<compile_context>
chip_gen: v7x
topology: tpu7x:2x2x1
jax: 0.10.0
libtpu: 0.0.40
codegen_flags: <defaults>
</compile_context>

<pallas_src>
import functools

import jax
import jax.numpy as jnp
import numpy as np
from jax import lax
from jax.experimental import pallas as pl
from jax.experimental.pallas import tpu as pltpu


# Nature-DQN conv-stack constants (the fused kernel is specialised to this stack).
_K1, _S1, _C1 = 8, 4, 32
_K2, _S2, _C2 = 4, 2, 64
_K3, _S3, _C3 = 3, 1, 64


def _conv_geometry(H, W):
    oh1, ow1 = (H - _K1) // _S1 + 1, (W - _K1) // _S1 + 1
    oh2, ow2 = (oh1 - _K2) // _S2 + 1, (ow1 - _K2) // _S2 + 1
    oh3, ow3 = (oh2 - _K3) // _S3 + 1, (ow2 - _K3) // _S3 + 1
    return oh1, ow1, oh2, ow2, oh3, ow3


# ------------------------------ fused kernel -------------------------------

def _dqn_fused_kernel(
    p1_ref, w1_ref, b1_ref, w2_ref, b2_ref, w3_ref, b3_ref,
    wf1_ref, bf1_ref, wf2_ref, bf2_ref,
    out_ref,
    a1_ref,
    *, nb, oh1, oh2, ow2, c2, c3, k2, s2,
):
    f32, bf16 = jnp.float32, jnp.bfloat16

    # conv1: one matmul per output row h against a block-diagonal weight slab,
    # so the output lanes are (w, c) and everything downstream is lane dense.
    for h in range(oh1):
        y1 = jnp.dot(p1_ref[h], w1_ref[...], preferred_element_type=f32)
        a1_ref[h] = jnp.maximum(y1 + b1_ref[...], 0.0).astype(bf16)

    # conv2 (kn2row: accumulate one dense matmul per kernel row) fused with
    # conv3, whose 3x3 kernel covers the entire 3x3 conv2 map (oh3 = ow3 = 1),
    # so the conv3 output is already the flattened fc1 input.
    y3 = jnp.zeros((nb, c3), f32)
    for oi in range(oh2):
        acc = jnp.zeros((nb, ow2 * c2), f32)
        for ki in range(k2):
            acc += jnp.dot(a1_ref[s2 * oi + ki], w2_ref[ki],
                           preferred_element_type=f32)
        y2 = jnp.maximum(acc + b2_ref[...], 0.0)                  # (nb, ow2*c2)
        y3 += jnp.dot(y2.astype(bf16), w3_ref[oi], preferred_element_type=f32)
    y3 = jnp.maximum(y3 + b3_ref[...], 0.0)                       # (nb, c3)

    # fc1 + fc2; the hidden layer never leaves the kernel, the only HBM store
    # is the lane-padded (nb, 128) output block.
    hid = jnp.dot(y3.astype(bf16), wf1_ref[...], preferred_element_type=f32)
    hid = jnp.maximum(hid + bf1_ref[...], 0.0)
    out = jnp.dot(hid.astype(bf16), wf2_ref[...], preferred_element_type=f32)
    out_ref[...] = (out + bf2_ref[...]).astype(out_ref.dtype)


# -------------------------- wrapper-side plumbing ---------------------------

def _conv1_patches(x_nhwc, oh, ow):
    """(N, H, W, C) -> (oh, N, ow*K1*K1*C); lanes ordered (w, ki, kj, c)."""
    taps = []
    for ki in range(_K1):
        for kj in range(_K1):
            taps.append(x_nhwc[:, ki:ki + _S1 * oh:_S1, kj:kj + _S1 * ow:_S1, :])
    p = jnp.stack(taps, axis=3)                    # (N, oh, ow, K1*K1, C)
    n, _, _, kk, c = p.shape
    p = jnp.transpose(p, (1, 0, 2, 3, 4))          # (oh, N, ow, K1*K1, C)
    return p.reshape(oh, n, ow * kk * c)


def pack_dqn_params(params, input_shape, n_actions):
    """One-time re-layout of PyTorch-style parameters for the fused kernel."""
    bf16, f32 = jnp.bfloat16, jnp.float32
    cin, H, W = input_shape
    oh1, ow1, oh2, ow2, oh3, ow3 = _conv_geometry(H, W)
    # TODO(synk): kernel is specialised to geometries where conv3 covers the
    # whole conv2 map (e.g. 36x36 inputs); 84x84 Atari frames would need a
    # general spatial loop for conv2/conv3.
    assert oh3 == 1 and ow3 == 1, "fused kernel requires a 1x1 conv3 output map"

    kd1 = _K1 * _K1 * cin

    def conv_pack(wt):                 # (Cout,Cin,KH,KW) -> (KH*KW*Cin, Cout)
        co, ci, kh, kw = wt.shape
        return wt.transpose(2, 3, 1, 0).reshape(kh * kw * ci, co).astype(f32)

    # conv1: block-diagonal slab so one matmul emits a whole output row with
    # lanes ordered (w, c).
    w1_mat = conv_pack(params["w1"])                       # (kd1, C1)
    w1_big = jnp.zeros((ow1 * kd1, ow1 * _C1), f32)
    for w in range(ow1):
        w1_big = w1_big.at[w * kd1:(w + 1) * kd1, w * _C1:(w + 1) * _C1].set(w1_mat)
    b1_big = jnp.tile(params["b1"].astype(f32), ow1).reshape(1, ow1 * _C1)

    # conv2: one (ow1*C1, ow2*C2) slab per kernel row ki (kn2row); each tap kj
    # of w2 is scattered into the (input-w, output-oj) block it feeds.
    w2 = params["w2"].astype(f32)                          # (C2, C1, K2, K2)
    w2_big = jnp.zeros((_K2, ow1 * _C1, ow2 * _C2), f32)
    for ki in range(_K2):
        for oj in range(ow2):
            for kj in range(_K2):
                w_in = _S2 * oj + kj
                w2_big = w2_big.at[
                    ki, w_in * _C1:(w_in + 1) * _C1, oj * _C2:(oj + 1) * _C2
                ].set(w2[:, :, ki, kj].T)
    b2_big = jnp.tile(params["b2"].astype(f32), ow2).reshape(1, ow2 * _C2)

    # conv3: one (ow2*C2, C3) slab per conv2 output row (= conv3 kernel row).
    w3 = params["w3"].astype(f32)                          # (C3, C2, K3, K3)
    w3_big = jnp.zeros((oh2, ow2 * _C2, _C3), f32)
    for oi in range(oh2):
        for oj in range(ow2):
            w3_big = w3_big.at[oi, oj * _C2:(oj + 1) * _C2, :].set(w3[:, :, oi, oj].T)
    b3 = params["b3"].reshape(1, _C3).astype(f32)

    # fc1/fc2: with a 1x1 conv3 map the NCHW flatten is just the channel axis.
    wf1 = params["fc1_w"].T.astype(f32)                    # (C3, hidden)
    bf1 = params["fc1_b"].reshape(1, -1).astype(f32)
    hidden = wf1.shape[1]
    npad = ((n_actions + 127) // 128) * 128
    wf2 = jnp.zeros((hidden, npad), f32).at[:, :n_actions].set(params["fc2_w"].T)
    bf2 = jnp.zeros((1, npad), f32).at[:, :n_actions].set(params["fc2_b"])

    return {
        "w1": w1_big.astype(bf16), "b1": b1_big,
        "w2": w2_big.astype(bf16), "b2": b2_big,
        "w3": w3_big.astype(bf16), "b3": b3,
        "wf1": wf1.astype(bf16), "bf1": bf1,
        "wf2": wf2.astype(bf16), "bf2": bf2,
    }


def _pick_batch_tile(n, samples_per_tile):
    """Batch tile: multiple of 8, >= 2 grid steps when the batch allows it."""
    spt = max(8, samples_per_tile - samples_per_tile % 8)
    if n < 16:
        nb = n                                   # single tile (full-array block)
    elif n <= spt:
        nb = (((n + 1) // 2) + 7) // 8 * 8       # split so both v7x TCs get work
    else:
        nb = spt
    padded_n = ((n + nb - 1) // nb) * nb
    return nb, padded_n


def dqn_forward_pallas(packed, x, *, n_actions, samples_per_tile=64):
    """x: (N, C, H, W) float32 -> (N, n_actions) float32."""
    n, cin, H, W = x.shape
    oh1, ow1, oh2, ow2, oh3, ow3 = _conv_geometry(H, W)
    assert oh3 == 1 and ow3 == 1, "fused kernel requires a 1x1 conv3 output map"
    kd1 = _K1 * _K1 * cin
    hidden = packed["wf1"].shape[1]
    npad = packed["wf2"].shape[1]
    assert packed["w1"].shape == (ow1 * kd1, ow1 * _C1), "packing/geometry mismatch"

    nb, padded_n = _pick_batch_tile(n, samples_per_tile)
    if padded_n != n:
        x = jnp.pad(x, ((0, padded_n - n), (0, 0), (0, 0), (0, 0)))

    # The only layout glue outside the kernel: NHWC + first-layer im2col, laid
    # out (oh1, N, ow1*kd1) so the kernel sees contiguous lane-dense blocks.
    x_nhwc = jnp.transpose(x, (0, 2, 3, 1)).astype(jnp.bfloat16)
    p1 = _conv1_patches(x_nhwc, oh1, ow1)          # (oh1, padded_n, ow1*kd1)

    kernel = functools.partial(
        _dqn_fused_kernel, nb=nb, oh1=oh1, oh2=oh2, ow2=ow2,
        c2=_C2, c3=_C3, k2=_K2, s2=_S2)

    out = pl.pallas_call(
        kernel,
        out_shape=jax.ShapeDtypeStruct((padded_n, npad), jnp.float32),
        grid=(padded_n // nb,),
        in_specs=[
            pl.BlockSpec((oh1, nb, ow1 * kd1), lambda i: (0, i, 0)),       # conv1 patches (batch tiled)
            pl.BlockSpec((ow1 * kd1, ow1 * _C1), lambda i: (0, 0)),        # w1 (resident)
            pl.BlockSpec((1, ow1 * _C1), lambda i: (0, 0)),                # b1
            pl.BlockSpec((_K2, ow1 * _C1, ow2 * _C2), lambda i: (0, 0, 0)),  # w2 slabs
            pl.BlockSpec((1, ow2 * _C2), lambda i: (0, 0)),                # b2
            pl.BlockSpec((oh2, ow2 * _C2, _C3), lambda i: (0, 0, 0)),      # w3 slabs
            pl.BlockSpec((1, _C3), lambda i: (0, 0)),                      # b3
            pl.BlockSpec((_C3, hidden), lambda i: (0, 0)),                 # fc1 w
            pl.BlockSpec((1, hidden), lambda i: (0, 0)),                   # fc1 b
            pl.BlockSpec((hidden, npad), lambda i: (0, 0)),                # fc2 w (lane padded)
            pl.BlockSpec((1, npad), lambda i: (0, 0)),                     # fc2 b (lane padded)
        ],
        out_specs=pl.BlockSpec((nb, npad), lambda i: (i, 0)),
        scratch_shapes=[pltpu.VMEM((oh1, nb, ow1 * _C1), jnp.bfloat16)],   # conv1 acts
        compiler_params=pltpu.CompilerParams(
            dimension_semantics=("parallel",),
            vmem_limit_bytes=32 * 1024 * 1024),
    )(p1, packed["w1"], packed["b1"], packed["w2"], packed["b2"],
      packed["w3"], packed["b3"], packed["wf1"], packed["bf1"],
      packed["wf2"], packed["bf2"])
    return out[:n, :n_actions]


# ------------------------------- DQNSolver init -----------------------------

def init_dqn_params(key, input_shape, n_actions):
    """Deterministic parameter init (PyTorch-style uniform(-1/sqrt(fan_in)))."""
    c_in, H, W = input_shape

    def uniform(key, shape, fan_in):
        bound = 1.0 / np.sqrt(fan_in)
        return jax.random.uniform(key, shape, jnp.float32, -bound, bound)

    ks = jax.random.split(key, 10)
    params = {}
    params["w1"] = uniform(ks[0], (32, c_in, 8, 8), c_in * 8 * 8)
    params["b1"] = uniform(ks[1], (32,), c_in * 8 * 8)
    params["w2"] = uniform(ks[2], (64, 32, 4, 4), 32 * 4 * 4)
    params["b2"] = uniform(ks[3], (64,), 32 * 4 * 4)
    params["w3"] = uniform(ks[4], (64, 64, 3, 3), 64 * 3 * 3)
    params["b3"] = uniform(ks[5], (64,), 64 * 3 * 3)

    oh1, ow1, oh2, ow2, oh3, ow3 = _conv_geometry(H, W)
    conv_out = 64 * oh3 * ow3

    params["fc1_w"] = uniform(ks[6], (512, conv_out), conv_out)   # (out, in)
    params["fc1_b"] = uniform(ks[7], (512,), conv_out)
    params["fc2_w"] = uniform(ks[8], (n_actions, 512), 512)
    params["fc2_b"] = uniform(ks[9], (n_actions,), 512)
    return params


# pure-JAX (f32) reference for a correctness sanity check
def dqn_forward_ref(params, x):
    dn = ("NCHW", "OIHW", "NCHW")

    def conv(x, w, b, s):
        y = lax.conv_general_dilated(x, w, (s, s), "VALID", dimension_numbers=dn)
        return jnp.maximum(y + b[None, :, None, None], 0.0)

    h = conv(x, params["w1"], params["b1"], 4)
    h = conv(h, params["w2"], params["b2"], 2)
    h = conv(h, params["w3"], params["b3"], 1)
    flat = h.reshape(x.shape[0], -1)
    h = jnp.maximum(flat @ params["fc1_w"].T + params["fc1_b"], 0.0)
    return h @ params["fc2_w"].T + params["fc2_b"]


if __name__ == "__main__":
    # batch=2, channels=4, 36x36 spatial: conv chain 36 -> 8 -> 3 -> 1
    # (smallest spatial size for which conv3's 3x3 kernel covers the full map).
    batch, n_actions = 2, 6
    input_shape = (4, 36, 36)

    key = jax.random.PRNGKey(0)
    pkey, xkey, xkey2 = jax.random.split(key, 3)
    params = init_dqn_params(pkey, input_shape, n_actions)
    packed = pack_dqn_params(params, input_shape, n_actions)

    fwd = jax.jit(functools.partial(dqn_forward_pallas, n_actions=n_actions))

    # Small batch: single grid step (full-array block exemption path).
    x = jax.random.normal(xkey, (batch,) + input_shape, dtype=jnp.float32)
    out = jax.block_until_ready(fwd(packed, x))
    assert out.shape == (batch, n_actions)
    assert out.dtype == jnp.float32
    ref = jax.block_until_ready(dqn_forward_ref(params, x))
    # Tolerance widened vs. the f32 reference because MXU operands are bf16
    # (accumulation/bias/ReLU are f32).
    np.testing.assert_allclose(np.asarray(out), np.asarray(ref), rtol=5e-2, atol=5e-2)

    # Larger batch exercising the multi-tile ("parallel") grid path.
    x2 = jax.random.normal(xkey2, (48,) + input_shape, dtype=jnp.float32)
    out2 = jax.block_until_ready(fwd(packed, x2))
    assert out2.shape == (48, n_actions)
    ref2 = jax.block_until_ready(dqn_forward_ref(params, x2))
    np.testing.assert_allclose(np.asarray(out2), np.asarray(ref2), rtol=5e-2, atol=5e-2)

    print("KERNEL_OK")
</pallas_src>

<mosaic_0001>
module attributes {stable_mosaic.version = 11 : i64} {
  func.func @_dqn_fused_kernel(%arg0: i32, %arg1: memref<8x2x2048xbf16, #tpu.memory_space<vmem>>, %arg2: memref<2048x256xbf16, #tpu.memory_space<vmem>>, %arg3: memref<1x256xf32, #tpu.memory_space<vmem>>, %arg4: memref<4x256x192xbf16, #tpu.memory_space<vmem>>, %arg5: memref<1x192xf32, #tpu.memory_space<vmem>>, %arg6: memref<3x192x64xbf16, #tpu.memory_space<vmem>>, %arg7: memref<1x64xf32, #tpu.memory_space<vmem>>, %arg8: memref<64x512xbf16, #tpu.memory_space<vmem>>, %arg9: memref<1x512xf32, #tpu.memory_space<vmem>>, %arg10: memref<512x128xbf16, #tpu.memory_space<vmem>>, %arg11: memref<1x128xf32, #tpu.memory_space<vmem>>, %arg12: memref<2x128xf32, #tpu.memory_space<vmem>>, %arg13: memref<8x2x256xbf16, #tpu.memory_space<vmem>>) attributes {dimension_semantics = [#tpu.dimension_semantics<parallel>], iteration_bounds = array<i64: 1>, scalar_prefetch = 0 : i64, scratch_operands = 1 : i64, tpu.core_type = #tpu.core_type<tc>, window_params = [{transform_indices = @transform_0, window_bounds = array<i64: 8, 2, 2048>}, {pipeline_mode = #tpu.pipeline_mode<synchronous>, transform_indices = @transform_1, window_bounds = array<i64: 2048, 256>}, {pipeline_mode = #tpu.pipeline_mode<synchronous>, transform_indices = @transform_2, window_bounds = array<i64: 1, 256>}, {pipeline_mode = #tpu.pipeline_mode<synchronous>, transform_indices = @transform_3, window_bounds = array<i64: 4, 256, 192>}, {pipeline_mode = #tpu.pipeline_mode<synchronous>, transform_indices = @transform_4, window_bounds = array<i64: 1, 192>}, {pipeline_mode = #tpu.pipeline_mode<synchronous>, transform_indices = @transform_5, window_bounds = array<i64: 3, 192, 64>}, {pipeline_mode = #tpu.pipeline_mode<synchronous>, transform_indices = @transform_6, window_bounds = array<i64: 1, 64>}, {pipeline_mode = #tpu.pipeline_mode<synchronous>, transform_indices = @transform_7, window_bounds = array<i64: 64, 512>}, {pipeline_mode = #tpu.pipeline_mode<synchronous>, transform_indices = @transform_8, window_bounds = array<i64: 1, 512>}, {pipeline_mode = #tpu.pipeline_mode<synchronous>, transform_indices = @transform_9, window_bounds = array<i64: 512, 128>}, {pipeline_mode = #tpu.pipeline_mode<synchronous>, transform_indices = @transform_10, window_bounds = array<i64: 1, 128>}, {transform_indices = @transform_11, window_bounds = array<i64: 2, 128>}]} {
    %c0 = arith.constant 0 : index
    %c0_0 = arith.constant 0 : index
    %c0_1 = arith.constant 0 : index
    %0 = vector.load %arg1[%c0, %c0_0, %c0_1] : memref<8x2x2048xbf16, #tpu.memory_space<vmem>>, vector<1x2x2048xbf16>
    %1 = vector.shape_cast %0 : vector<1x2x2048xbf16> to vector<2x2048xbf16>
    %c0_2 = arith.constant 0 : index
    %c0_3 = arith.constant 0 : index
    %2 = vector.load %arg2[%c0_2, %c0_3] : memref<2048x256xbf16, #tpu.memory_space<vmem>>, vector<2048x256xbf16>
    %cst = arith.constant dense<0.000000e+00> : vector<2x256xf32>
    %3 = tpu.matmul %1, %2, %cst {dimension_numbers = #tpu.dot_dimension_numbers<[1], [0], [0], [1], [0, 0, 1, 1], [], []>} : vector<2x2048xbf16>, vector<2048x256xbf16>, vector<2x256xf32> -> vector<2x256xf32>
    %c0_4 = arith.constant 0 : index
    %c0_5 = arith.constant 0 : index
    %4 = vector.load %arg3[%c0_4, %c0_5] : memref<1x256xf32, #tpu.memory_space<vmem>>, vector<1x256xf32>
    %5 = vector.broadcast %4 : vector<1x256xf32> to vector<2x256xf32>
    %6 = arith.addf %3, %5 : vector<2x256xf32>
    %cst_6 = arith.constant 0.000000e+00 : f32
    %7 = vector.broadcast %cst_6 : f32 to vector<2x256xf32>
    %8 = arith.maximumf %6, %7 : vector<2x256xf32>
    %9 = arith.truncf %8 : vector<2x256xf32> to vector<2x256xbf16>
    %c0_7 = arith.constant 0 : index
    %c0_8 = arith.constant 0 : index
    %c0_9 = arith.constant 0 : index
    %10 = vector.load %arg13[%c0_7, %c0_8, %c0_9] : memref<8x2x256xbf16, #tpu.memory_space<vmem>>, vector<1x2x256xbf16>
    %11 = vector.shape_cast %10 : vector<1x2x256xbf16> to vector<2x256xbf16>
    %12 = vector.shape_cast %9 : vector<2x256xbf16> to vector<1x2x256xbf16>
    tpu.vector_store %arg13[%c0_7, %c0_8, %c0_9], %12 {strides = array<i32>} : memref<8x2x256xbf16, #tpu.memory_space<vmem>>, vector<1x2x256xbf16>,
    %c1 = arith.constant 1 : index
    %c0_10 = arith.constant 0 : index
    %c0_11 = arith.constant 0 : index
    %13 = vector.load %arg1[%c1, %c0_10, %c0_11] : memref<8x2x2048xbf16, #tpu.memory_space<vmem>>, vector<1x2x2048xbf16>
    %14 = vector.shape_cast %13 : vector<1x2x2048xbf16> to vector<2x2048xbf16>
    %c0_12 = arith.constant 0 : index
    %c0_13 = arith.constant 0 : index
    %15 = vector.load %arg2[%c0_12, %c0_13] : memref<2048x256xbf16, #tpu.memory_space<vmem>>, vector<2048x256xbf16>
    %cst_14 = arith.constant dense<0.000000e+00> : vector<2x256xf32>
    %16 = tpu.matmul %14, %15, %cst_14 {dimension_numbers = #tpu.dot_dimension_numbers<[1], [0], [0], [1], [0, 0, 1, 1], [], []>} : vector<2x2048xbf16>, vector<2048x256xbf16>, vector<2x256xf32> -> vector<2x256xf32>
    %c0_15 = arith.constant 0 : index
    %c0_16 = arith.constant 0 : index
    %17 = vector.load %arg3[%c0_15, %c0_16] : memref<1x256xf32, #tpu.memory_space<vmem>>, vector<1x256xf32>
    %18 = vector.broadcast %17 : vector<1x256xf32> to vector<2x256xf32>
    %19 = arith.addf %16, %18 : vector<2x256xf32>
    %cst_17 = arith.constant 0.000000e+00 : f32
    %20 = vector.broadcast %cst_17 : f32 to vector<2x256xf32>
    %21 = arith.maximumf %19, %20 : vector<2x256xf32>
    %22 = arith.truncf %21 : vector<2x256xf32> to vector<2x256xbf16>
    %c1_18 = arith.constant 1 : index
    %c0_19 = arith.constant 0 : index
    %c0_20 = arith.constant 0 : index
    %23 = vector.load %arg13[%c1_18, %c0_19, %c0_20] : memref<8x2x256xbf16, #tpu.memory_space<vmem>>, vector<1x2x256xbf16>
    %24 = vector.shape_cast %23 : vector<1x2x256xbf16> to vector<2x256xbf16>
    %25 = vector.shape_cast %22 : vector<2x256xbf16> to vector<1x2x256xbf16>
    tpu.vector_store %arg13[%c1_18, %c0_19, %c0_20], %25 {strides = array<i32>} : memref<8x2x256xbf16, #tpu.memory_space<vmem>>, vector<1x2x256xbf16>,
    %c2 = arith.constant 2 : index
    %c0_21 = arith.constant 0 : index
    %c0_22 = arith.constant 0 : index
    %26 = vector.load %arg1[%c2, %c0_21, %c0_22] : memref<8x2x2048xbf16, #tpu.memory_space<vmem>>, vector<1x2x2048xbf16>
    %27 = vector.shape_cast %26 : vector<1x2x2048xbf16> to vector<2x2048xbf16>
    %c0_23 = arith.constant 0 : index
    %c0_24 = arith.constant 0 : index
    %28 = vector.load %arg2[%c0_23, %c0_24] : memref<2048x256xbf16, #tpu.memory_space<vmem>>, vector<2048x256xbf16>
    %cst_25 = arith.constant dense<0.000000e+00> : vector<2x256xf32>
    %29 = tpu.matmul %27, %28, %cst_25 {dimension_numbers = #tpu.dot_dimension_numbers<[1], [0], [0], [1], [0, 0, 1, 1], [], []>} : vector<2x2048xbf16>, vector<2048x256xbf16>, vector<2x256xf32> -> vector<2x256xf32>
    %c0_26 = arith.constant 0 : index
    %c0_27 = arith.constant 0 : index
    %30 = vector.load %arg3[%c0_26, %c0_27] : memref<1x256xf32, #tpu.memory_space<vmem>>, vector<1x256xf32>
    %31 = vector.broadcast %30 : vector<1x256xf32> to vector<2x256xf32>
    %32 = arith.addf %29, %31 : vector<2x256xf32>
    %cst_28 = arith.constant 0.000000e+00 : f32
    %33 = vector.broadcast %cst_28 : f32 to vector<2x256xf32>
    %34 = arith.maximumf %32, %33 : vector<2x256xf32>
    %35 = arith.truncf %34 : vector<2x256xf32> to vector<2x256xbf16>
    %c2_29 = arith.constant 2 : index
    %c0_30 = arith.constant 0 : index
    %c0_31 = arith.constant 0 : index
    %36 = vector.load %arg13[%c2_29, %c0_30, %c0_31] : memref<8x2x256xbf16, #tpu.memory_space<vmem>>, vector<1x2x256xbf16>
    %37 = vector.shape_cast %36 : vector<1x2x256xbf16> to vector<2x256xbf16>
    %38 = vector.shape_cast %35 : vector<2x256xbf16> to vector<1x2x256xbf16>
    tpu.vector_store %arg13[%c2_29, %c0_30, %c0_31], %38 {strides = array<i32>} : memref<8x2x256xbf16, #tpu.memory_space<vmem>>, vector<1x2x256xbf16>,
    %c3 = arith.constant 3 : index
    %c0_32 = arith.constant 0 : index
    %c0_33 = arith.constant 0 : index
    %39 = vector.load %arg1[%c3, %c0_32, %c0_33] : memref<8x2x2048xbf16, #tpu.memory_space<vmem>>, vector<1x2x2048xbf16>
    %40 = vector.shape_cast %39 : vector<1x2x2048xbf16> to vector<2x2048xbf16>
    %c0_34 = arith.constant 0 : index
    %c0_35 = arith.constant 0 : index
    %41 = vector.load %arg2[%c0_34, %c0_35] : memref<2048x256xbf16, #tpu.memory_space<vmem>>, vector<2048x256xbf16>
    %cst_36 = arith.constant dense<0.000000e+00> : vector<2x256xf32>
    %42 = tpu.matmul %40, %41, %cst_36 {dimension_numbers = #tpu.dot_dimension_numbers<[1], [0], [0], [1], [0, 0, 1, 1], [], []>} : vector<2x2048xbf16>, vector<2048x256xbf16>, vector<2x256xf32> -> vector<2x256xf32>
    %c0_37 = arith.constant 0 : index
    %c0_38 = arith.constant 0 : index
    %43 = vector.load %arg3[%c0_37, %c0_38] : memref<1x256xf32, #tpu.memory_space<vmem>>, vector<1x256xf32>
    %44 = vector.broadcast %43 : vector<1x256xf32> to vector<2x256xf32>
    %45 = arith.addf %42, %44 : vector<2x256xf32>
    %cst_39 = arith.constant 0.000000e+00 : f32
    %46 = vector.broadcast %cst_39 : f32 to vector<2x256xf32>
    %47 = arith.maximumf %45, %46 : vector<2x256xf32>
    %48 = arith.truncf %47 : vector<2x256xf32> to vector<2x256xbf16>
    %c3_40 = arith.constant 3 : index
    %c0_41 = arith.constant 0 : index
    %c0_42 = arith.constant 0 : index
    %49 = vector.load %arg13[%c3_40, %c0_41, %c0_42] : memref<8x2x256xbf16, #tpu.memory_space<vmem>>, vector<1x2x256xbf16>
    %50 = vector.shape_cast %49 : vector<1x2x256xbf16> to vector<2x256xbf16>
    %51 = vector.shape_cast %48 : vector<2x256xbf16> to vector<1x2x256xbf16>
    tpu.vector_store %arg13[%c3_40, %c0_41, %c0_42], %51 {strides = array<i32>} : memref<8x2x256xbf16, #tpu.memory_space<vmem>>, vector<1x2x256xbf16>,
    %c4 = arith.constant 4 : index
    %c0_43 = arith.constant 0 : index
    %c0_44 = arith.constant 0 : index
    %52 = vector.load %arg1[%c4, %c0_43, %c0_44] : memref<8x2x2048xbf16, #tpu.memory_space<vmem>>, vector<1x2x2048xbf16>
    %53 = vector.shape_cast %52 : vector<1x2x2048xbf16> to vector<2x2048xbf16>
    %c0_45 = arith.constant 0 : index
    %c0_46 = arith.constant 0 : index
    %54 = vector.load %arg2[%c0_45, %c0_46] : memref<2048x256xbf16, #tpu.memory_space<vmem>>, vector<2048x256xbf16>
    %cst_47 = arith.constant dense<0.000000e+00> : vector<2x256xf32>
    %55 = tpu.matmul %53, %54, %cst_47 {dimension_numbers = #tpu.dot_dimension_numbers<[1], [0], [0], [1], [0, 0, 1, 1], [], []>} : vector<2x2048xbf16>, vector<2048x256xbf16>, vector<2x256xf32> -> vector<2x256xf32>
    %c0_48 = arith.constant 0 : index
    %c0_49 = arith.constant 0 : index
    %56 = vector.load %arg3[%c0_48, %c0_49] : memref<1x256xf32, #tpu.memory_space<vmem>>, vector<1x256xf32>
    %57 = vector.broadcast %56 : vector<1x256xf32> to vector<2x256xf32>
    %58 = arith.addf %55, %57 : vector<2x256xf32>
    %cst_50 = arith.constant 0.000000e+00 : f32
    %59 = vector.broadcast %cst_50 : f32 to vector<2x256xf32>
    %60 = arith.maximumf %58, %59 : vector<2x256xf32>
    %61 = arith.truncf %60 : vector<2x256xf32> to vector<2x256xbf16>
    %c4_51 = arith.constant 4 : index
    %c0_52 = arith.constant 0 : index
    %c0_53 = arith.constant 0 : index
    %62 = vector.load %arg13[%c4_51, %c0_52, %c0_53] : memref<8x2x256xbf16, #tpu.memory_space<vmem>>, vector<1x2x256xbf16>
    %63 = vector.shape_cast %62 : vector<1x2x256xbf16> to vector<2x256xbf16>
    %64 = vector.shape_cast %61 : vector<2x256xbf16> to vector<1x2x256xbf16>
    tpu.vector_store %arg13[%c4_51, %c0_52, %c0_53], %64 {strides = array<i32>} : memref<8x2x256xbf16, #tpu.memory_space<vmem>>, vector<1x2x256xbf16>,
    %c5 = arith.constant 5 : index
    %c0_54 = arith.constant 0 : index
    %c0_55 = arith.constant 0 : index
    %65 = vector.load %arg1[%c5, %c0_54, %c0_55] : memref<8x2x2048xbf16, #tpu.memory_space<vmem>>, vector<1x2x2048xbf16>
    %66 = vector.shape_cast %65 : vector<1x2x2048xbf16> to vector<2x2048xbf16>
    %c0_56 = arith.constant 0 : index
    %c0_57 = arith.constant 0 : index
    %67 = vector.load %arg2[%c0_56, %c0_57] : memref<2048x256xbf16, #tpu.memory_space<vmem>>, vector<2048x256xbf16>
    %cst_58 = arith.constant dense<0.000000e+00> : vector<2x256xf32>
    %68 = tpu.matmul %66, %67, %cst_58 {dimension_numbers = #tpu.dot_dimension_numbers<[1], [0], [0], [1], [0, 0, 1, 1], [], []>} : vector<2x2048xbf16>, vector<2048x256xbf16>, vector<2x256xf32> -> vector<2x256xf32>
    %c0_59 = arith.constant 0 : index
    %c0_60 = arith.constant 0 : index
    %69 = vector.load %arg3[%c0_59, %c0_60] : memref<1x256xf32, #tpu.memory_space<vmem>>, vector<1x256xf32>
    %70 = vector.broadcast %69 : vector<1x256xf32> to vector<2x256xf32>
    %71 = arith.addf %68, %70 : vector<2x256xf32>
    %cst_61 = arith.constant 0.000000e+00 : f32
    %72 = vector.broadcast %cst_61 : f32 to vector<2x256xf32>
    %73 = arith.maximumf %71, %72 : vector<2x256xf32>
    %74 = arith.truncf %73 : vector<2x256xf32> to vector<2x256xbf16>
    %c5_62 = arith.constant 5 : index
    %c0_63 = arith.constant 0 : index
    %c0_64 = arith.constant 0 : index
    %75 = vector.load %arg13[%c5_62, %c0_63, %c0_64] : memref<8x2x256xbf16, #tpu.memory_space<vmem>>, vector<1x2x256xbf16>
    %76 = vector.shape_cast %75 : vector<1x2x256xbf16> to vector<2x256xbf16>
    %77 = vector.shape_cast %74 : vector<2x256xbf16> to vector<1x2x256xbf16>
    tpu.vector_store %arg13[%c5_62, %c0_63, %c0_64], %77 {strides = array<i32>} : memref<8x2x256xbf16, #tpu.memory_space<vmem>>, vector<1x2x256xbf16>,
    %c6 = arith.constant 6 : index
    %c0_65 = arith.constant 0 : index
    %c0_66 = arith.constant 0 : index
    %78 = vector.load %arg1[%c6, %c0_65, %c0_66] : memref<8x2x2048xbf16, #tpu.memory_space<vmem>>, vector<1x2x2048xbf16>
    %79 = vector.shape_cast %78 : vector<1x2x2048xbf16> to vector<2x2048xbf16>
    %c0_67 = arith.constant 0 : index
    %c0_68 = arith.constant 0 : index
    %80 = vector.load %arg2[%c0_67, %c0_68] : memref<2048x256xbf16, #tpu.memory_space<vmem>>, vector<2048x256xbf16>
    %cst_69 = arith.constant dense<0.000000e+00> : vector<2x256xf32>
    %81 = tpu.matmul %79, %80, %cst_69 {dimension_numbers = #tpu.dot_dimension_numbers<[1], [0], [0], [1], [0, 0, 1, 1], [], []>} : vector<2x2048xbf16>, vector<2048x256xbf16>, vector<2x256xf32> -> vector<2x256xf32>
    %c0_70 = arith.constant 0 : index
    %c0_71 = arith.constant 0 : index
    %82 = vector.load %arg3[%c0_70, %c0_71] : memref<1x256xf32, #tpu.memory_space<vmem>>, vector<1x256xf32>
    %83 = vector.broadcast %82 : vector<1x256xf32> to vector<2x256xf32>
    %84 = arith.addf %81, %83 : vector<2x256xf32>
    %cst_72 = arith.constant 0.000000e+00 : f32
    %85 = vector.broadcast %cst_72 : f32 to vector<2x256xf32>
    %86 = arith.maximumf %84, %85 : vector<2x256xf32>
    %87 = arith.truncf %86 : vector<2x256xf32> to vector<2x256xbf16>
    %c6_73 = arith.constant 6 : index
    %c0_74 = arith.constant 0 : index
    %c0_75 = arith.constant 0 : index
    %88 = vector.load %arg13[%c6_73, %c0_74, %c0_75] : memref<8x2x256xbf16, #tpu.memory_space<vmem>>, vector<1x2x256xbf16>
    %89 = vector.shape_cast %88 : vector<1x2x256xbf16> to vector<2x256xbf16>
    %90 = vector.shape_cast %87 : vector<2x256xbf16> to vector<1x2x256xbf16>
    tpu.vector_store %arg13[%c6_73, %c0_74, %c0_75], %90 {strides = array<i32>} : memref<8x2x256xbf16, #tpu.memory_space<vmem>>, vector<1x2x256xbf16>,
    %c7 = arith.constant 7 : index
    %c0_76 = arith.constant 0 : index
    %c0_77 = arith.constant 0 : index
    %91 = vector.load %arg1[%c7, %c0_76, %c0_77] : memref<8x2x2048xbf16, #tpu.memory_space<vmem>>, vector<1x2x2048xbf16>
    %92 = vector.shape_cast %91 : vector<1x2x2048xbf16> to vector<2x2048xbf16>
    %c0_78 = arith.constant 0 : index
    %c0_79 = arith.constant 0 : index
    %93 = vector.load %arg2[%c0_78, %c0_79] : memref<2048x256xbf16, #tpu.memory_space<vmem>>, vector<2048x256xbf16>
    %cst_80 = arith.constant dense<0.000000e+00> : vector<2x256xf32>
    %94 = tpu.matmul %92, %93, %cst_80 {dimension_numbers = #tpu.dot_dimension_numbers<[1], [0], [0], [1], [0, 0, 1, 1], [], []>} : vector<2x2048xbf16>, vector<2048x256xbf16>, vector<2x256xf32> -> vector<2x256xf32>
    %c0_81 = arith.constant 0 : index
    %c0_82 = arith.constant 0 : index
    %95 = vector.load %arg3[%c0_81, %c0_82] : memref<1x256xf32, #tpu.memory_space<vmem>>, vector<1x256xf32>
    %96 = vector.broadcast %95 : vector<1x256xf32> to vector<2x256xf32>
    %97 = arith.addf %94, %96 : vector<2x256xf32>
    %cst_83 = arith.constant 0.000000e+00 : f32
    %98 = vector.broadcast %cst_83 : f32 to vector<2x256xf32>
    %99 = arith.maximumf %97, %98 : vector<2x256xf32>
    %100 = arith.truncf %99 : vector<2x256xf32> to vector<2x256xbf16>
    %c7_84 = arith.constant 7 : index
    %c0_85 = arith.constant 0 : index
    %c0_86 = arith.constant 0 : index
    %101 = vector.load %arg13[%c7_84, %c0_85, %c0_86] : memref<8x2x256xbf16, #tpu.memory_space<vmem>>, vector<1x2x256xbf16>
    %102 = vector.shape_cast %101 : vector<1x2x256xbf16> to vector<2x256xbf16>
    %103 = vector.shape_cast %100 : vector<2x256xbf16> to vector<1x2x256xbf16>
    tpu.vector_store %arg13[%c7_84, %c0_85, %c0_86], %103 {strides = array<i32>} : memref<8x2x256xbf16, #tpu.memory_space<vmem>>, vector<1x2x256xbf16>,
    %cst_87 = arith.constant 0.000000e+00 : f32
    %104 = vector.broadcast %cst_87 : f32 to vector<2x64xf32>
    %cst_88 = arith.constant 0.000000e+00 : f32
    %105 = vector.broadcast %cst_88 : f32 to vector<2x192xf32>
    %c0_89 = arith.constant 0 : index
    %c0_90 = arith.constant 0 : index
    %c0_91 = arith.constant 0 : index
    %106 = vector.load %arg13[%c0_89, %c0_90, %c0_91] : memref<8x2x256xbf16, #tpu.memory_space<vmem>>, vector<1x2x256xbf16>
    %107 = vector.shape_cast %106 : vector<1x2x256xbf16> to vector<2x256xbf16>
    %c0_92 = arith.constant 0 : index
    %c0_93 = arith.constant 0 : index
    %c0_94 = arith.constant 0 : index
    %108 = vector.load %arg4[%c0_92, %c0_93, %c0_94] : memref<4x256x192xbf16, #tpu.memory_space<vmem>>, vector<1x256x192xbf16>
    %109 = vector.shape_cast %108 : vector<1x256x192xbf16> to vector<256x192xbf16>
    %cst_95 = arith.constant dense<0.000000e+00> : vector<2x192xf32>
    %110 = tpu.matmul %107, %109, %cst_95 {dimension_numbers = #tpu.dot_dimension_numbers<[1], [0], [0], [1], [0, 0, 1, 1], [], []>} : vector<2x256xbf16>, vector<256x192xbf16>, vector<2x192xf32> -> vector<2x192xf32>
    %111 = arith.addf %105, %110 : vector<2x192xf32>
    %c1_96 = arith.constant 1 : index
    %c0_97 = arith.constant 0 : index
    %c0_98 = arith.constant 0 : index
    %112 = vector.load %arg13[%c1_96, %c0_97, %c0_98] : memref<8x2x256xbf16, #tpu.memory_space<vmem>>, vector<1x2x256xbf16>
    %113 = vector.shape_cast %112 : vector<1x2x256xbf16> to vector<2x256xbf16>
    %c1_99 = arith.constant 1 : index
    %c0_100 = arith.constant 0 : index
    %c0_101 = arith.constant 0 : index
    %114 = vector.load %arg4[%c1_99, %c0_100, %c0_101] : memref<4x256x192xbf16, #tpu.memory_space<vmem>>, vector<1x256x192xbf16>
    %115 = vector.shape_cast %114 : vector<1x256x192xbf16> to vector<256x192xbf16>
    %cst_102 = arith.constant dense<0.000000e+00> : vector<2x192xf32>
    %116 = tpu.matmul %113, %115, %cst_102 {dimension_numbers = #tpu.dot_dimension_numbers<[1], [0], [0], [1], [0, 0, 1, 1], [], []>} : vector<2x256xbf16>, vector<256x192xbf16>, vector<2x192xf32> -> vector<2x192xf32>
    %117 = arith.addf %111, %116 : vector<2x192xf32>
    %c2_103 = arith.constant 2 : index
    %c0_104 = arith.constant 0 : index
    %c0_105 = arith.constant 0 : index
    %118 = vector.load %arg13[%c2_103, %c0_104, %c0_105] : memref<8x2x256xbf16, #tpu.memory_space<vmem>>, vector<1x2x256xbf16>
    %119 = vector.shape_cast %118 : vector<1x2x256xbf16> to vector<2x256xbf16>
    %c2_106 = arith.constant 2 : index
    %c0_107 = arith.constant 0 : index
    %c0_108 = arith.constant 0 : index
    %120 = vector.load %arg4[%c2_106, %c0_107, %c0_108] : memref<4x256x192xbf16, #tpu.memory_space<vmem>>, vector<1x256x192xbf16>
    %121 = vector.shape_cast %120 : vector<1x256x192xbf16> to vector<256x192xbf16>
    %cst_109 = arith.constant dense<0.000000e+00> : vector<2x192xf32>
    %122 = tpu.matmul %119, %121, %cst_109 {dimension_numbers = #tpu.dot_dimension_numbers<[1], [0], [0], [1], [0, 0, 1, 1], [], []>} : vector<2x256xbf16>, vector<256x192xbf16>, vector<2x192xf32> -> vector<2x192xf32>
    %123 = arith.addf %117, %122 : vector<2x192xf32>
    %c3_110 = arith.constant 3 : index
    %c0_111 = arith.constant 0 : index
    %c0_112 = arith.constant 0 : index
    %124 = vector.load %arg13[%c3_110, %c0_111, %c0_112] : memref<8x2x256xbf16, #tpu.memory_space<vmem>>, vector<1x2x256xbf16>
    %125 = vector.shape_cast %124 : vector<1x2x256xbf16> to vector<2x256xbf16>
    %c3_113 = arith.constant 3 : index
    %c0_114 = arith.constant 0 : index
    %c0_115 = arith.constant 0 : index
    %126 = vector.load %arg4[%c3_113, %c0_114, %c0_115] : memref<4x256x192xbf16, #tpu.memory_space<vmem>>, vector<1x256x192xbf16>
    %127 = vector.shape_cast %126 : vector<1x256x192xbf16> to vector<256x192xbf16>
    %cst_116 = arith.constant dense<0.000000e+00> : vector<2x192xf32>
    %128 = tpu.matmul %125, %127, %cst_116 {dimension_numbers = #tpu.dot_dimension_numbers<[1], [0], [0], [1], [0, 0, 1, 1], [], []>} : vector<2x256xbf16>, vector<256x192xbf16>, vector<2x192xf32> -> vector<2x192xf32>
    %129 = arith.addf %123, %128 : vector<2x192xf32>
    %c0_117 = arith.constant 0 : index
    %c0_118 = arith.constant 0 : index
    %130 = vector.load %arg5[%c0_117, %c0_118] : memref<1x192xf32, #tpu.memory_space<vmem>>, vector<1x192xf32>
    %131 = vector.broadcast %130 : vector<1x192xf32> to vector<2x192xf32>
    %132 = arith.addf %129, %131 : vector<2x192xf32>
    %cst_119 = arith.constant 0.000000e+00 : f32
    %133 = vector.broadcast %cst_119 : f32 to vector<2x192xf32>
    %134 = arith.maximumf %132, %133 : vector<2x192xf32>
    %135 = arith.truncf %134 : vector<2x192xf32> to vector<2x192xbf16>
    %c0_120 = arith.constant 0 : index
    %c0_121 = arith.constant 0 : index
    %c0_122 = arith.constant 0 : index
    %136 = vector.load %arg6[%c0_120, %c0_121, %c0_122] : memref<3x192x64xbf16, #tpu.memory_space<vmem>>, vector<1x192x64xbf16>
    %137 = vector.shape_cast %136 : vector<1x192x64xbf16> to vector<192x64xbf16>
    %cst_123 = arith.constant dense<0.000000e+00> : vector<2x64xf32>
    %138 = tpu.matmul %135, %137, %cst_123 {dimension_numbers = #tpu.dot_dimension_numbers<[1], [0], [0], [1], [0, 0, 1, 1], [], []>} : vector<2x192xbf16>, vector<192x64xbf16>, vector<2x64xf32> -> vector<2x64xf32>
    %139 = arith.addf %104, %138 : vector<2x64xf32>
    %cst_124 = arith.constant 0.000000e+00 : f32
    %140 = vector.broadcast %cst_124 : f32 to vector<2x192xf32>
    %c2_125 = arith.constant 2 : index
    %c0_126 = arith.constant 0 : index
    %c0_127 = arith.constant 0 : index
    %141 = vector.load %arg13[%c2_125, %c0_126, %c0_127] : memref<8x2x256xbf16, #tpu.memory_space<vmem>>, vector<1x2x256xbf16>
    %142 = vector.shape_cast %141 : vector<1x2x256xbf16> to vector<2x256xbf16>
    %c0_128 = arith.constant 0 : index
    %c0_129 = arith.constant 0 : index
    %c0_130 = arith.constant 0 : index
    %143 = vector.load %arg4[%c0_128, %c0_129, %c0_130] : memref<4x256x192xbf16, #tpu.memory_space<vmem>>, vector<1x256x192xbf16>
    %144 = vector.shape_cast %143 : vector<1x256x192xbf16> to vector<256x192xbf16>
    %cst_131 = arith.constant dense<0.000000e+00> : vector<2x192xf32>
    %145 = tpu.matmul %142, %144, %cst_131 {dimension_numbers = #tpu.dot_dimension_numbers<[1], [0], [0], [1], [0, 0, 1, 1], [], []>} : vector<2x256xbf16>, vector<256x192xbf16>, vector<2x192xf32> -> vector<2x192xf32>
    %146 = arith.addf %140, %145 : vector<2x192xf32>
    %c3_132 = arith.constant 3 : index
    %c0_133 = arith.constant 0 : index
    %c0_134 = arith.constant 0 : index
    %147 = vector.load %arg13[%c3_132, %c0_133, %c0_134] : memref<8x2x256xbf16, #tpu.memory_space<vmem>>, vector<1x2x256xbf16>
    %148 = vector.shape_cast %147 : vector<1x2x256xbf16> to vector<2x256xbf16>
    %c1_135 = arith.constant 1 : index
    %c0_136 = arith.constant 0 : index
    %c0_137 = arith.constant 0 : index
    %149 = vector.load %arg4[%c1_135, %c0_136, %c0_137] : memref<4x256x192xbf16, #tpu.memory_space<vmem>>, vector<1x256x192xbf16>
    %150 = vector.shape_cast %149 : vector<1x256x192xbf16> to vector<256x192xbf16>
    %cst_138 = arith.constant dense<0.000000e+00> : vector<2x192xf32>
    %151 = tpu.matmul %148, %150, %cst_138 {dimension_numbers = #tpu.dot_dimension_numbers<[1], [0], [0], [1], [0, 0, 1, 1], [], []>} : vector<2x256xbf16>, vector<256x192xbf16>, vector<2x192xf32> -> vector<2x192xf32>
    %152 = arith.addf %146, %151 : vector<2x192xf32>
    %c4_139 = arith.constant 4 : index
    %c0_140 = arith.constant 0 : index
    %c0_141 = arith.constant 0 : index
    %153 = vector.load %arg13[%c4_139, %c0_140, %c0_141] : memref<8x2x256xbf16, #tpu.memory_space<vmem>>, vector<1x2x256xbf16>
    %154 = vector.shape_cast %153 : vector<1x2x256xbf16> to vector<2x256xbf16>
    %c2_142 = arith.constant 2 : index
    %c0_143 = arith.constant 0 : index
    %c0_144 = arith.constant 0 : index
    %155 = vector.load %arg4[%c2_142, %c0_143, %c0_144] : memref<4x256x192xbf16, #tpu.memory_space<vmem>>, vector<1x256x192xbf16>
    %156 = vector.shape_cast %155 : vector<1x256x192xbf16> to vector<256x192xbf16>
    %cst_145 = arith.constant dense<0.000000e+00> : vector<2x192xf32>
    %157 = tpu.matmul %154, %156, %cst_145 {dimension_numbers = #tpu.dot_dimension_numbers<[1], [0], [0], [1], [0, 0, 1, 1], [], []>} : vector<2x256xbf16>, vector<256x192xbf16>, vector<2x192xf32> -> vector<2x192xf32>
    %158 = arith.addf %152, %157 : vector<2x192xf32>
    %c5_146 = arith.constant 5 : index
    %c0_147 = arith.constant 0 : index
    %c0_148 = arith.constant 0 : index
    %159 = vector.load %arg13[%c5_146, %c0_147, %c0_148] : memref<8x2x256xbf16, #tpu.memory_space<vmem>>, vector<1x2x256xbf16>
    %160 = vector.shape_cast %159 : vector<1x2x256xbf16> to vector<2x256xbf16>
    %c3_149 = arith.constant 3 : index
    %c0_150 = arith.constant 0 : index
    %c0_151 = arith.constant 0 : index
    %161 = vector.load %arg4[%c3_149, %c0_150, %c0_151] : memref<4x256x192xbf16, #tpu.memory_space<vmem>>, vector<1x256x192xbf16>
    %162 = vector.shape_cast %161 : vector<1x256x192xbf16> to vector<256x192xbf16>
    %cst_152 = arith.constant dense<0.000000e+00> : vector<2x192xf32>
    %163 = tpu.matmul %160, %162, %cst_152 {dimension_numbers = #tpu.dot_dimension_numbers<[1], [0], [0], [1], [0, 0, 1, 1], [], []>} : vector<2x256xbf16>, vector<256x192xbf16>, vector<2x192xf32> -> vector<2x192xf32>
    %164 = arith.addf %158, %163 : vector<2x192xf32>
    %c0_153 = arith.constant 0 : index
    %c0_154 = arith.constant 0 : index
    %165 = vector.load %arg5[%c0_153, %c0_154] : memref<1x192xf32, #tpu.memory_space<vmem>>, vector<1x192xf32>
    %166 = vector.broadcast %165 : vector<1x192xf32> to vector<2x192xf32>
    %167 = arith.addf %164, %166 : vector<2x192xf32>
    %cst_155 = arith.constant 0.000000e+00 : f32
    %168 = vector.broadcast %cst_155 : f32 to vector<2x192xf32>
    %169 = arith.maximumf %167, %168 : vector<2x192xf32>
    %170 = arith.truncf %169 : vector<2x192xf32> to vector<2x192xbf16>
    %c1_156 = arith.constant 1 : index
    %c0_157 = arith.constant 0 : index
    %c0_158 = arith.constant 0 : index
    %171 = vector.load %arg6[%c1_156, %c0_157, %c0_158] : memref<3x192x64xbf16, #tpu.memory_space<vmem>>, vector<1x192x64xbf16>
    %172 = vector.shape_cast %171 : vector<1x192x64xbf16> to vector<192x64xbf16>
    %cst_159 = arith.constant dense<0.000000e+00> : vector<2x64xf32>
    %173 = tpu.matmul %170, %172, %cst_159 {dimension_numbers = #tpu.dot_dimension_numbers<[1], [0], [0], [1], [0, 0, 1, 1], [], []>} : vector<2x192xbf16>, vector<192x64xbf16>, vector<2x64xf32> -> vector<2x64xf32>
    %174 = arith.addf %139, %173 : vector<2x64xf32>
    %cst_160 = arith.constant 0.000000e+00 : f32
    %175 = vector.broadcast %cst_160 : f32 to vector<2x192xf32>
    %c4_161 = arith.constant 4 : index
    %c0_162 = arith.constant 0 : index
    %c0_163 = arith.constant 0 : index
    %176 = vector.load %arg13[%c4_161, %c0_162, %c0_163] : memref<8x2x256xbf16, #tpu.memory_space<vmem>>, vector<1x2x256xbf16>
    %177 = vector.shape_cast %176 : vector<1x2x256xbf16> to vector<2x256xbf16>
    %c0_164 = arith.constant 0 : index
    %c0_165 = arith.constant 0 : index
    %c0_166 = arith.constant 0 : index
    %178 = vector.load %arg4[%c0_164, %c0_165, %c0_166] : memref<4x256x192xbf16, #tpu.memory_space<vmem>>, vector<1x256x192xbf16>
    %179 = vector.shape_cast %178 : vector<1x256x192xbf16> to vector<256x192xbf16>
    %cst_167 = arith.constant dense<0.000000e+00> : vector<2x192xf32>
    %180 = tpu.matmul %177, %179, %cst_167 {dimension_numbers = #tpu.dot_dimension_numbers<[1], [0], [0], [1], [0, 0, 1, 1], [], []>} : vector<2x256xbf16>, vector<256x192xbf16>, vector<2x192xf32> -> vector<2x192xf32>
    %181 = arith.addf %175, %180 : vector<2x192xf32>
    %c5_168 = arith.constant 5 : index
    %c0_169 = arith.constant 0 : index
    %c0_170 = arith.constant 0 : index
    %182 = vector.load %arg13[%c5_168, %c0_169, %c0_170] : memref<8x2x256xbf16, #tpu.memory_space<vmem>>, vector<1x2x256xbf16>
    %183 = vector.shape_cast %182 : vector<1x2x256xbf16> to vector<2x256xbf16>
    %c1_171 = arith.constant 1 : index
    %c0_172 = arith.constant 0 : index
    %c0_173 = arith.constant 0 : index
    %184 = vector.load %arg4[%c1_171, %c0_172, %c0_173] : memref<4x256x192xbf16, #tpu.memory_space<vmem>>, vector<1x256x192xbf16>
    %185 = vector.shape_cast %184 : vector<1x256x192xbf16> to vector<256x192xbf16>
    %cst_174 = arith.constant dense<0.000000e+00> : vector<2x192xf32>
    %186 = tpu.matmul %183, %185, %cst_174 {dimension_numbers = #tpu.dot_dimension_numbers<[1], [0], [0], [1], [0, 0, 1, 1], [], []>} : vector<2x256xbf16>, vector<256x192xbf16>, vector<2x192xf32> -> vector<2x192xf32>
    %187 = arith.addf %181, %186 : vector<2x192xf32>
    %c6_175 = arith.constant 6 : index
    %c0_176 = arith.constant 0 : index
    %c0_177 = arith.constant 0 : index
    %188 = vector.load %arg13[%c6_175, %c0_176, %c0_177] : memref<8x2x256xbf16, #tpu.memory_space<vmem>>, vector<1x2x256xbf16>
    %189 = vector.shape_cast %188 : vector<1x2x256xbf16> to vector<2x256xbf16>
    %c2_178 = arith.constant 2 : index
    %c0_179 = arith.constant 0 : index
    %c0_180 = arith.constant 0 : index
    %190 = vector.load %arg4[%c2_178, %c0_179, %c0_180] : memref<4x256x192xbf16, #tpu.memory_space<vmem>>, vector<1x256x192xbf16>
    %191 = vector.shape_cast %190 : vector<1x256x192xbf16> to vector<256x192xbf16>
    %cst_181 = arith.constant dense<0.000000e+00> : vector<2x192xf32>
    %192 = tpu.matmul %189, %191, %cst_181 {dimension_numbers = #tpu.dot_dimension_numbers<[1], [0], [0], [1], [0, 0, 1, 1], [], []>} : vector<2x256xbf16>, vector<256x192xbf16>, vector<2x192xf32> -> vector<2x192xf32>
    %193 = arith.addf %187, %192 : vector<2x192xf32>
    %c7_182 = arith.constant 7 : index
    %c0_183 = arith.constant 0 : index
    %c0_184 = arith.constant 0 : index
    %194 = vector.load %arg13[%c7_182, %c0_183, %c0_184] : memref<8x2x256xbf16, #tpu.memory_space<vmem>>, vector<1x2x256xbf16>
    %195 = vector.shape_cast %194 : vector<1x2x256xbf16> to vector<2x256xbf16>
    %c3_185 = arith.constant 3 : index
    %c0_186 = arith.constant 0 : index
    %c0_187 = arith.constant 0 : index
    %196 = vector.load %arg4[%c3_185, %c0_186, %c0_187] : memref<4x256x192xbf16, #tpu.memory_space<vmem>>, vector<1x256x192xbf16>
    %197 = vector.shape_cast %196 : vector<1x256x192xbf16> to vector<256x192xbf16>
    %cst_188 = arith.constant dense<0.000000e+00> : vector<2x192xf32>
    %198 = tpu.matmul %195, %197, %cst_188 {dimension_numbers = #tpu.dot_dimension_numbers<[1], [0], [0], [1], [0, 0, 1, 1], [], []>} : vector<2x256xbf16>, vector<256x192xbf16>, vector<2x192xf32> -> vector<2x192xf32>
    %199 = arith.addf %193, %198 : vector<2x192xf32>
    %c0_189 = arith.constant 0 : index
    %c0_190 = arith.constant 0 : index
    %200 = vector.load %arg5[%c0_189, %c0_190] : memref<1x192xf32, #tpu.memory_space<vmem>>, vector<1x192xf32>
    %201 = vector.broadcast %200 : vector<1x192xf32> to vector<2x192xf32>
    %202 = arith.addf %199, %201 : vector<2x192xf32>
    %cst_191 = arith.constant 0.000000e+00 : f32
    %203 = vector.broadcast %cst_191 : f32 to vector<2x192xf32>
    %204 = arith.maximumf %202, %203 : vector<2x192xf32>
    %205 = arith.truncf %204 : vector<2x192xf32> to vector<2x192xbf16>
    %c2_192 = arith.constant 2 : index
    %c0_193 = arith.constant 0 : index
    %c0_194 = arith.constant 0 : index
    %206 = vector.load %arg6[%c2_192, %c0_193, %c0_194] : memref<3x192x64xbf16, #tpu.memory_space<vmem>>, vector<1x192x64xbf16>
    %207 = vector.shape_cast %206 : vector<1x192x64xbf16> to vector<192x64xbf16>
    %cst_195 = arith.constant dense<0.000000e+00> : vector<2x64xf32>
    %208 = tpu.matmul %205, %207, %cst_195 {dimension_numbers = #tpu.dot_dimension_numbers<[1], [0], [0], [1], [0, 0, 1, 1], [], []>} : vector<2x192xbf16>, vector<192x64xbf16>, vector<2x64xf32> -> vector<2x64xf32>
    %209 = arith.addf %174, %208 : vector<2x64xf32>
    %c0_196 = arith.constant 0 : index
    %c0_197 = arith.constant 0 : index
    %210 = vector.load %arg7[%c0_196, %c0_197] : memref<1x64xf32, #tpu.memory_space<vmem>>, vector<1x64xf32>
    %211 = vector.broadcast %210 : vector<1x64xf32> to vector<2x64xf32>
    %212 = arith.addf %209, %211 : vector<2x64xf32>
    %cst_198 = arith.constant 0.000000e+00 : f32
    %213 = vector.broadcast %cst_198 : f32 to vector<2x64xf32>
    %214 = arith.maximumf %212, %213 : vector<2x64xf32>
    %215 = arith.truncf %214 : vector<2x64xf32> to vector<2x64xbf16>
    %c0_199 = arith.constant 0 : index
    %c0_200 = arith.constant 0 : index
    %216 = vector.load %arg8[%c0_199, %c0_200] : memref<64x512xbf16, #tpu.memory_space<vmem>>, vector<64x512xbf16>
    %cst_201 = arith.constant dense<0.000000e+00> : vector<2x512xf32>
    %217 = tpu.matmul %215, %216, %cst_201 {dimension_numbers = #tpu.dot_dimension_numbers<[1], [0], [0], [1], [0, 0, 1, 1], [], []>} : vector<2x64xbf16>, vector<64x512xbf16>, vector<2x512xf32> -> vector<2x512xf32>
    %c0_202 = arith.constant 0 : index
    %c0_203 = arith.constant 0 : index
    %218 = vector.load %arg9[%c0_202, %c0_203] : memref<1x512xf32, #tpu.memory_space<vmem>>, vector<1x512xf32>
    %219 = vector.broadcast %218 : vector<1x512xf32> to vector<2x512xf32>
    %220 = arith.addf %217, %219 : vector<2x512xf32>
    %cst_204 = arith.constant 0.000000e+00 : f32
    %221 = vector.broadcast %cst_204 : f32 to vector<2x512xf32>
    %222 = arith.maximumf %220, %221 : vector<2x512xf32>
    %223 = arith.truncf %222 : vector<2x512xf32> to vector<2x512xbf16>
    %c0_205 = arith.constant 0 : index
    %c0_206 = arith.constant 0 : index
    %224 = vector.load %arg10[%c0_205, %c0_206] : memref<512x128xbf16, #tpu.memory_space<vmem>>, vector<512x128xbf16>
    %cst_207 = arith.constant dense<0.000000e+00> : vector<2x128xf32>
    %225 = tpu.matmul %223, %224, %cst_207 {dimension_numbers = #tpu.dot_dimension_numbers<[1], [0], [0], [1], [0, 0, 1, 1], [], []>} : vector<2x512xbf16>, vector<512x128xbf16>, vector<2x128xf32> -> vector<2x128xf32>
    %c0_208 = arith.constant 0 : index
    %c0_209 = arith.constant 0 : index
    %226 = vector.load %arg11[%c0_208, %c0_209] : memref<1x128xf32, #tpu.memory_space<vmem>>, vector<1x128xf32>
    %227 = vector.broadcast %226 : vector<1x128xf32> to vector<2x128xf32>
    %228 = arith.addf %225, %227 : vector<2x128xf32>
    %c0_210 = arith.constant 0 : index
    %c0_211 = arith.constant 0 : index
    %229 = vector.load %arg12[%c0_210, %c0_211] : memref<2x128xf32, #tpu.memory_space<vmem>>, vector<2x128xf32>
    tpu.vector_store %arg12[%c0_210, %c0_211], %228 {strides = array<i32>} : memref<2x128xf32, #tpu.memory_space<vmem>>, vector<2x128xf32>,
    return
  }
  func.func @transform_0(%arg0: i32) -> (i32, i32, i32) {
    %c0_i32 = arith.constant 0 : i32
    %c0_i32_0 = arith.constant 0 : i32
    %c0_i32_1 = arith.constant 0 : i32
    return %c0_i32, %arg0, %c0_i32_0 : i32, i32, i32
  }
  func.func @transform_1(%arg0: i32) -> (i32, i32) {
    %c0_i32 = arith.constant 0 : i32
    %c0_i32_0 = arith.constant 0 : i32
    %c0_i32_1 = arith.constant 0 : i32
    return %c0_i32, %c0_i32_0 : i32, i32
  }
  func.func @transform_2(%arg0: i32) -> (i32, i32) {
    %c0_i32 = arith.constant 0 : i32
    %c0_i32_0 = arith.constant 0 : i32
    %c0_i32_1 = arith.constant 0 : i32
    return %c0_i32, %c0_i32_0 : i32, i32
  }
  func.func @transform_3(%arg0: i32) -> (i32, i32, i32) {
    %c0_i32 = arith.constant 0 : i32
    %c0_i32_0 = arith.constant 0 : i32
    %c0_i32_1 = arith.constant 0 : i32
    %c0_i32_2 = arith.constant 0 : i32
    return %c0_i32, %c0_i32_0, %c0_i32_1 : i32, i32, i32
  }
  func.func @transform_4(%arg0: i32) -> (i32, i32) {
    %c0_i32 = arith.constant 0 : i32
    %c0_i32_0 = arith.constant 0 : i32
    %c0_i32_1 = arith.constant 0 : i32
    return %c0_i32, %c0_i32_0 : i32, i32
  }
  func.func @transform_5(%arg0: i32) -> (i32, i32, i32) {
    %c0_i32 = arith.constant 0 : i32
    %c0_i32_0 = arith.constant 0 : i32
    %c0_i32_1 = arith.constant 0 : i32
    %c0_i32_2 = arith.constant 0 : i32
    return %c0_i32, %c0_i32_0, %c0_i32_1 : i32, i32, i32
  }
  func.func @transform_6(%arg0: i32) -> (i32, i32) {
    %c0_i32 = arith.constant 0 : i32
    %c0_i32_0 = arith.constant 0 : i32
    %c0_i32_1 = arith.constant 0 : i32
    return %c0_i32, %c0_i32_0 : i32, i32
  }
  func.func @transform_7(%arg0: i32) -> (i32, i32) {
    %c0_i32 = arith.constant 0 : i32
    %c0_i32_0 = arith.constant 0 : i32
    %c0_i32_1 = arith.constant 0 : i32
    return %c0_i32, %c0_i32_0 : i32, i32
  }
  func.func @transform_8(%arg0: i32) -> (i32, i32) {
    %c0_i32 = arith.constant 0 : i32
    %c0_i32_0 = arith.constant 0 : i32
    %c0_i32_1 = arith.constant 0 : i32
    return %c0_i32, %c0_i32_0 : i32, i32
  }
  func.func @transform_9(%arg0: i32) -> (i32, i32) {
    %c0_i32 = arith.constant 0 : i32
    %c0_i32_0 = arith.constant 0 : i32
    %c0_i32_1 = arith.constant 0 : i32
    return %c0_i32, %c0_i32_0 : i32, i32
  }
  func.func @transform_10(%arg0: i32) -> (i32, i32) {
    %c0_i32 = arith.constant 0 : i32
    %c0_i32_0 = arith.constant 0 : i32
    %c0_i32_1 = arith.constant 0 : i32
    return %c0_i32, %c0_i32_0 : i32, i32
  }
  func.func @transform_11(%arg0: i32) -> (i32, i32) {
    %c0_i32 = arith.constant 0 : i32
    %c0_i32_0 = arith.constant 0 : i32
    return %arg0, %c0_i32 : i32, i32
  }
}

</mosaic_0001>

<bundles_post_ra>
// kernel: dqn_forward_pallas.1
= control target key start
LH: loop header
LB: loop body
LE: loop exit
PB: predicated region body
PF: predicated region fallthrough
CT: control target
= control target key end

     0   :  { %v300_v7 = vlaneseq  ;;  %v23365_v8 = vmov 1966171168   ;;  %s28824_s0 = inlined_call_operand.vmem [shape: bf16[8,2,2048], index: 0, kind: input, shape index: {}]   ;;  %s28825_s1 = inlined_call_operand.vmem [shape: bf16[2048,256], index: 1, kind: input, shape index: {}]   ;;  %s28826_s2 = inlined_call_operand.vmem [shape: f32[1,256], index: 2, kind: input, shape index: {}]   ;;  %s28827_s3 = inlined_call_operand.vmem [shape: bf16[4,256,192], index: 3, kind: input, shape index: {}]   ;;  %s28828_s4 = inlined_call_operand.vmem [shape: f32[1,192], index: 4, kind: input, shape index: {}]   ;;  %s28829_s5 = inlined_call_operand.vmem [shape: bf16[3,192,64], index: 5, kind: input, shape index: {}]   ;;  %s28830_s6 = inlined_call_operand.vmem [shape: f32[1,64], index: 6, kind: input, shape index: {}]   ;;  %s28831_s7 = inlined_call_operand.vmem [shape: bf16[64,512], index: 7, kind: input, shape index: {}]   ;;  %s28832_s8 = inlined_call_operand.vmem [shape: f32[1,512], index: 8, kind: input, shape index: {}]   ;;  %s28833_s9 = inlined_call_operand.vmem [shape: bf16[512,128], index: 9, kind: input, shape index: {}]   ;;  %s28834_s10 = inlined_call_operand.vmem [shape: f32[1,128], index: 10, kind: input, shape index: {}]   ;;  %s28835_s11 = inlined_call_operand.hbm [shape: f32[2,128], index: 11, kind: output, shape index: {}]  }
   0x1   :  { %v21439_v0 = vld [vmem:[%s28825_s1 + $0x4] ss:$8 sps:$4 sm:$0xff]   ;;  %v21441_v1 = vld [vmem:[%s28825_s1] ss:$8 sps:$4 sm:$0xff]   ;;  %v21442_v2 = vld [vmem:[%s28825_s1 + $0x14] ss:$8 sps:$4 sm:$0xff]   ;;  %v314_v9 = vunpack.c.l.s4 %v23365_v8 }
   0x2   :  { %1706 = vmatprep.subr.bf16.mxu0 %v21439_v0  ;;  %3724 = vmatprep.subr.bf16.mxu1 %v21439_v0  ;;  %v21444_v3 = vld [vmem:[%s28825_s1 + $0x10] ss:$8 sps:$4 sm:$0xff]   ;;  %v21445_v4 = vld [vmem:[%s28825_s1 + $0x24] ss:$8 sps:$4 sm:$0xff]   ;;  %v21447_v5 = vld [vmem:[%s28825_s1 + $0x20] ss:$8 sps:$4 sm:$0xff]  }
   0x3   :  { %1707 = vmatpush1.bf16.msra.mxu0 %v21441_v1  ;;  %3725 = vmatpush1.bf16.msra.mxu1 %v21441_v1  ;;  %v21448_v6 = vld [vmem:[%s28825_s1 + $0x34] ss:$8 sps:$4 sm:$0xff]   ;;  %v21450_v10 = vld [vmem:[%s28825_s1 + $0x30] ss:$8 sps:$4 sm:$0xff]   ;;  %v21451_v11 = vld [vmem:[%s28825_s1 + $0x44] ss:$8 sps:$4 sm:$0xff]   ;;  %v315_v13 = vunpack.c.0.s8 %v314_v9 }
   0x4   :  { %1708 = vmatprep.subr.bf16.mxu0 %v21442_v2  ;;  %3726 = vmatprep.subr.bf16.mxu1 %v21442_v2  ;;  %v23455_v12 = vshrl.u32 %v300_v7, 7  ;;  %v21453_v14 = vld [vmem:[%s28825_s1 + $0x40] ss:$8 sps:$4 sm:$0xff]   ;;  %v21454_v15 = vld [vmem:[%s28825_s1 + $0x54] ss:$8 sps:$4 sm:$0xff]  }
   0x5   :  { %v21456_v17 = vld [vmem:[%s28825_s1 + $0x50] ss:$8 sps:$4 sm:$0xff]   ;;  %v21457_v18 = vld [vmem:[%s28825_s1 + $0x64] ss:$8 sps:$4 sm:$0xff]   ;;  %v21459_v20 = vld [vmem:[%s28825_s1 + $0x60] ss:$8 sps:$4 sm:$0xff]  }
   0x6   :  { %28972 = vst [vmem:[#allocation6_spill] sm:$0xff] %v23455_v12  ;;  %v23464_v16 = vsub.s32 %v315_v13, %v23455_v12  ;;  %v23475_v19 = vld [vmem:[%s28824_s0] sm:$0xff]  ;;  %v23487_v22 = vld [vmem:[%s28824_s0 + $0x10] sm:$0xff] }
   0x7   :  { %1709 = vmatpush1.bf16.msra.mxu0 %v21444_v3  ;;  %3727 = vmatpush1.bf16.msra.mxu1 %v21444_v3  ;;  %v21460_v23 = vld [vmem:[%s28825_s1 + $0x74] ss:$8 sps:$4 sm:$0xff]   ;;  %v21462_v28 = vld [vmem:[%s28825_s1 + $0x70] ss:$8 sps:$4 sm:$0xff]   ;;  %v21463_v29 = vld [vmem:[%s28825_s1 + $0x84] ss:$8 sps:$4 sm:$0xff]  }
   0x8   :  { %1710 = vmatprep.subr.bf16.mxu0 %v21445_v4  ;;  %3728 = vmatprep.subr.bf16.mxu1 %v21445_v4  ;;  %v23482_v21 = vrot.slane %v23475_v19, %v23464_v16  ;;  %v2337_v25 = vrot.slane %v23487_v22, %v23464_v16  ;;  %v21465_v31 = vld [vmem:[%s28825_s1 + $0x80] ss:$8 sps:$4 sm:$0xff]   ;;  %v21466_v32 = vld [vmem:[%s28825_s1 + $0x94] ss:$8 sps:$4 sm:$0xff]   ;;  %v21468_v33 = vld [vmem:[%s28825_s1 + $0x90] ss:$8 sps:$4 sm:$0xff]  }
   0x9   :  { %v21469_v34 = vld [vmem:[%s28825_s1 + $0xa4] ss:$8 sps:$4 sm:$0xff]   ;;  %v21471_v35 = vld [vmem:[%s28825_s1 + $0xa0] ss:$8 sps:$4 sm:$0xff]   ;;  %v21472_v36 = vld [vmem:[%s28825_s1 + $0xb4] ss:$8 sps:$4 sm:$0xff]  }
   0xa   :  { %v327_v24 = vcombine.high %v23482_v21, %v23482_v21  ;;  %v2345_v27 = vcombine.high %v2337_v25, %v2337_v25  ;;  %v21474_v37 = vld [vmem:[%s28825_s1 + $0xb0] ss:$8 sps:$4 sm:$0xff]   ;;  %v21475_v38 = vld [vmem:[%s28825_s1 + $0xc4] ss:$8 sps:$4 sm:$0xff]   ;;  %v21477_v39 = vld [vmem:[%s28825_s1 + $0xc0] ss:$8 sps:$4 sm:$0xff]   ;;  %v23560_v47 = vrot.slane %v23482_v21, %v23464_v16  ;;  %v23563_v48 = vrot.slane %v2337_v25, %v23464_v16 }
   0xb   :  { %1711 = vmatpush1.bf16.msra.mxu0 %v21447_v5  ;;  %3729 = vmatpush1.bf16.msra.mxu1 %v21447_v5  ;;  %v21478_v40 = vld [vmem:[%s28825_s1 + $0xd4] ss:$8 sps:$4 sm:$0xff]   ;;  %v21480_v41 = vld [vmem:[%s28825_s1 + $0xd0] ss:$8 sps:$4 sm:$0xff]   ;;  %v21481_v42 = vld [vmem:[%s28825_s1 + $0xe4] ss:$8 sps:$4 sm:$0xff]  }
   0xc   :  { %1712 = vmatprep.subr.bf16.mxu0 %v21448_v6  ;;  %3730 = vmatprep.subr.bf16.mxu1 %v21448_v6  ;;  %v23497_v26 = vrot.slane %v327_v24, %v23464_v16  ;;  %v23506_v30 = vrot.slane %v2345_v27, %v23464_v16  ;;  %v21483_v43 = vld [vmem:[%s28825_s1 + $0xe0] ss:$8 sps:$4 sm:$0xff]   ;;  %v21484_v44 = vld [vmem:[%s28825_s1 + $0xf4] ss:$8 sps:$4 sm:$0xff]   ;;  %v21486_v45 = vld [vmem:[%s28825_s1 + $0xf0] ss:$8 sps:$4 sm:$0xff]   ;;  %v357_v27 = vcombine.high %v23560_v47, %v23560_v47 }
   0xd   :  { %v21490_v46 = vld [vmem:[%s28825_s1 + $0x104] ss:$8 sps:$4 sm:$0xff]   ;;  %v21488_v49 = vld [vmem:[%s28825_s1 + $0x100] ss:$8 sps:$4 sm:$0xff]   ;;  %v21494_v50 = vld [vmem:[%s28825_s1 + $0x114] ss:$8 sps:$4 sm:$0xff]  }
   0xe   :  { %1738 = vmatprep.mubr.bf16.mxu0 %v23497_v26  ;;  %3756 = vmatprep.mubr.bf16.mxu1 %v23506_v30  ;;  %v359_v51 = vcombine.high %v23497_v26, %v23497_v26  ;;  %v2377_v52 = vcombine.high %v23506_v30, %v23506_v30  ;;  %v21492_v53 = vld [vmem:[%s28825_s1 + $0x110] ss:$8 sps:$4 sm:$0xff]   ;;  %v21497_v54 = vld [vmem:[%s28825_s1 + $0x124] ss:$8 sps:$4 sm:$0xff]   ;;  %v21495_v55 = vld [vmem:[%s28825_s1 + $0x120] ss:$8 sps:$4 sm:$0xff]  }
   0xf   :  { %1713 = vmatpush1.bf16.msra.mxu0 %v21450_v10  ;;  %3731 = vmatpush1.bf16.msra.mxu1 %v21450_v10  ;;  %v21500_v56 = vld [vmem:[%s28825_s1 + $0x134] ss:$8 sps:$4 sm:$0xff]   ;;  %v21498_v57 = vld [vmem:[%s28825_s1 + $0x130] ss:$8 sps:$4 sm:$0xff]   ;;  %v21503_v58 = vld [vmem:[%s28825_s1 + $0x144] ss:$8 sps:$4 sm:$0xff]  }
  0x10   :  { %1714 = vmatprep.subr.bf16.mxu0 %v21451_v11  ;;  %3732 = vmatprep.subr.bf16.mxu1 %v21451_v11  ;;  %v21501_v59 = vld [vmem:[%s28825_s1 + $0x140] ss:$8 sps:$4 sm:$0xff]   ;;  %v21506_v60 = vld [vmem:[%s28825_s1 + $0x154] ss:$8 sps:$4 sm:$0xff]   ;;  %v21504_v61 = vld [vmem:[%s28825_s1 + $0x150] ss:$8 sps:$4 sm:$0xff]  }
  0x11   :  { %v21509_v62 = vld [vmem:[%s28825_s1 + $0x164] ss:$8 sps:$4 sm:$0xff]   ;;  %v21507_v63 = vld [vmem:[%s28825_s1 + $0x160] ss:$8 sps:$4 sm:$0xff]   ;;  %v21512_v0 = vld [vmem:[%s28825_s1 + $0x174] ss:$8 sps:$4 sm:$0xff]  }
  0x12   :  { %v21510_v1 = vld [vmem:[%s28825_s1 + $0x170] ss:$8 sps:$4 sm:$0xff]   ;;  %v21515_v2 = vld [vmem:[%s28825_s1 + $0x184] ss:$8 sps:$4 sm:$0xff]   ;;  %v21513_v3 = vld [vmem:[%s28825_s1 + $0x180] ss:$8 sps:$4 sm:$0xff]  }
  0x13   :  { %1715 = vmatpush1.bf16.msra.mxu0 %v21453_v14  ;;  %3733 = vmatpush1.bf16.msra.mxu1 %v21453_v14  ;;  %v21518_v4 = vld [vmem:[%s28825_s1 + $0x194] ss:$8 sps:$4 sm:$0xff]   ;;  %v21516_v5 = vld [vmem:[%s28825_s1 + $0x190] ss:$8 sps:$4 sm:$0xff]   ;;  %v21521_v6 = vld [vmem:[%s28825_s1 + $0x1a4] ss:$8 sps:$4 sm:$0xff]  }
  0x14   :  { %1716 = vmatprep.subr.bf16.mxu0 %v21454_v15  ;;  %3734 = vmatprep.subr.bf16.mxu1 %v21454_v15  ;;  %v21519_v7 = vld [vmem:[%s28825_s1 + $0x1a0] ss:$8 sps:$4 sm:$0xff]   ;;  %v21524_v8 = vld [vmem:[%s28825_s1 + $0x1b4] ss:$8 sps:$4 sm:$0xff]   ;;  %v21522_v9 = vld [vmem:[%s28825_s1 + $0x1b0] ss:$8 sps:$4 sm:$0xff]  }
  0x15   :  { %v21527_v10 = vld [vmem:[%s28825_s1 + $0x1c4] ss:$8 sps:$4 sm:$0xff]   ;;  %v21525_v11 = vld [vmem:[%s28825_s1 + $0x1c0] ss:$8 sps:$4 sm:$0xff]   ;;  %v21530_v13 = vld [vmem:[%s28825_s1 + $0x1d4] ss:$8 sps:$4 sm:$0xff]  }
  0x16   :  { %v21528_v14 = vld [vmem:[%s28825_s1 + $0x1d0] ss:$8 sps:$4 sm:$0xff]   ;;  %v21533_v15 = vld [vmem:[%s28825_s1 + $0x1e4] ss:$8 sps:$4 sm:$0xff]   ;;  %v21536_v21 = vld [vmem:[%s28825_s1 + $0x1f4] ss:$8 sps:$4 sm:$0xff]  }
  0x17   :  { %1717 = vmatpush1.bf16.msra.mxu0 %v21456_v17  ;;  %3735 = vmatpush1.bf16.msra.mxu1 %v21456_v17  ;;  %v312_v17 = vcombine.high %v23475_v19, %v23475_v19  ;;  %v21539_v24 = vld [vmem:[%s28825_s1 + $0x204] ss:$8 sps:$4 sm:$0xff]   ;;  %v21542_v30 = vld [vmem:[%s28825_s1 + $0x214] ss:$8 sps:$4 sm:$0xff]  }
  0x18   :  { %1718 = vmatprep.subr.bf16.mxu0 %v21457_v18  ;;  %3736 = vmatprep.subr.bf16.mxu1 %v21457_v18  ;;  %v2330_v18 = vcombine.high %v23487_v22, %v23487_v22  ;;  %v21534_v22 = vld [vmem:[%s28825_s1 + $0x1f0] ss:$8 sps:$4 sm:$0xff]  }
  0x1a   :  { %v23669_v19 = vrot.slane %v2330_v18, %v23464_v16  ;;  %v21608_v18 = vld [vmem:[%s28825_s1 + $0x374] ss:$8 sps:$4 sm:$0xff]  }
  0x1b   :  { %1719 = vmatpush1.bf16.msra.mxu0 %v21459_v20  ;;  %3737 = vmatpush1.bf16.msra.mxu1 %v21459_v20  ;;  %v21531_v20 = vld [vmem:[%s28825_s1 + $0x1e0] ss:$8 sps:$4 sm:$0xff]  }
  0x1c   :  { %1720 = vmatprep.subr.bf16.mxu0 %v21460_v23  ;;  %3738 = vmatprep.subr.bf16.mxu1 %v21460_v23  ;;  %v23666_v23 = vrot.slane %v312_v17, %v23464_v16  ;;  %v2346_v26 = vcombine.high %v23669_v19, %v23669_v19  ;;  %v21603_v17 = vld [vmem:[%s28825_s1 + $0x360] ss:$8 sps:$4 sm:$0xff]  }
  0x1e   :  { %v328_v25 = vcombine.high %v23666_v23, %v23666_v23 }
  0x1f   :  { %1721 = vmatpush1.bf16.msra.mxu0 %v21462_v28  ;;  %3739 = vmatpush1.bf16.msra.mxu1 %v21462_v28  ;;  %v2375_v28 = vcombine.high %v23563_v48, %v23563_v48 }
  0x20   :  { %1722 = vmatprep.subr.bf16.mxu0 %v21463_v29  ;;  %3740 = vmatprep.subr.bf16.mxu1 %v21463_v29  ;;  %v21537_v29 = vld [vmem:[%s28825_s1 + $0x200] ss:$8 sps:$4 sm:$0xff]  }
  0x23   :  { %1723 = vmatpush1.bf16.msra.mxu0 %v21465_v31  ;;  %3741 = vmatpush1.bf16.msra.mxu1 %v21465_v31  ;;  %v23692_v31 = vrot.slane %v328_v25, %v23464_v16  ;;  %v21615_v25 = vld [vmem:[%s28825_s1 + $0x3a0] ss:$8 sps:$4 sm:$0xff]  }
  0x24   :  { %1724 = vmatprep.subr.bf16.mxu0 %v21466_v32  ;;  %3742 = vmatprep.subr.bf16.mxu1 %v21466_v32  ;;  %v23695_v32 = vrot.slane %v2346_v26, %v23464_v16  ;;  %v21620_v26 = vld [vmem:[%s28825_s1 + $0x3b4] ss:$8 sps:$4 sm:$0xff]  }
  0x27   :  { %1725 = vmatpush1.bf16.msra.mxu0 %v21468_v33  ;;  %3743 = vmatpush1.bf16.msra.mxu1 %v21468_v33  ;;  %v21540_v33 = vld [vmem:[%s28825_s1 + $0x210] ss:$8 sps:$4 sm:$0xff]  }
  0x28   :  { %1726 = vmatprep.subr.bf16.mxu0 %v21469_v34  ;;  %3744 = vmatprep.subr.bf16.mxu1 %v21469_v34  ;;  %v21545_v34 = vld [vmem:[%s28825_s1 + $0x224] ss:$8 sps:$4 sm:$0xff]  }
  0x2b   :  { %1727 = vmatpush1.bf16.msra.mxu0 %v21471_v35  ;;  %3745 = vmatpush1.bf16.msra.mxu1 %v21471_v35  ;;  %v21543_v35 = vld [vmem:[%s28825_s1 + $0x220] ss:$8 sps:$4 sm:$0xff]  }
  0x2c   :  { %1728 = vmatprep.subr.bf16.mxu0 %v21472_v36  ;;  %3746 = vmatprep.subr.bf16.mxu1 %v21472_v36  ;;  %v21548_v36 = vld [vmem:[%s28825_s1 + $0x234] ss:$8 sps:$4 sm:$0xff]  }
  0x2f   :  { %1729 = vmatpush1.bf16.msra.mxu0 %v21474_v37  ;;  %3747 = vmatpush1.bf16.msra.mxu1 %v21474_v37  ;;  %v21546_v37 = vld [vmem:[%s28825_s1 + $0x230] ss:$8 sps:$4 sm:$0xff]  }
  0x30   :  { %1730 = vmatprep.subr.bf16.mxu0 %v21475_v38  ;;  %3748 = vmatprep.subr.bf16.mxu1 %v21475_v38  ;;  %v21551_v38 = vld [vmem:[%s28825_s1 + $0x244] ss:$8 sps:$4 sm:$0xff]  }
  0x33   :  { %1731 = vmatpush1.bf16.msra.mxu0 %v21477_v39  ;;  %3749 = vmatpush1.bf16.msra.mxu1 %v21477_v39  ;;  %v21549_v39 = vld [vmem:[%s28825_s1 + $0x240] ss:$8 sps:$4 sm:$0xff]  }
  0x34   :  { %1732 = vmatprep.subr.bf16.mxu0 %v21478_v40  ;;  %3750 = vmatprep.subr.bf16.mxu1 %v21478_v40  ;;  %v21554_v40 = vld [vmem:[%s28825_s1 + $0x254] ss:$8 sps:$4 sm:$0xff]  }
  0x37   :  { %1733 = vmatpush1.bf16.msra.mxu0 %v21480_v41  ;;  %3751 = vmatpush1.bf16.msra.mxu1 %v21480_v41  ;;  %v21552_v41 = vld [vmem:[%s28825_s1 + $0x250] ss:$8 sps:$4 sm:$0xff]  }
  0x38   :  { %1734 = vmatprep.subr.bf16.mxu0 %v21481_v42  ;;  %3752 = vmatprep.subr.bf16.mxu1 %v21481_v42  ;;  %v21557_v42 = vld [vmem:[%s28825_s1 + $0x264] ss:$8 sps:$4 sm:$0xff]  }
  0x3b   :  { %1735 = vmatpush1.bf16.msra.mxu0 %v21483_v43  ;;  %3753 = vmatpush1.bf16.msra.mxu1 %v21483_v43  ;;  %v21555_v43 = vld [vmem:[%s28825_s1 + $0x260] ss:$8 sps:$4 sm:$0xff]  }
  0x3c   :  { %1736 = vmatprep.subr.bf16.mxu0 %v21484_v44  ;;  %3754 = vmatprep.subr.bf16.mxu1 %v21484_v44  ;;  %v21560_v44 = vld [vmem:[%s28825_s1 + $0x274] ss:$8 sps:$4 sm:$0xff]  }
  0x3f   :  { %1737 = vmatpush1.bf16.msra.mxu0 %v21486_v45  ;;  %3755 = vmatpush1.bf16.msra.mxu1 %v21486_v45  ;;  %v21558_v45 = vld [vmem:[%s28825_s1 + $0x270] ss:$8 sps:$4 sm:$0xff]  }
  0x40   :  { %1747 = vmatprep.subr.bf16.mxu0 %v21490_v46  ;;  %3765 = vmatprep.subr.bf16.mxu1 %v21490_v46  ;;  %v21563_v46 = vld [vmem:[%s28825_s1 + $0x284] ss:$8 sps:$4 sm:$0xff]  }
  0x42   :  { %1739 = vmatmul.mubr.bf16.vlgmr.msra.gmra.mrb[0].mxu0 %v23560_v47  ;;  %3757 = vmatmul.mubr.bf16.vlgmr.msra.gmra.mrb[0].mxu1 %v23563_v48  ;;  %v21561_v47 = vld [vmem:[%s28825_s1 + $0x280] ss:$8 sps:$4 sm:$0xff]   ;;  %v21566_v48 = vld [vmem:[%s28825_s1 + $0x294] ss:$8 sps:$4 sm:$0xff]  }
  0x43   :  { %1748 = vmatpush1.bf16.msra.mxu0 %v21488_v49  ;;  %3766 = vmatpush1.bf16.msra.mxu1 %v21488_v49  ;;  %v21564_v49 = vld [vmem:[%s28825_s1 + $0x290] ss:$8 sps:$4 sm:$0xff]  }
  0x44   :  { %1749 = vmatprep.subr.bf16.mxu0 %v21494_v50  ;;  %3767 = vmatprep.subr.bf16.mxu1 %v21494_v50  ;;  %v21569_v50 = vld [vmem:[%s28825_s1 + $0x2a4] ss:$8 sps:$4 sm:$0xff]  }
  0x45   :  { %1779 = vmatprep.mubr.bf16.mxu0 %v359_v51  ;;  %3797 = vmatprep.mubr.bf16.mxu1 %v2377_v52  ;;  %v21567_v51 = vld [vmem:[%s28825_s1 + $0x2a0] ss:$8 sps:$4 sm:$0xff]   ;;  %v21572_v52 = vld [vmem:[%s28825_s1 + $0x2b4] ss:$8 sps:$4 sm:$0xff]  }
  0x47   :  { %1750 = vmatpush1.bf16.msra.mxu0 %v21492_v53  ;;  %3768 = vmatpush1.bf16.msra.mxu1 %v21492_v53  ;;  %v21570_v53 = vld [vmem:[%s28825_s1 + $0x2b0] ss:$8 sps:$4 sm:$0xff]  }
  0x48   :  { %1751 = vmatprep.subr.bf16.mxu0 %v21497_v54  ;;  %3769 = vmatprep.subr.bf16.mxu1 %v21497_v54  ;;  %v21575_v54 = vld [vmem:[%s28825_s1 + $0x2c4] ss:$8 sps:$4 sm:$0xff]  }
  0x4b   :  { %1752 = vmatpush1.bf16.msra.mxu0 %v21495_v55  ;;  %3770 = vmatpush1.bf16.msra.mxu1 %v21495_v55  ;;  %v21573_v55 = vld [vmem:[%s28825_s1 + $0x2c0] ss:$8 sps:$4 sm:$0xff]  }
  0x4c   :  { %1753 = vmatprep.subr.bf16.mxu0 %v21500_v56  ;;  %3771 = vmatprep.subr.bf16.mxu1 %v21500_v56  ;;  %v21578_v56 = vld [vmem:[%s28825_s1 + $0x2d4] ss:$8 sps:$4 sm:$0xff]  }
  0x4f   :  { %1754 = vmatpush1.bf16.msra.mxu0 %v21498_v57  ;;  %3772 = vmatpush1.bf16.msra.mxu1 %v21498_v57  ;;  %v21576_v57 = vld [vmem:[%s28825_s1 + $0x2d0] ss:$8 sps:$4 sm:$0xff]  }
  0x50   :  { %1755 = vmatprep.subr.bf16.mxu0 %v21503_v58  ;;  %3773 = vmatprep.subr.bf16.mxu1 %v21503_v58  ;;  %v21581_v58 = vld [vmem:[%s28825_s1 + $0x2e4] ss:$8 sps:$4 sm:$0xff]  }
  0x53   :  { %1756 = vmatpush1.bf16.msra.mxu0 %v21501_v59  ;;  %3774 = vmatpush1.bf16.msra.mxu1 %v21501_v59  ;;  %v21579_v59 = vld [vmem:[%s28825_s1 + $0x2e0] ss:$8 sps:$4 sm:$0xff]  }
  0x54   :  { %1757 = vmatprep.subr.bf16.mxu0 %v21506_v60  ;;  %3775 = vmatprep.subr.bf16.mxu1 %v21506_v60  ;;  %v21584_v60 = vld [vmem:[%s28825_s1 + $0x2f4] ss:$8 sps:$4 sm:$0xff]  }
  0x57   :  { %1758 = vmatpush1.bf16.msra.mxu0 %v21504_v61  ;;  %3776 = vmatpush1.bf16.msra.mxu1 %v21504_v61  ;;  %v21582_v61 = vld [vmem:[%s28825_s1 + $0x2f0] ss:$8 sps:$4 sm:$0xff]  }
  0x58   :  { %1759 = vmatprep.subr.bf16.mxu0 %v21509_v62  ;;  %3777 = vmatprep.subr.bf16.mxu1 %v21509_v62  ;;  %v21587_v62 = vld [vmem:[%s28825_s1 + $0x304] ss:$8 sps:$4 sm:$0xff]  }
  0x5b   :  { %1760 = vmatpush1.bf16.msra.mxu0 %v21507_v63  ;;  %3778 = vmatpush1.bf16.msra.mxu1 %v21507_v63  ;;  %v23791_v63 = vrot.slane %v23666_v23, %v23464_v16  ;;  %v21609_v23 = vld [vmem:[%s28825_s1 + $0x380] ss:$8 sps:$4 sm:$0xff]  }
  0x5c   :  { %1761 = vmatprep.subr.bf16.mxu0 %v21512_v0  ;;  %3779 = vmatprep.subr.bf16.mxu1 %v21512_v0  ;;  %v23795_v0 = vrot.slane %v23669_v19, %v23464_v16  ;;  %v21614_v19 = vld [vmem:[%s28825_s1 + $0x394] ss:$8 sps:$4 sm:$0xff]  }
  0x5f   :  { %1762 = vmatpush1.bf16.msra.mxu0 %v21510_v1  ;;  %3780 = vmatpush1.bf16.msra.mxu1 %v21510_v1  ;;  %v21585_v1 = vld [vmem:[%s28825_s1 + $0x300] ss:$8 sps:$4 sm:$0xff]  }
  0x60   :  { %1763 = vmatprep.subr.bf16.mxu0 %v21515_v2  ;;  %3781 = vmatprep.subr.bf16.mxu1 %v21515_v2  ;;  %v21590_v2 = vld [vmem:[%s28825_s1 + $0x314] ss:$8 sps:$4 sm:$0xff]  }
  0x63   :  { %1764 = vmatpush1.bf16.msra.mxu0 %v21513_v3  ;;  %3782 = vmatpush1.bf16.msra.mxu1 %v21513_v3  ;;  %v360_v3 = vcombine.high %v23692_v31, %v23692_v31 }
  0x64   :  { %1765 = vmatprep.subr.bf16.mxu0 %v21518_v4  ;;  %3783 = vmatprep.subr.bf16.mxu1 %v21518_v4  ;;  %v2378_v4 = vcombine.high %v23695_v32, %v23695_v32 }
  0x67   :  { %1766 = vmatpush1.bf16.msra.mxu0 %v21516_v5  ;;  %3784 = vmatpush1.bf16.msra.mxu1 %v21516_v5  ;;  %v21588_v5 = vld [vmem:[%s28825_s1 + $0x310] ss:$8 sps:$4 sm:$0xff]  }
  0x68   :  { %1767 = vmatprep.subr.bf16.mxu0 %v21521_v6  ;;  %3785 = vmatprep.subr.bf16.mxu1 %v21521_v6  ;;  %v21593_v6 = vld [vmem:[%s28825_s1 + $0x324] ss:$8 sps:$4 sm:$0xff]  }
  0x6b   :  { %1768 = vmatpush1.bf16.msra.mxu0 %v21519_v7  ;;  %3786 = vmatpush1.bf16.msra.mxu1 %v21519_v7  ;;  %v21591_v7 = vld [vmem:[%s28825_s1 + $0x320] ss:$8 sps:$4 sm:$0xff]  }
  0x6c   :  { %1769 = vmatprep.subr.bf16.mxu0 %v21524_v8  ;;  %3787 = vmatprep.subr.bf16.mxu1 %v21524_v8  ;;  %v21596_v8 = vld [vmem:[%s28825_s1 + $0x334] ss:$8 sps:$4 sm:$0xff]  }
  0x6f   :  { %1770 = vmatpush1.bf16.msra.mxu0 %v21522_v9  ;;  %3788 = vmatpush1.bf16.msra.mxu1 %v21522_v9  ;;  %v21594_v9 = vld [vmem:[%s28825_s1 + $0x330] ss:$8 sps:$4 sm:$0xff]  }
  0x70   :  { %1771 = vmatprep.subr.bf16.mxu0 %v21527_v10  ;;  %3789 = vmatprep.subr.bf16.mxu1 %v21527_v10  ;;  %v21599_v10 = vld [vmem:[%s28825_s1 + $0x344] ss:$8 sps:$4 sm:$0xff]  }
  0x73   :  { %1772 = vmatpush1.bf16.msra.mxu0 %v21525_v11  ;;  %3790 = vmatpush1.bf16.msra.mxu1 %v21525_v11  ;;  %v21597_v11 = vld [vmem:[%s28825_s1 + $0x340] ss:$8 sps:$4 sm:$0xff]  }
  0x74   :  { %1773 = vmatprep.subr.bf16.mxu0 %v21530_v13  ;;  %3791 = vmatprep.subr.bf16.mxu1 %v21530_v13  ;;  %v21602_v13 = vld [vmem:[%s28825_s1 + $0x354] ss:$8 sps:$4 sm:$0xff]  }
  0x77   :  { %1774 = vmatpush1.bf16.msra.mxu0 %v21528_v14  ;;  %3792 = vmatpush1.bf16.msra.mxu1 %v21528_v14  ;;  %v21600_v14 = vld [vmem:[%s28825_s1 + $0x350] ss:$8 sps:$4 sm:$0xff]  }
  0x78   :  { %1775 = vmatprep.subr.bf16.mxu0 %v21533_v15  ;;  %3793 = vmatprep.subr.bf16.mxu1 %v21533_v15  ;;  %v21605_v15 = vld [vmem:[%s28825_s1 + $0x364] ss:$8 sps:$4 sm:$0xff]  }
  0x7b   :  { %1776 = vmatpush1.bf16.msra.mxu0 %v21531_v20  ;;  %3794 = vmatpush1.bf16.msra.mxu1 %v21531_v20  ;;  %v21606_v20 = vld [vmem:[%s28825_s1 + $0x370] ss:$8 sps:$4 sm:$0xff]  }
  0x7c   :  { %1777 = vmatprep.subr.bf16.mxu0 %v21536_v21  ;;  %3795 = vmatprep.subr.bf16.mxu1 %v21536_v21  ;;  %v21611_v21 = vld [vmem:[%s28825_s1 + $0x384] ss:$8 sps:$4 sm:$0xff]  }
  0x7f   :  { %1778 = vmatpush1.bf16.msra.mxu0 %v21534_v22  ;;  %3796 = vmatpush1.bf16.msra.mxu1 %v21534_v22  ;;  %v21612_v22 = vld [vmem:[%s28825_s1 + $0x390] ss:$8 sps:$4 sm:$0xff]  }
  0x80   :  { %1788 = vmatprep.subr.bf16.mxu0 %v21539_v24  ;;  %3806 = vmatprep.subr.bf16.mxu1 %v21539_v24  ;;  %v21617_v24 = vld [vmem:[%s28825_s1 + $0x3a4] ss:$8 sps:$4 sm:$0xff]  }
  0x82   :  { %1780 = vmatmul.mubr.bf16.vlgmr.msra.gmra.mrb[0].mxu0 %v357_v27  ;;  %3798 = vmatmul.mubr.bf16.vlgmr.msra.gmra.mrb[0].mxu1 %v2375_v28  ;;  %v21618_v27 = vld [vmem:[%s28825_s1 + $0x3b0] ss:$8 sps:$4 sm:$0xff]   ;;  %v21623_v28 = vld [vmem:[%s28825_s1 + $0x3c4] ss:$8 sps:$4 sm:$0xff]  }
  0x83   :  { %1789 = vmatpush1.bf16.msra.mxu0 %v21537_v29  ;;  %3807 = vmatpush1.bf16.msra.mxu1 %v21537_v29  ;;  %v21621_v29 = vld [vmem:[%s28825_s1 + $0x3c0] ss:$8 sps:$4 sm:$0xff]  }
  0x84   :  { %1790 = vmatprep.subr.bf16.mxu0 %v21542_v30  ;;  %3808 = vmatprep.subr.bf16.mxu1 %v21542_v30  ;;  %v21626_v30 = vld [vmem:[%s28825_s1 + $0x3d4] ss:$8 sps:$4 sm:$0xff]  }
  0x85   :  { %1820 = vmatprep.mubr.bf16.mxu0 %v23692_v31  ;;  %3838 = vmatprep.mubr.bf16.mxu1 %v23695_v32  ;;  %v21624_v31 = vld [vmem:[%s28825_s1 + $0x3d0] ss:$8 sps:$4 sm:$0xff]   ;;  %v21629_v32 = vld [vmem:[%s28825_s1 + $0x3e4] ss:$8 sps:$4 sm:$0xff]  }
  0x87   :  { %1791 = vmatpush1.bf16.msra.mxu0 %v21540_v33  ;;  %3809 = vmatpush1.bf16.msra.mxu1 %v21540_v33  ;;  %v23890_v33 = vld.sshfl [vmem:[%s28824_s0 + $0x8] sm:$0xff pattern:$0x75316420] }
  0x88   :  { %1792 = vmatprep.subr.bf16.mxu0 %v21545_v34  ;;  %3810 = vmatprep.subr.bf16.mxu1 %v21545_v34  ;;  %v23895_v34 = vld.sshfl [vmem:[%s28824_s0 + $0x18] sm:$0xff pattern:$0x75316420] }
  0x8b   :  { %1793 = vmatpush1.bf16.msra.mxu0 %v21543_v35  ;;  %3811 = vmatpush1.bf16.msra.mxu1 %v21543_v35  ;;  %v21627_v35 = vld [vmem:[%s28825_s1 + $0x3e0] ss:$8 sps:$4 sm:$0xff]  }
  0x8c   :  { %1794 = vmatprep.subr.bf16.mxu0 %v21548_v36  ;;  %3812 = vmatprep.subr.bf16.mxu1 %v21548_v36  ;;  %v21632_v36 = vld [vmem:[%s28825_s1 + $0x3f4] ss:$8 sps:$4 sm:$0xff]  }
  0x8f   :  { %1795 = vmatpush1.bf16.msra.mxu0 %v21546_v37  ;;  %3813 = vmatpush1.bf16.msra.mxu1 %v21546_v37  ;;  %v21630_v37 = vld [vmem:[%s28825_s1 + $0x3f0] ss:$8 sps:$4 sm:$0xff]  }
  0x90   :  { %1796 = vmatprep.subr.bf16.mxu0 %v21551_v38  ;;  %3814 = vmatprep.subr.bf16.mxu1 %v21551_v38  ;;  %v21635_v38 = vld [vmem:[%s28825_s1 + $0x404] ss:$8 sps:$4 sm:$0xff]  }
  0x93   :  { %1797 = vmatpush1.bf16.msra.mxu0 %v21549_v39  ;;  %3815 = vmatpush1.bf16.msra.mxu1 %v21549_v39  ;;  %v376_v39 = vcombine.high %v23890_v33, %v23890_v33 }
  0x94   :  { %1798 = vmatprep.subr.bf16.mxu0 %v21554_v40  ;;  %3816 = vmatprep.subr.bf16.mxu1 %v21554_v40  ;;  %v2394_v40 = vcombine.high %v23895_v34, %v23895_v34 }
  0x97   :  { %1799 = vmatpush1.bf16.msra.mxu0 %v21552_v41  ;;  %3817 = vmatpush1.bf16.msra.mxu1 %v21552_v41  ;;  %v358_v41 = vcombine.high %v23791_v63, %v23791_v63 }
  0x98   :  { %1800 = vmatprep.subr.bf16.mxu0 %v21557_v42  ;;  %3818 = vmatprep.subr.bf16.mxu1 %v21557_v42  ;;  %v2376_v42 = vcombine.high %v23795_v0, %v23795_v0 }
  0x9b   :  { %1801 = vmatpush1.bf16.msra.mxu0 %v21555_v43  ;;  %3819 = vmatpush1.bf16.msra.mxu1 %v21555_v43  ;;  %v21633_v43 = vld [vmem:[%s28825_s1 + $0x400] ss:$8 sps:$4 sm:$0xff]  }
  0x9c   :  { %1802 = vmatprep.subr.bf16.mxu0 %v21560_v44  ;;  %3820 = vmatprep.subr.bf16.mxu1 %v21560_v44  ;;  %v21638_v44 = vld [vmem:[%s28825_s1 + $0x414] ss:$8 sps:$4 sm:$0xff]  }
  0x9f   :  { %1803 = vmatpush1.bf16.msra.mxu0 %v21558_v45  ;;  %3821 = vmatpush1.bf16.msra.mxu1 %v21558_v45  ;;  %v23924_v45 = vrot.slane %v376_v39, %v23464_v16  ;;  %v21711_v39 = vld [vmem:[%s28825_s1 + $0x5a0] ss:$8 sps:$4 sm:$0xff]  }
  0xa0   :  { %1804 = vmatprep.subr.bf16.mxu0 %v21563_v46  ;;  %3822 = vmatprep.subr.bf16.mxu1 %v21563_v46  ;;  %v23927_v46 = vrot.slane %v2394_v40, %v23464_v16  ;;  %v21716_v40 = vld [vmem:[%s28825_s1 + $0x5b4] ss:$8 sps:$4 sm:$0xff]  }
  0xa3   :  { %1805 = vmatpush1.bf16.msra.mxu0 %v21561_v47  ;;  %3823 = vmatpush1.bf16.msra.mxu1 %v21561_v47  ;;  %v21636_v47 = vld [vmem:[%s28825_s1 + $0x410] ss:$8 sps:$4 sm:$0xff]  }
  0xa4   :  { %1806 = vmatprep.subr.bf16.mxu0 %v21566_v48  ;;  %3824 = vmatprep.subr.bf16.mxu1 %v21566_v48  ;;  %v21641_v48 = vld [vmem:[%s28825_s1 + $0x424] ss:$8 sps:$4 sm:$0xff]  }
  0xa7   :  { %1807 = vmatpush1.bf16.msra.mxu0 %v21564_v49  ;;  %3825 = vmatpush1.bf16.msra.mxu1 %v21564_v49  ;;  %v21639_v49 = vld [vmem:[%s28825_s1 + $0x420] ss:$8 sps:$4 sm:$0xff]  }
  0xa8   :  { %1808 = vmatprep.subr.bf16.mxu0 %v21569_v50  ;;  %3826 = vmatprep.subr.bf16.mxu1 %v21569_v50  ;;  %v21644_v50 = vld [vmem:[%s28825_s1 + $0x434] ss:$8 sps:$4 sm:$0xff]  }
  0xab   :  { %1809 = vmatpush1.bf16.msra.mxu0 %v21567_v51  ;;  %3827 = vmatpush1.bf16.msra.mxu1 %v21567_v51  ;;  %v21642_v51 = vld [vmem:[%s28825_s1 + $0x430] ss:$8 sps:$4 sm:$0xff]  }
  0xac   :  { %1810 = vmatprep.subr.bf16.mxu0 %v21572_v52  ;;  %3828 = vmatprep.subr.bf16.mxu1 %v21572_v52  ;;  %v21647_v52 = vld [vmem:[%s28825_s1 + $0x444] ss:$8 sps:$4 sm:$0xff]  }
  0xaf   :  { %1811 = vmatpush1.bf16.msra.mxu0 %v21570_v53  ;;  %3829 = vmatpush1.bf16.msra.mxu1 %v21570_v53  ;;  %v21645_v53 = vld [vmem:[%s28825_s1 + $0x440] ss:$8 sps:$4 sm:$0xff]  }
  0xb0   :  { %1812 = vmatprep.subr.bf16.mxu0 %v21575_v54  ;;  %3830 = vmatprep.subr.bf16.mxu1 %v21575_v54  ;;  %v21650_v54 = vld [vmem:[%s28825_s1 + $0x454] ss:$8 sps:$4 sm:$0xff]  }
  0xb3   :  { %1813 = vmatpush1.bf16.msra.mxu0 %v21573_v55  ;;  %3831 = vmatpush1.bf16.msra.mxu1 %v21573_v55  ;;  %v21648_v55 = vld [vmem:[%s28825_s1 + $0x450] ss:$8 sps:$4 sm:$0xff]  }
  0xb4   :  { %1814 = vmatprep.subr.bf16.mxu0 %v21578_v56  ;;  %3832 = vmatprep.subr.bf16.mxu1 %v21578_v56  ;;  %v21653_v56 = vld [vmem:[%s28825_s1 + $0x464] ss:$8 sps:$4 sm:$0xff]  }
  0xb7   :  { %1815 = vmatpush1.bf16.msra.mxu0 %v21576_v57  ;;  %3833 = vmatpush1.bf16.msra.mxu1 %v21576_v57  ;;  %v21651_v57 = vld [vmem:[%s28825_s1 + $0x460] ss:$8 sps:$4 sm:$0xff]  }
  0xb8   :  { %1816 = vmatprep.subr.bf16.mxu0 %v21581_v58  ;;  %3834 = vmatprep.subr.bf16.mxu1 %v21581_v58  ;;  %v21656_v58 = vld [vmem:[%s28825_s1 + $0x474] ss:$8 sps:$4 sm:$0xff]  }
  0xbb   :  { %1817 = vmatpush1.bf16.msra.mxu0 %v21579_v59  ;;  %3835 = vmatpush1.bf16.msra.mxu1 %v21579_v59  ;;  %v21654_v59 = vld [vmem:[%s28825_s1 + $0x470] ss:$8 sps:$4 sm:$0xff]  }
  0xbc   :  { %1818 = vmatprep.subr.bf16.mxu0 %v21584_v60  ;;  %3836 = vmatprep.subr.bf16.mxu1 %v21584_v60  ;;  %v21659_v60 = vld [vmem:[%s28825_s1 + $0x484] ss:$8 sps:$4 sm:$0xff]  }
  0xbf   :  { %1819 = vmatpush1.bf16.msra.mxu0 %v21582_v61  ;;  %3837 = vmatpush1.bf16.msra.mxu1 %v21582_v61  ;;  %v21657_v61 = vld [vmem:[%s28825_s1 + $0x480] ss:$8 sps:$4 sm:$0xff]  }
  0xc0   :  { %1829 = vmatprep.subr.bf16.mxu0 %v21587_v62  ;;  %3847 = vmatprep.subr.bf16.mxu1 %v21587_v62  ;;  %v21662_v62 = vld [vmem:[%s28825_s1 + $0x494] ss:$8 sps:$4 sm:$0xff]  }
  0xc2   :  { %1821 = vmatmul.mubr.bf16.vlgmr.msra.gmra.mrb[0].mxu0 %v23791_v63  ;;  %3839 = vmatmul.mubr.bf16.vlgmr.msra.gmra.mrb[0].mxu1 %v23795_v0  ;;  %v21660_v63 = vld [vmem:[%s28825_s1 + $0x490] ss:$8 sps:$4 sm:$0xff]   ;;  %v21665_v0 = vld [vmem:[%s28825_s1 + $0x4a4] ss:$8 sps:$4 sm:$0xff]  }
  0xc3   :  { %1830 = vmatpush1.bf16.msra.mxu0 %v21585_v1  ;;  %3848 = vmatpush1.bf16.msra.mxu1 %v21585_v1  ;;  %v21663_v1 = vld [vmem:[%s28825_s1 + $0x4a0] ss:$8 sps:$4 sm:$0xff]  }
  0xc4   :  { %1831 = vmatprep.subr.bf16.mxu0 %v21590_v2  ;;  %3849 = vmatprep.subr.bf16.mxu1 %v21590_v2  ;;  %v21668_v2 = vld [vmem:[%s28825_s1 + $0x4b4] ss:$8 sps:$4 sm:$0xff]  }
  0xc5   :  { %1861 = vmatprep.mubr.bf16.mxu0 %v360_v3  ;;  %3879 = vmatprep.mubr.bf16.mxu1 %v2378_v4  ;;  %v21666_v3 = vld [vmem:[%s28825_s1 + $0x4b0] ss:$8 sps:$4 sm:$0xff]   ;;  %v21671_v4 = vld [vmem:[%s28825_s1 + $0x4c4] ss:$8 sps:$4 sm:$0xff]  }
  0xc7   :  { %1832 = vmatpush1.bf16.msra.mxu0 %v21588_v5  ;;  %3850 = vmatpush1.bf16.msra.mxu1 %v21588_v5  ;;  %v21669_v5 = vld [vmem:[%s28825_s1 + $0x4c0] ss:$8 sps:$4 sm:$0xff]  }
  0xc8   :  { %1833 = vmatprep.subr.bf16.mxu0 %v21593_v6  ;;  %3851 = vmatprep.subr.bf16.mxu1 %v21593_v6  ;;  %v21674_v6 = vld [vmem:[%s28825_s1 + $0x4d4] ss:$8 sps:$4 sm:$0xff]  }
  0xcb   :  { %1834 = vmatpush1.bf16.msra.mxu0 %v21591_v7  ;;  %3852 = vmatpush1.bf16.msra.mxu1 %v21591_v7  ;;  %v21672_v7 = vld [vmem:[%s28825_s1 + $0x4d0] ss:$8 sps:$4 sm:$0xff]  }
  0xcc   :  { %1835 = vmatprep.subr.bf16.mxu0 %v21596_v8  ;;  %3853 = vmatprep.subr.bf16.mxu1 %v21596_v8  ;;  %v21677_v8 = vld [vmem:[%s28825_s1 + $0x4e4] ss:$8 sps:$4 sm:$0xff]  }
  0xcf   :  { %1836 = vmatpush1.bf16.msra.mxu0 %v21594_v9  ;;  %3854 = vmatpush1.bf16.msra.mxu1 %v21594_v9  ;;  %v21675_v9 = vld [vmem:[%s28825_s1 + $0x4e0] ss:$8 sps:$4 sm:$0xff]  }
  0xd0   :  { %1837 = vmatprep.subr.bf16.mxu0 %v21599_v10  ;;  %3855 = vmatprep.subr.bf16.mxu1 %v21599_v10  ;;  %v21680_v10 = vld [vmem:[%s28825_s1 + $0x4f4] ss:$8 sps:$4 sm:$0xff]  }
  0xd3   :  { %1838 = vmatpush1.bf16.msra.mxu0 %v21597_v11  ;;  %3856 = vmatpush1.bf16.msra.mxu1 %v21597_v11  ;;  %v21678_v11 = vld [vmem:[%s28825_s1 + $0x4f0] ss:$8 sps:$4 sm:$0xff]  }
  0xd4   :  { %1839 = vmatprep.subr.bf16.mxu0 %v21602_v13  ;;  %3857 = vmatprep.subr.bf16.mxu1 %v21602_v13  ;;  %v21683_v13 = vld [vmem:[%s28825_s1 + $0x504] ss:$8 sps:$4 sm:$0xff]  }
  0xd7   :  { %1840 = vmatpush1.bf16.msra.mxu0 %v21600_v14  ;;  %3858 = vmatpush1.bf16.msra.mxu1 %v21600_v14  ;;  %v24023_v14 = vrot.slane %v23890_v33, %v23464_v16  ;;  %v21702_v33 = vld [vmem:[%s28825_s1 + $0x570] ss:$8 sps:$4 sm:$0xff]  }
  0xd8   :  { %1841 = vmatprep.subr.bf16.mxu0 %v21605_v15  ;;  %3859 = vmatprep.subr.bf16.mxu1 %v21605_v15  ;;  %v24027_v15 = vrot.slane %v23895_v34, %v23464_v16  ;;  %v21707_v34 = vld [vmem:[%s28825_s1 + $0x584] ss:$8 sps:$4 sm:$0xff]  }
  0xdb   :  { %1842 = vmatpush1.bf16.msra.mxu0 %v21603_v17  ;;  %3860 = vmatpush1.bf16.msra.mxu1 %v21603_v17  ;;  %v21681_v17 = vld [vmem:[%s28825_s1 + $0x500] ss:$8 sps:$4 sm:$0xff]  }
  0xdc   :  { %1843 = vmatprep.subr.bf16.mxu0 %v21608_v18  ;;  %3861 = vmatprep.subr.bf16.mxu1 %v21608_v18  ;;  %v21686_v18 = vld [vmem:[%s28825_s1 + $0x514] ss:$8 sps:$4 sm:$0xff]  }
  0xdf   :  { %1844 = vmatpush1.bf16.msra.mxu0 %v21606_v20  ;;  %3862 = vmatpush1.bf16.msra.mxu1 %v21606_v20  ;;  %v408_v20 = vcombine.high %v23924_v45, %v23924_v45 }
  0xe0   :  { %1845 = vmatprep.subr.bf16.mxu0 %v21611_v21  ;;  %3863 = vmatprep.subr.bf16.mxu1 %v21611_v21  ;;  %v2426_v21 = vcombine.high %v23927_v46, %v23927_v46 }
  0xe3   :  { %1846 = vmatpush1.bf16.msra.mxu0 %v21609_v23  ;;  %3864 = vmatpush1.bf16.msra.mxu1 %v21609_v23  ;;  %v21684_v23 = vld [vmem:[%s28825_s1 + $0x510] ss:$8 sps:$4 sm:$0xff]  }
  0xe4   :  { %1847 = vmatprep.subr.bf16.mxu0 %v21614_v19  ;;  %3865 = vmatprep.subr.bf16.mxu1 %v21614_v19  ;;  %v21689_v19 = vld [vmem:[%s28825_s1 + $0x524] ss:$8 sps:$4 sm:$0xff]  }
  0xe7   :  { %1848 = vmatpush1.bf16.msra.mxu0 %v21612_v22  ;;  %3866 = vmatpush1.bf16.msra.mxu1 %v21612_v22  ;;  %v21687_v22 = vld [vmem:[%s28825_s1 + $0x520] ss:$8 sps:$4 sm:$0xff]  }
  0xe8   :  { %1849 = vmatprep.subr.bf16.mxu0 %v21617_v24  ;;  %3867 = vmatprep.subr.bf16.mxu1 %v21617_v24  ;;  %v21692_v24 = vld [vmem:[%s28825_s1 + $0x534] ss:$8 sps:$4 sm:$0xff]  }
  0xeb   :  { %1850 = vmatpush1.bf16.msra.mxu0 %v21615_v25  ;;  %3868 = vmatpush1.bf16.msra.mxu1 %v21615_v25  ;;  %v21690_v25 = vld [vmem:[%s28825_s1 + $0x530] ss:$8 sps:$4 sm:$0xff]  }
  0xec   :  { %1851 = vmatprep.subr.bf16.mxu0 %v21620_v26  ;;  %3869 = vmatprep.subr.bf16.mxu1 %v21620_v26  ;;  %v21695_v26 = vld [vmem:[%s28825_s1 + $0x544] ss:$8 sps:$4 sm:$0xff]  }
  0xef   :  { %1852 = vmatpush1.bf16.msra.mxu0 %v21618_v27  ;;  %3870 = vmatpush1.bf16.msra.mxu1 %v21618_v27  ;;  %v21693_v27 = vld [vmem:[%s28825_s1 + $0x540] ss:$8 sps:$4 sm:$0xff]  }
  0xf0   :  { %1853 = vmatprep.subr.bf16.mxu0 %v21623_v28  ;;  %3871 = vmatprep.subr.bf16.mxu1 %v21623_v28  ;;  %v21698_v28 = vld [vmem:[%s28825_s1 + $0x554] ss:$8 sps:$4 sm:$0xff]  }
  0xf3   :  { %1854 = vmatpush1.bf16.msra.mxu0 %v21621_v29  ;;  %3872 = vmatpush1.bf16.msra.mxu1 %v21621_v29  ;;  %v21696_v29 = vld [vmem:[%s28825_s1 + $0x550] ss:$8 sps:$4 sm:$0xff]  }
  0xf4   :  { %1855 = vmatprep.subr.bf16.mxu0 %v21626_v30  ;;  %3873 = vmatprep.subr.bf16.mxu1 %v21626_v30  ;;  %v21701_v30 = vld [vmem:[%s28825_s1 + $0x564] ss:$8 sps:$4 sm:$0xff]  }
  0xf7   :  { %1856 = vmatpush1.bf16.msra.mxu0 %v21624_v31  ;;  %3874 = vmatpush1.bf16.msra.mxu1 %v21624_v31  ;;  %v21699_v31 = vld [vmem:[%s28825_s1 + $0x560] ss:$8 sps:$4 sm:$0xff]  }
  0xf8   :  { %1857 = vmatprep.subr.bf16.mxu0 %v21629_v32  ;;  %3875 = vmatprep.subr.bf16.mxu1 %v21629_v32  ;;  %v21704_v32 = vld [vmem:[%s28825_s1 + $0x574] ss:$8 sps:$4 sm:$0xff]  }
  0xfb   :  { %1858 = vmatpush1.bf16.msra.mxu0 %v21627_v35  ;;  %3876 = vmatpush1.bf16.msra.mxu1 %v21627_v35  ;;  %v21705_v35 = vld [vmem:[%s28825_s1 + $0x580] ss:$8 sps:$4 sm:$0xff]  }
  0xfc   :  { %1859 = vmatprep.subr.bf16.mxu0 %v21632_v36  ;;  %3877 = vmatprep.subr.bf16.mxu1 %v21632_v36  ;;  %v21710_v36 = vld [vmem:[%s28825_s1 + $0x594] ss:$8 sps:$4 sm:$0xff]  }
  0xff   :  { %1860 = vmatpush1.bf16.msra.mxu0 %v21630_v37  ;;  %3878 = vmatpush1.bf16.msra.mxu1 %v21630_v37  ;;  %v21708_v37 = vld [vmem:[%s28825_s1 + $0x590] ss:$8 sps:$4 sm:$0xff]  }
 0x100   :  { %1870 = vmatprep.subr.bf16.mxu0 %v21635_v38  ;;  %3888 = vmatprep.subr.bf16.mxu1 %v21635_v38  ;;  %v21713_v38 = vld [vmem:[%s28825_s1 + $0x5a4] ss:$8 sps:$4 sm:$0xff]  }
 0x102   :  { %1862 = vmatmul.mubr.bf16.vlgmr.msra.gmra.mrb[0].mxu0 %v358_v41  ;;  %3880 = vmatmul.mubr.bf16.vlgmr.msra.gmra.mrb[0].mxu1 %v2376_v42  ;;  %v21714_v41 = vld [vmem:[%s28825_s1 + $0x5b0] ss:$8 sps:$4 sm:$0xff]   ;;  %v21719_v42 = vld [vmem:[%s28825_s1 + $0x5c4] ss:$8 sps:$4 sm:$0xff]  }
 0x103   :  { %1871 = vmatpush1.bf16.msra.mxu0 %v21633_v43  ;;  %3889 = vmatpush1.bf16.msra.mxu1 %v21633_v43  ;;  %v21717_v43 = vld [vmem:[%s28825_s1 + $0x5c0] ss:$8 sps:$4 sm:$0xff]  }
 0x104   :  { %1872 = vmatprep.subr.bf16.mxu0 %v21638_v44  ;;  %3890 = vmatprep.subr.bf16.mxu1 %v21638_v44  ;;  %v21722_v44 = vld [vmem:[%s28825_s1 + $0x5d4] ss:$8 sps:$4 sm:$0xff]  }
 0x105   :  { %1902 = vmatprep.mubr.bf16.mxu0 %v23924_v45  ;;  %3920 = vmatprep.mubr.bf16.mxu1 %v23927_v46  ;;  %v21720_v45 = vld [vmem:[%s28825_s1 + $0x5d0] ss:$8 sps:$4 sm:$0xff]   ;;  %v21725_v46 = vld [vmem:[%s28825_s1 + $0x5e4] ss:$8 sps:$4 sm:$0xff]  }
 0x107   :  { %1873 = vmatpush1.bf16.msra.mxu0 %v21636_v47  ;;  %3891 = vmatpush1.bf16.msra.mxu1 %v21636_v47  ;;  %v23275_v47 = vld [vmem:[%s28824_s0 + $0x8] sm:$0xff] }
 0x108   :  { %1874 = vmatprep.subr.bf16.mxu0 %v21641_v48  ;;  %3892 = vmatprep.subr.bf16.mxu1 %v21641_v48  ;;  %v361_v48 = vcombine.high %v23275_v47, %v23275_v47  ;;  %v21794_v47 = vld [vmem:[%s28825_s1 + $0x750] ss:$8 sps:$4 sm:$0xff]  }
 0x10b   :  { %1875 = vmatpush1.bf16.msra.mxu0 %v21639_v49  ;;  %3893 = vmatpush1.bf16.msra.mxu1 %v21639_v49  ;;  %v23276_v49 = vld [vmem:[%s28824_s0 + $0x18] sm:$0xff] }
 0x10c   :  { %1876 = vmatprep.subr.bf16.mxu0 %v21644_v50  ;;  %3894 = vmatprep.subr.bf16.mxu1 %v21644_v50  ;;  %v2379_v50 = vcombine.high %v23276_v49, %v23276_v49  ;;  %v21797_v49 = vld [vmem:[%s28825_s1 + $0x760] ss:$8 sps:$4 sm:$0xff]  }
 0x10f   :  { %1877 = vmatpush1.bf16.msra.mxu0 %v21642_v51  ;;  %3895 = vmatpush1.bf16.msra.mxu1 %v21642_v51  ;;  %v21723_v51 = vld [vmem:[%s28825_s1 + $0x5e0] ss:$8 sps:$4 sm:$0xff]  }
 0x110   :  { %1878 = vmatprep.subr.bf16.mxu0 %v21647_v52  ;;  %3896 = vmatprep.subr.bf16.mxu1 %v21647_v52  ;;  %v21728_v52 = vld [vmem:[%s28825_s1 + $0x5f4] ss:$8 sps:$4 sm:$0xff]  }
 0x113   :  { %1879 = vmatpush1.bf16.msra.mxu0 %v21645_v53  ;;  %3897 = vmatpush1.bf16.msra.mxu1 %v21645_v53  ;;  %v24132_v53 = vrot.slane %v361_v48, %v23464_v16  ;;  %v21799_v48 = vld [vmem:[%s28825_s1 + $0x764] ss:$8 sps:$4 sm:$0xff]  }
 0x114   :  { %1880 = vmatprep.subr.bf16.mxu0 %v21650_v54  ;;  %3898 = vmatprep.subr.bf16.mxu1 %v21650_v54  ;;  %v24135_v54 = vrot.slane %v2379_v50, %v23464_v16  ;;  %v21802_v50 = vld [vmem:[%s28825_s1 + $0x774] ss:$8 sps:$4 sm:$0xff]  }
 0x117   :  { %1881 = vmatpush1.bf16.msra.mxu0 %v21648_v55  ;;  %3899 = vmatpush1.bf16.msra.mxu1 %v21648_v55  ;;  %v21726_v55 = vld [vmem:[%s28825_s1 + $0x5f0] ss:$8 sps:$4 sm:$0xff]  }
 0x118   :  { %1882 = vmatprep.subr.bf16.mxu0 %v21653_v56  ;;  %3900 = vmatprep.subr.bf16.mxu1 %v21653_v56  ;;  %v21731_v56 = vld [vmem:[%s28825_s1 + $0x604] ss:$8 sps:$4 sm:$0xff]  }
 0x11b   :  { %1883 = vmatpush1.bf16.msra.mxu0 %v21651_v57  ;;  %3901 = vmatpush1.bf16.msra.mxu1 %v21651_v57  ;;  %v21729_v57 = vld [vmem:[%s28825_s1 + $0x600] ss:$8 sps:$4 sm:$0xff]  }
 0x11c   :  { %1884 = vmatprep.subr.bf16.mxu0 %v21656_v58  ;;  %3902 = vmatprep.subr.bf16.mxu1 %v21656_v58  ;;  %v377_v58 = vcombine.high %v24132_v53, %v24132_v53 }
 0x11f   :  { %1885 = vmatpush1.bf16.msra.mxu0 %v21654_v59  ;;  %3903 = vmatpush1.bf16.msra.mxu1 %v21654_v59  ;;  %v2395_v59 = vcombine.high %v24135_v54, %v24135_v54 }
 0x120   :  { %1886 = vmatprep.subr.bf16.mxu0 %v21659_v60  ;;  %3904 = vmatprep.subr.bf16.mxu1 %v21659_v60  ;;  %v406_v60 = vcombine.high %v24023_v14, %v24023_v14 }
 0x123   :  { %1887 = vmatpush1.bf16.msra.mxu0 %v21657_v61  ;;  %3905 = vmatpush1.bf16.msra.mxu1 %v21657_v61  ;;  %v2424_v61 = vcombine.high %v24027_v15, %v24027_v15 }
 0x124   :  { %1888 = vmatprep.subr.bf16.mxu0 %v21662_v62  ;;  %3906 = vmatprep.subr.bf16.mxu1 %v21662_v62  ;;  %v21734_v62 = vld [vmem:[%s28825_s1 + $0x614] ss:$8 sps:$4 sm:$0xff]  }
 0x127   :  { %1889 = vmatpush1.bf16.msra.mxu0 %v21660_v63  ;;  %3907 = vmatpush1.bf16.msra.mxu1 %v21660_v63  ;;  %v24158_v63 = vrot.slane %v377_v58, %v23464_v16  ;;  %v21814_v58 = vld [vmem:[%s28825_s1 + $0x7b4] ss:$8 sps:$4 sm:$0xff]  }
 0x128   :  { %1890 = vmatprep.subr.bf16.mxu0 %v21665_v0  ;;  %3908 = vmatprep.subr.bf16.mxu1 %v21665_v0  ;;  %v24161_v0 = vrot.slane %v2395_v59, %v23464_v16  ;;  %v21812_v59 = vld [vmem:[%s28825_s1 + $0x7b0] ss:$8 sps:$4 sm:$0xff]  }
 0x12b   :  { %1891 = vmatpush1.bf16.msra.mxu0 %v21663_v1  ;;  %3909 = vmatpush1.bf16.msra.mxu1 %v21663_v1  ;;  %v21732_v1 = vld [vmem:[%s28825_s1 + $0x610] ss:$8 sps:$4 sm:$0xff]  }
 0x12c   :  { %1892 = vmatprep.subr.bf16.mxu0 %v21668_v2  ;;  %3910 = vmatprep.subr.bf16.mxu1 %v21668_v2  ;;  %v21737_v2 = vld [vmem:[%s28825_s1 + $0x624] ss:$8 sps:$4 sm:$0xff]  }
 0x12f   :  { %1893 = vmatpush1.bf16.msra.mxu0 %v21666_v3  ;;  %3911 = vmatpush1.bf16.msra.mxu1 %v21666_v3  ;;  %v21735_v3 = vld [vmem:[%s28825_s1 + $0x620] ss:$8 sps:$4 sm:$0xff]  }
 0x130   :  { %1894 = vmatprep.subr.bf16.mxu0 %v21671_v4  ;;  %3912 = vmatprep.subr.bf16.mxu1 %v21671_v4  ;;  %v21740_v4 = vld [vmem:[%s28825_s1 + $0x634] ss:$8 sps:$4 sm:$0xff]  }
 0x133   :  { %1895 = vmatpush1.bf16.msra.mxu0 %v21669_v5  ;;  %3913 = vmatpush1.bf16.msra.mxu1 %v21669_v5  ;;  %v21738_v5 = vld [vmem:[%s28825_s1 + $0x630] ss:$8 sps:$4 sm:$0xff]  }
 0x134   :  { %1896 = vmatprep.subr.bf16.mxu0 %v21674_v6  ;;  %3914 = vmatprep.subr.bf16.mxu1 %v21674_v6  ;;  %v21743_v6 = vld [vmem:[%s28825_s1 + $0x644] ss:$8 sps:$4 sm:$0xff]  }
 0x137   :  { %1897 = vmatpush1.bf16.msra.mxu0 %v21672_v7  ;;  %3915 = vmatpush1.bf16.msra.mxu1 %v21672_v7  ;;  %v21741_v7 = vld [vmem:[%s28825_s1 + $0x640] ss:$8 sps:$4 sm:$0xff]  }
 0x138   :  { %1898 = vmatprep.subr.bf16.mxu0 %v21677_v8  ;;  %3916 = vmatprep.subr.bf16.mxu1 %v21677_v8  ;;  %v21746_v8 = vld [vmem:[%s28825_s1 + $0x654] ss:$8 sps:$4 sm:$0xff]  }
 0x13b   :  { %1899 = vmatpush1.bf16.msra.mxu0 %v21675_v9  ;;  %3917 = vmatpush1.bf16.msra.mxu1 %v21675_v9  ;;  %v21744_v9 = vld [vmem:[%s28825_s1 + $0x650] ss:$8 sps:$4 sm:$0xff]  }
 0x13c   :  { %1900 = vmatprep.subr.bf16.mxu0 %v21680_v10  ;;  %3918 = vmatprep.subr.bf16.mxu1 %v21680_v10  ;;  %v21749_v10 = vld [vmem:[%s28825_s1 + $0x664] ss:$8 sps:$4 sm:$0xff]  }
 0x13f   :  { %1901 = vmatpush1.bf16.msra.mxu0 %v21678_v11  ;;  %3919 = vmatpush1.bf16.msra.mxu1 %v21678_v11  ;;  %v21747_v11 = vld [vmem:[%s28825_s1 + $0x660] ss:$8 sps:$4 sm:$0xff]  }
 0x140   :  { %1911 = vmatprep.subr.bf16.mxu0 %v21683_v13  ;;  %3929 = vmatprep.subr.bf16.mxu1 %v21683_v13  ;;  %v21752_v13 = vld [vmem:[%s28825_s1 + $0x674] ss:$8 sps:$4 sm:$0xff]  }
 0x142   :  { %1903 = vmatmul.mubr.bf16.vlgmr.msra.gmra.mrb[0].mxu0 %v24023_v14  ;;  %3921 = vmatmul.mubr.bf16.vlgmr.msra.gmra.mrb[0].mxu1 %v24027_v15  ;;  %v21750_v14 = vld [vmem:[%s28825_s1 + $0x670] ss:$8 sps:$4 sm:$0xff]   ;;  %v21755_v15 = vld [vmem:[%s28825_s1 + $0x684] ss:$8 sps:$4 sm:$0xff]  }
 0x143   :  { %1912 = vmatpush1.bf16.msra.mxu0 %v21681_v17  ;;  %3930 = vmatpush1.bf16.msra.mxu1 %v21681_v17  ;;  %v21753_v17 = vld [vmem:[%s28825_s1 + $0x680] ss:$8 sps:$4 sm:$0xff]  }
 0x144   :  { %1913 = vmatprep.subr.bf16.mxu0 %v21686_v18  ;;  %3931 = vmatprep.subr.bf16.mxu1 %v21686_v18  ;;  %v21758_v18 = vld [vmem:[%s28825_s1 + $0x694] ss:$8 sps:$4 sm:$0xff]  }
 0x145   :  { %1943 = vmatprep.mubr.bf16.mxu0 %v408_v20  ;;  %3961 = vmatprep.mubr.bf16.mxu1 %v2426_v21  ;;  %v21756_v20 = vld [vmem:[%s28825_s1 + $0x690] ss:$8 sps:$4 sm:$0xff]   ;;  %v21761_v21 = vld [vmem:[%s28825_s1 + $0x6a4] ss:$8 sps:$4 sm:$0xff]  }
 0x147   :  { %1914 = vmatpush1.bf16.msra.mxu0 %v21684_v23  ;;  %3932 = vmatpush1.bf16.msra.mxu1 %v21684_v23  ;;  %v21759_v23 = vld [vmem:[%s28825_s1 + $0x6a0] ss:$8 sps:$4 sm:$0xff]  }
 0x148   :  { %1915 = vmatprep.subr.bf16.mxu0 %v21689_v19  ;;  %3933 = vmatprep.subr.bf16.mxu1 %v21689_v19  ;;  %v21764_v19 = vld [vmem:[%s28825_s1 + $0x6b4] ss:$8 sps:$4 sm:$0xff]  }
 0x14b   :  { %1916 = vmatpush1.bf16.msra.mxu0 %v21687_v22  ;;  %3934 = vmatpush1.bf16.msra.mxu1 %v21687_v22  ;;  %v21762_v22 = vld [vmem:[%s28825_s1 + $0x6b0] ss:$8 sps:$4 sm:$0xff]  }
 0x14c   :  { %1917 = vmatprep.subr.bf16.mxu0 %v21692_v24  ;;  %3935 = vmatprep.subr.bf16.mxu1 %v21692_v24  ;;  %v21767_v24 = vld [vmem:[%s28825_s1 + $0x6c4] ss:$8 sps:$4 sm:$0xff]  }
 0x14f   :  { %1918 = vmatpush1.bf16.msra.mxu0 %v21690_v25  ;;  %3936 = vmatpush1.bf16.msra.mxu1 %v21690_v25  ;;  %v21765_v25 = vld [vmem:[%s28825_s1 + $0x6c0] ss:$8 sps:$4 sm:$0xff]  }
 0x150   :  { %1919 = vmatprep.subr.bf16.mxu0 %v21695_v26  ;;  %3937 = vmatprep.subr.bf16.mxu1 %v21695_v26  ;;  %v21770_v26 = vld [vmem:[%s28825_s1 + $0x6d4] ss:$8 sps:$4 sm:$0xff]  }
 0x153   :  { %1920 = vmatpush1.bf16.msra.mxu0 %v21693_v27  ;;  %3938 = vmatpush1.bf16.msra.mxu1 %v21693_v27  ;;  %v21768_v27 = vld [vmem:[%s28825_s1 + $0x6d0] ss:$8 sps:$4 sm:$0xff]  }
 0x154   :  { %1921 = vmatprep.subr.bf16.mxu0 %v21698_v28  ;;  %3939 = vmatprep.subr.bf16.mxu1 %v21698_v28  ;;  %v21773_v28 = vld [vmem:[%s28825_s1 + $0x6e4] ss:$8 sps:$4 sm:$0xff]  }
 0x157   :  { %1922 = vmatpush1.bf16.msra.mxu0 %v21696_v29  ;;  %3940 = vmatpush1.bf16.msra.mxu1 %v21696_v29  ;;  %v21771_v29 = vld [vmem:[%s28825_s1 + $0x6e0] ss:$8 sps:$4 sm:$0xff]  }
 0x158   :  { %1923 = vmatprep.subr.bf16.mxu0 %v21701_v30  ;;  %3941 = vmatprep.subr.bf16.mxu1 %v21701_v30  ;;  %v21776_v30 = vld [vmem:[%s28825_s1 + $0x6f4] ss:$8 sps:$4 sm:$0xff]  }
 0x15b   :  { %1924 = vmatpush1.bf16.msra.mxu0 %v21699_v31  ;;  %3942 = vmatpush1.bf16.msra.mxu1 %v21699_v31  ;;  %v21774_v31 = vld [vmem:[%s28825_s1 + $0x6f0] ss:$8 sps:$4 sm:$0xff]  }
 0x15c   :  { %1925 = vmatprep.subr.bf16.mxu0 %v21704_v32  ;;  %3943 = vmatprep.subr.bf16.mxu1 %v21704_v32  ;;  %v21780_v32 = vld [vmem:[%s28825_s1 + $0x704] ss:$8 sps:$4 sm:$0xff]  }
 0x15f   :  { %1926 = vmatpush1.bf16.msra.mxu0 %v21702_v33  ;;  %3944 = vmatpush1.bf16.msra.mxu1 %v21702_v33  ;;  %v24257_v33 = vrot.slane %v24132_v53, %v23464_v16  ;;  %v21803_v53 = vld [vmem:[%s28825_s1 + $0x780] ss:$8 sps:$4 sm:$0xff]  }
 0x160   :  { %1927 = vmatprep.subr.bf16.mxu0 %v21707_v34  ;;  %3945 = vmatprep.subr.bf16.mxu1 %v21707_v34  ;;  %v24261_v34 = vrot.slane %v24135_v54, %v23464_v16  ;;  %v21808_v54 = vld [vmem:[%s28825_s1 + $0x794] ss:$8 sps:$4 sm:$0xff]  }
 0x163   :  { %1928 = vmatpush1.bf16.msra.mxu0 %v21705_v35  ;;  %3946 = vmatpush1.bf16.msra.mxu1 %v21705_v35  ;;  %v21778_v35 = vld [vmem:[%s28825_s1 + $0x700] ss:$8 sps:$4 sm:$0xff]  }
 0x164   :  { %1929 = vmatprep.subr.bf16.mxu0 %v21710_v36  ;;  %3947 = vmatprep.subr.bf16.mxu1 %v21710_v36  ;;  %v21784_v36 = vld [vmem:[%s28825_s1 + $0x714] ss:$8 sps:$4 sm:$0xff]  }
 0x167   :  { %1930 = vmatpush1.bf16.msra.mxu0 %v21708_v37  ;;  %3948 = vmatpush1.bf16.msra.mxu1 %v21708_v37  ;;  %v409_v37 = vcombine.high %v24158_v63, %v24158_v63 }
 0x168   :  { %1931 = vmatprep.subr.bf16.mxu0 %v21713_v38  ;;  %3949 = vmatprep.subr.bf16.mxu1 %v21713_v38  ;;  %v2427_v38 = vcombine.high %v24161_v0, %v24161_v0 }
 0x16b   :  { %1932 = vmatpush1.bf16.msra.mxu0 %v21711_v39  ;;  %3950 = vmatpush1.bf16.msra.mxu1 %v21711_v39  ;;  %v21782_v39 = vld [vmem:[%s28825_s1 + $0x710] ss:$8 sps:$4 sm:$0xff]  }
 0x16c   :  { %1933 = vmatprep.subr.bf16.mxu0 %v21716_v40  ;;  %3951 = vmatprep.subr.bf16.mxu1 %v21716_v40  ;;  %v21787_v40 = vld [vmem:[%s28825_s1 + $0x724] ss:$8 sps:$4 sm:$0xff]  }
 0x16f   :  { %1934 = vmatpush1.bf16.msra.mxu0 %v21714_v41  ;;  %3952 = vmatpush1.bf16.msra.mxu1 %v21714_v41  ;;  %v21785_v41 = vld [vmem:[%s28825_s1 + $0x720] ss:$8 sps:$4 sm:$0xff]  }
 0x170   :  { %1935 = vmatprep.subr.bf16.mxu0 %v21719_v42  ;;  %3953 = vmatprep.subr.bf16.mxu1 %v21719_v42  ;;  %v21790_v42 = vld [vmem:[%s28825_s1 + $0x734] ss:$8 sps:$4 sm:$0xff]  }
 0x173   :  { %1936 = vmatpush1.bf16.msra.mxu0 %v21717_v43  ;;  %3954 = vmatpush1.bf16.msra.mxu1 %v21717_v43  ;;  %v21788_v43 = vld [vmem:[%s28825_s1 + $0x730] ss:$8 sps:$4 sm:$0xff]  }
 0x174   :  { %1937 = vmatprep.subr.bf16.mxu0 %v21722_v44  ;;  %3955 = vmatprep.subr.bf16.mxu1 %v21722_v44  ;;  %v21793_v44 = vld [vmem:[%s28825_s1 + $0x744] ss:$8 sps:$4 sm:$0xff]  }
 0x177   :  { %1938 = vmatpush1.bf16.msra.mxu0 %v21720_v45  ;;  %3956 = vmatpush1.bf16.msra.mxu1 %v21720_v45  ;;  %v21791_v45 = vld [vmem:[%s28825_s1 + $0x740] ss:$8 sps:$4 sm:$0xff]  }
 0x178   :  { %1939 = vmatprep.subr.bf16.mxu0 %v21725_v46  ;;  %3957 = vmatprep.subr.bf16.mxu1 %v21725_v46  ;;  %v21796_v46 = vld [vmem:[%s28825_s1 + $0x754] ss:$8 sps:$4 sm:$0xff]  }
 0x17b   :  { %1940 = vmatpush1.bf16.msra.mxu0 %v21723_v51  ;;  %3958 = vmatpush1.bf16.msra.mxu1 %v21723_v51  ;;  %v21800_v51 = vld [vmem:[%s28825_s1 + $0x770] ss:$8 sps:$4 sm:$0xff]  }
 0x17c   :  { %1941 = vmatprep.subr.bf16.mxu0 %v21728_v52  ;;  %3959 = vmatprep.subr.bf16.mxu1 %v21728_v52  ;;  %v21805_v52 = vld [vmem:[%s28825_s1 + $0x784] ss:$8 sps:$4 sm:$0xff]  }
 0x17f   :  { %1942 = vmatpush1.bf16.msra.mxu0 %v21726_v55  ;;  %3960 = vmatpush1.bf16.msra.mxu1 %v21726_v55  ;;  %v21806_v55 = vld [vmem:[%s28825_s1 + $0x790] ss:$8 sps:$4 sm:$0xff]  }
 0x180   :  { %1952 = vmatprep.subr.bf16.mxu0 %v21731_v56  ;;  %3970 = vmatprep.subr.bf16.mxu1 %v21731_v56  ;;  %v21811_v56 = vld [vmem:[%s28825_s1 + $0x7a4] ss:$8 sps:$4 sm:$0xff]  }
 0x182   :  { %1944 = vmatmul.mubr.bf16.vlgmr.msra.gmra.mrb[0].mxu0 %v406_v60  ;;  %3962 = vmatmul.mubr.bf16.vlgmr.msra.gmra.mrb[0].mxu1 %v2424_v61  ;;  %v21817_v60 = vld [vmem:[%s28825_s1 + $0x7c4] ss:$8 sps:$4 sm:$0xff]   ;;  %v21815_v61 = vld [vmem:[%s28825_s1 + $0x7c0] ss:$8 sps:$4 sm:$0xff]  }
 0x183   :  { %1953 = vmatpush1.bf16.msra.mxu0 %v21729_v57  ;;  %3971 = vmatpush1.bf16.msra.mxu1 %v21729_v57  ;;  %v21809_v57 = vld [vmem:[%s28825_s1 + $0x7a0] ss:$8 sps:$4 sm:$0xff]  }
 0x184   :  { %1954 = vmatprep.subr.bf16.mxu0 %v21734_v62  ;;  %3972 = vmatprep.subr.bf16.mxu1 %v21734_v62  ;;  %v21820_v62 = vld [vmem:[%s28825_s1 + $0x7d4] ss:$8 sps:$4 sm:$0xff]  }
 0x185   :  { %1984 = vmatprep.mubr.bf16.mxu0 %v24158_v63  ;;  %4002 = vmatprep.mubr.bf16.mxu1 %v24161_v0  ;;  %v21818_v63 = vld [vmem:[%s28825_s1 + $0x7d0] ss:$8 sps:$4 sm:$0xff]   ;;  %v21823_v0 = vld [vmem:[%s28825_s1 + $0x7e4] ss:$8 sps:$4 sm:$0xff]  }
 0x187   :  { %1955 = vmatpush1.bf16.msra.mxu0 %v21732_v1  ;;  %3973 = vmatpush1.bf16.msra.mxu1 %v21732_v1  ;;  %v24356_v1 = vld [vmem:[%s28824_s0 + $0x20] sm:$0xff] }
 0x188   :  { %1956 = vmatprep.subr.bf16.mxu0 %v21737_v2  ;;  %3974 = vmatprep.subr.bf16.mxu1 %v21737_v2  ;;  %v24361_v2 = vld [vmem:[%s28824_s0 + $0x30] sm:$0xff] }
 0x18b   :  { %1957 = vmatpush1.bf16.msra.mxu0 %v21735_v3  ;;  %3975 = vmatpush1.bf16.msra.mxu1 %v21735_v3  ;;  %v21821_v3 = vld [vmem:[%s28825_s1 + $0x7e0] ss:$8 sps:$4 sm:$0xff]  }
 0x18c   :  { %1958 = vmatprep.subr.bf16.mxu0 %v21740_v4  ;;  %3976 = vmatprep.subr.bf16.mxu1 %v21740_v4  ;;  %v21826_v4 = vld [vmem:[%s28825_s1 + $0x7f4] ss:$8 sps:$4 sm:$0xff]  }
 0x18f   :  { %1959 = vmatpush1.bf16.msra.mxu0 %v21738_v5  ;;  %3977 = vmatpush1.bf16.msra.mxu1 %v21738_v5  ;;  %v24371_v5 = vrot.slane %v24356_v1, %v23464_v16 }
 0x190   :  { %1960 = vmatprep.subr.bf16.mxu0 %v21743_v6  ;;  %3978 = vmatprep.subr.bf16.mxu1 %v21743_v6  ;;  %v24375_v6 = vrot.slane %v24361_v2, %v23464_v16 }
 0x193   :  { %1961 = vmatpush1.bf16.msra.mxu0 %v21741_v7  ;;  %3979 = vmatpush1.bf16.msra.mxu1 %v21741_v7  ;;  %v21824_v7 = vld [vmem:[%s28825_s1 + $0x7f0] ss:$8 sps:$4 sm:$0xff]  }
 0x194   :  { %1962 = vmatprep.subr.bf16.mxu0 %v21746_v8  ;;  %3980 = vmatprep.subr.bf16.mxu1 %v21746_v8  ;;  %v21829_v8 = vld [vmem:[%s28825_s1 + $0x4] ss:$8 sps:$4 sm:$0xff]  }
 0x197   :  { %1963 = vmatpush1.bf16.msra.mxu0 %v21744_v9  ;;  %3981 = vmatpush1.bf16.msra.mxu1 %v21744_v9  ;;  %v4364_v9 = vcombine.high %v24371_v5, %v24371_v5 }
 0x198   :  { %1964 = vmatprep.subr.bf16.mxu0 %v21749_v10  ;;  %3982 = vmatprep.subr.bf16.mxu1 %v21749_v10  ;;  %v6383_v10 = vcombine.high %v24375_v6, %v24375_v6 }
 0x19b   :  { %1965 = vmatpush1.bf16.msra.mxu0 %v21747_v11  ;;  %3983 = vmatpush1.bf16.msra.mxu1 %v21747_v11  ;;  %v407_v11 = vcombine.high %v24257_v33, %v24257_v33 }
 0x19c   :  { %1966 = vmatprep.subr.bf16.mxu0 %v21752_v13  ;;  %3984 = vmatprep.subr.bf16.mxu1 %v21752_v13  ;;  %v2425_v13 = vcombine.high %v24261_v34, %v24261_v34 }
 0x19f   :  { %1967 = vmatpush1.bf16.msra.mxu0 %v21750_v14  ;;  %3985 = vmatpush1.bf16.msra.mxu1 %v21750_v14  ;;  %v21827_v14 = vld [vmem:[%s28825_s1] ss:$8 sps:$4 sm:$0xff]  }
 0x1a0   :  { %1968 = vmatprep.subr.bf16.mxu0 %v21755_v15  ;;  %3986 = vmatprep.subr.bf16.mxu1 %v21755_v15  ;;  %v21832_v15 = vld [vmem:[%s28825_s1 + $0x14] ss:$8 sps:$4 sm:$0xff]  }
 0x1a3   :  { %1969 = vmatpush1.bf16.msra.mxu0 %v21753_v17  ;;  %3987 = vmatpush1.bf16.msra.mxu1 %v21753_v17  ;;  %v24398_v17 = vrot.slane %v4364_v9, %v23464_v16 }
 0x1a4   :  { %1970 = vmatprep.subr.bf16.mxu0 %v21758_v18  ;;  %3988 = vmatprep.subr.bf16.mxu1 %v21758_v18  ;;  %v24401_v18 = vrot.slane %v6383_v10, %v23464_v16 }
 0x1a7   :  { %1971 = vmatpush1.bf16.msra.mxu0 %v21756_v20  ;;  %3989 = vmatpush1.bf16.msra.mxu1 %v21756_v20  ;;  %v21830_v20 = vld [vmem:[%s28825_s1 + $0x10] ss:$8 sps:$4 sm:$0xff]  }
 0x1a8   :  { %1972 = vmatprep.subr.bf16.mxu0 %v21761_v21  ;;  %3990 = vmatprep.subr.bf16.mxu1 %v21761_v21  ;;  %v21835_v21 = vld [vmem:[%s28825_s1 + $0x24] ss:$8 sps:$4 sm:$0xff]  }
 0x1ab   :  { %1973 = vmatpush1.bf16.msra.mxu0 %v21759_v23  ;;  %3991 = vmatpush1.bf16.msra.mxu1 %v21759_v23  ;;  %v21833_v23 = vld [vmem:[%s28825_s1 + $0x20] ss:$8 sps:$4 sm:$0xff]  }
 0x1ac   :  { %1974 = vmatprep.subr.bf16.mxu0 %v21764_v19  ;;  %3992 = vmatprep.subr.bf16.mxu1 %v21764_v19  ;;  %v21838_v19 = vld [vmem:[%s28825_s1 + $0x34] ss:$8 sps:$4 sm:$0xff]  }
 0x1af   :  { %1975 = vmatpush1.bf16.msra.mxu0 %v21762_v22  ;;  %3993 = vmatpush1.bf16.msra.mxu1 %v21762_v22  ;;  %v21836_v22 = vld [vmem:[%s28825_s1 + $0x30] ss:$8 sps:$4 sm:$0xff]  }
 0x1b0   :  { %1976 = vmatprep.subr.bf16.mxu0 %v21767_v24  ;;  %3994 = vmatprep.subr.bf16.mxu1 %v21767_v24  ;;  %v21841_v24 = vld [vmem:[%s28825_s1 + $0x44] ss:$8 sps:$4 sm:$0xff]  }
 0x1b3   :  { %1977 = vmatpush1.bf16.msra.mxu0 %v21765_v25  ;;  %3995 = vmatpush1.bf16.msra.mxu1 %v21765_v25  ;;  %v21839_v25 = vld [vmem:[%s28825_s1 + $0x40] ss:$8 sps:$4 sm:$0xff]  }
 0x1b4   :  { %1978 = vmatprep.subr.bf16.mxu0 %v21770_v26  ;;  %3996 = vmatprep.subr.bf16.mxu1 %v21770_v26  ;;  %v21844_v26 = vld [vmem:[%s28825_s1 + $0x54] ss:$8 sps:$4 sm:$0xff]  }
 0x1b7   :  { %1979 = vmatpush1.bf16.msra.mxu0 %v21768_v27  ;;  %3997 = vmatpush1.bf16.msra.mxu1 %v21768_v27  ;;  %v21842_v27 = vld [vmem:[%s28825_s1 + $0x50] ss:$8 sps:$4 sm:$0xff]  }
 0x1b8   :  { %1980 = vmatprep.subr.bf16.mxu0 %v21773_v28  ;;  %3998 = vmatprep.subr.bf16.mxu1 %v21773_v28  ;;  %v21847_v28 = vld [vmem:[%s28825_s1 + $0x64] ss:$8 sps:$4 sm:$0xff]  }
 0x1bb   :  { %1981 = vmatpush1.bf16.msra.mxu0 %v21771_v29  ;;  %3999 = vmatpush1.bf16.msra.mxu1 %v21771_v29  ;;  %v21845_v29 = vld [vmem:[%s28825_s1 + $0x60] ss:$8 sps:$4 sm:$0xff]  }
 0x1bc   :  { %1982 = vmatprep.subr.bf16.mxu0 %v21776_v30  ;;  %4000 = vmatprep.subr.bf16.mxu1 %v21776_v30  ;;  %v21850_v30 = vld [vmem:[%s28825_s1 + $0x74] ss:$8 sps:$4 sm:$0xff]  }
 0x1bf   :  { %1983 = vmatpush1.bf16.msra.mxu0 %v21774_v31  ;;  %4001 = vmatpush1.bf16.msra.mxu1 %v21774_v31  ;;  %v21848_v31 = vld [vmem:[%s28825_s1 + $0x70] ss:$8 sps:$4 sm:$0xff]  }
 0x1c0   :  { %1993 = vmatprep.subr.bf16.mxu0 %v21780_v32  ;;  %4011 = vmatprep.subr.bf16.mxu1 %v21780_v32  ;;  %v21853_v32 = vld [vmem:[%s28825_s1 + $0x84] ss:$8 sps:$4 sm:$0xff]  }
 0x1c2   :  { %1985 = vmatmul.mubr.bf16.vlgmr.msra.gmra.mrb[0].mxu0 %v24257_v33  ;;  %4003 = vmatmul.mubr.bf16.vlgmr.msra.gmra.mrb[0].mxu1 %v24261_v34  ;;  %v21851_v33 = vld [vmem:[%s28825_s1 + $0x80] ss:$8 sps:$4 sm:$0xff]   ;;  %v21856_v34 = vld [vmem:[%s28825_s1 + $0x94] ss:$8 sps:$4 sm:$0xff]  }
 0x1c3   :  { %1994 = vmatpush1.bf16.msra.mxu0 %v21778_v35  ;;  %4012 = vmatpush1.bf16.msra.mxu1 %v21778_v35  ;;  %v21854_v35 = vld [vmem:[%s28825_s1 + $0x90] ss:$8 sps:$4 sm:$0xff]  }
 0x1c4   :  { %1995 = vmatprep.subr.bf16.mxu0 %v21784_v36  ;;  %4013 = vmatprep.subr.bf16.mxu1 %v21784_v36  ;;  %v21859_v36 = vld [vmem:[%s28825_s1 + $0xa4] ss:$8 sps:$4 sm:$0xff]  }
 0x1c5   :  { %2025 = vmatprep.mubr.bf16.mxu0 %v409_v37  ;;  %4043 = vmatprep.mubr.bf16.mxu1 %v2427_v38 }
 0x1c7   :  { %1996 = vmatpush1.bf16.msra.mxu0 %v21782_v39  ;;  %4014 = vmatpush1.bf16.msra.mxu1 %v21782_v39 }
 0x1c8   :  { %1997 = vmatprep.subr.bf16.mxu0 %v21787_v40  ;;  %4015 = vmatprep.subr.bf16.mxu1 %v21787_v40 }
 0x1cb   :  { %1998 = vmatpush1.bf16.msra.mxu0 %v21785_v41  ;;  %4016 = vmatpush1.bf16.msra.mxu1 %v21785_v41 }
 0x1cc   :  { %1999 = vmatprep.subr.bf16.mxu0 %v21790_v42  ;;  %4017 = vmatprep.subr.bf16.mxu1 %v21790_v42 }
 0x1cf   :  { %2000 = vmatpush1.bf16.msra.mxu0 %v21788_v43  ;;  %4018 = vmatpush1.bf16.msra.mxu1 %v21788_v43 }
 0x1d0   :  { %2001 = vmatprep.subr.bf16.mxu0 %v21793_v44  ;;  %4019 = vmatprep.subr.bf16.mxu1 %v21793_v44 }
 0x1d3   :  { %2002 = vmatpush1.bf16.msra.mxu0 %v21791_v45  ;;  %4020 = vmatpush1.bf16.msra.mxu1 %v21791_v45 }
 0x1d4   :  { %2003 = vmatprep.subr.bf16.mxu0 %v21796_v46  ;;  %4021 = vmatprep.subr.bf16.mxu1 %v21796_v46 }
 0x1d7   :  { %2004 = vmatpush1.bf16.msra.mxu0 %v21794_v47  ;;  %4022 = vmatpush1.bf16.msra.mxu1 %v21794_v47 }
 0x1d8   :  { %2005 = vmatprep.subr.bf16.mxu0 %v21799_v48  ;;  %4023 = vmatprep.subr.bf16.mxu1 %v21799_v48 }
 0x1db   :  { %2006 = vmatpush1.bf16.msra.mxu0 %v21797_v49  ;;  %4024 = vmatpush1.bf16.msra.mxu1 %v21797_v49 }
 0x1dc   :  { %2007 = vmatprep.subr.bf16.mxu0 %v21802_v50  ;;  %4025 = vmatprep.subr.bf16.mxu1 %v21802_v50 }
 0x1df   :  { %2008 = vmatpush1.bf16.msra.mxu0 %v21800_v51  ;;  %4026 = vmatpush1.bf16.msra.mxu1 %v21800_v51 }
 0x1e0   :  { %2009 = vmatprep.subr.bf16.mxu0 %v21805_v52  ;;  %4027 = vmatprep.subr.bf16.mxu1 %v21805_v52 }
 0x1e3   :  { %2010 = vmatpush1.bf16.msra.mxu0 %v21803_v53  ;;  %4028 = vmatpush1.bf16.msra.mxu1 %v21803_v53 }
 0x1e4   :  { %2011 = vmatprep.subr.bf16.mxu0 %v21808_v54  ;;  %4029 = vmatprep.subr.bf16.mxu1 %v21808_v54 }
 0x1e7   :  { %2012 = vmatpush1.bf16.msra.mxu0 %v21806_v55  ;;  %4030 = vmatpush1.bf16.msra.mxu1 %v21806_v55 }
 0x1e8   :  { %2013 = vmatprep.subr.bf16.mxu0 %v21811_v56  ;;  %4031 = vmatprep.subr.bf16.mxu1 %v21811_v56 }
 0x1eb   :  { %2014 = vmatpush1.bf16.msra.mxu0 %v21809_v57  ;;  %4032 = vmatpush1.bf16.msra.mxu1 %v21809_v57 }
 0x1ec   :  { %2015 = vmatprep.subr.bf16.mxu0 %v21814_v58  ;;  %4033 = vmatprep.subr.bf16.mxu1 %v21814_v58 }
 0x1ef   :  { %2016 = vmatpush1.bf16.msra.mxu0 %v21812_v59  ;;  %4034 = vmatpush1.bf16.msra.mxu1 %v21812_v59 }
 0x1f0   :  { %2017 = vmatprep.subr.bf16.mxu0 %v21817_v60  ;;  %4035 = vmatprep.subr.bf16.mxu1 %v21817_v60 }
 0x1f3   :  { %2018 = vmatpush1.bf16.msra.mxu0 %v21815_v61  ;;  %4036 = vmatpush1.bf16.msra.mxu1 %v21815_v61 }
 0x1f4   :  { %2019 = vmatprep.subr.bf16.mxu0 %v21820_v62  ;;  %4037 = vmatprep.subr.bf16.mxu1 %v21820_v62 }
 0x1f7   :  { %2020 = vmatpush1.bf16.msra.mxu0 %v21818_v63  ;;  %4038 = vmatpush1.bf16.msra.mxu1 %v21818_v63 }
 0x1f8   :  { %2021 = vmatprep.subr.bf16.mxu0 %v21823_v0  ;;  %4039 = vmatprep.subr.bf16.mxu1 %v21823_v0 }
 0x1fb   :  { %2022 = vmatpush1.bf16.msra.mxu0 %v21821_v3  ;;  %4040 = vmatpush1.bf16.msra.mxu1 %v21821_v3 }
 0x1fc   :  { %2023 = vmatprep.subr.bf16.mxu0 %v21826_v4  ;;  %4041 = vmatprep.subr.bf16.mxu1 %v21826_v4 }
 0x1ff   :  { %2024 = vmatpush1.bf16.msra.mxu0 %v21824_v7  ;;  %4042 = vmatpush1.bf16.msra.mxu1 %v21824_v7 }
 0x200   :  { %5743 = vmatprep.subr.bf16.mxu0 %v21829_v8  ;;  %7762 = vmatprep.subr.bf16.mxu1 %v21829_v8 }
 0x202   :  { %2026 = vmatmul.mubr.bf16.vlgmr.msra.gmra.mrb[0].mxu0 %v407_v11  ;;  %4044 = vmatmul.mubr.bf16.vlgmr.msra.gmra.mrb[0].mxu1 %v2425_v13 }
 0x203   :  { %5744 = vmatpush1.bf16.msra.mxu0 %v21827_v14  ;;  %7763 = vmatpush1.bf16.msra.mxu1 %v21827_v14 }
 0x204   :  { %5745 = vmatprep.subr.bf16.mxu0 %v21832_v15  ;;  %7764 = vmatprep.subr.bf16.mxu1 %v21832_v15 }
 0x205   :  { %5775 = vmatprep.mubr.bf16.mxu0 %v24398_v17  ;;  %7794 = vmatprep.mubr.bf16.mxu1 %v24401_v18 }
 0x207   :  { %5746 = vmatpush1.bf16.msra.mxu0 %v21830_v20  ;;  %7765 = vmatpush1.bf16.msra.mxu1 %v21830_v20 }
 0x208   :  { %5747 = vmatprep.subr.bf16.mxu0 %v21835_v21  ;;  %7766 = vmatprep.subr.bf16.mxu1 %v21835_v21 }
 0x20b   :  { %5748 = vmatpush1.bf16.msra.mxu0 %v21833_v23  ;;  %7767 = vmatpush1.bf16.msra.mxu1 %v21833_v23 }
 0x20c   :  { %5749 = vmatprep.subr.bf16.mxu0 %v21838_v19  ;;  %7768 = vmatprep.subr.bf16.mxu1 %v21838_v19 }
 0x20f   :  { %5750 = vmatpush1.bf16.msra.mxu0 %v21836_v22  ;;  %7769 = vmatpush1.bf16.msra.mxu1 %v21836_v22 }
 0x210   :  { %5751 = vmatprep.subr.bf16.mxu0 %v21841_v24  ;;  %7770 = vmatprep.subr.bf16.mxu1 %v21841_v24 }
 0x213   :  { %5752 = vmatpush1.bf16.msra.mxu0 %v21839_v25  ;;  %7771 = vmatpush1.bf16.msra.mxu1 %v21839_v25 }
 0x214   :  { %5753 = vmatprep.subr.bf16.mxu0 %v21844_v26  ;;  %7772 = vmatprep.subr.bf16.mxu1 %v21844_v26 }
 0x217   :  { %5754 = vmatpush1.bf16.msra.mxu0 %v21842_v27  ;;  %7773 = vmatpush1.bf16.msra.mxu1 %v21842_v27 }
 0x218   :  { %5755 = vmatprep.subr.bf16.mxu0 %v21847_v28  ;;  %7774 = vmatprep.subr.bf16.mxu1 %v21847_v28 }
 0x21b   :  { %5756 = vmatpush1.bf16.msra.mxu0 %v21845_v29  ;;  %7775 = vmatpush1.bf16.msra.mxu1 %v21845_v29 }
 0x21c   :  { %5757 = vmatprep.subr.bf16.mxu0 %v21850_v30  ;;  %7776 = vmatprep.subr.bf16.mxu1 %v21850_v30 }
 0x21f   :  { %5758 = vmatpush1.bf16.msra.mxu0 %v21848_v31  ;;  %7777 = vmatpush1.bf16.msra.mxu1 %v21848_v31 }
 0x220   :  { %5759 = vmatprep.subr.bf16.mxu0 %v21853_v32  ;;  %7778 = vmatprep.subr.bf16.mxu1 %v21853_v32 }
 0x223   :  { %5760 = vmatpush1.bf16.msra.mxu0 %v21851_v33  ;;  %7779 = vmatpush1.bf16.msra.mxu1 %v21851_v33 }
 0x224   :  { %5761 = vmatprep.subr.bf16.mxu0 %v21856_v34  ;;  %7780 = vmatprep.subr.bf16.mxu1 %v21856_v34 }
 0x225   :  { %16 = vsyncpa [#allocation4], 0  ;;  %v21857_v37 = vld [vmem:[%s28825_s1 + $0xa0] ss:$8 sps:$4 sm:$0xff]   ;;  %v21862_v38 = vld [vmem:[%s28825_s1 + $0xb4] ss:$8 sps:$4 sm:$0xff]   ;;  %v24497_v49 = vrot.slane %v24371_v5, %v23464_v16  ;;  %v24501_v50 = vrot.slane %v24375_v6, %v23464_v16  ;;  %v4396_v53 = vcombine.high %v24398_v17, %v24398_v17  ;;  %v6415_v54 = vcombine.high %v24401_v18, %v24401_v18 }
 0x226   :  { %v21860_v39 = vld [vmem:[%s28825_s1 + $0xb0] ss:$8 sps:$4 sm:$0xff]   ;;  %v21865_v40 = vld [vmem:[%s28825_s1 + $0xc4] ss:$8 sps:$4 sm:$0xff]   ;;  %v21863_v41 = vld [vmem:[%s28825_s1 + $0xc0] ss:$8 sps:$4 sm:$0xff]   ;;  %v4349_v23 = vcombine.high %v24356_v1, %v24356_v1  ;;  %v6368_v19 = vcombine.high %v24361_v2, %v24361_v2 }
 0x227   :  { %5762 = vmatpush1.bf16.msra.mxu0 %v21854_v35  ;;  %7781 = vmatpush1.bf16.msra.mxu1 %v21854_v35  ;;  %v21868_v42 = vld [vmem:[%s28825_s1 + $0xd4] ss:$8 sps:$4 sm:$0xff]   ;;  %v21866_v43 = vld [vmem:[%s28825_s1 + $0xd0] ss:$8 sps:$4 sm:$0xff]   ;;  %v21871_v44 = vld [vmem:[%s28825_s1 + $0xe4] ss:$8 sps:$4 sm:$0xff]   ;;  %v4394_v29 = vcombine.high %v24497_v49, %v24497_v49  ;;  %v6413_v30 = vcombine.high %v24501_v50, %v24501_v50 }
 0x228   :  { %5763 = vmatprep.subr.bf16.mxu0 %v21859_v36  ;;  %7782 = vmatprep.subr.bf16.mxu1 %v21859_v36  ;;  %v21869_v45 = vld [vmem:[%s28825_s1 + $0xe0] ss:$8 sps:$4 sm:$0xff]   ;;  %v21874_v46 = vld [vmem:[%s28825_s1 + $0xf4] ss:$8 sps:$4 sm:$0xff]   ;;  %v21872_v47 = vld [vmem:[%s28825_s1 + $0xf0] ss:$8 sps:$4 sm:$0xff]   ;;  %v24604_v25 = vrot.slane %v4349_v23, %v23464_v16  ;;  %v24607_v1 = vrot.slane %v6368_v19, %v23464_v16 }
 0x229   :  { %v21877_v48 = vld [vmem:[%s28825_s1 + $0x104] ss:$8 sps:$4 sm:$0xff]   ;;  %v21875_v51 = vld [vmem:[%s28825_s1 + $0x100] ss:$8 sps:$4 sm:$0xff]   ;;  %v21880_v52 = vld [vmem:[%s28825_s1 + $0x114] ss:$8 sps:$4 sm:$0xff]  }
 0x22a   :  { %v21878_v55 = vld [vmem:[%s28825_s1 + $0x110] ss:$8 sps:$4 sm:$0xff]   ;;  %v21883_v56 = vld [vmem:[%s28825_s1 + $0x124] ss:$8 sps:$4 sm:$0xff]   ;;  %v21881_v57 = vld [vmem:[%s28825_s1 + $0x120] ss:$8 sps:$4 sm:$0xff]   ;;  %v4365_v27 = vcombine.high %v24604_v25, %v24604_v25  ;;  %v6384_v28 = vcombine.high %v24607_v1, %v24607_v1 }
 0x22b   :  { %5764 = vmatpush1.bf16.msra.mxu0 %v21857_v37  ;;  %7783 = vmatpush1.bf16.msra.mxu1 %v21857_v37  ;;  %v21886_v58 = vld [vmem:[%s28825_s1 + $0x134] ss:$8 sps:$4 sm:$0xff]   ;;  %v21884_v59 = vld [vmem:[%s28825_s1 + $0x130] ss:$8 sps:$4 sm:$0xff]   ;;  %v21889_v60 = vld [vmem:[%s28825_s1 + $0x144] ss:$8 sps:$4 sm:$0xff]  }
 0x22c   :  { %5765 = vmatprep.subr.bf16.mxu0 %v21862_v38  ;;  %7784 = vmatprep.subr.bf16.mxu1 %v21862_v38  ;;  %v21887_v61 = vld [vmem:[%s28825_s1 + $0x140] ss:$8 sps:$4 sm:$0xff]   ;;  %v21892_v62 = vld [vmem:[%s28825_s1 + $0x154] ss:$8 sps:$4 sm:$0xff]   ;;  %v21890_v63 = vld [vmem:[%s28825_s1 + $0x150] ss:$8 sps:$4 sm:$0xff]   ;;  %v24630_v33 = vrot.slane %v4365_v27, %v23464_v16  ;;  %v24633_v34 = vrot.slane %v6384_v28, %v23464_v16 }
 0x22d   :  { %v21895_v0 = vld [vmem:[%s28825_s1 + $0x164] ss:$8 sps:$4 sm:$0xff]   ;;  %v21893_v3 = vld [vmem:[%s28825_s1 + $0x160] ss:$8 sps:$4 sm:$0xff]   ;;  %v21898_v4 = vld [vmem:[%s28825_s1 + $0x174] ss:$8 sps:$4 sm:$0xff]  }
 0x22e   :  { %v21896_v5 = vld [vmem:[%s28825_s1 + $0x170] ss:$8 sps:$4 sm:$0xff]   ;;  %v21901_v6 = vld [vmem:[%s28825_s1 + $0x184] ss:$8 sps:$4 sm:$0xff]   ;;  %v21899_v7 = vld [vmem:[%s28825_s1 + $0x180] ss:$8 sps:$4 sm:$0xff]  }
 0x22f   :  { %5766 = vmatpush1.bf16.msra.mxu0 %v21860_v39  ;;  %7785 = vmatpush1.bf16.msra.mxu1 %v21860_v39  ;;  %v21904_v8 = vld [vmem:[%s28825_s1 + $0x194] ss:$8 sps:$4 sm:$0xff]   ;;  %v21902_v9 = vld [vmem:[%s28825_s1 + $0x190] ss:$8 sps:$4 sm:$0xff]   ;;  %v21907_v10 = vld [vmem:[%s28825_s1 + $0x1a4] ss:$8 sps:$4 sm:$0xff]  }
 0x230   :  { %5767 = vmatprep.subr.bf16.mxu0 %v21865_v40  ;;  %7786 = vmatprep.subr.bf16.mxu1 %v21865_v40  ;;  %v21905_v11 = vld [vmem:[%s28825_s1 + $0x1a0] ss:$8 sps:$4 sm:$0xff]   ;;  %v21910_v13 = vld [vmem:[%s28825_s1 + $0x1b4] ss:$8 sps:$4 sm:$0xff]   ;;  %v21908_v14 = vld [vmem:[%s28825_s1 + $0x1b0] ss:$8 sps:$4 sm:$0xff]  }
 0x231   :  { %v21913_v15 = vld [vmem:[%s28825_s1 + $0x1c4] ss:$8 sps:$4 sm:$0xff]   ;;  %v21911_v17 = vld [vmem:[%s28825_s1 + $0x1c0] ss:$8 sps:$4 sm:$0xff]   ;;  %v21916_v18 = vld [vmem:[%s28825_s1 + $0x1d4] ss:$8 sps:$4 sm:$0xff]  }
 0x232   :  { %v21914_v20 = vld [vmem:[%s28825_s1 + $0x1d0] ss:$8 sps:$4 sm:$0xff]   ;;  %v21919_v21 = vld [vmem:[%s28825_s1 + $0x1e4] ss:$8 sps:$4 sm:$0xff]   ;;  %v21917_v22 = vld [vmem:[%s28825_s1 + $0x1e0] ss:$8 sps:$4 sm:$0xff]  }
 0x233   :  { %5768 = vmatpush1.bf16.msra.mxu0 %v21863_v41  ;;  %7787 = vmatpush1.bf16.msra.mxu1 %v21863_v41  ;;  %v21922_v24 = vld [vmem:[%s28825_s1 + $0x1f4] ss:$8 sps:$4 sm:$0xff]   ;;  %v21920_v2 = vld [vmem:[%s28825_s1 + $0x1f0] ss:$8 sps:$4 sm:$0xff]   ;;  %v21925_v26 = vld [vmem:[%s28825_s1 + $0x204] ss:$8 sps:$4 sm:$0xff]  }
 0x234   :  { %5769 = vmatprep.subr.bf16.mxu0 %v21868_v42  ;;  %7788 = vmatprep.subr.bf16.mxu1 %v21868_v42  ;;  %v21923_v31 = vld [vmem:[%s28825_s1 + $0x200] ss:$8 sps:$4 sm:$0xff]   ;;  %v21928_v32 = vld [vmem:[%s28825_s1 + $0x214] ss:$8 sps:$4 sm:$0xff]   ;;  %v21926_v35 = vld [vmem:[%s28825_s1 + $0x210] ss:$8 sps:$4 sm:$0xff]  }
 0x235   :  { %v21931_v36 = vld [vmem:[%s28825_s1 + $0x224] ss:$8 sps:$4 sm:$0xff]   ;;  %v21929_v37 = vld [vmem:[%s28825_s1 + $0x220] ss:$8 sps:$4 sm:$0xff]   ;;  %v21934_v38 = vld [vmem:[%s28825_s1 + $0x234] ss:$8 sps:$4 sm:$0xff]  }
 0x236   :  { %v21932_v39 = vld [vmem:[%s28825_s1 + $0x230] ss:$8 sps:$4 sm:$0xff]   ;;  %v21937_v40 = vld [vmem:[%s28825_s1 + $0x244] ss:$8 sps:$4 sm:$0xff]   ;;  %v21935_v41 = vld [vmem:[%s28825_s1 + $0x240] ss:$8 sps:$4 sm:$0xff]  }
 0x237   :  { %5770 = vmatpush1.bf16.msra.mxu0 %v21866_v43  ;;  %7789 = vmatpush1.bf16.msra.mxu1 %v21866_v43  ;;  %v21940_v42 = vld [vmem:[%s28825_s1 + $0x254] ss:$8 sps:$4 sm:$0xff]   ;;  %v21938_v43 = vld [vmem:[%s28825_s1 + $0x250] ss:$8 sps:$4 sm:$0xff]   ;;  %v24778_v23 = vsub.s32 1, %v23455_v12  ;;  %vm17598_vm0 = vcmask 523264  }
 0x238   :  { %5771 = vmatprep.subr.bf16.mxu0 %v21871_v44  ;;  %7790 = vmatprep.subr.bf16.mxu1 %v21871_v44  ;;  %v21943_v44 = vld [vmem:[%s28825_s1 + $0x264] ss:$8 sps:$4 sm:$0xff]   ;;  %v21990_v19 = vld [vmem:[%s28825_s1 + $0x354] ss:$8 sps:$4 sm:$0xff]   ;;  %s23367_s24 = smov [#allocation3]  }
 0x239   :  { %28974 = vst [vmem:[#allocation8_spill] sm:$0xff] %v24778_v23  ;;  %s18695_s25 = sshll.u32 %s23367_s24, 4  ;;  %s18696_s25 = int_to_ptr.vmem [resolvable:$true] %s18695_s25 }
 0x23a   :  { %s23341_s26 = scalar_lea.vmem %s18696_s25, 32  ;;  %p23346_p1 = scmp.lt.s32.totalorder %s18696_s25, %s18696_s25 }
 0x23b   :  { %5772 = vmatpush1.bf16.msra.mxu0 %v21869_v45  ;;  %7791 = vmatpush1.bf16.msra.mxu1 %v21869_v45  ;;  %v21941_v45 = vld [vmem:[%s28825_s1 + $0x260] ss:$8 sps:$4 sm:$0xff]   ;;  %p23342_p0 = scmp.ne.s32.totalorder %s18696_s25, %s23341_s26  ;;  %p23347_p2 = scmp.lt.s32.totalorder %s23341_s26, %s23341_s26 }
 0x23c   :  { %5773 = vmatprep.subr.bf16.mxu0 %v21874_v46  ;;  %7792 = vmatprep.subr.bf16.mxu1 %v21874_v46  ;;  %v21946_v46 = vld [vmem:[%s28825_s1 + $0x274] ss:$8 sps:$4 sm:$0xff]  }
 0x23d   :  { %p23348_p3 = por %p23347_p2, %p23346_p1 }
 0x23f   :  { %5774 = vmatpush1.bf16.msra.mxu0 %v21872_v47  ;;  %7793 = vmatpush1.bf16.msra.mxu1 %v21872_v47  ;;  %v21944_v47 = vld [vmem:[%s28825_s1 + $0x270] ss:$8 sps:$4 sm:$0xff]   ;;  %p23349_p4 = pnand %p23348_p3, %p23342_p0 }
 0x240   :  { %5784 = vmatprep.subr.bf16.mxu0 %v21877_v48  ;;  %7803 = vmatprep.subr.bf16.mxu1 %v21877_v48  ;;  %v21949_v48 = vld [vmem:[%s28825_s1 + $0x284] ss:$8 sps:$4 sm:$0xff]  }
 0x242   :  { %5776 = vmatmul.mubr.bf16.vlgmr.msra.gmra.mrb[4].mxu0 %v24497_v49  ;;  %7795 = vmatmul.mubr.bf16.vlgmr.msra.gmra.mrb[4].mxu1 %v24501_v50  ;;  %v21947_v49 = vld [vmem:[%s28825_s1 + $0x280] ss:$8 sps:$4 sm:$0xff]   ;;  %v21952_v50 = vld [vmem:[%s28825_s1 + $0x294] ss:$8 sps:$4 sm:$0xff]  }
 0x243   :  { %5785 = vmatpush1.bf16.msra.mxu0 %v21875_v51  ;;  %7804 = vmatpush1.bf16.msra.mxu1 %v21875_v51  ;;  %v21950_v51 = vld [vmem:[%s28825_s1 + $0x290] ss:$8 sps:$4 sm:$0xff]  }
 0x244   :  { %5786 = vmatprep.subr.bf16.mxu0 %v21880_v52  ;;  %7805 = vmatprep.subr.bf16.mxu1 %v21880_v52  ;;  %v21955_v52 = vld [vmem:[%s28825_s1 + $0x2a4] ss:$8 sps:$4 sm:$0xff]  }
 0x245   :  { %5816 = vmatprep.mubr.bf16.mxu0 %v4396_v53  ;;  %7835 = vmatprep.mubr.bf16.mxu1 %v6415_v54  ;;  %v21953_v53 = vld [vmem:[%s28825_s1 + $0x2a0] ss:$8 sps:$4 sm:$0xff]   ;;  %v21958_v54 = vld [vmem:[%s28825_s1 + $0x2b4] ss:$8 sps:$4 sm:$0xff]  }
 0x247   :  { %5787 = vmatpush1.bf16.msra.mxu0 %v21878_v55  ;;  %7806 = vmatpush1.bf16.msra.mxu1 %v21878_v55  ;;  %v21956_v55 = vld [vmem:[%s28825_s1 + $0x2b0] ss:$8 sps:$4 sm:$0xff]  }
 0x248   :  { %5788 = vmatprep.subr.bf16.mxu0 %v21883_v56  ;;  %7807 = vmatprep.subr.bf16.mxu1 %v21883_v56  ;;  %v21961_v56 = vld [vmem:[%s28825_s1 + $0x2c4] ss:$8 sps:$4 sm:$0xff]  }
 0x24b   :  { %5789 = vmatpush1.bf16.msra.mxu0 %v21881_v57  ;;  %7808 = vmatpush1.bf16.msra.mxu1 %v21881_v57  ;;  %v21959_v57 = vld [vmem:[%s28825_s1 + $0x2c0] ss:$8 sps:$4 sm:$0xff]  }
 0x24c   :  { %5790 = vmatprep.subr.bf16.mxu0 %v21886_v58  ;;  %7809 = vmatprep.subr.bf16.mxu1 %v21886_v58  ;;  %v21964_v58 = vld [vmem:[%s28825_s1 + $0x2d4] ss:$8 sps:$4 sm:$0xff]  }
 0x24f   :  { %5791 = vmatpush1.bf16.msra.mxu0 %v21884_v59  ;;  %7810 = vmatpush1.bf16.msra.mxu1 %v21884_v59  ;;  %v21962_v59 = vld [vmem:[%s28825_s1 + $0x2d0] ss:$8 sps:$4 sm:$0xff]  }
 0x250   :  { %5792 = vmatprep.subr.bf16.mxu0 %v21889_v60  ;;  %7811 = vmatprep.subr.bf16.mxu1 %v21889_v60  ;;  %v21967_v60 = vld [vmem:[%s28825_s1 + $0x2e4] ss:$8 sps:$4 sm:$0xff]  }
 0x253   :  { %5793 = vmatpush1.bf16.msra.mxu0 %v21887_v61  ;;  %7812 = vmatpush1.bf16.msra.mxu1 %v21887_v61  ;;  %v21965_v61 = vld [vmem:[%s28825_s1 + $0x2e0] ss:$8 sps:$4 sm:$0xff]  }
 0x254   :  { %5794 = vmatprep.subr.bf16.mxu0 %v21892_v62  ;;  %7813 = vmatprep.subr.bf16.mxu1 %v21892_v62  ;;  %v21970_v62 = vld [vmem:[%s28825_s1 + $0x2f4] ss:$8 sps:$4 sm:$0xff]  }
 0x257   :  { %5795 = vmatpush1.bf16.msra.mxu0 %v21890_v63  ;;  %7814 = vmatpush1.bf16.msra.mxu1 %v21890_v63  ;;  %v21968_v63 = vld [vmem:[%s28825_s1 + $0x2f0] ss:$8 sps:$4 sm:$0xff]  }
 0x258   :  { %5796 = vmatprep.subr.bf16.mxu0 %v21895_v0  ;;  %7815 = vmatprep.subr.bf16.mxu1 %v21895_v0  ;;  %v21974_v0 = vld [vmem:[%s28825_s1 + $0x304] ss:$8 sps:$4 sm:$0xff]  }
 0x25b   :  { %5797 = vmatpush1.bf16.msra.mxu0 %v21893_v3  ;;  %7816 = vmatpush1.bf16.msra.mxu1 %v21893_v3  ;;  %v24729_v3 = vrot.slane %v24604_v25, %v23464_v16 }
 0x25c   :  { %5798 = vmatprep.subr.bf16.mxu0 %v21898_v4  ;;  %7817 = vmatprep.subr.bf16.mxu1 %v21898_v4  ;;  %v24733_v4 = vrot.slane %v24607_v1, %v23464_v16 }
 0x25f   :  { %5799 = vmatpush1.bf16.msra.mxu0 %v21896_v5  ;;  %7818 = vmatpush1.bf16.msra.mxu1 %v21896_v5  ;;  %v21972_v5 = vld [vmem:[%s28825_s1 + $0x300] ss:$8 sps:$4 sm:$0xff]  }
 0x260   :  { %5800 = vmatprep.subr.bf16.mxu0 %v21901_v6  ;;  %7819 = vmatprep.subr.bf16.mxu1 %v21901_v6  ;;  %v21978_v6 = vld [vmem:[%s28825_s1 + $0x314] ss:$8 sps:$4 sm:$0xff]  }
 0x263   :  { %5801 = vmatpush1.bf16.msra.mxu0 %v21899_v7  ;;  %7820 = vmatpush1.bf16.msra.mxu1 %v21899_v7  ;;  %v4397_v7 = vcombine.high %v24630_v33, %v24630_v33 }
 0x264   :  { %5802 = vmatprep.subr.bf16.mxu0 %v21904_v8  ;;  %7821 = vmatprep.subr.bf16.mxu1 %v21904_v8  ;;  %v6416_v8 = vcombine.high %v24633_v34, %v24633_v34 }
 0x267   :  { %5803 = vmatpush1.bf16.msra.mxu0 %v21902_v9  ;;  %7822 = vmatpush1.bf16.msra.mxu1 %v21902_v9  ;;  %v21976_v9 = vld [vmem:[%s28825_s1 + $0x310] ss:$8 sps:$4 sm:$0xff]  }
 0x268   :  { %5804 = vmatprep.subr.bf16.mxu0 %v21907_v10  ;;  %7823 = vmatprep.subr.bf16.mxu1 %v21907_v10  ;;  %v21981_v10 = vld [vmem:[%s28825_s1 + $0x324] ss:$8 sps:$4 sm:$0xff]  }
 0x26b   :  { %5805 = vmatpush1.bf16.msra.mxu0 %v21905_v11  ;;  %7824 = vmatpush1.bf16.msra.mxu1 %v21905_v11  ;;  %v21979_v11 = vld [vmem:[%s28825_s1 + $0x320] ss:$8 sps:$4 sm:$0xff]  }
 0x26c   :  { %5806 = vmatprep.subr.bf16.mxu0 %v21910_v13  ;;  %7825 = vmatprep.subr.bf16.mxu1 %v21910_v13  ;;  %v21984_v13 = vld [vmem:[%s28825_s1 + $0x334] ss:$8 sps:$4 sm:$0xff]  }
 0x26f   :  { %5807 = vmatpush1.bf16.msra.mxu0 %v21908_v14  ;;  %7826 = vmatpush1.bf16.msra.mxu1 %v21908_v14  ;;  %v21982_v14 = vld [vmem:[%s28825_s1 + $0x330] ss:$8 sps:$4 sm:$0xff]  }
 0x270   :  { %5808 = vmatprep.subr.bf16.mxu0 %v21913_v15  ;;  %7827 = vmatprep.subr.bf16.mxu1 %v21913_v15  ;;  %v21987_v15 = vld [vmem:[%s28825_s1 + $0x344] ss:$8 sps:$4 sm:$0xff]  }
 0x273   :  { %5809 = vmatpush1.bf16.msra.mxu0 %v21911_v17  ;;  %7828 = vmatpush1.bf16.msra.mxu1 %v21911_v17  ;;  %v21985_v17 = vld [vmem:[%s28825_s1 + $0x340] ss:$8 sps:$4 sm:$0xff]  }
 0x274   :  { %5810 = vmatprep.subr.bf16.mxu0 %v21916_v18  ;;  %7829 = vmatprep.subr.bf16.mxu1 %v21916_v18  ;;  %v24769_v18 = vsub.s32 0, %v23455_v12  ;;  %v27598_v12 = vld [vmem:[%s28827_s3 + $0x1e0] ss:$8 sps:$4 sm:$0xff]  }
 0x275   :  { %28984 = vst [vmem:[#allocation18_spill] sm:$0xff] %v27598_v12 }
 0x276   :  { %28973 = vst [vmem:[#allocation7_spill] sm:$0xff] %v24769_v18 }
 0x277   :  { %5811 = vmatpush1.bf16.msra.mxu0 %v21914_v20  ;;  %7830 = vmatpush1.bf16.msra.mxu1 %v21914_v20  ;;  %v298_v20 = vld [vmem:[%s28826_s2] sm:$0x3] }
 0x278   :  { %5812 = vmatprep.subr.bf16.mxu0 %v21919_v21  ;;  %7831 = vmatprep.subr.bf16.mxu1 %v21919_v21  ;;  %v2316_v21 = vld [vmem:[%s28826_s2] sm:$0x3]  ;;  %v307_v25 = vrot.slane %v298_v20, %v24778_v23 }
 0x279   :  { %v2325_v1 = vrot.slane %v2316_v21, %v24778_v23 }
 0x27b   :  { %5813 = vmatpush1.bf16.msra.mxu0 %v21917_v22  ;;  %7832 = vmatpush1.bf16.msra.mxu1 %v21917_v22  ;;  %v303_v22 = vrot.slane %v298_v20, %v24769_v18  ;;  %v22026_v20 = vld [vmem:[%s28825_s1 + $0x414] ss:$8 sps:$4 sm:$0xff]  }
 0x27c   :  { %5814 = vmatprep.subr.bf16.mxu0 %v21922_v24  ;;  %7833 = vmatprep.subr.bf16.mxu1 %v21922_v24  ;;  %v2321_v24 = vrot.slane %v2316_v21, %v24769_v18 }
 0x27f   :  { %5815 = vmatpush1.bf16.msra.mxu0 %v21920_v2  ;;  %7834 = vmatpush1.bf16.msra.mxu1 %v21920_v2  ;;  %v21988_v2 = vld [vmem:[%s28825_s1 + $0x350] ss:$8 sps:$4 sm:$0xff]  }
 0x280   :  { %5825 = vmatprep.subr.bf16.mxu0 %v21925_v26  ;;  %7844 = vmatprep.subr.bf16.mxu1 %v21925_v26  ;;  %v21993_v26 = vld [vmem:[%s28825_s1 + $0x364] ss:$8 sps:$4 sm:$0xff]  }
 0x282   :  { %5817 = vmatmul.mubr.bf16.vlgmr.msra.gmra.mrb[4].mxu0 %v4394_v29  ;;  %7836 = vmatmul.mubr.bf16.vlgmr.msra.gmra.mrb[4].mxu1 %v6413_v30 }
 0x283   :  { %5826 = vmatpush1.bf16.msra.mxu0 %v21923_v31  ;;  %7845 = vmatpush1.bf16.msra.mxu1 %v21923_v31 }
 0x284   :  { %5827 = vmatprep.subr.bf16.mxu0 %v21928_v32  ;;  %7846 = vmatprep.subr.bf16.mxu1 %v21928_v32 }
 0x285   :  { %5857 = vmatprep.mubr.bf16.mxu0 %v24630_v33  ;;  %7876 = vmatprep.mubr.bf16.mxu1 %v24633_v34 }
 0x287   :  { %5828 = vmatpush1.bf16.msra.mxu0 %v21926_v35  ;;  %7847 = vmatpush1.bf16.msra.mxu1 %v21926_v35 }
 0x288   :  { %5829 = vmatprep.subr.bf16.mxu0 %v21931_v36  ;;  %7848 = vmatprep.subr.bf16.mxu1 %v21931_v36 }
 0x28b   :  { %5830 = vmatpush1.bf16.msra.mxu0 %v21929_v37  ;;  %7849 = vmatpush1.bf16.msra.mxu1 %v21929_v37  ;;  %v21991_v37 = vld [vmem:[%s28825_s1 + $0x360] ss:$8 sps:$4 sm:$0xff]  }
 0x28c   :  { %5831 = vmatprep.subr.bf16.mxu0 %v21934_v38  ;;  %7850 = vmatprep.subr.bf16.mxu1 %v21934_v38 }
 0x28f   :  { %5832 = vmatpush1.bf16.msra.mxu0 %v21932_v39  ;;  %7851 = vmatpush1.bf16.msra.mxu1 %v21932_v39 }
 0x290   :  { %5833 = vmatprep.subr.bf16.mxu0 %v21937_v40  ;;  %7852 = vmatprep.subr.bf16.mxu1 %v21937_v40 }
 0x293   :  { %5834 = vmatpush1.bf16.msra.mxu0 %v21935_v41  ;;  %7853 = vmatpush1.bf16.msra.mxu1 %v21935_v41 }
 0x294   :  { %5835 = vmatprep.subr.bf16.mxu0 %v21940_v42  ;;  %7854 = vmatprep.subr.bf16.mxu1 %v21940_v42  ;;  %v21996_v42 = vld [vmem:[%s28825_s1 + $0x374] ss:$8 sps:$4 sm:$0xff]  }
 0x297   :  { %5836 = vmatpush1.bf16.msra.mxu0 %v21938_v43  ;;  %7855 = vmatpush1.bf16.msra.mxu1 %v21938_v43 }
 0x298   :  { %5837 = vmatprep.subr.bf16.mxu0 %v21943_v44  ;;  %7856 = vmatprep.subr.bf16.mxu1 %v21943_v44 }
 0x29b   :  { %5838 = vmatpush1.bf16.msra.mxu0 %v21941_v45  ;;  %7857 = vmatpush1.bf16.msra.mxu1 %v21941_v45 }
 0x29c   :  { %5839 = vmatprep.subr.bf16.mxu0 %v21946_v46  ;;  %7858 = vmatprep.subr.bf16.mxu1 %v21946_v46 }
 0x29f   :  { %5840 = vmatpush1.bf16.msra.mxu0 %v21944_v47  ;;  %7859 = vmatpush1.bf16.msra.mxu1 %v21944_v47  ;;  %v21994_v47 = vld [vmem:[%s28825_s1 + $0x370] ss:$8 sps:$4 sm:$0xff]  }
 0x2a0   :  { %5841 = vmatprep.subr.bf16.mxu0 %v21949_v48  ;;  %7860 = vmatprep.subr.bf16.mxu1 %v21949_v48  ;;  %v21999_v48 = vld [vmem:[%s28825_s1 + $0x384] ss:$8 sps:$4 sm:$0xff]  }
 0x2a3   :  { %5842 = vmatpush1.bf16.msra.mxu0 %v21947_v49  ;;  %7861 = vmatpush1.bf16.msra.mxu1 %v21947_v49 }
 0x2a4   :  { %5843 = vmatprep.subr.bf16.mxu0 %v21952_v50  ;;  %7862 = vmatprep.subr.bf16.mxu1 %v21952_v50 }
 0x2a7   :  { %5844 = vmatpush1.bf16.msra.mxu0 %v21950_v51  ;;  %7863 = vmatpush1.bf16.msra.mxu1 %v21950_v51  ;;  %v21997_v51 = vld [vmem:[%s28825_s1 + $0x380] ss:$8 sps:$4 sm:$0xff]  }
 0x2a8   :  { %5845 = vmatprep.subr.bf16.mxu0 %v21955_v52  ;;  %7864 = vmatprep.subr.bf16.mxu1 %v21955_v52  ;;  %v22002_v52 = vld [vmem:[%s28825_s1 + $0x394] ss:$8 sps:$4 sm:$0xff]  }
 0x2ab   :  { %5846 = vmatpush1.bf16.msra.mxu0 %v21953_v53  ;;  %7865 = vmatpush1.bf16.msra.mxu1 %v21953_v53  ;;  %v22000_v53 = vld [vmem:[%s28825_s1 + $0x390] ss:$8 sps:$4 sm:$0xff]  }
 0x2ac   :  { %5847 = vmatprep.subr.bf16.mxu0 %v21958_v54  ;;  %7866 = vmatprep.subr.bf16.mxu1 %v21958_v54  ;;  %v22005_v54 = vld [vmem:[%s28825_s1 + $0x3a4] ss:$8 sps:$4 sm:$0xff]  }
 0x2af   :  { %5848 = vmatpush1.bf16.msra.mxu0 %v21956_v55  ;;  %7867 = vmatpush1.bf16.msra.mxu1 %v21956_v55  ;;  %v22003_v55 = vld [vmem:[%s28825_s1 + $0x3a0] ss:$8 sps:$4 sm:$0xff]  }
 0x2b0   :  { %5849 = vmatprep.subr.bf16.mxu0 %v21961_v56  ;;  %7868 = vmatprep.subr.bf16.mxu1 %v21961_v56  ;;  %v22008_v56 = vld [vmem:[%s28825_s1 + $0x3b4] ss:$8 sps:$4 sm:$0xff]  }
 0x2b3   :  { %5850 = vmatpush1.bf16.msra.mxu0 %v21959_v57  ;;  %7869 = vmatpush1.bf16.msra.mxu1 %v21959_v57  ;;  %v22006_v57 = vld [vmem:[%s28825_s1 + $0x3b0] ss:$8 sps:$4 sm:$0xff]  }
 0x2b4   :  { %5851 = vmatprep.subr.bf16.mxu0 %v21964_v58  ;;  %7870 = vmatprep.subr.bf16.mxu1 %v21964_v58  ;;  %v22011_v58 = vld [vmem:[%s28825_s1 + $0x3c4] ss:$8 sps:$4 sm:$0xff]  }
 0x2b7   :  { %5852 = vmatpush1.bf16.msra.mxu0 %v21962_v59  ;;  %7871 = vmatpush1.bf16.msra.mxu1 %v21962_v59  ;;  %v22009_v59 = vld [vmem:[%s28825_s1 + $0x3c0] ss:$8 sps:$4 sm:$0xff]  }
 0x2b8   :  { %5853 = vmatprep.subr.bf16.mxu0 %v21967_v60  ;;  %7872 = vmatprep.subr.bf16.mxu1 %v21967_v60  ;;  %v22014_v60 = vld [vmem:[%s28825_s1 + $0x3d4] ss:$8 sps:$4 sm:$0xff]  }
 0x2bb   :  { %5854 = vmatpush1.bf16.msra.mxu0 %v21965_v61  ;;  %7873 = vmatpush1.bf16.msra.mxu1 %v21965_v61  ;;  %v22012_v61 = vld [vmem:[%s28825_s1 + $0x3d0] ss:$8 sps:$4 sm:$0xff]  }
 0x2bc   :  { %5855 = vmatprep.subr.bf16.mxu0 %v21970_v62  ;;  %7874 = vmatprep.subr.bf16.mxu1 %v21970_v62  ;;  %v22017_v62 = vld [vmem:[%s28825_s1 + $0x3e4] ss:$8 sps:$4 sm:$0xff]  }
 0x2bf   :  { %5856 = vmatpush1.bf16.msra.mxu0 %v21968_v63  ;;  %7875 = vmatpush1.bf16.msra.mxu1 %v21968_v63  ;;  %v24846_v63 = vld [vmem:[%s28824_s0 + $0x28] sm:$0xff] }
 0x2c0   :  { %5866 = vmatprep.subr.bf16.mxu0 %v21974_v0  ;;  %7885 = vmatprep.subr.bf16.mxu1 %v21974_v0  ;;  %v24851_v0 = vld [vmem:[%s28824_s0 + $0x38] sm:$0xff] }
 0x2c2   :  { %5858 = vmatmul.mubr.bf16.vlgmr.msra.gmra.mrb[4].mxu0 %v24729_v3  ;;  %7877 = vmatmul.mubr.bf16.vlgmr.msra.gmra.mrb[4].mxu1 %v24733_v4 }
 0x2c3   :  { %5867 = vmatpush1.bf16.msra.mxu0 %v21972_v5  ;;  %7886 = vmatpush1.bf16.msra.mxu1 %v21972_v5  ;;  %v22015_v5 = vld [vmem:[%s28825_s1 + $0x3e0] ss:$8 sps:$4 sm:$0xff]  }
 0x2c4   :  { %5868 = vmatprep.subr.bf16.mxu0 %v21978_v6  ;;  %7887 = vmatprep.subr.bf16.mxu1 %v21978_v6  ;;  %v22020_v6 = vld [vmem:[%s28825_s1 + $0x3f4] ss:$8 sps:$4 sm:$0xff]  }
 0x2c5   :  { %5898 = vmatprep.mubr.bf16.mxu0 %v4397_v7  ;;  %7917 = vmatprep.mubr.bf16.mxu1 %v6416_v8  ;;  %v24861_v7 = vrot.slane %v24846_v63, %v23464_v16  ;;  %v24865_v8 = vrot.slane %v24851_v0, %v23464_v16 }
 0x2c7   :  { %5869 = vmatpush1.bf16.msra.mxu0 %v21976_v9  ;;  %7888 = vmatpush1.bf16.msra.mxu1 %v21976_v9  ;;  %v22018_v9 = vld [vmem:[%s28825_s1 + $0x3f0] ss:$8 sps:$4 sm:$0xff]  }
 0x2c8   :  { %5870 = vmatprep.subr.bf16.mxu0 %v21981_v10  ;;  %7889 = vmatprep.subr.bf16.mxu1 %v21981_v10  ;;  %v22023_v10 = vld [vmem:[%s28825_s1 + $0x404] ss:$8 sps:$4 sm:$0xff]  }
 0x2cb   :  { %5871 = vmatpush1.bf16.msra.mxu0 %v21979_v11  ;;  %7890 = vmatpush1.bf16.msra.mxu1 %v21979_v11  ;;  %v4413_v11 = vcombine.high %v24861_v7, %v24861_v7 }
 0x2cc   :  { %5872 = vmatprep.subr.bf16.mxu0 %v21984_v13  ;;  %7891 = vmatprep.subr.bf16.mxu1 %v21984_v13  ;;  %v6432_v13 = vcombine.high %v24865_v8, %v24865_v8 }
 0x2cd   :  { %v24888_v21 = vrot.slane %v4413_v11, %v23464_v16  ;;  %v22093_v11 = vld [vmem:[%s28825_s1 + $0x580] ss:$8 sps:$4 sm:$0xff]  }
 0x2cf   :  { %5873 = vmatpush1.bf16.msra.mxu0 %v21982_v14  ;;  %7892 = vmatpush1.bf16.msra.mxu1 %v21982_v14  ;;  %v4395_v14 = vcombine.high %v24729_v3, %v24729_v3  ;;  %v24891_v3 = vrot.slane %v6432_v13, %v23464_v16  ;;  %v22098_v13 = vld [vmem:[%s28825_s1 + $0x594] ss:$8 sps:$4 sm:$0xff]  }
 0x2d0   :  { %5874 = vmatprep.subr.bf16.mxu0 %v21987_v15  ;;  %7893 = vmatprep.subr.bf16.mxu1 %v21987_v15  ;;  %v6414_v15 = vcombine.high %v24733_v4, %v24733_v4  ;;  %v22024_v4 = vld [vmem:[%s28825_s1 + $0x410] ss:$8 sps:$4 sm:$0xff]  }
 0x2d3   :  { %5875 = vmatpush1.bf16.msra.mxu0 %v21985_v17  ;;  %7894 = vmatpush1.bf16.msra.mxu1 %v21985_v17  ;;  %v22021_v17 = vld [vmem:[%s28825_s1 + $0x400] ss:$8 sps:$4 sm:$0xff]  }
 0x2d4   :  { %5876 = vmatprep.subr.bf16.mxu0 %v21990_v19  ;;  %7895 = vmatprep.subr.bf16.mxu1 %v21990_v19  ;;  %v22029_v19 = vld [vmem:[%s28825_s1 + $0x424] ss:$8 sps:$4 sm:$0xff]  }
 0x2d5   :  { %v2027_v27 = vpop.f32.mrb[0].mxu0  ;;  %v4045_v28 = vpop.f32.mrb[0].mxu1 }
 0x2d6   :  { %v21196_v29 = vadd.f32 %v2027_v27, %v303_v22  ;;  %v21198_v30 = vadd.f32 %v4045_v28, %v2321_v24  ;;  %v2029_v31 = vpop.f32.mrb[1].mxu0  ;;  %v4047_v32 = vpop.f32.mrb[1].mxu1  ;;  %v22027_v22 = vld [vmem:[%s28825_s1 + $0x420] ss:$8 sps:$4 sm:$0xff]   ;;  %v22032_v24 = vld [vmem:[%s28825_s1 + $0x434] ss:$8 sps:$4 sm:$0xff]  }
 0x2d7   :  { %v21197_v33 = vadd.f32 %v2029_v31, %v307_v25  ;;  %v21199_v34 = vadd.f32 %v4047_v32, %v2325_v1  ;;  %v2031_v35 = vpop.f32.mrb[2].mxu0  ;;  %v4049_v36 = vpop.f32.mrb[2].mxu1  ;;  %5877 = vmatpush1.bf16.msra.mxu0 %v21988_v2  ;;  %7896 = vmatpush1.bf16.msra.mxu1 %v21988_v2  ;;  %v22030_v25 = vld [vmem:[%s28825_s1 + $0x430] ss:$8 sps:$4 sm:$0xff]   ;;  %v22035_v1 = vld [vmem:[%s28825_s1 + $0x444] ss:$8 sps:$4 sm:$0xff]  }
 0x2d8   :  { %v2034_v38 = vmax.f32 %v21196_v29, 0.0  ;;  %v4052_v39 = vmax.f32 %v21198_v30, 0.0  ;;  %v2032_v40 = vpop.f32.mrb[3].mxu0  ;;  %v4050_v41 = vpop.f32.mrb[3].mxu1  ;;  %5878 = vmatprep.subr.bf16.mxu0 %v21993_v26  ;;  %7897 = vmatprep.subr.bf16.mxu1 %v21993_v26  ;;  %v22033_v2 = vld [vmem:[%s28825_s1 + $0x440] ss:$8 sps:$4 sm:$0xff]  }
 0x2d9   :  { %v2035_v43 = vmax.f32 %v21197_v33, 0.0  ;;  %v4053_v44 = vmax.f32 %v21199_v34, 0.0  ;;  %v22038_v26 = vld [vmem:[%s28825_s1 + $0x454] ss:$8 sps:$4 sm:$0xff]   ;;  %v22036_v27 = vld [vmem:[%s28825_s1 + $0x450] ss:$8 sps:$4 sm:$0xff]  }
 0x2da   :  { %v22041_v28 = vld [vmem:[%s28825_s1 + $0x464] ss:$8 sps:$4 sm:$0xff]   ;;  %v22039_v29 = vld [vmem:[%s28825_s1 + $0x460] ss:$8 sps:$4 sm:$0xff]   ;;  %v22044_v30 = vld [vmem:[%s28825_s1 + $0x474] ss:$8 sps:$4 sm:$0xff]  }
 0x2db   :  { %v18959_v45 = vpack.c.bf16 %v2035_v43, %v2034_v38  ;;  %v19219_v46 = vpack.c.bf16 %v4053_v44, %v4052_v39  ;;  %5879 = vmatpush1.bf16.msra.mxu0 %v21991_v37  ;;  %7898 = vmatpush1.bf16.msra.mxu1 %v21991_v37  ;;  %v22042_v31 = vld [vmem:[%s28825_s1 + $0x470] ss:$8 sps:$4 sm:$0xff]   ;;  %v22047_v32 = vld [vmem:[%s28825_s1 + $0x484] ss:$8 sps:$4 sm:$0xff]   ;;  %v22045_v33 = vld [vmem:[%s28825_s1 + $0x480] ss:$8 sps:$4 sm:$0xff]  }
 0x2dc   :  { %5880 = vmatprep.subr.bf16.mxu0 %v21996_v42  ;;  %7899 = vmatprep.subr.bf16.mxu1 %v21996_v42  ;;  %v22050_v34 = vld [vmem:[%s28825_s1 + $0x494] ss:$8 sps:$4 sm:$0xff]   ;;  %v22048_v35 = vld [vmem:[%s28825_s1 + $0x490] ss:$8 sps:$4 sm:$0xff]   ;;  %v22053_v36 = vld [vmem:[%s28825_s1 + $0x4a4] ss:$8 sps:$4 sm:$0xff]  }
 0x2dd   :  { %v2047_v49 = vrot.slane %v18959_v45, %v23464_v16  ;;  %v4065_v50 = vrot.slane %v19219_v46, %v23464_v16  ;;  %v22051_v37 = vld [vmem:[%s28825_s1 + $0x4a0] ss:$8 sps:$4 sm:$0xff]   ;;  %v22056_v38 = vld [vmem:[%s28825_s1 + $0x4b4] ss:$8 sps:$4 sm:$0xff]   ;;  %v22054_v39 = vld [vmem:[%s28825_s1 + $0x4b0] ss:$8 sps:$4 sm:$0xff]  }
 0x2de   :  { %v22059_v40 = vld [vmem:[%s28825_s1 + $0x4c4] ss:$8 sps:$4 sm:$0xff]   ;;  %v22057_v41 = vld [vmem:[%s28825_s1 + $0x4c0] ss:$8 sps:$4 sm:$0xff]   ;;  %v22062_v42 = vld [vmem:[%s28825_s1 + $0x4d4] ss:$8 sps:$4 sm:$0xff]  }
 0x2df   :  { %18960 = vst.sshfl [vmem:[#allocation2] sm:$0x5 pattern:$0x73625140] %v2047_v49  ;;  %5881 = vmatpush1.bf16.msra.mxu0 %v21994_v47  ;;  %7900 = vmatpush1.bf16.msra.mxu1 %v21994_v47  ;;  %v22060_v43 = vld [vmem:[%s28825_s1 + $0x4d0] ss:$8 sps:$4 sm:$0xff]   ;;  %v24987_v49 = vrot.slane %v24861_v7, %v23464_v16 }
 0x2e0   :  { %19220 = vst.sshfl [vmem:[#allocation2 + $0x2] sm:$0x5 pattern:$0x73625140] %v4065_v50  ;;  %5882 = vmatprep.subr.bf16.mxu0 %v21999_v48  ;;  %7901 = vmatprep.subr.bf16.mxu1 %v21999_v48  ;;  %v22065_v44 = vld [vmem:[%s28825_s1 + $0x4e4] ss:$8 sps:$4 sm:$0xff]   ;;  %v24991_v50 = vrot.slane %v24865_v8, %v23464_v16 }
 0x2e1   :  { %v22063_v45 = vld [vmem:[%s28825_s1 + $0x4e0] ss:$8 sps:$4 sm:$0xff]   ;;  %v22068_v46 = vld [vmem:[%s28825_s1 + $0x4f4] ss:$8 sps:$4 sm:$0xff]   ;;  %v22066_v47 = vld [vmem:[%s28825_s1 + $0x4f0] ss:$8 sps:$4 sm:$0xff]  }
 0x2e2   :  { %v22071_v48 = vld [vmem:[%s28825_s1 + $0x504] ss:$8 sps:$4 sm:$0xff]   ;;  %v22087_v7 = vld [vmem:[%s28825_s1 + $0x560] ss:$8 sps:$4 sm:$0xff]   ;;  %v22092_v8 = vld [vmem:[%s28825_s1 + $0x574] ss:$8 sps:$4 sm:$0xff]  }
 0x2e3   :  { %5883 = vmatpush1.bf16.msra.mxu0 %v21997_v51  ;;  %7902 = vmatpush1.bf16.msra.mxu1 %v21997_v51  ;;  %v22069_v51 = vld [vmem:[%s28825_s1 + $0x500] ss:$8 sps:$4 sm:$0xff]  }
 0x2e4   :  { %5884 = vmatprep.subr.bf16.mxu0 %v22002_v52  ;;  %7903 = vmatprep.subr.bf16.mxu1 %v22002_v52  ;;  %v22074_v52 = vld [vmem:[%s28825_s1 + $0x514] ss:$8 sps:$4 sm:$0xff]  }
 0x2e7   :  { %5885 = vmatpush1.bf16.msra.mxu0 %v22000_v53  ;;  %7904 = vmatpush1.bf16.msra.mxu1 %v22000_v53  ;;  %v4445_v53 = vcombine.high %v24888_v21, %v24888_v21 }
 0x2e8   :  { %5886 = vmatprep.subr.bf16.mxu0 %v22005_v54  ;;  %7905 = vmatprep.subr.bf16.mxu1 %v22005_v54  ;;  %v6464_v54 = vcombine.high %v24891_v3, %v24891_v3 }
 0x2eb   :  { %5887 = vmatpush1.bf16.msra.mxu0 %v22003_v55  ;;  %7906 = vmatpush1.bf16.msra.mxu1 %v22003_v55  ;;  %v22072_v55 = vld [vmem:[%s28825_s1 + $0x510] ss:$8 sps:$4 sm:$0xff]  }
 0x2ec   :  { %5888 = vmatprep.subr.bf16.mxu0 %v22008_v56  ;;  %7907 = vmatprep.subr.bf16.mxu1 %v22008_v56  ;;  %v22077_v56 = vld [vmem:[%s28825_s1 + $0x524] ss:$8 sps:$4 sm:$0xff]  }
 0x2ef   :  { %5889 = vmatpush1.bf16.msra.mxu0 %v22006_v57  ;;  %7908 = vmatpush1.bf16.msra.mxu1 %v22006_v57  ;;  %v22075_v57 = vld [vmem:[%s28825_s1 + $0x520] ss:$8 sps:$4 sm:$0xff]  }
 0x2f0   :  { %5890 = vmatprep.subr.bf16.mxu0 %v22011_v58  ;;  %7909 = vmatprep.subr.bf16.mxu1 %v22011_v58  ;;  %v22080_v58 = vld [vmem:[%s28825_s1 + $0x534] ss:$8 sps:$4 sm:$0xff]  }
 0x2f3   :  { %5891 = vmatpush1.bf16.msra.mxu0 %v22009_v59  ;;  %7910 = vmatpush1.bf16.msra.mxu1 %v22009_v59  ;;  %v22078_v59 = vld [vmem:[%s28825_s1 + $0x530] ss:$8 sps:$4 sm:$0xff]  }
 0x2f4   :  { %5892 = vmatprep.subr.bf16.mxu0 %v22014_v60  ;;  %7911 = vmatprep.subr.bf16.mxu1 %v22014_v60  ;;  %v22083_v60 = vld [vmem:[%s28825_s1 + $0x544] ss:$8 sps:$4 sm:$0xff]  }
 0x2f7   :  { %5893 = vmatpush1.bf16.msra.mxu0 %v22012_v61  ;;  %7912 = vmatpush1.bf16.msra.mxu1 %v22012_v61  ;;  %v22081_v61 = vld [vmem:[%s28825_s1 + $0x540] ss:$8 sps:$4 sm:$0xff]  }
 0x2f8   :  { %5894 = vmatprep.subr.bf16.mxu0 %v22017_v62  ;;  %7913 = vmatprep.subr.bf16.mxu1 %v22017_v62  ;;  %v22086_v62 = vld [vmem:[%s28825_s1 + $0x554] ss:$8 sps:$4 sm:$0xff]  }
 0x2fb   :  { %5895 = vmatpush1.bf16.msra.mxu0 %v22015_v5  ;;  %7914 = vmatpush1.bf16.msra.mxu1 %v22015_v5  ;;  %v22084_v5 = vld [vmem:[%s28825_s1 + $0x550] ss:$8 sps:$4 sm:$0xff]  }
 0x2fc   :  { %5896 = vmatprep.subr.bf16.mxu0 %v22020_v6  ;;  %7915 = vmatprep.subr.bf16.mxu1 %v22020_v6  ;;  %v22089_v6 = vld [vmem:[%s28825_s1 + $0x564] ss:$8 sps:$4 sm:$0xff]  }
 0x2ff   :  { %5897 = vmatpush1.bf16.msra.mxu0 %v22018_v9  ;;  %7916 = vmatpush1.bf16.msra.mxu1 %v22018_v9  ;;  %v22090_v9 = vld [vmem:[%s28825_s1 + $0x570] ss:$8 sps:$4 sm:$0xff]  }
 0x300   :  { %5907 = vmatprep.subr.bf16.mxu0 %v22023_v10  ;;  %7926 = vmatprep.subr.bf16.mxu1 %v22023_v10  ;;  %v22095_v10 = vld [vmem:[%s28825_s1 + $0x584] ss:$8 sps:$4 sm:$0xff]  }
 0x302   :  { %5899 = vmatmul.mubr.bf16.vlgmr.msra.gmra.mrb[4].mxu0 %v4395_v14  ;;  %7918 = vmatmul.mubr.bf16.vlgmr.msra.gmra.mrb[4].mxu1 %v6414_v15  ;;  %v22096_v14 = vld [vmem:[%s28825_s1 + $0x590] ss:$8 sps:$4 sm:$0xff]   ;;  %v22101_v15 = vld [vmem:[%s28825_s1 + $0x5a4] ss:$8 sps:$4 sm:$0xff]  }
 0x303   :  { %5908 = vmatpush1.bf16.msra.mxu0 %v22021_v17  ;;  %7927 = vmatpush1.bf16.msra.mxu1 %v22021_v17  ;;  %v22099_v17 = vld [vmem:[%s28825_s1 + $0x5a0] ss:$8 sps:$4 sm:$0xff]  }
 0x304   :  { %5909 = vmatprep.subr.bf16.mxu0 %v22026_v20  ;;  %7928 = vmatprep.subr.bf16.mxu1 %v22026_v20  ;;  %v22104_v20 = vld [vmem:[%s28825_s1 + $0x5b4] ss:$8 sps:$4 sm:$0xff]  }
 0x305   :  { %5939 = vmatprep.mubr.bf16.mxu0 %v24888_v21  ;;  %7958 = vmatprep.mubr.bf16.mxu1 %v24891_v3  ;;  %v22102_v21 = vld [vmem:[%s28825_s1 + $0x5b0] ss:$8 sps:$4 sm:$0xff]   ;;  %v22107_v3 = vld [vmem:[%s28825_s1 + $0x5c4] ss:$8 sps:$4 sm:$0xff]  }
 0x307   :  { %5910 = vmatpush1.bf16.msra.mxu0 %v22024_v4  ;;  %7929 = vmatpush1.bf16.msra.mxu1 %v22024_v4  ;;  %v22105_v4 = vld [vmem:[%s28825_s1 + $0x5c0] ss:$8 sps:$4 sm:$0xff]  }
 0x308   :  { %5911 = vmatprep.subr.bf16.mxu0 %v22029_v19  ;;  %7930 = vmatprep.subr.bf16.mxu1 %v22029_v19  ;;  %v22110_v19 = vld [vmem:[%s28825_s1 + $0x5d4] ss:$8 sps:$4 sm:$0xff]  }
 0x30b   :  { %5912 = vmatpush1.bf16.msra.mxu0 %v22027_v22  ;;  %7931 = vmatpush1.bf16.msra.mxu1 %v22027_v22  ;;  %v22108_v22 = vld [vmem:[%s28825_s1 + $0x5d0] ss:$8 sps:$4 sm:$0xff]  }
 0x30c   :  { %5913 = vmatprep.subr.bf16.mxu0 %v22032_v24  ;;  %7932 = vmatprep.subr.bf16.mxu1 %v22032_v24  ;;  %v22113_v24 = vld [vmem:[%s28825_s1 + $0x5e4] ss:$8 sps:$4 sm:$0xff]  }
 0x30f   :  { %5914 = vmatpush1.bf16.msra.mxu0 %v22030_v25  ;;  %7933 = vmatpush1.bf16.msra.mxu1 %v22030_v25  ;;  %v4398_v25 = vcombine.high %v24846_v63, %v24846_v63 }
 0x310   :  { %5915 = vmatprep.subr.bf16.mxu0 %v22035_v1  ;;  %7934 = vmatprep.subr.bf16.mxu1 %v22035_v1  ;;  %v6417_v1 = vcombine.high %v24851_v0, %v24851_v0  ;;  %v22114_v0 = vld [vmem:[%s28825_s1 + $0x5f0] ss:$8 sps:$4 sm:$0xff]  }
 0x312   :  { %v25097_v63 = vrot.slane %v6417_v1, %v23464_v16  ;;  %v22187_v1 = vld [vmem:[%s28825_s1 + $0x764] ss:$8 sps:$4 sm:$0xff]  }
 0x313   :  { %5916 = vmatpush1.bf16.msra.mxu0 %v22033_v2  ;;  %7935 = vmatpush1.bf16.msra.mxu1 %v22033_v2  ;;  %v22111_v2 = vld [vmem:[%s28825_s1 + $0x5e0] ss:$8 sps:$4 sm:$0xff]  }
 0x314   :  { %5917 = vmatprep.subr.bf16.mxu0 %v22038_v26  ;;  %7936 = vmatprep.subr.bf16.mxu1 %v22038_v26  ;;  %v22116_v26 = vld [vmem:[%s28825_s1 + $0x5f4] ss:$8 sps:$4 sm:$0xff]  }
 0x317   :  { %5918 = vmatpush1.bf16.msra.mxu0 %v22036_v27  ;;  %7937 = vmatpush1.bf16.msra.mxu1 %v22036_v27  ;;  %v25094_v27 = vrot.slane %v4398_v25, %v23464_v16  ;;  %v22182_v25 = vld [vmem:[%s28825_s1 + $0x750] ss:$8 sps:$4 sm:$0xff]  }
 0x318   :  { %5919 = vmatprep.subr.bf16.mxu0 %v22041_v28  ;;  %7938 = vmatprep.subr.bf16.mxu1 %v22041_v28  ;;  %v22119_v28 = vld [vmem:[%s28825_s1 + $0x604] ss:$8 sps:$4 sm:$0xff]  }
 0x31b   :  { %5920 = vmatpush1.bf16.msra.mxu0 %v22039_v29  ;;  %7939 = vmatpush1.bf16.msra.mxu1 %v22039_v29  ;;  %v4414_v29 = vcombine.high %v25094_v27, %v25094_v27 }
 0x31c   :  { %5921 = vmatprep.subr.bf16.mxu0 %v22044_v30  ;;  %7940 = vmatprep.subr.bf16.mxu1 %v22044_v30  ;;  %v6433_v30 = vcombine.high %v25097_v63, %v25097_v63 }
 0x31f   :  { %5922 = vmatpush1.bf16.msra.mxu0 %v22042_v31  ;;  %7941 = vmatpush1.bf16.msra.mxu1 %v22042_v31  ;;  %v4443_v31 = vcombine.high %v24987_v49, %v24987_v49 }
 0x320   :  { %5923 = vmatprep.subr.bf16.mxu0 %v22047_v32  ;;  %7942 = vmatprep.subr.bf16.mxu1 %v22047_v32  ;;  %v6462_v32 = vcombine.high %v24991_v50, %v24991_v50 }
 0x323   :  { %5924 = vmatpush1.bf16.msra.mxu0 %v22045_v33  ;;  %7943 = vmatpush1.bf16.msra.mxu1 %v22045_v33  ;;  %v22117_v33 = vld [vmem:[%s28825_s1 + $0x600] ss:$8 sps:$4 sm:$0xff]  }
 0x324   :  { %5925 = vmatprep.subr.bf16.mxu0 %v22050_v34  ;;  %7944 = vmatprep.subr.bf16.mxu1 %v22050_v34  ;;  %v22122_v34 = vld [vmem:[%s28825_s1 + $0x614] ss:$8 sps:$4 sm:$0xff]  }
 0x327   :  { %5926 = vmatpush1.bf16.msra.mxu0 %v22048_v35  ;;  %7945 = vmatpush1.bf16.msra.mxu1 %v22048_v35  ;;  %v25120_v35 = vrot.slane %v4414_v29, %v23464_v16  ;;  %v22194_v29 = vld [vmem:[%s28825_s1 + $0x790] ss:$8 sps:$4 sm:$0xff]  }
 0x328   :  { %5927 = vmatprep.subr.bf16.mxu0 %v22053_v36  ;;  %7946 = vmatprep.subr.bf16.mxu1 %v22053_v36  ;;  %v25123_v36 = vrot.slane %v6433_v30, %v23464_v16  ;;  %v22199_v30 = vld [vmem:[%s28825_s1 + $0x7a4] ss:$8 sps:$4 sm:$0xff]  }
 0x32b   :  { %5928 = vmatpush1.bf16.msra.mxu0 %v22051_v37  ;;  %7947 = vmatpush1.bf16.msra.mxu1 %v22051_v37  ;;  %v22120_v37 = vld [vmem:[%s28825_s1 + $0x610] ss:$8 sps:$4 sm:$0xff]  }
 0x32c   :  { %5929 = vmatprep.subr.bf16.mxu0 %v22056_v38  ;;  %7948 = vmatprep.subr.bf16.mxu1 %v22056_v38  ;;  %v22125_v38 = vld [vmem:[%s28825_s1 + $0x624] ss:$8 sps:$4 sm:$0xff]  }
 0x32f   :  { %5930 = vmatpush1.bf16.msra.mxu0 %v22054_v39  ;;  %7949 = vmatpush1.bf16.msra.mxu1 %v22054_v39  ;;  %v22123_v39 = vld [vmem:[%s28825_s1 + $0x620] ss:$8 sps:$4 sm:$0xff]  }
 0x330   :  { %5931 = vmatprep.subr.bf16.mxu0 %v22059_v40  ;;  %7950 = vmatprep.subr.bf16.mxu1 %v22059_v40  ;;  %v22128_v40 = vld [vmem:[%s28825_s1 + $0x634] ss:$8 sps:$4 sm:$0xff]  }
 0x333   :  { %5932 = vmatpush1.bf16.msra.mxu0 %v22057_v41  ;;  %7951 = vmatpush1.bf16.msra.mxu1 %v22057_v41  ;;  %v22126_v41 = vld [vmem:[%s28825_s1 + $0x630] ss:$8 sps:$4 sm:$0xff]  }
 0x334   :  { %5933 = vmatprep.subr.bf16.mxu0 %v22062_v42  ;;  %7952 = vmatprep.subr.bf16.mxu1 %v22062_v42  ;;  %v22131_v42 = vld [vmem:[%s28825_s1 + $0x644] ss:$8 sps:$4 sm:$0xff]  }
 0x337   :  { %5934 = vmatpush1.bf16.msra.mxu0 %v22060_v43  ;;  %7953 = vmatpush1.bf16.msra.mxu1 %v22060_v43  ;;  %v22129_v43 = vld [vmem:[%s28825_s1 + $0x640] ss:$8 sps:$4 sm:$0xff]  }
 0x338   :  { %5935 = vmatprep.subr.bf16.mxu0 %v22065_v44  ;;  %7954 = vmatprep.subr.bf16.mxu1 %v22065_v44  ;;  %v22134_v44 = vld [vmem:[%s28825_s1 + $0x654] ss:$8 sps:$4 sm:$0xff]  }
 0x33b   :  { %5936 = vmatpush1.bf16.msra.mxu0 %v22063_v45  ;;  %7955 = vmatpush1.bf16.msra.mxu1 %v22063_v45  ;;  %v22132_v45 = vld [vmem:[%s28825_s1 + $0x650] ss:$8 sps:$4 sm:$0xff]  }
 0x33c   :  { %5937 = vmatprep.subr.bf16.mxu0 %v22068_v46  ;;  %7956 = vmatprep.subr.bf16.mxu1 %v22068_v46  ;;  %v22137_v46 = vld [vmem:[%s28825_s1 + $0x664] ss:$8 sps:$4 sm:$0xff]  }
 0x33f   :  { %5938 = vmatpush1.bf16.msra.mxu0 %v22066_v47  ;;  %7957 = vmatpush1.bf16.msra.mxu1 %v22066_v47  ;;  %v22135_v47 = vld [vmem:[%s28825_s1 + $0x660] ss:$8 sps:$4 sm:$0xff]  }
 0x340   :  { %5948 = vmatprep.subr.bf16.mxu0 %v22071_v48  ;;  %7967 = vmatprep.subr.bf16.mxu1 %v22071_v48  ;;  %v22140_v48 = vld [vmem:[%s28825_s1 + $0x674] ss:$8 sps:$4 sm:$0xff]  }
 0x342   :  { %5940 = vmatmul.mubr.bf16.vlgmr.msra.gmra.mrb[4].mxu0 %v24987_v49  ;;  %7959 = vmatmul.mubr.bf16.vlgmr.msra.gmra.mrb[4].mxu1 %v24991_v50  ;;  %v22138_v49 = vld [vmem:[%s28825_s1 + $0x670] ss:$8 sps:$4 sm:$0xff]   ;;  %v22143_v50 = vld [vmem:[%s28825_s1 + $0x684] ss:$8 sps:$4 sm:$0xff]  }
 0x343   :  { %5949 = vmatpush1.bf16.msra.mxu0 %v22069_v51  ;;  %7968 = vmatpush1.bf16.msra.mxu1 %v22069_v51  ;;  %v22141_v51 = vld [vmem:[%s28825_s1 + $0x680] ss:$8 sps:$4 sm:$0xff]  }
 0x344   :  { %5950 = vmatprep.subr.bf16.mxu0 %v22074_v52  ;;  %7969 = vmatprep.subr.bf16.mxu1 %v22074_v52  ;;  %v22146_v52 = vld [vmem:[%s28825_s1 + $0x694] ss:$8 sps:$4 sm:$0xff]  }
 0x345   :  { %5980 = vmatprep.mubr.bf16.mxu0 %v4445_v53  ;;  %7999 = vmatprep.mubr.bf16.mxu1 %v6464_v54  ;;  %v22144_v53 = vld [vmem:[%s28825_s1 + $0x690] ss:$8 sps:$4 sm:$0xff]   ;;  %v22149_v54 = vld [vmem:[%s28825_s1 + $0x6a4] ss:$8 sps:$4 sm:$0xff]  }
 0x347   :  { %5951 = vmatpush1.bf16.msra.mxu0 %v22072_v55  ;;  %7970 = vmatpush1.bf16.msra.mxu1 %v22072_v55  ;;  %v22147_v55 = vld [vmem:[%s28825_s1 + $0x6a0] ss:$8 sps:$4 sm:$0xff]  }
 0x348   :  { %5952 = vmatprep.subr.bf16.mxu0 %v22077_v56  ;;  %7971 = vmatprep.subr.bf16.mxu1 %v22077_v56  ;;  %v22152_v56 = vld [vmem:[%s28825_s1 + $0x6b4] ss:$8 sps:$4 sm:$0xff]  }
 0x34b   :  { %5953 = vmatpush1.bf16.msra.mxu0 %v22075_v57  ;;  %7972 = vmatpush1.bf16.msra.mxu1 %v22075_v57  ;;  %v22150_v57 = vld [vmem:[%s28825_s1 + $0x6b0] ss:$8 sps:$4 sm:$0xff]  }
 0x34c   :  { %5954 = vmatprep.subr.bf16.mxu0 %v22080_v58  ;;  %7973 = vmatprep.subr.bf16.mxu1 %v22080_v58  ;;  %v22155_v58 = vld [vmem:[%s28825_s1 + $0x6c4] ss:$8 sps:$4 sm:$0xff]  }
 0x34f   :  { %5955 = vmatpush1.bf16.msra.mxu0 %v22078_v59  ;;  %7974 = vmatpush1.bf16.msra.mxu1 %v22078_v59  ;;  %v22153_v59 = vld [vmem:[%s28825_s1 + $0x6c0] ss:$8 sps:$4 sm:$0xff]  }
 0x350   :  { %5956 = vmatprep.subr.bf16.mxu0 %v22083_v60  ;;  %7975 = vmatprep.subr.bf16.mxu1 %v22083_v60  ;;  %v22158_v60 = vld [vmem:[%s28825_s1 + $0x6d4] ss:$8 sps:$4 sm:$0xff]  }
 0x353   :  { %5957 = vmatpush1.bf16.msra.mxu0 %v22081_v61  ;;  %7976 = vmatpush1.bf16.msra.mxu1 %v22081_v61  ;;  %v22156_v61 = vld [vmem:[%s28825_s1 + $0x6d0] ss:$8 sps:$4 sm:$0xff]  }
 0x354   :  { %5958 = vmatprep.subr.bf16.mxu0 %v22086_v62  ;;  %7977 = vmatprep.subr.bf16.mxu1 %v22086_v62  ;;  %v22161_v62 = vld [vmem:[%s28825_s1 + $0x6e4] ss:$8 sps:$4 sm:$0xff]  }
 0x357   :  { %5959 = vmatpush1.bf16.msra.mxu0 %v22084_v5  ;;  %7978 = vmatpush1.bf16.msra.mxu1 %v22084_v5  ;;  %v22159_v5 = vld [vmem:[%s28825_s1 + $0x6e0] ss:$8 sps:$4 sm:$0xff]  }
 0x358   :  { %5960 = vmatprep.subr.bf16.mxu0 %v22089_v6  ;;  %7979 = vmatprep.subr.bf16.mxu1 %v22089_v6  ;;  %v22164_v6 = vld [vmem:[%s28825_s1 + $0x6f4] ss:$8 sps:$4 sm:$0xff]  }
 0x35b   :  { %5961 = vmatpush1.bf16.msra.mxu0 %v22087_v7  ;;  %7980 = vmatpush1.bf16.msra.mxu1 %v22087_v7  ;;  %v22162_v7 = vld [vmem:[%s28825_s1 + $0x6f0] ss:$8 sps:$4 sm:$0xff]  }
 0x35c   :  { %5962 = vmatprep.subr.bf16.mxu0 %v22092_v8  ;;  %7981 = vmatprep.subr.bf16.mxu1 %v22092_v8  ;;  %v22168_v8 = vld [vmem:[%s28825_s1 + $0x704] ss:$8 sps:$4 sm:$0xff]  }
 0x35f   :  { %5963 = vmatpush1.bf16.msra.mxu0 %v22090_v9  ;;  %7982 = vmatpush1.bf16.msra.mxu1 %v22090_v9  ;;  %v25219_v9 = vrot.slane %v25094_v27, %v23464_v16  ;;  %v22188_v27 = vld [vmem:[%s28825_s1 + $0x770] ss:$8 sps:$4 sm:$0xff]  }
 0x360   :  { %5964 = vmatprep.subr.bf16.mxu0 %v22095_v10  ;;  %7983 = vmatprep.subr.bf16.mxu1 %v22095_v10  ;;  %v25223_v10 = vrot.slane %v25097_v63, %v23464_v16  ;;  %v22193_v63 = vld [vmem:[%s28825_s1 + $0x784] ss:$8 sps:$4 sm:$0xff]  }
 0x363   :  { %5965 = vmatpush1.bf16.msra.mxu0 %v22093_v11  ;;  %7984 = vmatpush1.bf16.msra.mxu1 %v22093_v11  ;;  %v22166_v11 = vld [vmem:[%s28825_s1 + $0x700] ss:$8 sps:$4 sm:$0xff]  }
 0x364   :  { %5966 = vmatprep.subr.bf16.mxu0 %v22098_v13  ;;  %7985 = vmatprep.subr.bf16.mxu1 %v22098_v13  ;;  %v22172_v13 = vld [vmem:[%s28825_s1 + $0x714] ss:$8 sps:$4 sm:$0xff]  }
 0x367   :  { %5967 = vmatpush1.bf16.msra.mxu0 %v22096_v14  ;;  %7986 = vmatpush1.bf16.msra.mxu1 %v22096_v14  ;;  %v4446_v14 = vcombine.high %v25120_v35, %v25120_v35 }
 0x368   :  { %5968 = vmatprep.subr.bf16.mxu0 %v22101_v15  ;;  %7987 = vmatprep.subr.bf16.mxu1 %v22101_v15  ;;  %v6465_v15 = vcombine.high %v25123_v36, %v25123_v36 }
 0x36b   :  { %5969 = vmatpush1.bf16.msra.mxu0 %v22099_v17  ;;  %7988 = vmatpush1.bf16.msra.mxu1 %v22099_v17  ;;  %v22170_v17 = vld [vmem:[%s28825_s1 + $0x710] ss:$8 sps:$4 sm:$0xff]  }
 0x36c   :  { %5970 = vmatprep.subr.bf16.mxu0 %v22104_v20  ;;  %7989 = vmatprep.subr.bf16.mxu1 %v22104_v20  ;;  %v22175_v20 = vld [vmem:[%s28825_s1 + $0x724] ss:$8 sps:$4 sm:$0xff]  }
 0x36f   :  { %5971 = vmatpush1.bf16.msra.mxu0 %v22102_v21  ;;  %7990 = vmatpush1.bf16.msra.mxu1 %v22102_v21  ;;  %v22173_v21 = vld [vmem:[%s28825_s1 + $0x720] ss:$8 sps:$4 sm:$0xff]  }
 0x370   :  { %5972 = vmatprep.subr.bf16.mxu0 %v22107_v3  ;;  %7991 = vmatprep.subr.bf16.mxu1 %v22107_v3  ;;  %v22178_v3 = vld [vmem:[%s28825_s1 + $0x734] ss:$8 sps:$4 sm:$0xff]  }
 0x373   :  { %5973 = vmatpush1.bf16.msra.mxu0 %v22105_v4  ;;  %7992 = vmatpush1.bf16.msra.mxu1 %v22105_v4  ;;  %v22176_v4 = vld [vmem:[%s28825_s1 + $0x730] ss:$8 sps:$4 sm:$0xff]  }
 0x374   :  { %5974 = vmatprep.subr.bf16.mxu0 %v22110_v19  ;;  %7993 = vmatprep.subr.bf16.mxu1 %v22110_v19  ;;  %v22181_v19 = vld [vmem:[%s28825_s1 + $0x744] ss:$8 sps:$4 sm:$0xff]  }
 0x377   :  { %5975 = vmatpush1.bf16.msra.mxu0 %v22108_v22  ;;  %7994 = vmatpush1.bf16.msra.mxu1 %v22108_v22  ;;  %v22179_v22 = vld [vmem:[%s28825_s1 + $0x740] ss:$8 sps:$4 sm:$0xff]  }
 0x378   :  { %5976 = vmatprep.subr.bf16.mxu0 %v22113_v24  ;;  %7995 = vmatprep.subr.bf16.mxu1 %v22113_v24  ;;  %v22184_v24 = vld [vmem:[%s28825_s1 + $0x754] ss:$8 sps:$4 sm:$0xff]  }
 0x37b   :  { %5977 = vmatpush1.bf16.msra.mxu0 %v22111_v2  ;;  %7996 = vmatpush1.bf16.msra.mxu1 %v22111_v2  ;;  %v22185_v2 = vld [vmem:[%s28825_s1 + $0x760] ss:$8 sps:$4 sm:$0xff]  }
 0x37c   :  { %5978 = vmatprep.subr.bf16.mxu0 %v22116_v26  ;;  %7997 = vmatprep.subr.bf16.mxu1 %v22116_v26  ;;  %v22190_v26 = vld [vmem:[%s28825_s1 + $0x774] ss:$8 sps:$4 sm:$0xff]  }
 0x37f   :  { %5979 = vmatpush1.bf16.msra.mxu0 %v22114_v0  ;;  %7998 = vmatpush1.bf16.msra.mxu1 %v22114_v0  ;;  %v22191_v0 = vld [vmem:[%s28825_s1 + $0x780] ss:$8 sps:$4 sm:$0xff]  }
 0x380   :  { %5989 = vmatprep.subr.bf16.mxu0 %v22119_v28  ;;  %8008 = vmatprep.subr.bf16.mxu1 %v22119_v28  ;;  %v22196_v28 = vld [vmem:[%s28825_s1 + $0x794] ss:$8 sps:$4 sm:$0xff]  }
 0x382   :  { %5981 = vmatmul.mubr.bf16.vlgmr.msra.gmra.mrb[4].mxu0 %v4443_v31  ;;  %8000 = vmatmul.mubr.bf16.vlgmr.msra.gmra.mrb[4].mxu1 %v6462_v32  ;;  %v22197_v31 = vld [vmem:[%s28825_s1 + $0x7a0] ss:$8 sps:$4 sm:$0xff]   ;;  %v22202_v32 = vld [vmem:[%s28825_s1 + $0x7b4] ss:$8 sps:$4 sm:$0xff]  }
 0x383   :  { %5990 = vmatpush1.bf16.msra.mxu0 %v22117_v33  ;;  %8009 = vmatpush1.bf16.msra.mxu1 %v22117_v33  ;;  %v22200_v33 = vld [vmem:[%s28825_s1 + $0x7b0] ss:$8 sps:$4 sm:$0xff]  }
 0x384   :  { %5991 = vmatprep.subr.bf16.mxu0 %v22122_v34  ;;  %8010 = vmatprep.subr.bf16.mxu1 %v22122_v34  ;;  %v22205_v34 = vld [vmem:[%s28825_s1 + $0x7c4] ss:$8 sps:$4 sm:$0xff]  }
 0x385   :  { %6021 = vmatprep.mubr.bf16.mxu0 %v25120_v35  ;;  %8040 = vmatprep.mubr.bf16.mxu1 %v25123_v36  ;;  %v22203_v35 = vld [vmem:[%s28825_s1 + $0x7c0] ss:$8 sps:$4 sm:$0xff]   ;;  %v22208_v36 = vld [vmem:[%s28825_s1 + $0x7d4] ss:$8 sps:$4 sm:$0xff]  }
 0x387   :  { %5992 = vmatpush1.bf16.msra.mxu0 %v22120_v37  ;;  %8011 = vmatpush1.bf16.msra.mxu1 %v22120_v37  ;;  %v22206_v37 = vld [vmem:[%s28825_s1 + $0x7d0] ss:$8 sps:$4 sm:$0xff]  }
 0x388   :  { %5993 = vmatprep.subr.bf16.mxu0 %v22125_v38  ;;  %8012 = vmatprep.subr.bf16.mxu1 %v22125_v38  ;;  %v22211_v38 = vld [vmem:[%s28825_s1 + $0x7e4] ss:$8 sps:$4 sm:$0xff]  }
 0x38b   :  { %5994 = vmatpush1.bf16.msra.mxu0 %v22123_v39  ;;  %8013 = vmatpush1.bf16.msra.mxu1 %v22123_v39  ;;  %v25318_v39 = vld [vmem:[%s28824_s0 + $0x40] sm:$0xff] }
 0x38c   :  { %5995 = vmatprep.subr.bf16.mxu0 %v22128_v40  ;;  %8014 = vmatprep.subr.bf16.mxu1 %v22128_v40  ;;  %v25323_v40 = vld [vmem:[%s28824_s0 + $0x50] sm:$0xff] }
 0x38f   :  { %5996 = vmatpush1.bf16.msra.mxu0 %v22126_v41  ;;  %8015 = vmatpush1.bf16.msra.mxu1 %v22126_v41  ;;  %v22209_v41 = vld [vmem:[%s28825_s1 + $0x7e0] ss:$8 sps:$4 sm:$0xff]  }
 0x390   :  { %5997 = vmatprep.subr.bf16.mxu0 %v22131_v42  ;;  %8016 = vmatprep.subr.bf16.mxu1 %v22131_v42  ;;  %v22214_v42 = vld [vmem:[%s28825_s1 + $0x7f4] ss:$8 sps:$4 sm:$0xff]  }
 0x393   :  { %5998 = vmatpush1.bf16.msra.mxu0 %v22129_v43  ;;  %8017 = vmatpush1.bf16.msra.mxu1 %v22129_v43  ;;  %v25333_v43 = vrot.slane %v25318_v39, %v23464_v16 }
 0x394   :  { %5999 = vmatprep.subr.bf16.mxu0 %v22134_v44  ;;  %8018 = vmatprep.subr.bf16.mxu1 %v22134_v44  ;;  %v25337_v44 = vrot.slane %v25323_v40, %v23464_v16 }
 0x397   :  { %6000 = vmatpush1.bf16.msra.mxu0 %v22132_v45  ;;  %8019 = vmatpush1.bf16.msra.mxu1 %v22132_v45  ;;  %v22212_v45 = vld [vmem:[%s28825_s1 + $0x7f0] ss:$8 sps:$4 sm:$0xff]  }
 0x398   :  { %6001 = vmatprep.subr.bf16.mxu0 %v22137_v46  ;;  %8020 = vmatprep.subr.bf16.mxu1 %v22137_v46  ;;  %v22217_v46 = vld [vmem:[%s28825_s1 + $0x4] ss:$8 sps:$4 sm:$0xff]  }
 0x39b   :  { %6002 = vmatpush1.bf16.msra.mxu0 %v22135_v47  ;;  %8021 = vmatpush1.bf16.msra.mxu1 %v22135_v47  ;;  %v8402_v47 = vcombine.high %v25333_v43, %v25333_v43 }
 0x39c   :  { %6003 = vmatprep.subr.bf16.mxu0 %v22140_v48  ;;  %8022 = vmatprep.subr.bf16.mxu1 %v22140_v48  ;;  %v10421_v48 = vcombine.high %v25337_v44, %v25337_v44 }
 0x39f   :  { %6004 = vmatpush1.bf16.msra.mxu0 %v22138_v49  ;;  %8023 = vmatpush1.bf16.msra.mxu1 %v22138_v49  ;;  %v4444_v49 = vcombine.high %v25219_v9, %v25219_v9 }
 0x3a0   :  { %6005 = vmatprep.subr.bf16.mxu0 %v22143_v50  ;;  %8024 = vmatprep.subr.bf16.mxu1 %v22143_v50  ;;  %v6463_v50 = vcombine.high %v25223_v10, %v25223_v10 }
 0x3a3   :  { %6006 = vmatpush1.bf16.msra.mxu0 %v22141_v51  ;;  %8025 = vmatpush1.bf16.msra.mxu1 %v22141_v51  ;;  %v22215_v51 = vld [vmem:[%s28825_s1] ss:$8 sps:$4 sm:$0xff]  }
 0x3a4   :  { %6007 = vmatprep.subr.bf16.mxu0 %v22146_v52  ;;  %8026 = vmatprep.subr.bf16.mxu1 %v22146_v52  ;;  %v22220_v52 = vld [vmem:[%s28825_s1 + $0x14] ss:$8 sps:$4 sm:$0xff]  }
 0x3a7   :  { %6008 = vmatpush1.bf16.msra.mxu0 %v22144_v53  ;;  %8027 = vmatpush1.bf16.msra.mxu1 %v22144_v53  ;;  %v25360_v53 = vrot.slane %v8402_v47, %v23464_v16  ;;  %v22287_v47 = vld [vmem:[%s28825_s1 + $0x180] ss:$8 sps:$4 sm:$0xff]  }
 0x3a8   :  { %6009 = vmatprep.subr.bf16.mxu0 %v22149_v54  ;;  %8028 = vmatprep.subr.bf16.mxu1 %v22149_v54  ;;  %v25363_v54 = vrot.slane %v10421_v48, %v23464_v16  ;;  %v22292_v48 = vld [vmem:[%s28825_s1 + $0x194] ss:$8 sps:$4 sm:$0xff]  }
 0x3ab   :  { %6010 = vmatpush1.bf16.msra.mxu0 %v22147_v55  ;;  %8029 = vmatpush1.bf16.msra.mxu1 %v22147_v55  ;;  %v22218_v55 = vld [vmem:[%s28825_s1 + $0x10] ss:$8 sps:$4 sm:$0xff]  }
 0x3ac   :  { %6011 = vmatprep.subr.bf16.mxu0 %v22152_v56  ;;  %8030 = vmatprep.subr.bf16.mxu1 %v22152_v56  ;;  %v22223_v56 = vld [vmem:[%s28825_s1 + $0x24] ss:$8 sps:$4 sm:$0xff]  }
 0x3af   :  { %6012 = vmatpush1.bf16.msra.mxu0 %v22150_v57  ;;  %8031 = vmatpush1.bf16.msra.mxu1 %v22150_v57  ;;  %v22221_v57 = vld [vmem:[%s28825_s1 + $0x20] ss:$8 sps:$4 sm:$0xff]  }
 0x3b0   :  { %6013 = vmatprep.subr.bf16.mxu0 %v22155_v58  ;;  %8032 = vmatprep.subr.bf16.mxu1 %v22155_v58  ;;  %v22226_v58 = vld [vmem:[%s28825_s1 + $0x34] ss:$8 sps:$4 sm:$0xff]  }
 0x3b3   :  { %6014 = vmatpush1.bf16.msra.mxu0 %v22153_v59  ;;  %8033 = vmatpush1.bf16.msra.mxu1 %v22153_v59  ;;  %v22224_v59 = vld [vmem:[%s28825_s1 + $0x30] ss:$8 sps:$4 sm:$0xff]  }
 0x3b4   :  { %6015 = vmatprep.subr.bf16.mxu0 %v22158_v60  ;;  %8034 = vmatprep.subr.bf16.mxu1 %v22158_v60  ;;  %v22229_v60 = vld [vmem:[%s28825_s1 + $0x44] ss:$8 sps:$4 sm:$0xff]  }
 0x3b7   :  { %6016 = vmatpush1.bf16.msra.mxu0 %v22156_v61  ;;  %8035 = vmatpush1.bf16.msra.mxu1 %v22156_v61  ;;  %v22227_v61 = vld [vmem:[%s28825_s1 + $0x40] ss:$8 sps:$4 sm:$0xff]  }
 0x3b8   :  { %6017 = vmatprep.subr.bf16.mxu0 %v22161_v62  ;;  %8036 = vmatprep.subr.bf16.mxu1 %v22161_v62  ;;  %v22232_v62 = vld [vmem:[%s28825_s1 + $0x54] ss:$8 sps:$4 sm:$0xff]  }
 0x3bb   :  { %6018 = vmatpush1.bf16.msra.mxu0 %v22159_v5  ;;  %8037 = vmatpush1.bf16.msra.mxu1 %v22159_v5  ;;  %v22230_v5 = vld [vmem:[%s28825_s1 + $0x50] ss:$8 sps:$4 sm:$0xff]  }
 0x3bc   :  { %6019 = vmatprep.subr.bf16.mxu0 %v22164_v6  ;;  %8038 = vmatprep.subr.bf16.mxu1 %v22164_v6  ;;  %v22235_v6 = vld [vmem:[%s28825_s1 + $0x64] ss:$8 sps:$4 sm:$0xff]  }
 0x3bf   :  { %6020 = vmatpush1.bf16.msra.mxu0 %v22162_v7  ;;  %8039 = vmatpush1.bf16.msra.mxu1 %v22162_v7  ;;  %v22233_v7 = vld [vmem:[%s28825_s1 + $0x60] ss:$8 sps:$4 sm:$0xff]  }
 0x3c0   :  { %6030 = vmatprep.subr.bf16.mxu0 %v22168_v8  ;;  %8049 = vmatprep.subr.bf16.mxu1 %v22168_v8  ;;  %v22238_v8 = vld [vmem:[%s28825_s1 + $0x74] ss:$8 sps:$4 sm:$0xff]  }
 0x3c2   :  { %6022 = vmatmul.mubr.bf16.vlgmr.msra.gmra.mrb[4].mxu0 %v25219_v9  ;;  %8041 = vmatmul.mubr.bf16.vlgmr.msra.gmra.mrb[4].mxu1 %v25223_v10  ;;  %v22236_v9 = vld [vmem:[%s28825_s1 + $0x70] ss:$8 sps:$4 sm:$0xff]   ;;  %v22241_v10 = vld [vmem:[%s28825_s1 + $0x84] ss:$8 sps:$4 sm:$0xff]  }
 0x3c3   :  { %6031 = vmatpush1.bf16.msra.mxu0 %v22166_v11  ;;  %8050 = vmatpush1.bf16.msra.mxu1 %v22166_v11  ;;  %v22239_v11 = vld [vmem:[%s28825_s1 + $0x80] ss:$8 sps:$4 sm:$0xff]  }
 0x3c4   :  { %6032 = vmatprep.subr.bf16.mxu0 %v22172_v13  ;;  %8051 = vmatprep.subr.bf16.mxu1 %v22172_v13  ;;  %v22244_v13 = vld [vmem:[%s28825_s1 + $0x94] ss:$8 sps:$4 sm:$0xff]  }
 0x3c5   :  { %6062 = vmatprep.mubr.bf16.mxu0 %v4446_v14  ;;  %8081 = vmatprep.mubr.bf16.mxu1 %v6465_v15  ;;  %v22242_v14 = vld [vmem:[%s28825_s1 + $0x90] ss:$8 sps:$4 sm:$0xff]   ;;  %v22247_v15 = vld [vmem:[%s28825_s1 + $0xa4] ss:$8 sps:$4 sm:$0xff]  }
 0x3c7   :  { %6033 = vmatpush1.bf16.msra.mxu0 %v22170_v17  ;;  %8052 = vmatpush1.bf16.msra.mxu1 %v22170_v17  ;;  %v22245_v17 = vld [vmem:[%s28825_s1 + $0xa0] ss:$8 sps:$4 sm:$0xff]  }
 0x3c8   :  { %6034 = vmatprep.subr.bf16.mxu0 %v22175_v20  ;;  %8053 = vmatprep.subr.bf16.mxu1 %v22175_v20  ;;  %v22250_v20 = vld [vmem:[%s28825_s1 + $0xb4] ss:$8 sps:$4 sm:$0xff]  }
 0x3cb   :  { %6035 = vmatpush1.bf16.msra.mxu0 %v22173_v21  ;;  %8054 = vmatpush1.bf16.msra.mxu1 %v22173_v21  ;;  %v22248_v21 = vld [vmem:[%s28825_s1 + $0xb0] ss:$8 sps:$4 sm:$0xff]  }
 0x3cc   :  { %6036 = vmatprep.subr.bf16.mxu0 %v22178_v3  ;;  %8055 = vmatprep.subr.bf16.mxu1 %v22178_v3  ;;  %v22253_v3 = vld [vmem:[%s28825_s1 + $0xc4] ss:$8 sps:$4 sm:$0xff]  }
 0x3cf   :  { %6037 = vmatpush1.bf16.msra.mxu0 %v22176_v4  ;;  %8056 = vmatpush1.bf16.msra.mxu1 %v22176_v4  ;;  %v22251_v4 = vld [vmem:[%s28825_s1 + $0xc0] ss:$8 sps:$4 sm:$0xff]  }
 0x3d0   :  { %6038 = vmatprep.subr.bf16.mxu0 %v22181_v19  ;;  %8057 = vmatprep.subr.bf16.mxu1 %v22181_v19  ;;  %v22256_v19 = vld [vmem:[%s28825_s1 + $0xd4] ss:$8 sps:$4 sm:$0xff]  }
 0x3d3   :  { %6039 = vmatpush1.bf16.msra.mxu0 %v22179_v22  ;;  %8058 = vmatpush1.bf16.msra.mxu1 %v22179_v22  ;;  %v22254_v22 = vld [vmem:[%s28825_s1 + $0xd0] ss:$8 sps:$4 sm:$0xff]  }
 0x3d4   :  { %6040 = vmatprep.subr.bf16.mxu0 %v22184_v24  ;;  %8059 = vmatprep.subr.bf16.mxu1 %v22184_v24  ;;  %v22259_v24 = vld [vmem:[%s28825_s1 + $0xe4] ss:$8 sps:$4 sm:$0xff]  }
 0x3d7   :  { %6041 = vmatpush1.bf16.msra.mxu0 %v22182_v25  ;;  %8060 = vmatpush1.bf16.msra.mxu1 %v22182_v25  ;;  %v22257_v25 = vld [vmem:[%s28825_s1 + $0xe0] ss:$8 sps:$4 sm:$0xff]  }
 0x3d8   :  { %6042 = vmatprep.subr.bf16.mxu0 %v22187_v1  ;;  %8061 = vmatprep.subr.bf16.mxu1 %v22187_v1  ;;  %v22262_v1 = vld [vmem:[%s28825_s1 + $0xf4] ss:$8 sps:$4 sm:$0xff]  }
 0x3db   :  { %6043 = vmatpush1.bf16.msra.mxu0 %v22185_v2  ;;  %8062 = vmatpush1.bf16.msra.mxu1 %v22185_v2  ;;  %v22260_v2 = vld [vmem:[%s28825_s1 + $0xf0] ss:$8 sps:$4 sm:$0xff]  }
 0x3dc   :  { %6044 = vmatprep.subr.bf16.mxu0 %v22190_v26  ;;  %8063 = vmatprep.subr.bf16.mxu1 %v22190_v26  ;;  %v22265_v26 = vld [vmem:[%s28825_s1 + $0x104] ss:$8 sps:$4 sm:$0xff]  }
 0x3df   :  { %6045 = vmatpush1.bf16.msra.mxu0 %v22188_v27  ;;  %8064 = vmatpush1.bf16.msra.mxu1 %v22188_v27  ;;  %v25459_v27 = vrot.slane %v25333_v43, %v23464_v16  ;;  %v22281_v43 = vld [vmem:[%s28825_s1 + $0x160] ss:$8 sps:$4 sm:$0xff]  }
 0x3e0   :  { %6046 = vmatprep.subr.bf16.mxu0 %v22193_v63  ;;  %8065 = vmatprep.subr.bf16.mxu1 %v22193_v63  ;;  %v25463_v63 = vrot.slane %v25337_v44, %v23464_v16  ;;  %v22286_v44 = vld [vmem:[%s28825_s1 + $0x174] ss:$8 sps:$4 sm:$0xff]  }
 0x3e3   :  { %6047 = vmatpush1.bf16.msra.mxu0 %v22191_v0  ;;  %8066 = vmatpush1.bf16.msra.mxu1 %v22191_v0  ;;  %v22263_v0 = vld [vmem:[%s28825_s1 + $0x100] ss:$8 sps:$4 sm:$0xff]  }
 0x3e4   :  { %6048 = vmatprep.subr.bf16.mxu0 %v22196_v28  ;;  %8067 = vmatprep.subr.bf16.mxu1 %v22196_v28  ;;  %v22268_v28 = vld [vmem:[%s28825_s1 + $0x114] ss:$8 sps:$4 sm:$0xff]  }
 0x3e7   :  { %6049 = vmatpush1.bf16.msra.mxu0 %v22194_v29  ;;  %8068 = vmatpush1.bf16.msra.mxu1 %v22194_v29  ;;  %v8434_v29 = vcombine.high %v25360_v53, %v25360_v53 }
 0x3e8   :  { %6050 = vmatprep.subr.bf16.mxu0 %v22199_v30  ;;  %8069 = vmatprep.subr.bf16.mxu1 %v22199_v30  ;;  %v10453_v30 = vcombine.high %v25363_v54, %v25363_v54 }
 0x3eb   :  { %6051 = vmatpush1.bf16.msra.mxu0 %v22197_v31  ;;  %8070 = vmatpush1.bf16.msra.mxu1 %v22197_v31  ;;  %v22266_v31 = vld [vmem:[%s28825_s1 + $0x110] ss:$8 sps:$4 sm:$0xff]  }
 0x3ec   :  { %6052 = vmatprep.subr.bf16.mxu0 %v22202_v32  ;;  %8071 = vmatprep.subr.bf16.mxu1 %v22202_v32  ;;  %v22271_v32 = vld [vmem:[%s28825_s1 + $0x124] ss:$8 sps:$4 sm:$0xff]  }
 0x3ef   :  { %6053 = vmatpush1.bf16.msra.mxu0 %v22200_v33  ;;  %8072 = vmatpush1.bf16.msra.mxu1 %v22200_v33  ;;  %v22269_v33 = vld [vmem:[%s28825_s1 + $0x120] ss:$8 sps:$4 sm:$0xff]  }
 0x3f0   :  { %6054 = vmatprep.subr.bf16.mxu0 %v22205_v34  ;;  %8073 = vmatprep.subr.bf16.mxu1 %v22205_v34  ;;  %v22274_v34 = vld [vmem:[%s28825_s1 + $0x134] ss:$8 sps:$4 sm:$0xff]  }
 0x3f3   :  { %6055 = vmatpush1.bf16.msra.mxu0 %v22203_v35  ;;  %8074 = vmatpush1.bf16.msra.mxu1 %v22203_v35  ;;  %v22272_v35 = vld [vmem:[%s28825_s1 + $0x130] ss:$8 sps:$4 sm:$0xff]  }
 0x3f4   :  { %6056 = vmatprep.subr.bf16.mxu0 %v22208_v36  ;;  %8075 = vmatprep.subr.bf16.mxu1 %v22208_v36  ;;  %v22277_v36 = vld [vmem:[%s28825_s1 + $0x144] ss:$8 sps:$4 sm:$0xff]  }
 0x3f7   :  { %6057 = vmatpush1.bf16.msra.mxu0 %v22206_v37  ;;  %8076 = vmatpush1.bf16.msra.mxu1 %v22206_v37  ;;  %v22275_v37 = vld [vmem:[%s28825_s1 + $0x140] ss:$8 sps:$4 sm:$0xff]  }
 0x3f8   :  { %6058 = vmatprep.subr.bf16.mxu0 %v22211_v38  ;;  %8077 = vmatprep.subr.bf16.mxu1 %v22211_v38  ;;  %v22280_v38 = vld [vmem:[%s28825_s1 + $0x154] ss:$8 sps:$4 sm:$0xff]  }
 0x3fb   :  { %6059 = vmatpush1.bf16.msra.mxu0 %v22209_v41  ;;  %8078 = vmatpush1.bf16.msra.mxu1 %v22209_v41  ;;  %v22278_v41 = vld [vmem:[%s28825_s1 + $0x150] ss:$8 sps:$4 sm:$0xff]  }
 0x3fc   :  { %6060 = vmatprep.subr.bf16.mxu0 %v22214_v42  ;;  %8079 = vmatprep.subr.bf16.mxu1 %v22214_v42  ;;  %v22283_v42 = vld [vmem:[%s28825_s1 + $0x164] ss:$8 sps:$4 sm:$0xff]  }
 0x3ff   :  { %6061 = vmatpush1.bf16.msra.mxu0 %v22212_v45  ;;  %8080 = vmatpush1.bf16.msra.mxu1 %v22212_v45  ;;  %v22284_v45 = vld [vmem:[%s28825_s1 + $0x170] ss:$8 sps:$4 sm:$0xff]  }
 0x400   :  { %9781 = vmatprep.subr.bf16.mxu0 %v22217_v46  ;;  %11800 = vmatprep.subr.bf16.mxu1 %v22217_v46  ;;  %v22289_v46 = vld [vmem:[%s28825_s1 + $0x184] ss:$8 sps:$4 sm:$0xff]  }
 0x402   :  { %6063 = vmatmul.mubr.bf16.vlgmr.msra.gmra.mrb[4].mxu0 %v4444_v49  ;;  %8082 = vmatmul.mubr.bf16.vlgmr.msra.gmra.mrb[4].mxu1 %v6463_v50  ;;  %v22290_v49 = vld [vmem:[%s28825_s1 + $0x190] ss:$8 sps:$4 sm:$0xff]   ;;  %v22295_v50 = vld [vmem:[%s28825_s1 + $0x1a4] ss:$8 sps:$4 sm:$0xff]  }
 0x403   :  { %9782 = vmatpush1.bf16.msra.mxu0 %v22215_v51  ;;  %11801 = vmatpush1.bf16.msra.mxu1 %v22215_v51  ;;  %v22293_v51 = vld [vmem:[%s28825_s1 + $0x1a0] ss:$8 sps:$4 sm:$0xff]  }
 0x404   :  { %9783 = vmatprep.subr.bf16.mxu0 %v22220_v52  ;;  %11802 = vmatprep.subr.bf16.mxu1 %v22220_v52  ;;  %v22298_v52 = vld [vmem:[%s28825_s1 + $0x1b4] ss:$8 sps:$4 sm:$0xff]  }
 0x405   :  { %9813 = vmatprep.mubr.bf16.mxu0 %v25360_v53  ;;  %11832 = vmatprep.mubr.bf16.mxu1 %v25363_v54  ;;  %v22296_v53 = vld [vmem:[%s28825_s1 + $0x1b0] ss:$8 sps:$4 sm:$0xff]   ;;  %v22301_v54 = vld [vmem:[%s28825_s1 + $0x1c4] ss:$8 sps:$4 sm:$0xff]  }
 0x407   :  { %9784 = vmatpush1.bf16.msra.mxu0 %v22218_v55  ;;  %11803 = vmatpush1.bf16.msra.mxu1 %v22218_v55  ;;  %v22299_v55 = vld [vmem:[%s28825_s1 + $0x1c0] ss:$8 sps:$4 sm:$0xff]  }
 0x408   :  { %9785 = vmatprep.subr.bf16.mxu0 %v22223_v56  ;;  %11804 = vmatprep.subr.bf16.mxu1 %v22223_v56  ;;  %v22304_v56 = vld [vmem:[%s28825_s1 + $0x1d4] ss:$8 sps:$4 sm:$0xff]  }
 0x40b   :  { %9786 = vmatpush1.bf16.msra.mxu0 %v22221_v57  ;;  %11805 = vmatpush1.bf16.msra.mxu1 %v22221_v57  ;;  %v22302_v57 = vld [vmem:[%s28825_s1 + $0x1d0] ss:$8 sps:$4 sm:$0xff]  }
 0x40c   :  { %9787 = vmatprep.subr.bf16.mxu0 %v22226_v58  ;;  %11806 = vmatprep.subr.bf16.mxu1 %v22226_v58  ;;  %v22307_v58 = vld [vmem:[%s28825_s1 + $0x1e4] ss:$8 sps:$4 sm:$0xff]  }
 0x40f   :  { %9788 = vmatpush1.bf16.msra.mxu0 %v22224_v59  ;;  %11807 = vmatpush1.bf16.msra.mxu1 %v22224_v59  ;;  %v8387_v59 = vcombine.high %v25318_v39, %v25318_v39 }
 0x410   :  { %9789 = vmatprep.subr.bf16.mxu0 %v22229_v60  ;;  %11808 = vmatprep.subr.bf16.mxu1 %v22229_v60  ;;  %v10406_v60 = vcombine.high %v25323_v40, %v25323_v40  ;;  %v22308_v40 = vld [vmem:[%s28825_s1 + $0x1f0] ss:$8 sps:$4 sm:$0xff]  }
 0x412   :  { %v25569_v39 = vrot.slane %v10406_v60, %v23464_v16  ;;  %v22378_v60 = vld [vmem:[%s28825_s1 + $0x354] ss:$8 sps:$4 sm:$0xff]  }
 0x413   :  { %9790 = vmatpush1.bf16.msra.mxu0 %v22227_v61  ;;  %11809 = vmatpush1.bf16.msra.mxu1 %v22227_v61  ;;  %v22305_v61 = vld [vmem:[%s28825_s1 + $0x1e0] ss:$8 sps:$4 sm:$0xff]  }
 0x414   :  { %9791 = vmatprep.subr.bf16.mxu0 %v22232_v62  ;;  %11810 = vmatprep.subr.bf16.mxu1 %v22232_v62  ;;  %v22310_v62 = vld [vmem:[%s28825_s1 + $0x1f4] ss:$8 sps:$4 sm:$0xff]  }
 0x417   :  { %9792 = vmatpush1.bf16.msra.mxu0 %v22230_v5  ;;  %11811 = vmatpush1.bf16.msra.mxu1 %v22230_v5  ;;  %v25566_v5 = vrot.slane %v8387_v59, %v23464_v16  ;;  %v6354_v59 = vld [vmem:[%s28826_s2] sm:$0x3] }
 0x418   :  { %9793 = vmatprep.subr.bf16.mxu0 %v22235_v6  ;;  %11812 = vmatprep.subr.bf16.mxu1 %v22235_v6  ;;  %v22313_v6 = vld [vmem:[%s28825_s1 + $0x204] ss:$8 sps:$4 sm:$0xff]  }
 0x41b   :  { %9794 = vmatpush1.bf16.msra.mxu0 %v22233_v7  ;;  %11813 = vmatpush1.bf16.msra.mxu1 %v22233_v7  ;;  %v8403_v7 = vcombine.high %v25566_v5, %v25566_v5 }
 0x41c   :  { %9795 = vmatprep.subr.bf16.mxu0 %v22238_v8  ;;  %11814 = vmatprep.subr.bf16.mxu1 %v22238_v8  ;;  %v10422_v8 = vcombine.high %v25569_v39, %v25569_v39 }
 0x41f   :  { %9796 = vmatpush1.bf16.msra.mxu0 %v22236_v9  ;;  %11815 = vmatpush1.bf16.msra.mxu1 %v22236_v9  ;;  %v8432_v9 = vcombine.high %v25459_v27, %v25459_v27 }
 0x420   :  { %9797 = vmatprep.subr.bf16.mxu0 %v22241_v10  ;;  %11816 = vmatprep.subr.bf16.mxu1 %v22241_v10  ;;  %v10451_v10 = vcombine.high %v25463_v63, %v25463_v63 }
 0x423   :  { %9798 = vmatpush1.bf16.msra.mxu0 %v22239_v11  ;;  %11817 = vmatpush1.bf16.msra.mxu1 %v22239_v11  ;;  %v22311_v11 = vld [vmem:[%s28825_s1 + $0x200] ss:$8 sps:$4 sm:$0xff]  }
 0x424   :  { %9799 = vmatprep.subr.bf16.mxu0 %v22244_v13  ;;  %11818 = vmatprep.subr.bf16.mxu1 %v22244_v13  ;;  %v22316_v13 = vld [vmem:[%s28825_s1 + $0x214] ss:$8 sps:$4 sm:$0xff]  }
 0x427   :  { %9800 = vmatpush1.bf16.msra.mxu0 %v22242_v14  ;;  %11819 = vmatpush1.bf16.msra.mxu1 %v22242_v14  ;;  %v25592_v14 = vrot.slane %v8403_v7, %v23464_v16 }
 0x428   :  { %9801 = vmatprep.subr.bf16.mxu0 %v22247_v15  ;;  %11820 = vmatprep.subr.bf16.mxu1 %v22247_v15  ;;  %v25595_v15 = vrot.slane %v10422_v8, %v23464_v16 }
 0x42b   :  { %9802 = vmatpush1.bf16.msra.mxu0 %v22245_v17  ;;  %11821 = vmatpush1.bf16.msra.mxu1 %v22245_v17  ;;  %v22314_v17 = vld [vmem:[%s28825_s1 + $0x210] ss:$8 sps:$4 sm:$0xff]  }
 0x42c   :  { %9803 = vmatprep.subr.bf16.mxu0 %v22250_v20  ;;  %11822 = vmatprep.subr.bf16.mxu1 %v22250_v20  ;;  %v22319_v20 = vld [vmem:[%s28825_s1 + $0x224] ss:$8 sps:$4 sm:$0xff]  }
 0x42f   :  { %9804 = vmatpush1.bf16.msra.mxu0 %v22248_v21  ;;  %11823 = vmatpush1.bf16.msra.mxu1 %v22248_v21  ;;  %v22317_v21 = vld [vmem:[%s28825_s1 + $0x220] ss:$8 sps:$4 sm:$0xff]  }
 0x430   :  { %9805 = vmatprep.subr.bf16.mxu0 %v22253_v3  ;;  %11824 = vmatprep.subr.bf16.mxu1 %v22253_v3  ;;  %v22322_v3 = vld [vmem:[%s28825_s1 + $0x234] ss:$8 sps:$4 sm:$0xff]  }
 0x433   :  { %9806 = vmatpush1.bf16.msra.mxu0 %v22251_v4  ;;  %11825 = vmatpush1.bf16.msra.mxu1 %v22251_v4  ;;  %v22320_v4 = vld [vmem:[%s28825_s1 + $0x230] ss:$8 sps:$4 sm:$0xff]  }
 0x434   :  { %9807 = vmatprep.subr.bf16.mxu0 %v22256_v19  ;;  %11826 = vmatprep.subr.bf16.mxu1 %v22256_v19  ;;  %v22325_v19 = vld [vmem:[%s28825_s1 + $0x244] ss:$8 sps:$4 sm:$0xff]  }
 0x437   :  { %9808 = vmatpush1.bf16.msra.mxu0 %v22254_v22  ;;  %11827 = vmatpush1.bf16.msra.mxu1 %v22254_v22  ;;  %v22323_v22 = vld [vmem:[%s28825_s1 + $0x240] ss:$8 sps:$4 sm:$0xff]  }
 0x438   :  { %9809 = vmatprep.subr.bf16.mxu0 %v22259_v24  ;;  %11828 = vmatprep.subr.bf16.mxu1 %v22259_v24  ;;  %v22328_v24 = vld [vmem:[%s28825_s1 + $0x254] ss:$8 sps:$4 sm:$0xff]  }
 0x43b   :  { %9810 = vmatpush1.bf16.msra.mxu0 %v22257_v25  ;;  %11829 = vmatpush1.bf16.msra.mxu1 %v22257_v25  ;;  %v22326_v25 = vld [vmem:[%s28825_s1 + $0x250] ss:$8 sps:$4 sm:$0xff]  }
 0x43c   :  { %9811 = vmatprep.subr.bf16.mxu0 %v22262_v1  ;;  %11830 = vmatprep.subr.bf16.mxu1 %v22262_v1  ;;  %v22331_v1 = vld [vmem:[%s28825_s1 + $0x264] ss:$8 sps:$4 sm:$0xff]  }
 0x43f   :  { %9812 = vmatpush1.bf16.msra.mxu0 %v22260_v2  ;;  %11831 = vmatpush1.bf16.msra.mxu1 %v22260_v2  ;;  %v22329_v2 = vld [vmem:[%s28825_s1 + $0x260] ss:$8 sps:$4 sm:$0xff]  }
 0x440   :  { %9822 = vmatprep.subr.bf16.mxu0 %v22265_v26  ;;  %11841 = vmatprep.subr.bf16.mxu1 %v22265_v26  ;;  %v22334_v26 = vld [vmem:[%s28825_s1 + $0x274] ss:$8 sps:$4 sm:$0xff]  }
 0x442   :  { %9814 = vmatmul.mubr.bf16.vlgmr.msra.gmra.mrb[8].mxu0 %v25459_v27  ;;  %11833 = vmatmul.mubr.bf16.vlgmr.msra.gmra.mrb[8].mxu1 %v25463_v63  ;;  %v22332_v27 = vld [vmem:[%s28825_s1 + $0x270] ss:$8 sps:$4 sm:$0xff]   ;;  %v22337_v63 = vld [vmem:[%s28825_s1 + $0x284] ss:$8 sps:$4 sm:$0xff]  }
 0x443   :  { %9823 = vmatpush1.bf16.msra.mxu0 %v22263_v0  ;;  %11842 = vmatpush1.bf16.msra.mxu1 %v22263_v0  ;;  %v22335_v0 = vld [vmem:[%s28825_s1 + $0x280] ss:$8 sps:$4 sm:$0xff]  }
 0x444   :  { %9824 = vmatprep.subr.bf16.mxu0 %v22268_v28  ;;  %11843 = vmatprep.subr.bf16.mxu1 %v22268_v28  ;;  %v22340_v28 = vld [vmem:[%s28825_s1 + $0x294] ss:$8 sps:$4 sm:$0xff]  }
 0x445   :  { %9854 = vmatprep.mubr.bf16.mxu0 %v8434_v29  ;;  %11873 = vmatprep.mubr.bf16.mxu1 %v10453_v30  ;;  %v22338_v29 = vld [vmem:[%s28825_s1 + $0x290] ss:$8 sps:$4 sm:$0xff]   ;;  %v22343_v30 = vld [vmem:[%s28825_s1 + $0x2a4] ss:$8 sps:$4 sm:$0xff]  }
 0x447   :  { %9825 = vmatpush1.bf16.msra.mxu0 %v22266_v31  ;;  %11844 = vmatpush1.bf16.msra.mxu1 %v22266_v31  ;;  %v22341_v31 = vld [vmem:[%s28825_s1 + $0x2a0] ss:$8 sps:$4 sm:$0xff]  }
 0x448   :  { %9826 = vmatprep.subr.bf16.mxu0 %v22271_v32  ;;  %11845 = vmatprep.subr.bf16.mxu1 %v22271_v32  ;;  %v22346_v32 = vld [vmem:[%s28825_s1 + $0x2b4] ss:$8 sps:$4 sm:$0xff]  }
 0x44b   :  { %9827 = vmatpush1.bf16.msra.mxu0 %v22269_v33  ;;  %11846 = vmatpush1.bf16.msra.mxu1 %v22269_v33  ;;  %v22344_v33 = vld [vmem:[%s28825_s1 + $0x2b0] ss:$8 sps:$4 sm:$0xff]  }
 0x44c   :  { %9828 = vmatprep.subr.bf16.mxu0 %v22274_v34  ;;  %11847 = vmatprep.subr.bf16.mxu1 %v22274_v34  ;;  %v22349_v34 = vld [vmem:[%s28825_s1 + $0x2c4] ss:$8 sps:$4 sm:$0xff]  }
 0x44f   :  { %9829 = vmatpush1.bf16.msra.mxu0 %v22272_v35  ;;  %11848 = vmatpush1.bf16.msra.mxu1 %v22272_v35  ;;  %v22347_v35 = vld [vmem:[%s28825_s1 + $0x2c0] ss:$8 sps:$4 sm:$0xff]  }
 0x450   :  { %9830 = vmatprep.subr.bf16.mxu0 %v22277_v36  ;;  %11849 = vmatprep.subr.bf16.mxu1 %v22277_v36  ;;  %v22352_v36 = vld [vmem:[%s28825_s1 + $0x2d4] ss:$8 sps:$4 sm:$0xff]  }
 0x453   :  { %9831 = vmatpush1.bf16.msra.mxu0 %v22275_v37  ;;  %11850 = vmatpush1.bf16.msra.mxu1 %v22275_v37  ;;  %v22350_v37 = vld [vmem:[%s28825_s1 + $0x2d0] ss:$8 sps:$4 sm:$0xff]  }
 0x454   :  { %9832 = vmatprep.subr.bf16.mxu0 %v22280_v38  ;;  %11851 = vmatprep.subr.bf16.mxu1 %v22280_v38  ;;  %v22355_v38 = vld [vmem:[%s28825_s1 + $0x2e4] ss:$8 sps:$4 sm:$0xff]  }
 0x457   :  { %9833 = vmatpush1.bf16.msra.mxu0 %v22278_v41  ;;  %11852 = vmatpush1.bf16.msra.mxu1 %v22278_v41  ;;  %v22353_v41 = vld [vmem:[%s28825_s1 + $0x2e0] ss:$8 sps:$4 sm:$0xff]  }
 0x458   :  { %9834 = vmatprep.subr.bf16.mxu0 %v22283_v42  ;;  %11853 = vmatprep.subr.bf16.mxu1 %v22283_v42  ;;  %v22358_v42 = vld [vmem:[%s28825_s1 + $0x2f4] ss:$8 sps:$4 sm:$0xff]  }
 0x45b   :  { %9835 = vmatpush1.bf16.msra.mxu0 %v22281_v43  ;;  %11854 = vmatpush1.bf16.msra.mxu1 %v22281_v43  ;;  %v22356_v43 = vld [vmem:[%s28825_s1 + $0x2f0] ss:$8 sps:$4 sm:$0xff]  }
 0x45c   :  { %9836 = vmatprep.subr.bf16.mxu0 %v22286_v44  ;;  %11855 = vmatprep.subr.bf16.mxu1 %v22286_v44  ;;  %v22362_v44 = vld [vmem:[%s28825_s1 + $0x304] ss:$8 sps:$4 sm:$0xff]  }
 0x45f   :  { %9837 = vmatpush1.bf16.msra.mxu0 %v22284_v45  ;;  %11856 = vmatpush1.bf16.msra.mxu1 %v22284_v45  ;;  %v25691_v45 = vrot.slane %v25566_v5, %v23464_v16 }
 0x460   :  { %9838 = vmatprep.subr.bf16.mxu0 %v22289_v46  ;;  %11857 = vmatprep.subr.bf16.mxu1 %v22289_v46  ;;  %v25695_v46 = vrot.slane %v25569_v39, %v23464_v16  ;;  %v6363_v39 = vrot.slane %v6354_v59, %v24778_v23 }
 0x463   :  { %9839 = vmatpush1.bf16.msra.mxu0 %v22287_v47  ;;  %11858 = vmatpush1.bf16.msra.mxu1 %v22287_v47  ;;  %v22360_v47 = vld [vmem:[%s28825_s1 + $0x300] ss:$8 sps:$4 sm:$0xff]  }
 0x464   :  { %9840 = vmatprep.subr.bf16.mxu0 %v22292_v48  ;;  %11859 = vmatprep.subr.bf16.mxu1 %v22292_v48  ;;  %v22366_v48 = vld [vmem:[%s28825_s1 + $0x314] ss:$8 sps:$4 sm:$0xff]  }
 0x467   :  { %9841 = vmatpush1.bf16.msra.mxu0 %v22290_v49  ;;  %11860 = vmatpush1.bf16.msra.mxu1 %v22290_v49  ;;  %v8435_v49 = vcombine.high %v25592_v14, %v25592_v14 }
 0x468   :  { %9842 = vmatprep.subr.bf16.mxu0 %v22295_v50  ;;  %11861 = vmatprep.subr.bf16.mxu1 %v22295_v50  ;;  %v10454_v50 = vcombine.high %v25595_v15, %v25595_v15 }
 0x46b   :  { %9843 = vmatpush1.bf16.msra.mxu0 %v22293_v51  ;;  %11862 = vmatpush1.bf16.msra.mxu1 %v22293_v51  ;;  %v22364_v51 = vld [vmem:[%s28825_s1 + $0x310] ss:$8 sps:$4 sm:$0xff]  }
 0x46c   :  { %9844 = vmatprep.subr.bf16.mxu0 %v22298_v52  ;;  %11863 = vmatprep.subr.bf16.mxu1 %v22298_v52  ;;  %v22369_v52 = vld [vmem:[%s28825_s1 + $0x324] ss:$8 sps:$4 sm:$0xff]  }
 0x46f   :  { %9845 = vmatpush1.bf16.msra.mxu0 %v22296_v53  ;;  %11864 = vmatpush1.bf16.msra.mxu1 %v22296_v53  ;;  %v22367_v53 = vld [vmem:[%s28825_s1 + $0x320] ss:$8 sps:$4 sm:$0xff]  }
 0x470   :  { %9846 = vmatprep.subr.bf16.mxu0 %v22301_v54  ;;  %11865 = vmatprep.subr.bf16.mxu1 %v22301_v54  ;;  %v22372_v54 = vld [vmem:[%s28825_s1 + $0x334] ss:$8 sps:$4 sm:$0xff]  }
 0x473   :  { %9847 = vmatpush1.bf16.msra.mxu0 %v22299_v55  ;;  %11866 = vmatpush1.bf16.msra.mxu1 %v22299_v55  ;;  %v22370_v55 = vld [vmem:[%s28825_s1 + $0x330] ss:$8 sps:$4 sm:$0xff]  }
 0x474   :  { %9848 = vmatprep.subr.bf16.mxu0 %v22304_v56  ;;  %11867 = vmatprep.subr.bf16.mxu1 %v22304_v56  ;;  %v22375_v56 = vld [vmem:[%s28825_s1 + $0x344] ss:$8 sps:$4 sm:$0xff]  }
 0x477   :  { %9849 = vmatpush1.bf16.msra.mxu0 %v22302_v57  ;;  %11868 = vmatpush1.bf16.msra.mxu1 %v22302_v57  ;;  %v22373_v57 = vld [vmem:[%s28825_s1 + $0x340] ss:$8 sps:$4 sm:$0xff]  }
 0x478   :  { %9850 = vmatprep.subr.bf16.mxu0 %v22307_v58  ;;  %11869 = vmatprep.subr.bf16.mxu1 %v22307_v58  ;;  %v4335_v58 = vld [vmem:[%s28826_s2] sm:$0x3] }
 0x479   :  { %v4344_v5 = vrot.slane %v4335_v58, %v24778_v23 }
 0x47b   :  { %9851 = vmatpush1.bf16.msra.mxu0 %v22305_v61  ;;  %11870 = vmatpush1.bf16.msra.mxu1 %v22305_v61  ;;  %v4340_v61 = vrot.slane %v4335_v58, %v24769_v18  ;;  %v22414_v58 = vld [vmem:[%s28825_s1 + $0x414] ss:$8 sps:$4 sm:$0xff]  }
 0x47c   :  { %9852 = vmatprep.subr.bf16.mxu0 %v22310_v62  ;;  %11871 = vmatprep.subr.bf16.mxu1 %v22310_v62  ;;  %v6359_v62 = vrot.slane %v6354_v59, %v24769_v18 }
 0x47f   :  { %9853 = vmatpush1.bf16.msra.mxu0 %v22308_v40  ;;  %11872 = vmatpush1.bf16.msra.mxu1 %v22308_v40  ;;  %v22376_v40 = vld [vmem:[%s28825_s1 + $0x350] ss:$8 sps:$4 sm:$0xff]  }
 0x480   :  { %9863 = vmatprep.subr.bf16.mxu0 %v22313_v6  ;;  %11882 = vmatprep.subr.bf16.mxu1 %v22313_v6  ;;  %v22381_v6 = vld [vmem:[%s28825_s1 + $0x364] ss:$8 sps:$4 sm:$0xff]  }
 0x482   :  { %9855 = vmatmul.mubr.bf16.vlgmr.msra.gmra.mrb[8].mxu0 %v8432_v9  ;;  %11874 = vmatmul.mubr.bf16.vlgmr.msra.gmra.mrb[8].mxu1 %v10451_v10 }
 0x483   :  { %9864 = vmatpush1.bf16.msra.mxu0 %v22311_v11  ;;  %11883 = vmatpush1.bf16.msra.mxu1 %v22311_v11 }
 0x484   :  { %9865 = vmatprep.subr.bf16.mxu0 %v22316_v13  ;;  %11884 = vmatprep.subr.bf16.mxu1 %v22316_v13 }
 0x485   :  { %9895 = vmatprep.mubr.bf16.mxu0 %v25592_v14  ;;  %11914 = vmatprep.mubr.bf16.mxu1 %v25595_v15 }
 0x487   :  { %9866 = vmatpush1.bf16.msra.mxu0 %v22314_v17  ;;  %11885 = vmatpush1.bf16.msra.mxu1 %v22314_v17 }
 0x488   :  { %9867 = vmatprep.subr.bf16.mxu0 %v22319_v20  ;;  %11886 = vmatprep.subr.bf16.mxu1 %v22319_v20 }
 0x48b   :  { %9868 = vmatpush1.bf16.msra.mxu0 %v22317_v21  ;;  %11887 = vmatpush1.bf16.msra.mxu1 %v22317_v21  ;;  %v22379_v21 = vld [vmem:[%s28825_s1 + $0x360] ss:$8 sps:$4 sm:$0xff]  }
 0x48c   :  { %9869 = vmatprep.subr.bf16.mxu0 %v22322_v3  ;;  %11888 = vmatprep.subr.bf16.mxu1 %v22322_v3 }
 0x48f   :  { %9870 = vmatpush1.bf16.msra.mxu0 %v22320_v4  ;;  %11889 = vmatpush1.bf16.msra.mxu1 %v22320_v4 }
 0x490   :  { %9871 = vmatprep.subr.bf16.mxu0 %v22325_v19  ;;  %11890 = vmatprep.subr.bf16.mxu1 %v22325_v19 }
 0x493   :  { %9872 = vmatpush1.bf16.msra.mxu0 %v22323_v22  ;;  %11891 = vmatpush1.bf16.msra.mxu1 %v22323_v22 }
 0x494   :  { %9873 = vmatprep.subr.bf16.mxu0 %v22328_v24  ;;  %11892 = vmatprep.subr.bf16.mxu1 %v22328_v24  ;;  %v22384_v24 = vld [vmem:[%s28825_s1 + $0x374] ss:$8 sps:$4 sm:$0xff]  }
 0x497   :  { %9874 = vmatpush1.bf16.msra.mxu0 %v22326_v25  ;;  %11893 = vmatpush1.bf16.msra.mxu1 %v22326_v25 }
 0x498   :  { %9875 = vmatprep.subr.bf16.mxu0 %v22331_v1  ;;  %11894 = vmatprep.subr.bf16.mxu1 %v22331_v1 }
 0x49b   :  { %9876 = vmatpush1.bf16.msra.mxu0 %v22329_v2  ;;  %11895 = vmatpush1.bf16.msra.mxu1 %v22329_v2 }
 0x49c   :  { %9877 = vmatprep.subr.bf16.mxu0 %v22334_v26  ;;  %11896 = vmatprep.subr.bf16.mxu1 %v22334_v26 }
 0x49f   :  { %9878 = vmatpush1.bf16.msra.mxu0 %v22332_v27  ;;  %11897 = vmatpush1.bf16.msra.mxu1 %v22332_v27  ;;  %v22382_v27 = vld [vmem:[%s28825_s1 + $0x370] ss:$8 sps:$4 sm:$0xff]  }
 0x4a0   :  { %9879 = vmatprep.subr.bf16.mxu0 %v22337_v63  ;;  %11898 = vmatprep.subr.bf16.mxu1 %v22337_v63  ;;  %v22387_v63 = vld [vmem:[%s28825_s1 + $0x384] ss:$8 sps:$4 sm:$0xff]  }
 0x4a3   :  { %9880 = vmatpush1.bf16.msra.mxu0 %v22335_v0  ;;  %11899 = vmatpush1.bf16.msra.mxu1 %v22335_v0 }
 0x4a4   :  { %9881 = vmatprep.subr.bf16.mxu0 %v22340_v28  ;;  %11900 = vmatprep.subr.bf16.mxu1 %v22340_v28 }
 0x4a7   :  { %9882 = vmatpush1.bf16.msra.mxu0 %v22338_v29  ;;  %11901 = vmatpush1.bf16.msra.mxu1 %v22338_v29  ;;  %v22385_v29 = vld [vmem:[%s28825_s1 + $0x380] ss:$8 sps:$4 sm:$0xff]  }
 0x4a8   :  { %9883 = vmatprep.subr.bf16.mxu0 %v22343_v30  ;;  %11902 = vmatprep.subr.bf16.mxu1 %v22343_v30  ;;  %v22390_v30 = vld [vmem:[%s28825_s1 + $0x394] ss:$8 sps:$4 sm:$0xff]  }
 0x4ab   :  { %9884 = vmatpush1.bf16.msra.mxu0 %v22341_v31  ;;  %11903 = vmatpush1.bf16.msra.mxu1 %v22341_v31  ;;  %v22388_v31 = vld [vmem:[%s28825_s1 + $0x390] ss:$8 sps:$4 sm:$0xff]  }
 0x4ac   :  { %9885 = vmatprep.subr.bf16.mxu0 %v22346_v32  ;;  %11904 = vmatprep.subr.bf16.mxu1 %v22346_v32  ;;  %v22393_v32 = vld [vmem:[%s28825_s1 + $0x3a4] ss:$8 sps:$4 sm:$0xff]  }
 0x4af   :  { %9886 = vmatpush1.bf16.msra.mxu0 %v22344_v33  ;;  %11905 = vmatpush1.bf16.msra.mxu1 %v22344_v33  ;;  %v22391_v33 = vld [vmem:[%s28825_s1 + $0x3a0] ss:$8 sps:$4 sm:$0xff]  }
 0x4b0   :  { %9887 = vmatprep.subr.bf16.mxu0 %v22349_v34  ;;  %11906 = vmatprep.subr.bf16.mxu1 %v22349_v34  ;;  %v22396_v34 = vld [vmem:[%s28825_s1 + $0x3b4] ss:$8 sps:$4 sm:$0xff]  }
 0x4b3   :  { %9888 = vmatpush1.bf16.msra.mxu0 %v22347_v35  ;;  %11907 = vmatpush1.bf16.msra.mxu1 %v22347_v35  ;;  %v22394_v35 = vld [vmem:[%s28825_s1 + $0x3b0] ss:$8 sps:$4 sm:$0xff]  }
 0x4b4   :  { %9889 = vmatprep.subr.bf16.mxu0 %v22352_v36  ;;  %11908 = vmatprep.subr.bf16.mxu1 %v22352_v36  ;;  %v22399_v36 = vld [vmem:[%s28825_s1 + $0x3c4] ss:$8 sps:$4 sm:$0xff]  }
 0x4b7   :  { %9890 = vmatpush1.bf16.msra.mxu0 %v22350_v37  ;;  %11909 = vmatpush1.bf16.msra.mxu1 %v22350_v37  ;;  %v22397_v37 = vld [vmem:[%s28825_s1 + $0x3c0] ss:$8 sps:$4 sm:$0xff]  }
 0x4b8   :  { %9891 = vmatprep.subr.bf16.mxu0 %v22355_v38  ;;  %11910 = vmatprep.subr.bf16.mxu1 %v22355_v38  ;;  %v22402_v38 = vld [vmem:[%s28825_s1 + $0x3d4] ss:$8 sps:$4 sm:$0xff]  }
 0x4bb   :  { %9892 = vmatpush1.bf16.msra.mxu0 %v22353_v41  ;;  %11911 = vmatpush1.bf16.msra.mxu1 %v22353_v41  ;;  %v22400_v41 = vld [vmem:[%s28825_s1 + $0x3d0] ss:$8 sps:$4 sm:$0xff]  }
 0x4bc   :  { %9893 = vmatprep.subr.bf16.mxu0 %v22358_v42  ;;  %11912 = vmatprep.subr.bf16.mxu1 %v22358_v42  ;;  %v22405_v42 = vld [vmem:[%s28825_s1 + $0x3e4] ss:$8 sps:$4 sm:$0xff]  }
 0x4bf   :  { %9894 = vmatpush1.bf16.msra.mxu0 %v22356_v43  ;;  %11913 = vmatpush1.bf16.msra.mxu1 %v22356_v43  ;;  %v25802_v43 = vld [vmem:[%s28824_s0 + $0x48] sm:$0xff] }
 0x4c0   :  { %9904 = vmatprep.subr.bf16.mxu0 %v22362_v44  ;;  %11923 = vmatprep.subr.bf16.mxu1 %v22362_v44  ;;  %v25807_v44 = vld [vmem:[%s28824_s0 + $0x58] sm:$0xff] }
 0x4c2   :  { %9896 = vmatmul.mubr.bf16.vlgmr.msra.gmra.mrb[8].mxu0 %v25691_v45  ;;  %11915 = vmatmul.mubr.bf16.vlgmr.msra.gmra.mrb[8].mxu1 %v25695_v46 }
 0x4c3   :  { %9905 = vmatpush1.bf16.msra.mxu0 %v22360_v47  ;;  %11924 = vmatpush1.bf16.msra.mxu1 %v22360_v47  ;;  %v22403_v47 = vld [vmem:[%s28825_s1 + $0x3e0] ss:$8 sps:$4 sm:$0xff]  }
 0x4c4   :  { %9906 = vmatprep.subr.bf16.mxu0 %v22366_v48  ;;  %11925 = vmatprep.subr.bf16.mxu1 %v22366_v48  ;;  %v22408_v48 = vld [vmem:[%s28825_s1 + $0x3f4] ss:$8 sps:$4 sm:$0xff]  }
 0x4c5   :  { %9936 = vmatprep.mubr.bf16.mxu0 %v8435_v49  ;;  %11955 = vmatprep.mubr.bf16.mxu1 %v10454_v50  ;;  %v25817_v49 = vrot.slane %v25802_v43, %v23464_v16  ;;  %v25821_v50 = vrot.slane %v25807_v44, %v23464_v16 }
 0x4c7   :  { %9907 = vmatpush1.bf16.msra.mxu0 %v22364_v51  ;;  %11926 = vmatpush1.bf16.msra.mxu1 %v22364_v51  ;;  %v22406_v51 = vld [vmem:[%s28825_s1 + $0x3f0] ss:$8 sps:$4 sm:$0xff]  }
 0x4c8   :  { %9908 = vmatprep.subr.bf16.mxu0 %v22369_v52  ;;  %11927 = vmatprep.subr.bf16.mxu1 %v22369_v52  ;;  %v22411_v52 = vld [vmem:[%s28825_s1 + $0x404] ss:$8 sps:$4 sm:$0xff]  }
 0x4cb   :  { %9909 = vmatpush1.bf16.msra.mxu0 %v22367_v53  ;;  %11928 = vmatpush1.bf16.msra.mxu1 %v22367_v53  ;;  %v8451_v53 = vcombine.high %v25817_v49, %v25817_v49 }
 0x4cc   :  { %9910 = vmatprep.subr.bf16.mxu0 %v22372_v54  ;;  %11929 = vmatprep.subr.bf16.mxu1 %v22372_v54  ;;  %v10470_v54 = vcombine.high %v25821_v50, %v25821_v50 }
 0x4cd   :  { %v25844_v59 = vrot.slane %v8451_v53, %v23464_v16  ;;  %v22481_v53 = vld [vmem:[%s28825_s1 + $0x580] ss:$8 sps:$4 sm:$0xff]  }
 0x4cf   :  { %9911 = vmatpush1.bf16.msra.mxu0 %v22370_v55  ;;  %11930 = vmatpush1.bf16.msra.mxu1 %v22370_v55  ;;  %v8433_v55 = vcombine.high %v25691_v45, %v25691_v45  ;;  %v25847_v45 = vrot.slane %v10470_v54, %v23464_v16  ;;  %v22486_v54 = vld [vmem:[%s28825_s1 + $0x594] ss:$8 sps:$4 sm:$0xff]  }
 0x4d0   :  { %9912 = vmatprep.subr.bf16.mxu0 %v22375_v56  ;;  %11931 = vmatprep.subr.bf16.mxu1 %v22375_v56  ;;  %v10452_v56 = vcombine.high %v25695_v46, %v25695_v46  ;;  %v22412_v46 = vld [vmem:[%s28825_s1 + $0x410] ss:$8 sps:$4 sm:$0xff]  }
 0x4d3   :  { %9913 = vmatpush1.bf16.msra.mxu0 %v22373_v57  ;;  %11932 = vmatpush1.bf16.msra.mxu1 %v22373_v57  ;;  %v22409_v57 = vld [vmem:[%s28825_s1 + $0x400] ss:$8 sps:$4 sm:$0xff]  }
 0x4d4   :  { %9914 = vmatprep.subr.bf16.mxu0 %v22378_v60  ;;  %11933 = vmatprep.subr.bf16.mxu1 %v22378_v60  ;;  %v22417_v60 = vld [vmem:[%s28825_s1 + $0x424] ss:$8 sps:$4 sm:$0xff]  }
 0x4d5   :  { %v6064_v7 = vpop.f32.mrb[4].mxu0  ;;  %v8083_v8 = vpop.f32.mrb[4].mxu1 }
 0x4d6   :  { %v21200_v9 = vadd.f32 %v6064_v7, %v4340_v61  ;;  %v21202_v10 = vadd.f32 %v8083_v8, %v6359_v62  ;;  %v6066_v11 = vpop.f32.mrb[5].mxu0  ;;  %v8085_v13 = vpop.f32.mrb[5].mxu1  ;;  %v22415_v61 = vld [vmem:[%s28825_s1 + $0x420] ss:$8 sps:$4 sm:$0xff]   ;;  %v22420_v62 = vld [vmem:[%s28825_s1 + $0x434] ss:$8 sps:$4 sm:$0xff]  }
 0x4d7   :  { %v21201_v14 = vadd.f32 %v6066_v11, %v4344_v5  ;;  %v21203_v15 = vadd.f32 %v8085_v13, %v6363_v39  ;;  %v6068_v17 = vpop.f32.mrb[6].mxu0  ;;  %v8087_v20 = vpop.f32.mrb[6].mxu1  ;;  %9915 = vmatpush1.bf16.msra.mxu0 %v22376_v40  ;;  %11934 = vmatpush1.bf16.msra.mxu1 %v22376_v40  ;;  %v22418_v5 = vld [vmem:[%s28825_s1 + $0x430] ss:$8 sps:$4 sm:$0xff]   ;;  %v22423_v39 = vld [vmem:[%s28825_s1 + $0x444] ss:$8 sps:$4 sm:$0xff]  }
 0x4d8   :  { %v6071_v3 = vmax.f32 %v21200_v9, 0.0  ;;  %v8090_v4 = vmax.f32 %v21202_v10, 0.0  ;;  %v6069_v19 = vpop.f32.mrb[7].mxu0  ;;  %v8088_v22 = vpop.f32.mrb[7].mxu1  ;;  %9916 = vmatprep.subr.bf16.mxu0 %v22381_v6  ;;  %11935 = vmatprep.subr.bf16.mxu1 %v22381_v6  ;;  %v22421_v40 = vld [vmem:[%s28825_s1 + $0x440] ss:$8 sps:$4 sm:$0xff]  }
 0x4d9   :  { %v6072_v25 = vmax.f32 %v21201_v14, 0.0  ;;  %v8091_v1 = vmax.f32 %v21203_v15, 0.0  ;;  %v22426_v6 = vld [vmem:[%s28825_s1 + $0x454] ss:$8 sps:$4 sm:$0xff]   ;;  %v22424_v7 = vld [vmem:[%s28825_s1 + $0x450] ss:$8 sps:$4 sm:$0xff]  }
 0x4da   :  { %v22429_v8 = vld [vmem:[%s28825_s1 + $0x464] ss:$8 sps:$4 sm:$0xff]   ;;  %v22427_v9 = vld [vmem:[%s28825_s1 + $0x460] ss:$8 sps:$4 sm:$0xff]   ;;  %v22432_v10 = vld [vmem:[%s28825_s1 + $0x474] ss:$8 sps:$4 sm:$0xff]  }
 0x4db   :  { %v19479_v2 = vpack.c.bf16 %v6072_v25, %v6071_v3  ;;  %v19739_v26 = vpack.c.bf16 %v8091_v1, %v8090_v4  ;;  %9917 = vmatpush1.bf16.msra.mxu0 %v22379_v21  ;;  %11936 = vmatpush1.bf16.msra.mxu1 %v22379_v21  ;;  %v22430_v11 = vld [vmem:[%s28825_s1 + $0x470] ss:$8 sps:$4 sm:$0xff]   ;;  %v22435_v13 = vld [vmem:[%s28825_s1 + $0x484] ss:$8 sps:$4 sm:$0xff]   ;;  %v22433_v14 = vld [vmem:[%s28825_s1 + $0x480] ss:$8 sps:$4 sm:$0xff]  }
 0x4dc   :  { %9918 = vmatprep.subr.bf16.mxu0 %v22384_v24  ;;  %11937 = vmatprep.subr.bf16.mxu1 %v22384_v24  ;;  %v22438_v15 = vld [vmem:[%s28825_s1 + $0x494] ss:$8 sps:$4 sm:$0xff]   ;;  %v22436_v17 = vld [vmem:[%s28825_s1 + $0x490] ss:$8 sps:$4 sm:$0xff]   ;;  %v22441_v20 = vld [vmem:[%s28825_s1 + $0x4a4] ss:$8 sps:$4 sm:$0xff]  }
 0x4dd   :  { %v6084_v0 = vrot.slane %v19479_v2, %v23464_v16  ;;  %v8103_v28 = vrot.slane %v19739_v26, %v23464_v16  ;;  %v22439_v21 = vld [vmem:[%s28825_s1 + $0x4a0] ss:$8 sps:$4 sm:$0xff]   ;;  %v22444_v3 = vld [vmem:[%s28825_s1 + $0x4b4] ss:$8 sps:$4 sm:$0xff]   ;;  %v22442_v4 = vld [vmem:[%s28825_s1 + $0x4b0] ss:$8 sps:$4 sm:$0xff]  }
 0x4de   :  { %v22447_v19 = vld [vmem:[%s28825_s1 + $0x4c4] ss:$8 sps:$4 sm:$0xff]   ;;  %v22445_v22 = vld [vmem:[%s28825_s1 + $0x4c0] ss:$8 sps:$4 sm:$0xff]   ;;  %v22450_v24 = vld [vmem:[%s28825_s1 + $0x4d4] ss:$8 sps:$4 sm:$0xff]  }
 0x4df   :  { %19480 = vst.sshfl [vmem:[#allocation2 + $0x4] sm:$0x5 pattern:$0x73625140] %v6084_v0  ;;  %9919 = vmatpush1.bf16.msra.mxu0 %v22382_v27  ;;  %11938 = vmatpush1.bf16.msra.mxu1 %v22382_v27  ;;  %v22448_v25 = vld [vmem:[%s28825_s1 + $0x4d0] ss:$8 sps:$4 sm:$0xff]   ;;  %v25943_v0 = vrot.slane %v25817_v49, %v23464_v16 }
 0x4e0   :  { %19740 = vst.sshfl [vmem:[#allocation2 + $0x6] sm:$0x5 pattern:$0x73625140] %v8103_v28  ;;  %9920 = vmatprep.subr.bf16.mxu0 %v22387_v63  ;;  %11939 = vmatprep.subr.bf16.mxu1 %v22387_v63  ;;  %v22453_v1 = vld [vmem:[%s28825_s1 + $0x4e4] ss:$8 sps:$4 sm:$0xff]   ;;  %v25947_v28 = vrot.slane %v25821_v50, %v23464_v16 }
 0x4e1   :  { %v22451_v2 = vld [vmem:[%s28825_s1 + $0x4e0] ss:$8 sps:$4 sm:$0xff]   ;;  %v22456_v26 = vld [vmem:[%s28825_s1 + $0x4f4] ss:$8 sps:$4 sm:$0xff]   ;;  %v22454_v27 = vld [vmem:[%s28825_s1 + $0x4f0] ss:$8 sps:$4 sm:$0xff]  }
 0x4e2   :  { %v22459_v63 = vld [vmem:[%s28825_s1 + $0x504] ss:$8 sps:$4 sm:$0xff]   ;;  %v22475_v49 = vld [vmem:[%s28825_s1 + $0x560] ss:$8 sps:$4 sm:$0xff]   ;;  %v22480_v50 = vld [vmem:[%s28825_s1 + $0x574] ss:$8 sps:$4 sm:$0xff]  }
 0x4e3   :  { %9921 = vmatpush1.bf16.msra.mxu0 %v22385_v29  ;;  %11940 = vmatpush1.bf16.msra.mxu1 %v22385_v29  ;;  %v22457_v29 = vld [vmem:[%s28825_s1 + $0x500] ss:$8 sps:$4 sm:$0xff]  }
 0x4e4   :  { %9922 = vmatprep.subr.bf16.mxu0 %v22390_v30  ;;  %11941 = vmatprep.subr.bf16.mxu1 %v22390_v30  ;;  %v22462_v30 = vld [vmem:[%s28825_s1 + $0x514] ss:$8 sps:$4 sm:$0xff]  }
 0x4e7   :  { %9923 = vmatpush1.bf16.msra.mxu0 %v22388_v31  ;;  %11942 = vmatpush1.bf16.msra.mxu1 %v22388_v31  ;;  %v8483_v31 = vcombine.high %v25844_v59, %v25844_v59 }
 0x4e8   :  { %9924 = vmatprep.subr.bf16.mxu0 %v22393_v32  ;;  %11943 = vmatprep.subr.bf16.mxu1 %v22393_v32  ;;  %v10502_v32 = vcombine.high %v25847_v45, %v25847_v45 }
 0x4eb   :  { %9925 = vmatpush1.bf16.msra.mxu0 %v22391_v33  ;;  %11944 = vmatpush1.bf16.msra.mxu1 %v22391_v33  ;;  %v22460_v33 = vld [vmem:[%s28825_s1 + $0x510] ss:$8 sps:$4 sm:$0xff]  }
 0x4ec   :  { %9926 = vmatprep.subr.bf16.mxu0 %v22396_v34  ;;  %11945 = vmatprep.subr.bf16.mxu1 %v22396_v34  ;;  %v22465_v34 = vld [vmem:[%s28825_s1 + $0x524] ss:$8 sps:$4 sm:$0xff]  }
 0x4ef   :  { %9927 = vmatpush1.bf16.msra.mxu0 %v22394_v35  ;;  %11946 = vmatpush1.bf16.msra.mxu1 %v22394_v35  ;;  %v22463_v35 = vld [vmem:[%s28825_s1 + $0x520] ss:$8 sps:$4 sm:$0xff]  }
 0x4f0   :  { %9928 = vmatprep.subr.bf16.mxu0 %v22399_v36  ;;  %11947 = vmatprep.subr.bf16.mxu1 %v22399_v36  ;;  %v22468_v36 = vld [vmem:[%s28825_s1 + $0x534] ss:$8 sps:$4 sm:$0xff]  }
 0x4f3   :  { %9929 = vmatpush1.bf16.msra.mxu0 %v22397_v37  ;;  %11948 = vmatpush1.bf16.msra.mxu1 %v22397_v37  ;;  %v22466_v37 = vld [vmem:[%s28825_s1 + $0x530] ss:$8 sps:$4 sm:$0xff]  }
 0x4f4   :  { %9930 = vmatprep.subr.bf16.mxu0 %v22402_v38  ;;  %11949 = vmatprep.subr.bf16.mxu1 %v22402_v38  ;;  %v22471_v38 = vld [vmem:[%s28825_s1 + $0x544] ss:$8 sps:$4 sm:$0xff]  }
 0x4f7   :  { %9931 = vmatpush1.bf16.msra.mxu0 %v22400_v41  ;;  %11950 = vmatpush1.bf16.msra.mxu1 %v22400_v41  ;;  %v22469_v41 = vld [vmem:[%s28825_s1 + $0x540] ss:$8 sps:$4 sm:$0xff]  }
 0x4f8   :  { %9932 = vmatprep.subr.bf16.mxu0 %v22405_v42  ;;  %11951 = vmatprep.subr.bf16.mxu1 %v22405_v42  ;;  %v22474_v42 = vld [vmem:[%s28825_s1 + $0x554] ss:$8 sps:$4 sm:$0xff]  }
 0x4fb   :  { %9933 = vmatpush1.bf16.msra.mxu0 %v22403_v47  ;;  %11952 = vmatpush1.bf16.msra.mxu1 %v22403_v47  ;;  %v22472_v47 = vld [vmem:[%s28825_s1 + $0x550] ss:$8 sps:$4 sm:$0xff]  }
 0x4fc   :  { %9934 = vmatprep.subr.bf16.mxu0 %v22408_v48  ;;  %11953 = vmatprep.subr.bf16.mxu1 %v22408_v48  ;;  %v22477_v48 = vld [vmem:[%s28825_s1 + $0x564] ss:$8 sps:$4 sm:$0xff]  }
 0x4ff   :  { %9935 = vmatpush1.bf16.msra.mxu0 %v22406_v51  ;;  %11954 = vmatpush1.bf16.msra.mxu1 %v22406_v51  ;;  %v22478_v51 = vld [vmem:[%s28825_s1 + $0x570] ss:$8 sps:$4 sm:$0xff]  }
 0x500   :  { %9945 = vmatprep.subr.bf16.mxu0 %v22411_v52  ;;  %11964 = vmatprep.subr.bf16.mxu1 %v22411_v52  ;;  %v22483_v52 = vld [vmem:[%s28825_s1 + $0x584] ss:$8 sps:$4 sm:$0xff]  }
 0x502   :  { %9937 = vmatmul.mubr.bf16.vlgmr.msra.gmra.mrb[8].mxu0 %v8433_v55  ;;  %11956 = vmatmul.mubr.bf16.vlgmr.msra.gmra.mrb[8].mxu1 %v10452_v56  ;;  %v22484_v55 = vld [vmem:[%s28825_s1 + $0x590] ss:$8 sps:$4 sm:$0xff]   ;;  %v22489_v56 = vld [vmem:[%s28825_s1 + $0x5a4] ss:$8 sps:$4 sm:$0xff]  }
 0x503   :  { %9946 = vmatpush1.bf16.msra.mxu0 %v22409_v57  ;;  %11965 = vmatpush1.bf16.msra.mxu1 %v22409_v57  ;;  %v22487_v57 = vld [vmem:[%s28825_s1 + $0x5a0] ss:$8 sps:$4 sm:$0xff]  }
 0x504   :  { %9947 = vmatprep.subr.bf16.mxu0 %v22414_v58  ;;  %11966 = vmatprep.subr.bf16.mxu1 %v22414_v58  ;;  %v22492_v58 = vld [vmem:[%s28825_s1 + $0x5b4] ss:$8 sps:$4 sm:$0xff]  }
 0x505   :  { %9977 = vmatprep.mubr.bf16.mxu0 %v25844_v59  ;;  %11996 = vmatprep.mubr.bf16.mxu1 %v25847_v45  ;;  %v22490_v59 = vld [vmem:[%s28825_s1 + $0x5b0] ss:$8 sps:$4 sm:$0xff]   ;;  %v22495_v45 = vld [vmem:[%s28825_s1 + $0x5c4] ss:$8 sps:$4 sm:$0xff]  }
 0x507   :  { %9948 = vmatpush1.bf16.msra.mxu0 %v22412_v46  ;;  %11967 = vmatpush1.bf16.msra.mxu1 %v22412_v46  ;;  %v22493_v46 = vld [vmem:[%s28825_s1 + $0x5c0] ss:$8 sps:$4 sm:$0xff]  }
 0x508   :  { %9949 = vmatprep.subr.bf16.mxu0 %v22417_v60  ;;  %11968 = vmatprep.subr.bf16.mxu1 %v22417_v60  ;;  %v22498_v60 = vld [vmem:[%s28825_s1 + $0x5d4] ss:$8 sps:$4 sm:$0xff]  }
 0x50b   :  { %9950 = vmatpush1.bf16.msra.mxu0 %v22415_v61  ;;  %11969 = vmatpush1.bf16.msra.mxu1 %v22415_v61  ;;  %v22496_v61 = vld [vmem:[%s28825_s1 + $0x5d0] ss:$8 sps:$4 sm:$0xff]  }
 0x50c   :  { %9951 = vmatprep.subr.bf16.mxu0 %v22420_v62  ;;  %11970 = vmatprep.subr.bf16.mxu1 %v22420_v62  ;;  %v22501_v62 = vld [vmem:[%s28825_s1 + $0x5e4] ss:$8 sps:$4 sm:$0xff]  }
 0x50f   :  { %9952 = vmatpush1.bf16.msra.mxu0 %v22418_v5  ;;  %11971 = vmatpush1.bf16.msra.mxu1 %v22418_v5  ;;  %v8436_v5 = vcombine.high %v25802_v43, %v25802_v43 }
 0x510   :  { %9953 = vmatprep.subr.bf16.mxu0 %v22423_v39  ;;  %11972 = vmatprep.subr.bf16.mxu1 %v22423_v39  ;;  %v10455_v39 = vcombine.high %v25807_v44, %v25807_v44  ;;  %v22502_v44 = vld [vmem:[%s28825_s1 + $0x5f0] ss:$8 sps:$4 sm:$0xff]  }
 0x512   :  { %v26053_v43 = vrot.slane %v10455_v39, %v23464_v16  ;;  %v22575_v39 = vld [vmem:[%s28825_s1 + $0x764] ss:$8 sps:$4 sm:$0xff]  }
 0x513   :  { %9954 = vmatpush1.bf16.msra.mxu0 %v22421_v40  ;;  %11973 = vmatpush1.bf16.msra.mxu1 %v22421_v40  ;;  %v22499_v40 = vld [vmem:[%s28825_s1 + $0x5e0] ss:$8 sps:$4 sm:$0xff]  }
 0x514   :  { %9955 = vmatprep.subr.bf16.mxu0 %v22426_v6  ;;  %11974 = vmatprep.subr.bf16.mxu1 %v22426_v6  ;;  %v22504_v6 = vld [vmem:[%s28825_s1 + $0x5f4] ss:$8 sps:$4 sm:$0xff]  }
 0x517   :  { %9956 = vmatpush1.bf16.msra.mxu0 %v22424_v7  ;;  %11975 = vmatpush1.bf16.msra.mxu1 %v22424_v7  ;;  %v26050_v7 = vrot.slane %v8436_v5, %v23464_v16  ;;  %v22570_v5 = vld [vmem:[%s28825_s1 + $0x750] ss:$8 sps:$4 sm:$0xff]  }
 0x518   :  { %9957 = vmatprep.subr.bf16.mxu0 %v22429_v8  ;;  %11976 = vmatprep.subr.bf16.mxu1 %v22429_v8  ;;  %v22507_v8 = vld [vmem:[%s28825_s1 + $0x604] ss:$8 sps:$4 sm:$0xff]  }
 0x51b   :  { %9958 = vmatpush1.bf16.msra.mxu0 %v22427_v9  ;;  %11977 = vmatpush1.bf16.msra.mxu1 %v22427_v9  ;;  %v8452_v9 = vcombine.high %v26050_v7, %v26050_v7 }
 0x51c   :  { %9959 = vmatprep.subr.bf16.mxu0 %v22432_v10  ;;  %11978 = vmatprep.subr.bf16.mxu1 %v22432_v10  ;;  %v10471_v10 = vcombine.high %v26053_v43, %v26053_v43 }
 0x51f   :  { %9960 = vmatpush1.bf16.msra.mxu0 %v22430_v11  ;;  %11979 = vmatpush1.bf16.msra.mxu1 %v22430_v11  ;;  %v8481_v11 = vcombine.high %v25943_v0, %v25943_v0 }
 0x520   :  { %9961 = vmatprep.subr.bf16.mxu0 %v22435_v13  ;;  %11980 = vmatprep.subr.bf16.mxu1 %v22435_v13  ;;  %v10500_v13 = vcombine.high %v25947_v28, %v25947_v28 }
 0x523   :  { %9962 = vmatpush1.bf16.msra.mxu0 %v22433_v14  ;;  %11981 = vmatpush1.bf16.msra.mxu1 %v22433_v14  ;;  %v22505_v14 = vld [vmem:[%s28825_s1 + $0x600] ss:$8 sps:$4 sm:$0xff]  }
 0x524   :  { %9963 = vmatprep.subr.bf16.mxu0 %v22438_v15  ;;  %11982 = vmatprep.subr.bf16.mxu1 %v22438_v15  ;;  %v22510_v15 = vld [vmem:[%s28825_s1 + $0x614] ss:$8 sps:$4 sm:$0xff]  }
 0x527   :  { %9964 = vmatpush1.bf16.msra.mxu0 %v22436_v17  ;;  %11983 = vmatpush1.bf16.msra.mxu1 %v22436_v17  ;;  %v26076_v17 = vrot.slane %v8452_v9, %v23464_v16  ;;  %v22582_v9 = vld [vmem:[%s28825_s1 + $0x790] ss:$8 sps:$4 sm:$0xff]  }
 0x528   :  { %9965 = vmatprep.subr.bf16.mxu0 %v22441_v20  ;;  %11984 = vmatprep.subr.bf16.mxu1 %v22441_v20  ;;  %v26079_v20 = vrot.slane %v10471_v10, %v23464_v16  ;;  %v22587_v10 = vld [vmem:[%s28825_s1 + $0x7a4] ss:$8 sps:$4 sm:$0xff]  }
 0x52b   :  { %9966 = vmatpush1.bf16.msra.mxu0 %v22439_v21  ;;  %11985 = vmatpush1.bf16.msra.mxu1 %v22439_v21  ;;  %v22508_v21 = vld [vmem:[%s28825_s1 + $0x610] ss:$8 sps:$4 sm:$0xff]  }
 0x52c   :  { %9967 = vmatprep.subr.bf16.mxu0 %v22444_v3  ;;  %11986 = vmatprep.subr.bf16.mxu1 %v22444_v3  ;;  %v22513_v3 = vld [vmem:[%s28825_s1 + $0x624] ss:$8 sps:$4 sm:$0xff]  }
 0x52f   :  { %9968 = vmatpush1.bf16.msra.mxu0 %v22442_v4  ;;  %11987 = vmatpush1.bf16.msra.mxu1 %v22442_v4  ;;  %v22511_v4 = vld [vmem:[%s28825_s1 + $0x620] ss:$8 sps:$4 sm:$0xff]  }
 0x530   :  { %9969 = vmatprep.subr.bf16.mxu0 %v22447_v19  ;;  %11988 = vmatprep.subr.bf16.mxu1 %v22447_v19  ;;  %v22516_v19 = vld [vmem:[%s28825_s1 + $0x634] ss:$8 sps:$4 sm:$0xff]  }
 0x533   :  { %9970 = vmatpush1.bf16.msra.mxu0 %v22445_v22  ;;  %11989 = vmatpush1.bf16.msra.mxu1 %v22445_v22  ;;  %v22514_v22 = vld [vmem:[%s28825_s1 + $0x630] ss:$8 sps:$4 sm:$0xff]  }
 0x534   :  { %9971 = vmatprep.subr.bf16.mxu0 %v22450_v24  ;;  %11990 = vmatprep.subr.bf16.mxu1 %v22450_v24  ;;  %v22519_v24 = vld [vmem:[%s28825_s1 + $0x644] ss:$8 sps:$4 sm:$0xff]  }
 0x537   :  { %9972 = vmatpush1.bf16.msra.mxu0 %v22448_v25  ;;  %11991 = vmatpush1.bf16.msra.mxu1 %v22448_v25  ;;  %v22517_v25 = vld [vmem:[%s28825_s1 + $0x640] ss:$8 sps:$4 sm:$0xff]  }
 0x538   :  { %9973 = vmatprep.subr.bf16.mxu0 %v22453_v1  ;;  %11992 = vmatprep.subr.bf16.mxu1 %v22453_v1  ;;  %v22522_v1 = vld [vmem:[%s28825_s1 + $0x654] ss:$8 sps:$4 sm:$0xff]  }
 0x53b   :  { %9974 = vmatpush1.bf16.msra.mxu0 %v22451_v2  ;;  %11993 = vmatpush1.bf16.msra.mxu1 %v22451_v2  ;;  %v22520_v2 = vld [vmem:[%s28825_s1 + $0x650] ss:$8 sps:$4 sm:$0xff]  }
 0x53c   :  { %9975 = vmatprep.subr.bf16.mxu0 %v22456_v26  ;;  %11994 = vmatprep.subr.bf16.mxu1 %v22456_v26  ;;  %v22525_v26 = vld [vmem:[%s28825_s1 + $0x664] ss:$8 sps:$4 sm:$0xff]  }
 0x53f   :  { %9976 = vmatpush1.bf16.msra.mxu0 %v22454_v27  ;;  %11995 = vmatpush1.bf16.msra.mxu1 %v22454_v27  ;;  %v22523_v27 = vld [vmem:[%s28825_s1 + $0x660] ss:$8 sps:$4 sm:$0xff]  }
 0x540   :  { %9986 = vmatprep.subr.bf16.mxu0 %v22459_v63  ;;  %12005 = vmatprep.subr.bf16.mxu1 %v22459_v63  ;;  %v22528_v63 = vld [vmem:[%s28825_s1 + $0x674] ss:$8 sps:$4 sm:$0xff]  }
 0x542   :  { %9978 = vmatmul.mubr.bf16.vlgmr.msra.gmra.mrb[8].mxu0 %v25943_v0  ;;  %11997 = vmatmul.mubr.bf16.vlgmr.msra.gmra.mrb[8].mxu1 %v25947_v28  ;;  %v22526_v0 = vld [vmem:[%s28825_s1 + $0x670] ss:$8 sps:$4 sm:$0xff]   ;;  %v22531_v28 = vld [vmem:[%s28825_s1 + $0x684] ss:$8 sps:$4 sm:$0xff]  }
 0x543   :  { %9987 = vmatpush1.bf16.msra.mxu0 %v22457_v29  ;;  %12006 = vmatpush1.bf16.msra.mxu1 %v22457_v29  ;;  %v22529_v29 = vld [vmem:[%s28825_s1 + $0x680] ss:$8 sps:$4 sm:$0xff]  }
 0x544   :  { %9988 = vmatprep.subr.bf16.mxu0 %v22462_v30  ;;  %12007 = vmatprep.subr.bf16.mxu1 %v22462_v30  ;;  %v22534_v30 = vld [vmem:[%s28825_s1 + $0x694] ss:$8 sps:$4 sm:$0xff]  }
 0x545   :  { %10018 = vmatprep.mubr.bf16.mxu0 %v8483_v31  ;;  %12037 = vmatprep.mubr.bf16.mxu1 %v10502_v32  ;;  %v22532_v31 = vld [vmem:[%s28825_s1 + $0x690] ss:$8 sps:$4 sm:$0xff]   ;;  %v22537_v32 = vld [vmem:[%s28825_s1 + $0x6a4] ss:$8 sps:$4 sm:$0xff]  }
 0x547   :  { %9989 = vmatpush1.bf16.msra.mxu0 %v22460_v33  ;;  %12008 = vmatpush1.bf16.msra.mxu1 %v22460_v33  ;;  %v22535_v33 = vld [vmem:[%s28825_s1 + $0x6a0] ss:$8 sps:$4 sm:$0xff]  }
 0x548   :  { %9990 = vmatprep.subr.bf16.mxu0 %v22465_v34  ;;  %12009 = vmatprep.subr.bf16.mxu1 %v22465_v34  ;;  %v22540_v34 = vld [vmem:[%s28825_s1 + $0x6b4] ss:$8 sps:$4 sm:$0xff]  }
 0x54b   :  { %9991 = vmatpush1.bf16.msra.mxu0 %v22463_v35  ;;  %12010 = vmatpush1.bf16.msra.mxu1 %v22463_v35  ;;  %v22538_v35 = vld [vmem:[%s28825_s1 + $0x6b0] ss:$8 sps:$4 sm:$0xff]  }
 0x54c   :  { %9992 = vmatprep.subr.bf16.mxu0 %v22468_v36  ;;  %12011 = vmatprep.subr.bf16.mxu1 %v22468_v36  ;;  %v22543_v36 = vld [vmem:[%s28825_s1 + $0x6c4] ss:$8 sps:$4 sm:$0xff]  }
 0x54f   :  { %9993 = vmatpush1.bf16.msra.mxu0 %v22466_v37  ;;  %12012 = vmatpush1.bf16.msra.mxu1 %v22466_v37  ;;  %v22541_v37 = vld [vmem:[%s28825_s1 + $0x6c0] ss:$8 sps:$4 sm:$0xff]  }
 0x550   :  { %9994 = vmatprep.subr.bf16.mxu0 %v22471_v38  ;;  %12013 = vmatprep.subr.bf16.mxu1 %v22471_v38  ;;  %v22546_v38 = vld [vmem:[%s28825_s1 + $0x6d4] ss:$8 sps:$4 sm:$0xff]  }
 0x553   :  { %9995 = vmatpush1.bf16.msra.mxu0 %v22469_v41  ;;  %12014 = vmatpush1.bf16.msra.mxu1 %v22469_v41  ;;  %v22544_v41 = vld [vmem:[%s28825_s1 + $0x6d0] ss:$8 sps:$4 sm:$0xff]  }
 0x554   :  { %9996 = vmatprep.subr.bf16.mxu0 %v22474_v42  ;;  %12015 = vmatprep.subr.bf16.mxu1 %v22474_v42  ;;  %v22549_v42 = vld [vmem:[%s28825_s1 + $0x6e4] ss:$8 sps:$4 sm:$0xff]  }
 0x557   :  { %9997 = vmatpush1.bf16.msra.mxu0 %v22472_v47  ;;  %12016 = vmatpush1.bf16.msra.mxu1 %v22472_v47  ;;  %v22547_v47 = vld [vmem:[%s28825_s1 + $0x6e0] ss:$8 sps:$4 sm:$0xff]  }
 0x558   :  { %9998 = vmatprep.subr.bf16.mxu0 %v22477_v48  ;;  %12017 = vmatprep.subr.bf16.mxu1 %v22477_v48  ;;  %v22552_v48 = vld [vmem:[%s28825_s1 + $0x6f4] ss:$8 sps:$4 sm:$0xff]  }
 0x55b   :  { %9999 = vmatpush1.bf16.msra.mxu0 %v22475_v49  ;;  %12018 = vmatpush1.bf16.msra.mxu1 %v22475_v49  ;;  %v22550_v49 = vld [vmem:[%s28825_s1 + $0x6f0] ss:$8 sps:$4 sm:$0xff]  }
 0x55c   :  { %10000 = vmatprep.subr.bf16.mxu0 %v22480_v50  ;;  %12019 = vmatprep.subr.bf16.mxu1 %v22480_v50  ;;  %v22556_v50 = vld [vmem:[%s28825_s1 + $0x704] ss:$8 sps:$4 sm:$0xff]  }
 0x55f   :  { %10001 = vmatpush1.bf16.msra.mxu0 %v22478_v51  ;;  %12020 = vmatpush1.bf16.msra.mxu1 %v22478_v51  ;;  %v26175_v51 = vrot.slane %v26050_v7, %v23464_v16  ;;  %v22576_v7 = vld [vmem:[%s28825_s1 + $0x770] ss:$8 sps:$4 sm:$0xff]  }
 0x560   :  { %10002 = vmatprep.subr.bf16.mxu0 %v22483_v52  ;;  %12021 = vmatprep.subr.bf16.mxu1 %v22483_v52  ;;  %v26179_v52 = vrot.slane %v26053_v43, %v23464_v16  ;;  %v22581_v43 = vld [vmem:[%s28825_s1 + $0x784] ss:$8 sps:$4 sm:$0xff]  }
 0x563   :  { %10003 = vmatpush1.bf16.msra.mxu0 %v22481_v53  ;;  %12022 = vmatpush1.bf16.msra.mxu1 %v22481_v53  ;;  %v22554_v53 = vld [vmem:[%s28825_s1 + $0x700] ss:$8 sps:$4 sm:$0xff]  }
 0x564   :  { %10004 = vmatprep.subr.bf16.mxu0 %v22486_v54  ;;  %12023 = vmatprep.subr.bf16.mxu1 %v22486_v54  ;;  %v22560_v54 = vld [vmem:[%s28825_s1 + $0x714] ss:$8 sps:$4 sm:$0xff]  }
 0x567   :  { %10005 = vmatpush1.bf16.msra.mxu0 %v22484_v55  ;;  %12024 = vmatpush1.bf16.msra.mxu1 %v22484_v55  ;;  %v8484_v55 = vcombine.high %v26076_v17, %v26076_v17 }
 0x568   :  { %10006 = vmatprep.subr.bf16.mxu0 %v22489_v56  ;;  %12025 = vmatprep.subr.bf16.mxu1 %v22489_v56  ;;  %v10503_v56 = vcombine.high %v26079_v20, %v26079_v20 }
 0x56b   :  { %10007 = vmatpush1.bf16.msra.mxu0 %v22487_v57  ;;  %12026 = vmatpush1.bf16.msra.mxu1 %v22487_v57  ;;  %v22558_v57 = vld [vmem:[%s28825_s1 + $0x710] ss:$8 sps:$4 sm:$0xff]  }
 0x56c   :  { %10008 = vmatprep.subr.bf16.mxu0 %v22492_v58  ;;  %12027 = vmatprep.subr.bf16.mxu1 %v22492_v58  ;;  %v22563_v58 = vld [vmem:[%s28825_s1 + $0x724] ss:$8 sps:$4 sm:$0xff]  }
 0x56f   :  { %10009 = vmatpush1.bf16.msra.mxu0 %v22490_v59  ;;  %12028 = vmatpush1.bf16.msra.mxu1 %v22490_v59  ;;  %v22561_v59 = vld [vmem:[%s28825_s1 + $0x720] ss:$8 sps:$4 sm:$0xff]  }
 0x570   :  { %10010 = vmatprep.subr.bf16.mxu0 %v22495_v45  ;;  %12029 = vmatprep.subr.bf16.mxu1 %v22495_v45  ;;  %v22566_v45 = vld [vmem:[%s28825_s1 + $0x734] ss:$8 sps:$4 sm:$0xff]  }
 0x573   :  { %10011 = vmatpush1.bf16.msra.mxu0 %v22493_v46  ;;  %12030 = vmatpush1.bf16.msra.mxu1 %v22493_v46  ;;  %v22564_v46 = vld [vmem:[%s28825_s1 + $0x730] ss:$8 sps:$4 sm:$0xff]  }
 0x574   :  { %10012 = vmatprep.subr.bf16.mxu0 %v22498_v60  ;;  %12031 = vmatprep.subr.bf16.mxu1 %v22498_v60  ;;  %v22569_v60 = vld [vmem:[%s28825_s1 + $0x744] ss:$8 sps:$4 sm:$0xff]  }
 0x577   :  { %10013 = vmatpush1.bf16.msra.mxu0 %v22496_v61  ;;  %12032 = vmatpush1.bf16.msra.mxu1 %v22496_v61  ;;  %v22567_v61 = vld [vmem:[%s28825_s1 + $0x740] ss:$8 sps:$4 sm:$0xff]  }
 0x578   :  { %10014 = vmatprep.subr.bf16.mxu0 %v22501_v62  ;;  %12033 = vmatprep.subr.bf16.mxu1 %v22501_v62  ;;  %v22572_v62 = vld [vmem:[%s28825_s1 + $0x754] ss:$8 sps:$4 sm:$0xff]  }
 0x57b   :  { %10015 = vmatpush1.bf16.msra.mxu0 %v22499_v40  ;;  %12034 = vmatpush1.bf16.msra.mxu1 %v22499_v40  ;;  %v22573_v40 = vld [vmem:[%s28825_s1 + $0x760] ss:$8 sps:$4 sm:$0xff]  }
 0x57c   :  { %10016 = vmatprep.subr.bf16.mxu0 %v22504_v6  ;;  %12035 = vmatprep.subr.bf16.mxu1 %v22504_v6  ;;  %v22578_v6 = vld [vmem:[%s28825_s1 + $0x774] ss:$8 sps:$4 sm:$0xff]  }
 0x57f   :  { %10017 = vmatpush1.bf16.msra.mxu0 %v22502_v44  ;;  %12036 = vmatpush1.bf16.msra.mxu1 %v22502_v44  ;;  %v22579_v44 = vld [vmem:[%s28825_s1 + $0x780] ss:$8 sps:$4 sm:$0xff]  }
 0x580   :  { %10027 = vmatprep.subr.bf16.mxu0 %v22507_v8  ;;  %12046 = vmatprep.subr.bf16.mxu1 %v22507_v8  ;;  %v22584_v8 = vld [vmem:[%s28825_s1 + $0x794] ss:$8 sps:$4 sm:$0xff]  }
 0x582   :  { %10019 = vmatmul.mubr.bf16.vlgmr.msra.gmra.mrb[8].mxu0 %v8481_v11  ;;  %12038 = vmatmul.mubr.bf16.vlgmr.msra.gmra.mrb[8].mxu1 %v10500_v13  ;;  %v22585_v11 = vld [vmem:[%s28825_s1 + $0x7a0] ss:$8 sps:$4 sm:$0xff]   ;;  %v22590_v13 = vld [vmem:[%s28825_s1 + $0x7b4] ss:$8 sps:$4 sm:$0xff]  }
 0x583   :  { %10028 = vmatpush1.bf16.msra.mxu0 %v22505_v14  ;;  %12047 = vmatpush1.bf16.msra.mxu1 %v22505_v14  ;;  %v22588_v14 = vld [vmem:[%s28825_s1 + $0x7b0] ss:$8 sps:$4 sm:$0xff]  }
 0x584   :  { %10029 = vmatprep.subr.bf16.mxu0 %v22510_v15  ;;  %12048 = vmatprep.subr.bf16.mxu1 %v22510_v15  ;;  %v22593_v15 = vld [vmem:[%s28825_s1 + $0x7c4] ss:$8 sps:$4 sm:$0xff]  }
 0x585   :  { %10059 = vmatprep.mubr.bf16.mxu0 %v26076_v17  ;;  %12078 = vmatprep.mubr.bf16.mxu1 %v26079_v20  ;;  %v22591_v17 = vld [vmem:[%s28825_s1 + $0x7c0] ss:$8 sps:$4 sm:$0xff]   ;;  %v22596_v20 = vld [vmem:[%s28825_s1 + $0x7d4] ss:$8 sps:$4 sm:$0xff]  }
 0x587   :  { %10030 = vmatpush1.bf16.msra.mxu0 %v22508_v21  ;;  %12049 = vmatpush1.bf16.msra.mxu1 %v22508_v21  ;;  %v22594_v21 = vld [vmem:[%s28825_s1 + $0x7d0] ss:$8 sps:$4 sm:$0xff]  }
 0x588   :  { %10031 = vmatprep.subr.bf16.mxu0 %v22513_v3  ;;  %12050 = vmatprep.subr.bf16.mxu1 %v22513_v3  ;;  %v22599_v3 = vld [vmem:[%s28825_s1 + $0x7e4] ss:$8 sps:$4 sm:$0xff]  }
 0x58b   :  { %10032 = vmatpush1.bf16.msra.mxu0 %v22511_v4  ;;  %12051 = vmatpush1.bf16.msra.mxu1 %v22511_v4  ;;  %v26274_v4 = vld [vmem:[%s28824_s0 + $0x60] sm:$0xff] }
 0x58c   :  { %10033 = vmatprep.subr.bf16.mxu0 %v22516_v19  ;;  %12052 = vmatprep.subr.bf16.mxu1 %v22516_v19  ;;  %v26279_v19 = vld [vmem:[%s28824_s0 + $0x70] sm:$0xff] }
 0x58f   :  { %10034 = vmatpush1.bf16.msra.mxu0 %v22514_v22  ;;  %12053 = vmatpush1.bf16.msra.mxu1 %v22514_v22  ;;  %v22597_v22 = vld [vmem:[%s28825_s1 + $0x7e0] ss:$8 sps:$4 sm:$0xff]  }
 0x590   :  { %10035 = vmatprep.subr.bf16.mxu0 %v22519_v24  ;;  %12054 = vmatprep.subr.bf16.mxu1 %v22519_v24  ;;  %v22602_v24 = vld [vmem:[%s28825_s1 + $0x7f4] ss:$8 sps:$4 sm:$0xff]  }
 0x593   :  { %10036 = vmatpush1.bf16.msra.mxu0 %v22517_v25  ;;  %12055 = vmatpush1.bf16.msra.mxu1 %v22517_v25  ;;  %v26289_v25 = vrot.slane %v26274_v4, %v23464_v16 }
 0x594   :  { %10037 = vmatprep.subr.bf16.mxu0 %v22522_v1  ;;  %12056 = vmatprep.subr.bf16.mxu1 %v22522_v1  ;;  %v26293_v1 = vrot.slane %v26279_v19, %v23464_v16 }
 0x597   :  { %10038 = vmatpush1.bf16.msra.mxu0 %v22520_v2  ;;  %12057 = vmatpush1.bf16.msra.mxu1 %v22520_v2  ;;  %v22600_v2 = vld [vmem:[%s28825_s1 + $0x7f0] ss:$8 sps:$4 sm:$0xff]  }
 0x598   :  { %10039 = vmatprep.subr.bf16.mxu0 %v22525_v26  ;;  %12058 = vmatprep.subr.bf16.mxu1 %v22525_v26  ;;  %v22605_v26 = vld [vmem:[%s28825_s1 + $0x4] ss:$8 sps:$4 sm:$0xff]  }
 0x59b   :  { %10040 = vmatpush1.bf16.msra.mxu0 %v22523_v27  ;;  %12059 = vmatpush1.bf16.msra.mxu1 %v22523_v27  ;;  %v12440_v27 = vcombine.high %v26289_v25, %v26289_v25 }
 0x59c   :  { %10041 = vmatprep.subr.bf16.mxu0 %v22528_v63  ;;  %12060 = vmatprep.subr.bf16.mxu1 %v22528_v63  ;;  %v14459_v63 = vcombine.high %v26293_v1, %v26293_v1 }
 0x59f   :  { %10042 = vmatpush1.bf16.msra.mxu0 %v22526_v0  ;;  %12061 = vmatpush1.bf16.msra.mxu1 %v22526_v0  ;;  %v8482_v0 = vcombine.high %v26175_v51, %v26175_v51 }
 0x5a0   :  { %10043 = vmatprep.subr.bf16.mxu0 %v22531_v28  ;;  %12062 = vmatprep.subr.bf16.mxu1 %v22531_v28  ;;  %v10501_v28 = vcombine.high %v26179_v52, %v26179_v52 }
 0x5a3   :  { %10044 = vmatpush1.bf16.msra.mxu0 %v22529_v29  ;;  %12063 = vmatpush1.bf16.msra.mxu1 %v22529_v29  ;;  %v22603_v29 = vld [vmem:[%s28825_s1] ss:$8 sps:$4 sm:$0xff]  }
 0x5a4   :  { %10045 = vmatprep.subr.bf16.mxu0 %v22534_v30  ;;  %12064 = vmatprep.subr.bf16.mxu1 %v22534_v30  ;;  %v22608_v30 = vld [vmem:[%s28825_s1 + $0x14] ss:$8 sps:$4 sm:$0xff]  }
 0x5a7   :  { %10046 = vmatpush1.bf16.msra.mxu0 %v22532_v31  ;;  %12065 = vmatpush1.bf16.msra.mxu1 %v22532_v31  ;;  %v26316_v31 = vrot.slane %v12440_v27, %v23464_v16  ;;  %v22675_v27 = vld [vmem:[%s28825_s1 + $0x180] ss:$8 sps:$4 sm:$0xff]  }
 0x5a8   :  { %10047 = vmatprep.subr.bf16.mxu0 %v22537_v32  ;;  %12066 = vmatprep.subr.bf16.mxu1 %v22537_v32  ;;  %v26319_v32 = vrot.slane %v14459_v63, %v23464_v16  ;;  %v22680_v63 = vld [vmem:[%s28825_s1 + $0x194] ss:$8 sps:$4 sm:$0xff]  }
 0x5ab   :  { %10048 = vmatpush1.bf16.msra.mxu0 %v22535_v33  ;;  %12067 = vmatpush1.bf16.msra.mxu1 %v22535_v33  ;;  %v22606_v33 = vld [vmem:[%s28825_s1 + $0x10] ss:$8 sps:$4 sm:$0xff]  }
 0x5ac   :  { %10049 = vmatprep.subr.bf16.mxu0 %v22540_v34  ;;  %12068 = vmatprep.subr.bf16.mxu1 %v22540_v34  ;;  %v22611_v34 = vld [vmem:[%s28825_s1 + $0x24] ss:$8 sps:$4 sm:$0xff]  }
 0x5af   :  { %10050 = vmatpush1.bf16.msra.mxu0 %v22538_v35  ;;  %12069 = vmatpush1.bf16.msra.mxu1 %v22538_v35  ;;  %v22609_v35 = vld [vmem:[%s28825_s1 + $0x20] ss:$8 sps:$4 sm:$0xff]  }
 0x5b0   :  { %10051 = vmatprep.subr.bf16.mxu0 %v22543_v36  ;;  %12070 = vmatprep.subr.bf16.mxu1 %v22543_v36  ;;  %v22614_v36 = vld [vmem:[%s28825_s1 + $0x34] ss:$8 sps:$4 sm:$0xff]  }
 0x5b3   :  { %10052 = vmatpush1.bf16.msra.mxu0 %v22541_v37  ;;  %12071 = vmatpush1.bf16.msra.mxu1 %v22541_v37  ;;  %v22612_v37 = vld [vmem:[%s28825_s1 + $0x30] ss:$8 sps:$4 sm:$0xff]  }
 0x5b4   :  { %10053 = vmatprep.subr.bf16.mxu0 %v22546_v38  ;;  %12072 = vmatprep.subr.bf16.mxu1 %v22546_v38  ;;  %v22617_v38 = vld [vmem:[%s28825_s1 + $0x44] ss:$8 sps:$4 sm:$0xff]  }
 0x5b7   :  { %10054 = vmatpush1.bf16.msra.mxu0 %v22544_v41  ;;  %12073 = vmatpush1.bf16.msra.mxu1 %v22544_v41  ;;  %v22615_v41 = vld [vmem:[%s28825_s1 + $0x40] ss:$8 sps:$4 sm:$0xff]  }
 0x5b8   :  { %10055 = vmatprep.subr.bf16.mxu0 %v22549_v42  ;;  %12074 = vmatprep.subr.bf16.mxu1 %v22549_v42  ;;  %v22620_v42 = vld [vmem:[%s28825_s1 + $0x54] ss:$8 sps:$4 sm:$0xff]  }
 0x5bb   :  { %10056 = vmatpush1.bf16.msra.mxu0 %v22547_v47  ;;  %12075 = vmatpush1.bf16.msra.mxu1 %v22547_v47  ;;  %v22618_v47 = vld [vmem:[%s28825_s1 + $0x50] ss:$8 sps:$4 sm:$0xff]  }
 0x5bc   :  { %10057 = vmatprep.subr.bf16.mxu0 %v22552_v48  ;;  %12076 = vmatprep.subr.bf16.mxu1 %v22552_v48  ;;  %v22623_v48 = vld [vmem:[%s28825_s1 + $0x64] ss:$8 sps:$4 sm:$0xff]  }
 0x5bf   :  { %10058 = vmatpush1.bf16.msra.mxu0 %v22550_v49  ;;  %12077 = vmatpush1.bf16.msra.mxu1 %v22550_v49  ;;  %v22621_v49 = vld [vmem:[%s28825_s1 + $0x60] ss:$8 sps:$4 sm:$0xff]  }
 0x5c0   :  { %10068 = vmatprep.subr.bf16.mxu0 %v22556_v50  ;;  %12087 = vmatprep.subr.bf16.mxu1 %v22556_v50  ;;  %v22626_v50 = vld [vmem:[%s28825_s1 + $0x74] ss:$8 sps:$4 sm:$0xff]  }
 0x5c2   :  { %10060 = vmatmul.mubr.bf16.vlgmr.msra.gmra.mrb[8].mxu0 %v26175_v51  ;;  %12079 = vmatmul.mubr.bf16.vlgmr.msra.gmra.mrb[8].mxu1 %v26179_v52  ;;  %v22624_v51 = vld [vmem:[%s28825_s1 + $0x70] ss:$8 sps:$4 sm:$0xff]   ;;  %v22629_v52 = vld [vmem:[%s28825_s1 + $0x84] ss:$8 sps:$4 sm:$0xff]  }
 0x5c3   :  { %10069 = vmatpush1.bf16.msra.mxu0 %v22554_v53  ;;  %12088 = vmatpush1.bf16.msra.mxu1 %v22554_v53  ;;  %v22627_v53 = vld [vmem:[%s28825_s1 + $0x80] ss:$8 sps:$4 sm:$0xff]  }
 0x5c4   :  { %10070 = vmatprep.subr.bf16.mxu0 %v22560_v54  ;;  %12089 = vmatprep.subr.bf16.mxu1 %v22560_v54  ;;  %v22632_v54 = vld [vmem:[%s28825_s1 + $0x94] ss:$8 sps:$4 sm:$0xff]  }
 0x5c5   :  { %10100 = vmatprep.mubr.bf16.mxu0 %v8484_v55  ;;  %12119 = vmatprep.mubr.bf16.mxu1 %v10503_v56  ;;  %v22630_v55 = vld [vmem:[%s28825_s1 + $0x90] ss:$8 sps:$4 sm:$0xff]   ;;  %v22635_v56 = vld [vmem:[%s28825_s1 + $0xa4] ss:$8 sps:$4 sm:$0xff]  }
 0x5c7   :  { %10071 = vmatpush1.bf16.msra.mxu0 %v22558_v57  ;;  %12090 = vmatpush1.bf16.msra.mxu1 %v22558_v57  ;;  %v22633_v57 = vld [vmem:[%s28825_s1 + $0xa0] ss:$8 sps:$4 sm:$0xff]  }
 0x5c8   :  { %10072 = vmatprep.subr.bf16.mxu0 %v22563_v58  ;;  %12091 = vmatprep.subr.bf16.mxu1 %v22563_v58  ;;  %v22638_v58 = vld [vmem:[%s28825_s1 + $0xb4] ss:$8 sps:$4 sm:$0xff]  }
 0x5cb   :  { %10073 = vmatpush1.bf16.msra.mxu0 %v22561_v59  ;;  %12092 = vmatpush1.bf16.msra.mxu1 %v22561_v59  ;;  %v22636_v59 = vld [vmem:[%s28825_s1 + $0xb0] ss:$8 sps:$4 sm:$0xff]  }
 0x5cc   :  { %10074 = vmatprep.subr.bf16.mxu0 %v22566_v45  ;;  %12093 = vmatprep.subr.bf16.mxu1 %v22566_v45  ;;  %v22641_v45 = vld [vmem:[%s28825_s1 + $0xc4] ss:$8 sps:$4 sm:$0xff]  }
 0x5cf   :  { %10075 = vmatpush1.bf16.msra.mxu0 %v22564_v46  ;;  %12094 = vmatpush1.bf16.msra.mxu1 %v22564_v46  ;;  %v22639_v46 = vld [vmem:[%s28825_s1 + $0xc0] ss:$8 sps:$4 sm:$0xff]  }
 0x5d0   :  { %10076 = vmatprep.subr.bf16.mxu0 %v22569_v60  ;;  %12095 = vmatprep.subr.bf16.mxu1 %v22569_v60  ;;  %v22644_v60 = vld [vmem:[%s28825_s1 + $0xd4] ss:$8 sps:$4 sm:$0xff]  }
 0x5d3   :  { %10077 = vmatpush1.bf16.msra.mxu0 %v22567_v61  ;;  %12096 = vmatpush1.bf16.msra.mxu1 %v22567_v61  ;;  %v22642_v61 = vld [vmem:[%s28825_s1 + $0xd0] ss:$8 sps:$4 sm:$0xff]  }
 0x5d4   :  { %10078 = vmatprep.subr.bf16.mxu0 %v22572_v62  ;;  %12097 = vmatprep.subr.bf16.mxu1 %v22572_v62  ;;  %v22647_v62 = vld [vmem:[%s28825_s1 + $0xe4] ss:$8 sps:$4 sm:$0xff]  }
 0x5d7   :  { %10079 = vmatpush1.bf16.msra.mxu0 %v22570_v5  ;;  %12098 = vmatpush1.bf16.msra.mxu1 %v22570_v5  ;;  %v22645_v5 = vld [vmem:[%s28825_s1 + $0xe0] ss:$8 sps:$4 sm:$0xff]  }
 0x5d8   :  { %10080 = vmatprep.subr.bf16.mxu0 %v22575_v39  ;;  %12099 = vmatprep.subr.bf16.mxu1 %v22575_v39  ;;  %v22650_v39 = vld [vmem:[%s28825_s1 + $0xf4] ss:$8 sps:$4 sm:$0xff]  }
 0x5db   :  { %10081 = vmatpush1.bf16.msra.mxu0 %v22573_v40  ;;  %12100 = vmatpush1.bf16.msra.mxu1 %v22573_v40  ;;  %v22648_v40 = vld [vmem:[%s28825_s1 + $0xf0] ss:$8 sps:$4 sm:$0xff]  }
 0x5dc   :  { %10082 = vmatprep.subr.bf16.mxu0 %v22578_v6  ;;  %12101 = vmatprep.subr.bf16.mxu1 %v22578_v6  ;;  %v22653_v6 = vld [vmem:[%s28825_s1 + $0x104] ss:$8 sps:$4 sm:$0xff]  }
 0x5df   :  { %10083 = vmatpush1.bf16.msra.mxu0 %v22576_v7  ;;  %12102 = vmatpush1.bf16.msra.mxu1 %v22576_v7  ;;  %v26415_v7 = vrot.slane %v26289_v25, %v23464_v16  ;;  %v22669_v25 = vld [vmem:[%s28825_s1 + $0x160] ss:$8 sps:$4 sm:$0xff]  }
 0x5e0   :  { %10084 = vmatprep.subr.bf16.mxu0 %v22581_v43  ;;  %12103 = vmatprep.subr.bf16.mxu1 %v22581_v43  ;;  %v26419_v43 = vrot.slane %v26293_v1, %v23464_v16  ;;  %v22674_v1 = vld [vmem:[%s28825_s1 + $0x174] ss:$8 sps:$4 sm:$0xff]  }
 0x5e3   :  { %10085 = vmatpush1.bf16.msra.mxu0 %v22579_v44  ;;  %12104 = vmatpush1.bf16.msra.mxu1 %v22579_v44  ;;  %v22651_v44 = vld [vmem:[%s28825_s1 + $0x100] ss:$8 sps:$4 sm:$0xff]  }
 0x5e4   :  { %10086 = vmatprep.subr.bf16.mxu0 %v22584_v8  ;;  %12105 = vmatprep.subr.bf16.mxu1 %v22584_v8  ;;  %v22656_v8 = vld [vmem:[%s28825_s1 + $0x114] ss:$8 sps:$4 sm:$0xff]  }
 0x5e7   :  { %10087 = vmatpush1.bf16.msra.mxu0 %v22582_v9  ;;  %12106 = vmatpush1.bf16.msra.mxu1 %v22582_v9  ;;  %v12472_v9 = vcombine.high %v26316_v31, %v26316_v31 }
 0x5e8   :  { %10088 = vmatprep.subr.bf16.mxu0 %v22587_v10  ;;  %12107 = vmatprep.subr.bf16.mxu1 %v22587_v10  ;;  %v14491_v10 = vcombine.high %v26319_v32, %v26319_v32 }
 0x5eb   :  { %10089 = vmatpush1.bf16.msra.mxu0 %v22585_v11  ;;  %12108 = vmatpush1.bf16.msra.mxu1 %v22585_v11  ;;  %v22654_v11 = vld [vmem:[%s28825_s1 + $0x110] ss:$8 sps:$4 sm:$0xff]  }
 0x5ec   :  { %10090 = vmatprep.subr.bf16.mxu0 %v22590_v13  ;;  %12109 = vmatprep.subr.bf16.mxu1 %v22590_v13  ;;  %v22659_v13 = vld [vmem:[%s28825_s1 + $0x124] ss:$8 sps:$4 sm:$0xff]  }
 0x5ef   :  { %10091 = vmatpush1.bf16.msra.mxu0 %v22588_v14  ;;  %12110 = vmatpush1.bf16.msra.mxu1 %v22588_v14  ;;  %v22657_v14 = vld [vmem:[%s28825_s1 + $0x120] ss:$8 sps:$4 sm:$0xff]  }
 0x5f0   :  { %10092 = vmatprep.subr.bf16.mxu0 %v22593_v15  ;;  %12111 = vmatprep.subr.bf16.mxu1 %v22593_v15  ;;  %v22662_v15 = vld [vmem:[%s28825_s1 + $0x134] ss:$8 sps:$4 sm:$0xff]  }
 0x5f3   :  { %10093 = vmatpush1.bf16.msra.mxu0 %v22591_v17  ;;  %12112 = vmatpush1.bf16.msra.mxu1 %v22591_v17  ;;  %v22660_v17 = vld [vmem:[%s28825_s1 + $0x130] ss:$8 sps:$4 sm:$0xff]  }
 0x5f4   :  { %10094 = vmatprep.subr.bf16.mxu0 %v22596_v20  ;;  %12113 = vmatprep.subr.bf16.mxu1 %v22596_v20  ;;  %v22665_v20 = vld [vmem:[%s28825_s1 + $0x144] ss:$8 sps:$4 sm:$0xff]  }
 0x5f7   :  { %10095 = vmatpush1.bf16.msra.mxu0 %v22594_v21  ;;  %12114 = vmatpush1.bf16.msra.mxu1 %v22594_v21  ;;  %v22663_v21 = vld [vmem:[%s28825_s1 + $0x140] ss:$8 sps:$4 sm:$0xff]  }
 0x5f8   :  { %10096 = vmatprep.subr.bf16.mxu0 %v22599_v3  ;;  %12115 = vmatprep.subr.bf16.mxu1 %v22599_v3  ;;  %v22668_v3 = vld [vmem:[%s28825_s1 + $0x154] ss:$8 sps:$4 sm:$0xff]  }
 0x5fb   :  { %10097 = vmatpush1.bf16.msra.mxu0 %v22597_v22  ;;  %12116 = vmatpush1.bf16.msra.mxu1 %v22597_v22  ;;  %v22666_v22 = vld [vmem:[%s28825_s1 + $0x150] ss:$8 sps:$4 sm:$0xff]  }
 0x5fc   :  { %10098 = vmatprep.subr.bf16.mxu0 %v22602_v24  ;;  %12117 = vmatprep.subr.bf16.mxu1 %v22602_v24  ;;  %v22671_v24 = vld [vmem:[%s28825_s1 + $0x164] ss:$8 sps:$4 sm:$0xff]  }
 0x5ff   :  { %10099 = vmatpush1.bf16.msra.mxu0 %v22600_v2  ;;  %12118 = vmatpush1.bf16.msra.mxu1 %v22600_v2  ;;  %v22672_v2 = vld [vmem:[%s28825_s1 + $0x170] ss:$8 sps:$4 sm:$0xff]  }
 0x600   :  { %13819 = vmatprep.subr.bf16.mxu0 %v22605_v26  ;;  %15838 = vmatprep.subr.bf16.mxu1 %v22605_v26  ;;  %v22677_v26 = vld [vmem:[%s28825_s1 + $0x184] ss:$8 sps:$4 sm:$0xff]  }
 0x602   :  { %10101 = vmatmul.mubr.bf16.vlgmr.msra.gmra.mrb[8].mxu0 %v8482_v0  ;;  %12120 = vmatmul.mubr.bf16.vlgmr.msra.gmra.mrb[8].mxu1 %v10501_v28  ;;  %v22678_v0 = vld [vmem:[%s28825_s1 + $0x190] ss:$8 sps:$4 sm:$0xff]   ;;  %v22683_v28 = vld [vmem:[%s28825_s1 + $0x1a4] ss:$8 sps:$4 sm:$0xff]  }
 0x603   :  { %13820 = vmatpush1.bf16.msra.mxu0 %v22603_v29  ;;  %15839 = vmatpush1.bf16.msra.mxu1 %v22603_v29  ;;  %v22681_v29 = vld [vmem:[%s28825_s1 + $0x1a0] ss:$8 sps:$4 sm:$0xff]  }
 0x604   :  { %13821 = vmatprep.subr.bf16.mxu0 %v22608_v30  ;;  %15840 = vmatprep.subr.bf16.mxu1 %v22608_v30  ;;  %v22686_v30 = vld [vmem:[%s28825_s1 + $0x1b4] ss:$8 sps:$4 sm:$0xff]  }
 0x605   :  { %13851 = vmatprep.mubr.bf16.mxu0 %v26316_v31  ;;  %15870 = vmatprep.mubr.bf16.mxu1 %v26319_v32  ;;  %v22684_v31 = vld [vmem:[%s28825_s1 + $0x1b0] ss:$8 sps:$4 sm:$0xff]   ;;  %v22689_v32 = vld [vmem:[%s28825_s1 + $0x1c4] ss:$8 sps:$4 sm:$0xff]  }
 0x607   :  { %13822 = vmatpush1.bf16.msra.mxu0 %v22606_v33  ;;  %15841 = vmatpush1.bf16.msra.mxu1 %v22606_v33  ;;  %v22687_v33 = vld [vmem:[%s28825_s1 + $0x1c0] ss:$8 sps:$4 sm:$0xff]  }
 0x608   :  { %13823 = vmatprep.subr.bf16.mxu0 %v22611_v34  ;;  %15842 = vmatprep.subr.bf16.mxu1 %v22611_v34  ;;  %v22692_v34 = vld [vmem:[%s28825_s1 + $0x1d4] ss:$8 sps:$4 sm:$0xff]  }
 0x60b   :  { %13824 = vmatpush1.bf16.msra.mxu0 %v22609_v35  ;;  %15843 = vmatpush1.bf16.msra.mxu1 %v22609_v35  ;;  %v22690_v35 = vld [vmem:[%s28825_s1 + $0x1d0] ss:$8 sps:$4 sm:$0xff]  }
 0x60c   :  { %13825 = vmatprep.subr.bf16.mxu0 %v22614_v36  ;;  %15844 = vmatprep.subr.bf16.mxu1 %v22614_v36  ;;  %v22695_v36 = vld [vmem:[%s28825_s1 + $0x1e4] ss:$8 sps:$4 sm:$0xff]  }
 0x60f   :  { %13826 = vmatpush1.bf16.msra.mxu0 %v22612_v37  ;;  %15845 = vmatpush1.bf16.msra.mxu1 %v22612_v37  ;;  %v12425_v37 = vcombine.high %v26274_v4, %v26274_v4 }
 0x610   :  { %13827 = vmatprep.subr.bf16.mxu0 %v22617_v38  ;;  %15846 = vmatprep.subr.bf16.mxu1 %v22617_v38  ;;  %v14444_v38 = vcombine.high %v26279_v19, %v26279_v19  ;;  %v22696_v19 = vld [vmem:[%s28825_s1 + $0x1f0] ss:$8 sps:$4 sm:$0xff]  }
 0x612   :  { %v26525_v4 = vrot.slane %v14444_v38, %v23464_v16  ;;  %v22766_v38 = vld [vmem:[%s28825_s1 + $0x354] ss:$8 sps:$4 sm:$0xff]  }
 0x613   :  { %13828 = vmatpush1.bf16.msra.mxu0 %v22615_v41  ;;  %15847 = vmatpush1.bf16.msra.mxu1 %v22615_v41  ;;  %v22693_v41 = vld [vmem:[%s28825_s1 + $0x1e0] ss:$8 sps:$4 sm:$0xff]  }
 0x614   :  { %13829 = vmatprep.subr.bf16.mxu0 %v22620_v42  ;;  %15848 = vmatprep.subr.bf16.mxu1 %v22620_v42  ;;  %v22698_v42 = vld [vmem:[%s28825_s1 + $0x1f4] ss:$8 sps:$4 sm:$0xff]  }
 0x617   :  { %13830 = vmatpush1.bf16.msra.mxu0 %v22618_v47  ;;  %15849 = vmatpush1.bf16.msra.mxu1 %v22618_v47  ;;  %v26522_v47 = vrot.slane %v12425_v37, %v23464_v16  ;;  %v10392_v37 = vld [vmem:[%s28826_s2] sm:$0x3] }
 0x618   :  { %13831 = vmatprep.subr.bf16.mxu0 %v22623_v48  ;;  %15850 = vmatprep.subr.bf16.mxu1 %v22623_v48  ;;  %v22701_v48 = vld [vmem:[%s28825_s1 + $0x204] ss:$8 sps:$4 sm:$0xff]  }
 0x61b   :  { %13832 = vmatpush1.bf16.msra.mxu0 %v22621_v49  ;;  %15851 = vmatpush1.bf16.msra.mxu1 %v22621_v49  ;;  %v12441_v49 = vcombine.high %v26522_v47, %v26522_v47 }
 0x61c   :  { %13833 = vmatprep.subr.bf16.mxu0 %v22626_v50  ;;  %15852 = vmatprep.subr.bf16.mxu1 %v22626_v50  ;;  %v14460_v50 = vcombine.high %v26525_v4, %v26525_v4 }
 0x61f   :  { %13834 = vmatpush1.bf16.msra.mxu0 %v22624_v51  ;;  %15853 = vmatpush1.bf16.msra.mxu1 %v22624_v51  ;;  %v12470_v51 = vcombine.high %v26415_v7, %v26415_v7 }
 0x620   :  { %13835 = vmatprep.subr.bf16.mxu0 %v22629_v52  ;;  %15854 = vmatprep.subr.bf16.mxu1 %v22629_v52  ;;  %v14489_v52 = vcombine.high %v26419_v43, %v26419_v43 }
 0x623   :  { %13836 = vmatpush1.bf16.msra.mxu0 %v22627_v53  ;;  %15855 = vmatpush1.bf16.msra.mxu1 %v22627_v53  ;;  %v22699_v53 = vld [vmem:[%s28825_s1 + $0x200] ss:$8 sps:$4 sm:$0xff]  }
 0x624   :  { %13837 = vmatprep.subr.bf16.mxu0 %v22632_v54  ;;  %15856 = vmatprep.subr.bf16.mxu1 %v22632_v54  ;;  %v22704_v54 = vld [vmem:[%s28825_s1 + $0x214] ss:$8 sps:$4 sm:$0xff]  }
 0x627   :  { %13838 = vmatpush1.bf16.msra.mxu0 %v22630_v55  ;;  %15857 = vmatpush1.bf16.msra.mxu1 %v22630_v55  ;;  %v26548_v55 = vrot.slane %v12441_v49, %v23464_v16 }
 0x628   :  { %13839 = vmatprep.subr.bf16.mxu0 %v22635_v56  ;;  %15858 = vmatprep.subr.bf16.mxu1 %v22635_v56  ;;  %v26551_v56 = vrot.slane %v14460_v50, %v23464_v16 }
 0x62b   :  { %13840 = vmatpush1.bf16.msra.mxu0 %v22633_v57  ;;  %15859 = vmatpush1.bf16.msra.mxu1 %v22633_v57  ;;  %v22702_v57 = vld [vmem:[%s28825_s1 + $0x210] ss:$8 sps:$4 sm:$0xff]  }
 0x62c   :  { %13841 = vmatprep.subr.bf16.mxu0 %v22638_v58  ;;  %15860 = vmatprep.subr.bf16.mxu1 %v22638_v58  ;;  %v22707_v58 = vld [vmem:[%s28825_s1 + $0x224] ss:$8 sps:$4 sm:$0xff]  }
 0x62f   :  { %13842 = vmatpush1.bf16.msra.mxu0 %v22636_v59  ;;  %15861 = vmatpush1.bf16.msra.mxu1 %v22636_v59  ;;  %v22705_v59 = vld [vmem:[%s28825_s1 + $0x220] ss:$8 sps:$4 sm:$0xff]  }
 0x630   :  { %13843 = vmatprep.subr.bf16.mxu0 %v22641_v45  ;;  %15862 = vmatprep.subr.bf16.mxu1 %v22641_v45  ;;  %v22710_v45 = vld [vmem:[%s28825_s1 + $0x234] ss:$8 sps:$4 sm:$0xff]  }
 0x633   :  { %13844 = vmatpush1.bf16.msra.mxu0 %v22639_v46  ;;  %15863 = vmatpush1.bf16.msra.mxu1 %v22639_v46  ;;  %v22708_v46 = vld [vmem:[%s28825_s1 + $0x230] ss:$8 sps:$4 sm:$0xff]  }
 0x634   :  { %13845 = vmatprep.subr.bf16.mxu0 %v22644_v60  ;;  %15864 = vmatprep.subr.bf16.mxu1 %v22644_v60  ;;  %v22713_v60 = vld [vmem:[%s28825_s1 + $0x244] ss:$8 sps:$4 sm:$0xff]  }
 0x637   :  { %13846 = vmatpush1.bf16.msra.mxu0 %v22642_v61  ;;  %15865 = vmatpush1.bf16.msra.mxu1 %v22642_v61  ;;  %v22711_v61 = vld [vmem:[%s28825_s1 + $0x240] ss:$8 sps:$4 sm:$0xff]  }
 0x638   :  { %13847 = vmatprep.subr.bf16.mxu0 %v22647_v62  ;;  %15866 = vmatprep.subr.bf16.mxu1 %v22647_v62  ;;  %v22716_v62 = vld [vmem:[%s28825_s1 + $0x254] ss:$8 sps:$4 sm:$0xff]  }
 0x63b   :  { %13848 = vmatpush1.bf16.msra.mxu0 %v22645_v5  ;;  %15867 = vmatpush1.bf16.msra.mxu1 %v22645_v5  ;;  %v22714_v5 = vld [vmem:[%s28825_s1 + $0x250] ss:$8 sps:$4 sm:$0xff]  }
 0x63c   :  { %13849 = vmatprep.subr.bf16.mxu0 %v22650_v39  ;;  %15868 = vmatprep.subr.bf16.mxu1 %v22650_v39  ;;  %v22719_v39 = vld [vmem:[%s28825_s1 + $0x264] ss:$8 sps:$4 sm:$0xff]  }
 0x63f   :  { %13850 = vmatpush1.bf16.msra.mxu0 %v22648_v40  ;;  %15869 = vmatpush1.bf16.msra.mxu1 %v22648_v40  ;;  %v22717_v40 = vld [vmem:[%s28825_s1 + $0x260] ss:$8 sps:$4 sm:$0xff]  }
 0x640   :  { %13860 = vmatprep.subr.bf16.mxu0 %v22653_v6  ;;  %15879 = vmatprep.subr.bf16.mxu1 %v22653_v6  ;;  %v22722_v6 = vld [vmem:[%s28825_s1 + $0x274] ss:$8 sps:$4 sm:$0xff]  }
 0x642   :  { %13852 = vmatmul.mubr.bf16.vlgmr.msra.gmra.mrb[12].mxu0 %v26415_v7  ;;  %15871 = vmatmul.mubr.bf16.vlgmr.msra.gmra.mrb[12].mxu1 %v26419_v43  ;;  %v22720_v7 = vld [vmem:[%s28825_s1 + $0x270] ss:$8 sps:$4 sm:$0xff]   ;;  %v22725_v43 = vld [vmem:[%s28825_s1 + $0x284] ss:$8 sps:$4 sm:$0xff]  }
 0x643   :  { %13861 = vmatpush1.bf16.msra.mxu0 %v22651_v44  ;;  %15880 = vmatpush1.bf16.msra.mxu1 %v22651_v44  ;;  %v22723_v44 = vld [vmem:[%s28825_s1 + $0x280] ss:$8 sps:$4 sm:$0xff]  }
 0x644   :  { %13862 = vmatprep.subr.bf16.mxu0 %v22656_v8  ;;  %15881 = vmatprep.subr.bf16.mxu1 %v22656_v8  ;;  %v22728_v8 = vld [vmem:[%s28825_s1 + $0x294] ss:$8 sps:$4 sm:$0xff]  }
 0x645   :  { %13892 = vmatprep.mubr.bf16.mxu0 %v12472_v9  ;;  %15911 = vmatprep.mubr.bf16.mxu1 %v14491_v10  ;;  %v22726_v9 = vld [vmem:[%s28825_s1 + $0x290] ss:$8 sps:$4 sm:$0xff]   ;;  %v22731_v10 = vld [vmem:[%s28825_s1 + $0x2a4] ss:$8 sps:$4 sm:$0xff]  }
 0x647   :  { %13863 = vmatpush1.bf16.msra.mxu0 %v22654_v11  ;;  %15882 = vmatpush1.bf16.msra.mxu1 %v22654_v11  ;;  %v22729_v11 = vld [vmem:[%s28825_s1 + $0x2a0] ss:$8 sps:$4 sm:$0xff]  }
 0x648   :  { %13864 = vmatprep.subr.bf16.mxu0 %v22659_v13  ;;  %15883 = vmatprep.subr.bf16.mxu1 %v22659_v13  ;;  %v22734_v13 = vld [vmem:[%s28825_s1 + $0x2b4] ss:$8 sps:$4 sm:$0xff]  }
 0x64b   :  { %13865 = vmatpush1.bf16.msra.mxu0 %v22657_v14  ;;  %15884 = vmatpush1.bf16.msra.mxu1 %v22657_v14  ;;  %v22732_v14 = vld [vmem:[%s28825_s1 + $0x2b0] ss:$8 sps:$4 sm:$0xff]  }
 0x64c   :  { %13866 = vmatprep.subr.bf16.mxu0 %v22662_v15  ;;  %15885 = vmatprep.subr.bf16.mxu1 %v22662_v15  ;;  %v22737_v15 = vld [vmem:[%s28825_s1 + $0x2c4] ss:$8 sps:$4 sm:$0xff]  }
 0x64f   :  { %13867 = vmatpush1.bf16.msra.mxu0 %v22660_v17  ;;  %15886 = vmatpush1.bf16.msra.mxu1 %v22660_v17  ;;  %v22735_v17 = vld [vmem:[%s28825_s1 + $0x2c0] ss:$8 sps:$4 sm:$0xff]  }
 0x650   :  { %13868 = vmatprep.subr.bf16.mxu0 %v22665_v20  ;;  %15887 = vmatprep.subr.bf16.mxu1 %v22665_v20  ;;  %v22740_v20 = vld [vmem:[%s28825_s1 + $0x2d4] ss:$8 sps:$4 sm:$0xff]  }
 0x653   :  { %13869 = vmatpush1.bf16.msra.mxu0 %v22663_v21  ;;  %15888 = vmatpush1.bf16.msra.mxu1 %v22663_v21  ;;  %v22738_v21 = vld [vmem:[%s28825_s1 + $0x2d0] ss:$8 sps:$4 sm:$0xff]  }
 0x654   :  { %13870 = vmatprep.subr.bf16.mxu0 %v22668_v3  ;;  %15889 = vmatprep.subr.bf16.mxu1 %v22668_v3  ;;  %v22743_v3 = vld [vmem:[%s28825_s1 + $0x2e4] ss:$8 sps:$4 sm:$0xff]  }
 0x657   :  { %13871 = vmatpush1.bf16.msra.mxu0 %v22666_v22  ;;  %15890 = vmatpush1.bf16.msra.mxu1 %v22666_v22  ;;  %v22741_v22 = vld [vmem:[%s28825_s1 + $0x2e0] ss:$8 sps:$4 sm:$0xff]  }
 0x658   :  { %13872 = vmatprep.subr.bf16.mxu0 %v22671_v24  ;;  %15891 = vmatprep.subr.bf16.mxu1 %v22671_v24  ;;  %v22746_v24 = vld [vmem:[%s28825_s1 + $0x2f4] ss:$8 sps:$4 sm:$0xff]  }
 0x65b   :  { %13873 = vmatpush1.bf16.msra.mxu0 %v22669_v25  ;;  %15892 = vmatpush1.bf16.msra.mxu1 %v22669_v25  ;;  %v22744_v25 = vld [vmem:[%s28825_s1 + $0x2f0] ss:$8 sps:$4 sm:$0xff]  }
 0x65c   :  { %13874 = vmatprep.subr.bf16.mxu0 %v22674_v1  ;;  %15893 = vmatprep.subr.bf16.mxu1 %v22674_v1  ;;  %v22750_v1 = vld [vmem:[%s28825_s1 + $0x304] ss:$8 sps:$4 sm:$0xff]  }
 0x65f   :  { %13875 = vmatpush1.bf16.msra.mxu0 %v22672_v2  ;;  %15894 = vmatpush1.bf16.msra.mxu1 %v22672_v2  ;;  %v26647_v2 = vrot.slane %v26522_v47, %v23464_v16 }
 0x660   :  { %13876 = vmatprep.subr.bf16.mxu0 %v22677_v26  ;;  %15895 = vmatprep.subr.bf16.mxu1 %v22677_v26  ;;  %v26651_v26 = vrot.slane %v26525_v4, %v23464_v16  ;;  %v10401_v4 = vrot.slane %v10392_v37, %v24778_v23 }
 0x663   :  { %13877 = vmatpush1.bf16.msra.mxu0 %v22675_v27  ;;  %15896 = vmatpush1.bf16.msra.mxu1 %v22675_v27  ;;  %v22748_v27 = vld [vmem:[%s28825_s1 + $0x300] ss:$8 sps:$4 sm:$0xff]  }
 0x664   :  { %13878 = vmatprep.subr.bf16.mxu0 %v22680_v63  ;;  %15897 = vmatprep.subr.bf16.mxu1 %v22680_v63  ;;  %v22754_v63 = vld [vmem:[%s28825_s1 + $0x314] ss:$8 sps:$4 sm:$0xff]  }
 0x667   :  { %13879 = vmatpush1.bf16.msra.mxu0 %v22678_v0  ;;  %15898 = vmatpush1.bf16.msra.mxu1 %v22678_v0  ;;  %v12473_v0 = vcombine.high %v26548_v55, %v26548_v55 }
 0x668   :  { %13880 = vmatprep.subr.bf16.mxu0 %v22683_v28  ;;  %15899 = vmatprep.subr.bf16.mxu1 %v22683_v28  ;;  %v14492_v28 = vcombine.high %v26551_v56, %v26551_v56 }
 0x66b   :  { %13881 = vmatpush1.bf16.msra.mxu0 %v22681_v29  ;;  %15900 = vmatpush1.bf16.msra.mxu1 %v22681_v29  ;;  %v22752_v29 = vld [vmem:[%s28825_s1 + $0x310] ss:$8 sps:$4 sm:$0xff]  }
 0x66c   :  { %13882 = vmatprep.subr.bf16.mxu0 %v22686_v30  ;;  %15901 = vmatprep.subr.bf16.mxu1 %v22686_v30  ;;  %v22757_v30 = vld [vmem:[%s28825_s1 + $0x324] ss:$8 sps:$4 sm:$0xff]  }
 0x66f   :  { %13883 = vmatpush1.bf16.msra.mxu0 %v22684_v31  ;;  %15902 = vmatpush1.bf16.msra.mxu1 %v22684_v31  ;;  %v22755_v31 = vld [vmem:[%s28825_s1 + $0x320] ss:$8 sps:$4 sm:$0xff]  }
 0x670   :  { %13884 = vmatprep.subr.bf16.mxu0 %v22689_v32  ;;  %15903 = vmatprep.subr.bf16.mxu1 %v22689_v32  ;;  %v22760_v32 = vld [vmem:[%s28825_s1 + $0x334] ss:$8 sps:$4 sm:$0xff]  }
 0x673   :  { %13885 = vmatpush1.bf16.msra.mxu0 %v22687_v33  ;;  %15904 = vmatpush1.bf16.msra.mxu1 %v22687_v33  ;;  %v22758_v33 = vld [vmem:[%s28825_s1 + $0x330] ss:$8 sps:$4 sm:$0xff]  }
 0x674   :  { %13886 = vmatprep.subr.bf16.mxu0 %v22692_v34  ;;  %15905 = vmatprep.subr.bf16.mxu1 %v22692_v34  ;;  %v22763_v34 = vld [vmem:[%s28825_s1 + $0x344] ss:$8 sps:$4 sm:$0xff]  }
 0x677   :  { %13887 = vmatpush1.bf16.msra.mxu0 %v22690_v35  ;;  %15906 = vmatpush1.bf16.msra.mxu1 %v22690_v35  ;;  %v22761_v35 = vld [vmem:[%s28825_s1 + $0x340] ss:$8 sps:$4 sm:$0xff]  }
 0x678   :  { %13888 = vmatprep.subr.bf16.mxu0 %v22695_v36  ;;  %15907 = vmatprep.subr.bf16.mxu1 %v22695_v36  ;;  %v8373_v36 = vld [vmem:[%s28826_s2] sm:$0x3] }
 0x679   :  { %v8382_v47 = vrot.slane %v8373_v36, %v24778_v23  ;;  %v27605_v23 = vld [vmem:[%s28827_s3 + $0xe0] ss:$8 sps:$4 sm:$0xff]  }
 0x67a   :  { %28985 = vst [vmem:[#allocation19_spill] sm:$0xff] %v27605_v23 }
 0x67b   :  { %13889 = vmatpush1.bf16.msra.mxu0 %v22693_v41  ;;  %15908 = vmatpush1.bf16.msra.mxu1 %v22693_v41  ;;  %v8378_v41 = vrot.slane %v8373_v36, %v24769_v18  ;;  %v22802_v36 = vld [vmem:[%s28825_s1 + $0x414] ss:$8 sps:$4 sm:$0xff]  }
 0x67c   :  { %13890 = vmatprep.subr.bf16.mxu0 %v22698_v42  ;;  %15909 = vmatprep.subr.bf16.mxu1 %v22698_v42  ;;  %v10397_v42 = vrot.slane %v10392_v37, %v24769_v18  ;;  %v27610_v18 = vld [vmem:[%s28827_s3 + $0x1f4] ss:$8 sps:$4 sm:$0xff]  }
 0x67d   :  { %28986 = vst [vmem:[#allocation20_spill] sm:$0xff] %v27610_v18 }
 0x67f   :  { %13891 = vmatpush1.bf16.msra.mxu0 %v22696_v19  ;;  %15910 = vmatpush1.bf16.msra.mxu1 %v22696_v19  ;;  %v22764_v19 = vld [vmem:[%s28825_s1 + $0x350] ss:$8 sps:$4 sm:$0xff]  }
 0x680   :  { %13901 = vmatprep.subr.bf16.mxu0 %v22701_v48  ;;  %15920 = vmatprep.subr.bf16.mxu1 %v22701_v48  ;;  %v22769_v48 = vld [vmem:[%s28825_s1 + $0x364] ss:$8 sps:$4 sm:$0xff]  }
 0x682   :  { %13893 = vmatmul.mubr.bf16.vlgmr.msra.gmra.mrb[12].mxu0 %v12470_v51  ;;  %15912 = vmatmul.mubr.bf16.vlgmr.msra.gmra.mrb[12].mxu1 %v14489_v52 }
 0x683   :  { %13902 = vmatpush1.bf16.msra.mxu0 %v22699_v53  ;;  %15921 = vmatpush1.bf16.msra.mxu1 %v22699_v53 }
 0x684   :  { %13903 = vmatprep.subr.bf16.mxu0 %v22704_v54  ;;  %15922 = vmatprep.subr.bf16.mxu1 %v22704_v54 }
 0x685   :  { %13933 = vmatprep.mubr.bf16.mxu0 %v26548_v55  ;;  %15952 = vmatprep.mubr.bf16.mxu1 %v26551_v56 }
 0x687   :  { %13904 = vmatpush1.bf16.msra.mxu0 %v22702_v57  ;;  %15923 = vmatpush1.bf16.msra.mxu1 %v22702_v57 }
 0x688   :  { %13905 = vmatprep.subr.bf16.mxu0 %v22707_v58  ;;  %15924 = vmatprep.subr.bf16.mxu1 %v22707_v58 }
 0x68b   :  { %13906 = vmatpush1.bf16.msra.mxu0 %v22705_v59  ;;  %15925 = vmatpush1.bf16.msra.mxu1 %v22705_v59  ;;  %v22767_v59 = vld [vmem:[%s28825_s1 + $0x360] ss:$8 sps:$4 sm:$0xff]  }
 0x68c   :  { %13907 = vmatprep.subr.bf16.mxu0 %v22710_v45  ;;  %15926 = vmatprep.subr.bf16.mxu1 %v22710_v45 }
 0x68f   :  { %13908 = vmatpush1.bf16.msra.mxu0 %v22708_v46  ;;  %15927 = vmatpush1.bf16.msra.mxu1 %v22708_v46 }
 0x690   :  { %13909 = vmatprep.subr.bf16.mxu0 %v22713_v60  ;;  %15928 = vmatprep.subr.bf16.mxu1 %v22713_v60 }
 0x693   :  { %13910 = vmatpush1.bf16.msra.mxu0 %v22711_v61  ;;  %15929 = vmatpush1.bf16.msra.mxu1 %v22711_v61 }
 0x694   :  { %13911 = vmatprep.subr.bf16.mxu0 %v22716_v62  ;;  %15930 = vmatprep.subr.bf16.mxu1 %v22716_v62  ;;  %v22772_v62 = vld [vmem:[%s28825_s1 + $0x374] ss:$8 sps:$4 sm:$0xff]  }
 0x697   :  { %13912 = vmatpush1.bf16.msra.mxu0 %v22714_v5  ;;  %15931 = vmatpush1.bf16.msra.mxu1 %v22714_v5 }
 0x698   :  { %13913 = vmatprep.subr.bf16.mxu0 %v22719_v39  ;;  %15932 = vmatprep.subr.bf16.mxu1 %v22719_v39 }
 0x69b   :  { %13914 = vmatpush1.bf16.msra.mxu0 %v22717_v40  ;;  %15933 = vmatpush1.bf16.msra.mxu1 %v22717_v40 }
 0x69c   :  { %13915 = vmatprep.subr.bf16.mxu0 %v22722_v6  ;;  %15934 = vmatprep.subr.bf16.mxu1 %v22722_v6 }
 0x69f   :  { %13916 = vmatpush1.bf16.msra.mxu0 %v22720_v7  ;;  %15935 = vmatpush1.bf16.msra.mxu1 %v22720_v7  ;;  %v22770_v7 = vld [vmem:[%s28825_s1 + $0x370] ss:$8 sps:$4 sm:$0xff]  }
 0x6a0   :  { %13917 = vmatprep.subr.bf16.mxu0 %v22725_v43  ;;  %15936 = vmatprep.subr.bf16.mxu1 %v22725_v43  ;;  %v22775_v43 = vld [vmem:[%s28825_s1 + $0x384] ss:$8 sps:$4 sm:$0xff]  }
 0x6a3   :  { %13918 = vmatpush1.bf16.msra.mxu0 %v22723_v44  ;;  %15937 = vmatpush1.bf16.msra.mxu1 %v22723_v44 }
 0x6a4   :  { %13919 = vmatprep.subr.bf16.mxu0 %v22728_v8  ;;  %15938 = vmatprep.subr.bf16.mxu1 %v22728_v8 }
 0x6a7   :  { %13920 = vmatpush1.bf16.msra.mxu0 %v22726_v9  ;;  %15939 = vmatpush1.bf16.msra.mxu1 %v22726_v9  ;;  %v22773_v9 = vld [vmem:[%s28825_s1 + $0x380] ss:$8 sps:$4 sm:$0xff]  }
 0x6a8   :  { %13921 = vmatprep.subr.bf16.mxu0 %v22731_v10  ;;  %15940 = vmatprep.subr.bf16.mxu1 %v22731_v10  ;;  %v22778_v10 = vld [vmem:[%s28825_s1 + $0x394] ss:$8 sps:$4 sm:$0xff]  }
 0x6ab   :  { %13922 = vmatpush1.bf16.msra.mxu0 %v22729_v11  ;;  %15941 = vmatpush1.bf16.msra.mxu1 %v22729_v11  ;;  %v22776_v11 = vld [vmem:[%s28825_s1 + $0x390] ss:$8 sps:$4 sm:$0xff]  }
 0x6ac   :  { %13923 = vmatprep.subr.bf16.mxu0 %v22734_v13  ;;  %15942 = vmatprep.subr.bf16.mxu1 %v22734_v13  ;;  %v22781_v13 = vld [vmem:[%s28825_s1 + $0x3a4] ss:$8 sps:$4 sm:$0xff]  }
 0x6af   :  { %13924 = vmatpush1.bf16.msra.mxu0 %v22732_v14  ;;  %15943 = vmatpush1.bf16.msra.mxu1 %v22732_v14  ;;  %v22779_v14 = vld [vmem:[%s28825_s1 + $0x3a0] ss:$8 sps:$4 sm:$0xff]  }
 0x6b0   :  { %13925 = vmatprep.subr.bf16.mxu0 %v22737_v15  ;;  %15944 = vmatprep.subr.bf16.mxu1 %v22737_v15  ;;  %v22784_v15 = vld [vmem:[%s28825_s1 + $0x3b4] ss:$8 sps:$4 sm:$0xff]  }
 0x6b3   :  { %13926 = vmatpush1.bf16.msra.mxu0 %v22735_v17  ;;  %15945 = vmatpush1.bf16.msra.mxu1 %v22735_v17  ;;  %v22782_v17 = vld [vmem:[%s28825_s1 + $0x3b0] ss:$8 sps:$4 sm:$0xff]  }
 0x6b4   :  { %13927 = vmatprep.subr.bf16.mxu0 %v22740_v20  ;;  %15946 = vmatprep.subr.bf16.mxu1 %v22740_v20  ;;  %v22787_v20 = vld [vmem:[%s28825_s1 + $0x3c4] ss:$8 sps:$4 sm:$0xff]  }
 0x6b7   :  { %13928 = vmatpush1.bf16.msra.mxu0 %v22738_v21  ;;  %15947 = vmatpush1.bf16.msra.mxu1 %v22738_v21  ;;  %v22785_v21 = vld [vmem:[%s28825_s1 + $0x3c0] ss:$8 sps:$4 sm:$0xff]  }
 0x6b8   :  { %13929 = vmatprep.subr.bf16.mxu0 %v22743_v3  ;;  %15948 = vmatprep.subr.bf16.mxu1 %v22743_v3  ;;  %v22790_v3 = vld [vmem:[%s28825_s1 + $0x3d4] ss:$8 sps:$4 sm:$0xff]  }
 0x6bb   :  { %13930 = vmatpush1.bf16.msra.mxu0 %v22741_v22  ;;  %15949 = vmatpush1.bf16.msra.mxu1 %v22741_v22  ;;  %v22788_v22 = vld [vmem:[%s28825_s1 + $0x3d0] ss:$8 sps:$4 sm:$0xff]  }
 0x6bc   :  { %13931 = vmatprep.subr.bf16.mxu0 %v22746_v24  ;;  %15950 = vmatprep.subr.bf16.mxu1 %v22746_v24  ;;  %v22793_v24 = vld [vmem:[%s28825_s1 + $0x3e4] ss:$8 sps:$4 sm:$0xff]  }
 0x6bf   :  { %13932 = vmatpush1.bf16.msra.mxu0 %v22744_v25  ;;  %15951 = vmatpush1.bf16.msra.mxu1 %v22744_v25  ;;  %v26758_v25 = vld [vmem:[%s28824_s0 + $0x68] sm:$0xff] }
 0x6c0   :  { %13942 = vmatprep.subr.bf16.mxu0 %v22750_v1  ;;  %15961 = vmatprep.subr.bf16.mxu1 %v22750_v1  ;;  %v26763_v1 = vld [vmem:[%s28824_s0 + $0x78] sm:$0xff] }
 0x6c2   :  { %13934 = vmatmul.mubr.bf16.vlgmr.msra.gmra.mrb[12].mxu0 %v26647_v2  ;;  %15953 = vmatmul.mubr.bf16.vlgmr.msra.gmra.mrb[12].mxu1 %v26651_v26 }
 0x6c3   :  { %13943 = vmatpush1.bf16.msra.mxu0 %v22748_v27  ;;  %15962 = vmatpush1.bf16.msra.mxu1 %v22748_v27  ;;  %v22791_v27 = vld [vmem:[%s28825_s1 + $0x3e0] ss:$8 sps:$4 sm:$0xff]  }
 0x6c4   :  { %13944 = vmatprep.subr.bf16.mxu0 %v22754_v63  ;;  %15963 = vmatprep.subr.bf16.mxu1 %v22754_v63  ;;  %v22796_v63 = vld [vmem:[%s28825_s1 + $0x3f4] ss:$8 sps:$4 sm:$0xff]  }
 0x6c5   :  { %13974 = vmatprep.mubr.bf16.mxu0 %v12473_v0  ;;  %15993 = vmatprep.mubr.bf16.mxu1 %v14492_v28  ;;  %v26773_v0 = vrot.slane %v26758_v25, %v23464_v16  ;;  %v26777_v28 = vrot.slane %v26763_v1, %v23464_v16 }
 0x6c7   :  { %13945 = vmatpush1.bf16.msra.mxu0 %v22752_v29  ;;  %15964 = vmatpush1.bf16.msra.mxu1 %v22752_v29  ;;  %v22794_v29 = vld [vmem:[%s28825_s1 + $0x3f0] ss:$8 sps:$4 sm:$0xff]  }
 0x6c8   :  { %13946 = vmatprep.subr.bf16.mxu0 %v22757_v30  ;;  %15965 = vmatprep.subr.bf16.mxu1 %v22757_v30  ;;  %v22799_v30 = vld [vmem:[%s28825_s1 + $0x404] ss:$8 sps:$4 sm:$0xff]  }
 0x6cb   :  { %13947 = vmatpush1.bf16.msra.mxu0 %v22755_v31  ;;  %15966 = vmatpush1.bf16.msra.mxu1 %v22755_v31  ;;  %v12489_v31 = vcombine.high %v26773_v0, %v26773_v0 }
 0x6cc   :  { %13948 = vmatprep.subr.bf16.mxu0 %v22760_v32  ;;  %15967 = vmatprep.subr.bf16.mxu1 %v22760_v32  ;;  %v14508_v32 = vcombine.high %v26777_v28, %v26777_v28 }
 0x6cd   :  { %v26800_v37 = vrot.slane %v12489_v31, %v23464_v16  ;;  %v22869_v31 = vld [vmem:[%s28825_s1 + $0x580] ss:$8 sps:$4 sm:$0xff]  }
 0x6cf   :  { %13949 = vmatpush1.bf16.msra.mxu0 %v22758_v33  ;;  %15968 = vmatpush1.bf16.msra.mxu1 %v22758_v33  ;;  %v12471_v33 = vcombine.high %v26647_v2, %v26647_v2  ;;  %v26803_v2 = vrot.slane %v14508_v32, %v23464_v16  ;;  %v22874_v32 = vld [vmem:[%s28825_s1 + $0x594] ss:$8 sps:$4 sm:$0xff]  }
 0x6d0   :  { %13950 = vmatprep.subr.bf16.mxu0 %v22763_v34  ;;  %15969 = vmatprep.subr.bf16.mxu1 %v22763_v34  ;;  %v14490_v34 = vcombine.high %v26651_v26, %v26651_v26  ;;  %v22800_v26 = vld [vmem:[%s28825_s1 + $0x410] ss:$8 sps:$4 sm:$0xff]  }
 0x6d3   :  { %13951 = vmatpush1.bf16.msra.mxu0 %v22761_v35  ;;  %15970 = vmatpush1.bf16.msra.mxu1 %v22761_v35  ;;  %v22797_v35 = vld [vmem:[%s28825_s1 + $0x400] ss:$8 sps:$4 sm:$0xff]  }
 0x6d4   :  { %13952 = vmatprep.subr.bf16.mxu0 %v22766_v38  ;;  %15971 = vmatprep.subr.bf16.mxu1 %v22766_v38  ;;  %v22805_v38 = vld [vmem:[%s28825_s1 + $0x424] ss:$8 sps:$4 sm:$0xff]  }
 0x6d5   :  { %v10102_v49 = vpop.f32.mrb[8].mxu0  ;;  %v12121_v50 = vpop.f32.mrb[8].mxu1 }
 0x6d6   :  { %v21204_v51 = vadd.f32 %v10102_v49, %v8378_v41  ;;  %v21206_v52 = vadd.f32 %v12121_v50, %v10397_v42  ;;  %v10104_v53 = vpop.f32.mrb[9].mxu0  ;;  %v12123_v54 = vpop.f32.mrb[9].mxu1  ;;  %v22803_v41 = vld [vmem:[%s28825_s1 + $0x420] ss:$8 sps:$4 sm:$0xff]   ;;  %v22808_v42 = vld [vmem:[%s28825_s1 + $0x434] ss:$8 sps:$4 sm:$0xff]  }
 0x6d7   :  { %v21205_v55 = vadd.f32 %v10104_v53, %v8382_v47  ;;  %v21207_v56 = vadd.f32 %v12123_v54, %v10401_v4  ;;  %v10106_v57 = vpop.f32.mrb[10].mxu0  ;;  %v12125_v58 = vpop.f32.mrb[10].mxu1  ;;  %13953 = vmatpush1.bf16.msra.mxu0 %v22764_v19  ;;  %15972 = vmatpush1.bf16.msra.mxu1 %v22764_v19  ;;  %v22806_v47 = vld [vmem:[%s28825_s1 + $0x430] ss:$8 sps:$4 sm:$0xff]   ;;  %v22811_v4 = vld [vmem:[%s28825_s1 + $0x444] ss:$8 sps:$4 sm:$0xff]  }
 0x6d8   :  { %v10109_v45 = vmax.f32 %v21204_v51, 0.0  ;;  %v12128_v46 = vmax.f32 %v21206_v52, 0.0  ;;  %v10107_v60 = vpop.f32.mrb[11].mxu0  ;;  %v12126_v61 = vpop.f32.mrb[11].mxu1  ;;  %13954 = vmatprep.subr.bf16.mxu0 %v22769_v48  ;;  %15973 = vmatprep.subr.bf16.mxu1 %v22769_v48  ;;  %v22809_v19 = vld [vmem:[%s28825_s1 + $0x440] ss:$8 sps:$4 sm:$0xff]  }
 0x6d9   :  { %v10110_v5 = vmax.f32 %v21205_v55, 0.0  ;;  %v12129_v39 = vmax.f32 %v21207_v56, 0.0  ;;  %v22814_v48 = vld [vmem:[%s28825_s1 + $0x454] ss:$8 sps:$4 sm:$0xff]   ;;  %v22812_v49 = vld [vmem:[%s28825_s1 + $0x450] ss:$8 sps:$4 sm:$0xff]  }
 0x6da   :  { %v22817_v50 = vld [vmem:[%s28825_s1 + $0x464] ss:$8 sps:$4 sm:$0xff]   ;;  %v22815_v51 = vld [vmem:[%s28825_s1 + $0x460] ss:$8 sps:$4 sm:$0xff]   ;;  %v22820_v52 = vld [vmem:[%s28825_s1 + $0x474] ss:$8 sps:$4 sm:$0xff]  }
 0x6db   :  { %v19999_v40 = vpack.c.bf16 %v10110_v5, %v10109_v45  ;;  %v20259_v6 = vpack.c.bf16 %v12129_v39, %v12128_v46  ;;  %13955 = vmatpush1.bf16.msra.mxu0 %v22767_v59  ;;  %15974 = vmatpush1.bf16.msra.mxu1 %v22767_v59  ;;  %v22818_v53 = vld [vmem:[%s28825_s1 + $0x470] ss:$8 sps:$4 sm:$0xff]   ;;  %v22823_v54 = vld [vmem:[%s28825_s1 + $0x484] ss:$8 sps:$4 sm:$0xff]   ;;  %v22821_v55 = vld [vmem:[%s28825_s1 + $0x480] ss:$8 sps:$4 sm:$0xff]  }
 0x6dc   :  { %13956 = vmatprep.subr.bf16.mxu0 %v22772_v62  ;;  %15975 = vmatprep.subr.bf16.mxu1 %v22772_v62  ;;  %v22826_v56 = vld [vmem:[%s28825_s1 + $0x494] ss:$8 sps:$4 sm:$0xff]   ;;  %v22824_v57 = vld [vmem:[%s28825_s1 + $0x490] ss:$8 sps:$4 sm:$0xff]   ;;  %v22829_v58 = vld [vmem:[%s28825_s1 + $0x4a4] ss:$8 sps:$4 sm:$0xff]  }
 0x6dd   :  { %v10122_v44 = vrot.slane %v19999_v40, %v23464_v16  ;;  %v12141_v8 = vrot.slane %v20259_v6, %v23464_v16  ;;  %v22827_v59 = vld [vmem:[%s28825_s1 + $0x4a0] ss:$8 sps:$4 sm:$0xff]   ;;  %v22832_v45 = vld [vmem:[%s28825_s1 + $0x4b4] ss:$8 sps:$4 sm:$0xff]   ;;  %v22830_v46 = vld [vmem:[%s28825_s1 + $0x4b0] ss:$8 sps:$4 sm:$0xff]  }
 0x6de   :  { %v22835_v60 = vld [vmem:[%s28825_s1 + $0x4c4] ss:$8 sps:$4 sm:$0xff]   ;;  %v22833_v61 = vld [vmem:[%s28825_s1 + $0x4c0] ss:$8 sps:$4 sm:$0xff]   ;;  %v22838_v62 = vld [vmem:[%s28825_s1 + $0x4d4] ss:$8 sps:$4 sm:$0xff]  }
 0x6df   :  { %20000 = vst.sshfl [vmem:[#allocation2 + $0x8] sm:$0x5 pattern:$0x73625140] %v10122_v44  ;;  %13957 = vmatpush1.bf16.msra.mxu0 %v22770_v7  ;;  %15976 = vmatpush1.bf16.msra.mxu1 %v22770_v7  ;;  %v22836_v5 = vld [vmem:[%s28825_s1 + $0x4d0] ss:$8 sps:$4 sm:$0xff]   ;;  %v26899_v44 = vrot.slane %v26773_v0, %v23464_v16 }
 0x6e0   :  { %20260 = vst.sshfl [vmem:[#allocation2 + $0xa] sm:$0x5 pattern:$0x73625140] %v12141_v8  ;;  %13958 = vmatprep.subr.bf16.mxu0 %v22775_v43  ;;  %15977 = vmatprep.subr.bf16.mxu1 %v22775_v43  ;;  %v22841_v39 = vld [vmem:[%s28825_s1 + $0x4e4] ss:$8 sps:$4 sm:$0xff]   ;;  %v26903_v8 = vrot.slane %v26777_v28, %v23464_v16 }
 0x6e1   :  { %v22839_v40 = vld [vmem:[%s28825_s1 + $0x4e0] ss:$8 sps:$4 sm:$0xff]   ;;  %v22844_v6 = vld [vmem:[%s28825_s1 + $0x4f4] ss:$8 sps:$4 sm:$0xff]   ;;  %v22842_v7 = vld [vmem:[%s28825_s1 + $0x4f0] ss:$8 sps:$4 sm:$0xff]  }
 0x6e2   :  { %v22847_v43 = vld [vmem:[%s28825_s1 + $0x504] ss:$8 sps:$4 sm:$0xff]   ;;  %v22863_v0 = vld [vmem:[%s28825_s1 + $0x560] ss:$8 sps:$4 sm:$0xff]   ;;  %v22868_v28 = vld [vmem:[%s28825_s1 + $0x574] ss:$8 sps:$4 sm:$0xff]  }
 0x6e3   :  { %13959 = vmatpush1.bf16.msra.mxu0 %v22773_v9  ;;  %15978 = vmatpush1.bf16.msra.mxu1 %v22773_v9  ;;  %v22845_v9 = vld [vmem:[%s28825_s1 + $0x500] ss:$8 sps:$4 sm:$0xff]  }
 0x6e4   :  { %13960 = vmatprep.subr.bf16.mxu0 %v22778_v10  ;;  %15979 = vmatprep.subr.bf16.mxu1 %v22778_v10  ;;  %v22850_v10 = vld [vmem:[%s28825_s1 + $0x514] ss:$8 sps:$4 sm:$0xff]  }
 0x6e7   :  { %13961 = vmatpush1.bf16.msra.mxu0 %v22776_v11  ;;  %15980 = vmatpush1.bf16.msra.mxu1 %v22776_v11  ;;  %v12521_v11 = vcombine.high %v26800_v37, %v26800_v37 }
 0x6e8   :  { %13962 = vmatprep.subr.bf16.mxu0 %v22781_v13  ;;  %15981 = vmatprep.subr.bf16.mxu1 %v22781_v13  ;;  %v14540_v13 = vcombine.high %v26803_v2, %v26803_v2 }
 0x6eb   :  { %13963 = vmatpush1.bf16.msra.mxu0 %v22779_v14  ;;  %15982 = vmatpush1.bf16.msra.mxu1 %v22779_v14  ;;  %v22848_v14 = vld [vmem:[%s28825_s1 + $0x510] ss:$8 sps:$4 sm:$0xff]  }
 0x6ec   :  { %13964 = vmatprep.subr.bf16.mxu0 %v22784_v15  ;;  %15983 = vmatprep.subr.bf16.mxu1 %v22784_v15  ;;  %v22853_v15 = vld [vmem:[%s28825_s1 + $0x524] ss:$8 sps:$4 sm:$0xff]  }
 0x6ef   :  { %13965 = vmatpush1.bf16.msra.mxu0 %v22782_v17  ;;  %15984 = vmatpush1.bf16.msra.mxu1 %v22782_v17  ;;  %v22851_v17 = vld [vmem:[%s28825_s1 + $0x520] ss:$8 sps:$4 sm:$0xff]  }
 0x6f0   :  { %13966 = vmatprep.subr.bf16.mxu0 %v22787_v20  ;;  %15985 = vmatprep.subr.bf16.mxu1 %v22787_v20  ;;  %v22856_v20 = vld [vmem:[%s28825_s1 + $0x534] ss:$8 sps:$4 sm:$0xff]  }
 0x6f3   :  { %13967 = vmatpush1.bf16.msra.mxu0 %v22785_v21  ;;  %15986 = vmatpush1.bf16.msra.mxu1 %v22785_v21  ;;  %v22854_v21 = vld [vmem:[%s28825_s1 + $0x530] ss:$8 sps:$4 sm:$0xff]  }
 0x6f4   :  { %13968 = vmatprep.subr.bf16.mxu0 %v22790_v3  ;;  %15987 = vmatprep.subr.bf16.mxu1 %v22790_v3  ;;  %v22859_v3 = vld [vmem:[%s28825_s1 + $0x544] ss:$8 sps:$4 sm:$0xff]  }
 0x6f7   :  { %13969 = vmatpush1.bf16.msra.mxu0 %v22788_v22  ;;  %15988 = vmatpush1.bf16.msra.mxu1 %v22788_v22  ;;  %v22857_v22 = vld [vmem:[%s28825_s1 + $0x540] ss:$8 sps:$4 sm:$0xff]  }
 0x6f8   :  { %13970 = vmatprep.subr.bf16.mxu0 %v22793_v24  ;;  %15989 = vmatprep.subr.bf16.mxu1 %v22793_v24  ;;  %v22862_v24 = vld [vmem:[%s28825_s1 + $0x554] ss:$8 sps:$4 sm:$0xff]  }
 0x6fb   :  { %13971 = vmatpush1.bf16.msra.mxu0 %v22791_v27  ;;  %15990 = vmatpush1.bf16.msra.mxu1 %v22791_v27  ;;  %v22860_v27 = vld [vmem:[%s28825_s1 + $0x550] ss:$8 sps:$4 sm:$0xff]  }
 0x6fc   :  { %13972 = vmatprep.subr.bf16.mxu0 %v22796_v63  ;;  %15991 = vmatprep.subr.bf16.mxu1 %v22796_v63  ;;  %v22865_v63 = vld [vmem:[%s28825_s1 + $0x564] ss:$8 sps:$4 sm:$0xff]  }
 0x6ff   :  { %13973 = vmatpush1.bf16.msra.mxu0 %v22794_v29  ;;  %15992 = vmatpush1.bf16.msra.mxu1 %v22794_v29  ;;  %v22866_v29 = vld [vmem:[%s28825_s1 + $0x570] ss:$8 sps:$4 sm:$0xff]  }
 0x700   :  { %13983 = vmatprep.subr.bf16.mxu0 %v22799_v30  ;;  %16002 = vmatprep.subr.bf16.mxu1 %v22799_v30  ;;  %v22871_v30 = vld [vmem:[%s28825_s1 + $0x584] ss:$8 sps:$4 sm:$0xff]  }
 0x702   :  { %13975 = vmatmul.mubr.bf16.vlgmr.msra.gmra.mrb[12].mxu0 %v12471_v33  ;;  %15994 = vmatmul.mubr.bf16.vlgmr.msra.gmra.mrb[12].mxu1 %v14490_v34  ;;  %v22872_v33 = vld [vmem:[%s28825_s1 + $0x590] ss:$8 sps:$4 sm:$0xff]   ;;  %v22877_v34 = vld [vmem:[%s28825_s1 + $0x5a4] ss:$8 sps:$4 sm:$0xff]  }
 0x703   :  { %13984 = vmatpush1.bf16.msra.mxu0 %v22797_v35  ;;  %16003 = vmatpush1.bf16.msra.mxu1 %v22797_v35  ;;  %v22875_v35 = vld [vmem:[%s28825_s1 + $0x5a0] ss:$8 sps:$4 sm:$0xff]  }
 0x704   :  { %13985 = vmatprep.subr.bf16.mxu0 %v22802_v36  ;;  %16004 = vmatprep.subr.bf16.mxu1 %v22802_v36  ;;  %v22880_v36 = vld [vmem:[%s28825_s1 + $0x5b4] ss:$8 sps:$4 sm:$0xff]  }
 0x705   :  { %14015 = vmatprep.mubr.bf16.mxu0 %v26800_v37  ;;  %16034 = vmatprep.mubr.bf16.mxu1 %v26803_v2  ;;  %v22878_v37 = vld [vmem:[%s28825_s1 + $0x5b0] ss:$8 sps:$4 sm:$0xff]   ;;  %v22883_v2 = vld [vmem:[%s28825_s1 + $0x5c4] ss:$8 sps:$4 sm:$0xff]  }
 0x707   :  { %13986 = vmatpush1.bf16.msra.mxu0 %v22800_v26  ;;  %16005 = vmatpush1.bf16.msra.mxu1 %v22800_v26  ;;  %v22881_v26 = vld [vmem:[%s28825_s1 + $0x5c0] ss:$8 sps:$4 sm:$0xff]  }
 0x708   :  { %13987 = vmatprep.subr.bf16.mxu0 %v22805_v38  ;;  %16006 = vmatprep.subr.bf16.mxu1 %v22805_v38  ;;  %v22886_v38 = vld [vmem:[%s28825_s1 + $0x5d4] ss:$8 sps:$4 sm:$0xff]  }
 0x70b   :  { %13988 = vmatpush1.bf16.msra.mxu0 %v22803_v41  ;;  %16007 = vmatpush1.bf16.msra.mxu1 %v22803_v41  ;;  %v22884_v41 = vld [vmem:[%s28825_s1 + $0x5d0] ss:$8 sps:$4 sm:$0xff]  }
 0x70c   :  { %13989 = vmatprep.subr.bf16.mxu0 %v22808_v42  ;;  %16008 = vmatprep.subr.bf16.mxu1 %v22808_v42  ;;  %v22889_v42 = vld [vmem:[%s28825_s1 + $0x5e4] ss:$8 sps:$4 sm:$0xff]  }
 0x70f   :  { %13990 = vmatpush1.bf16.msra.mxu0 %v22806_v47  ;;  %16009 = vmatpush1.bf16.msra.mxu1 %v22806_v47  ;;  %v12474_v47 = vcombine.high %v26758_v25, %v26758_v25 }
 0x710   :  { %13991 = vmatprep.subr.bf16.mxu0 %v22811_v4  ;;  %16010 = vmatprep.subr.bf16.mxu1 %v22811_v4  ;;  %v14493_v4 = vcombine.high %v26763_v1, %v26763_v1  ;;  %v22890_v1 = vld [vmem:[%s28825_s1 + $0x5f0] ss:$8 sps:$4 sm:$0xff]  }
 0x712   :  { %v27009_v25 = vrot.slane %v14493_v4, %v23464_v16  ;;  %v22963_v4 = vld [vmem:[%s28825_s1 + $0x764] ss:$8 sps:$4 sm:$0xff]  }
 0x713   :  { %13992 = vmatpush1.bf16.msra.mxu0 %v22809_v19  ;;  %16011 = vmatpush1.bf16.msra.mxu1 %v22809_v19  ;;  %v22887_v19 = vld [vmem:[%s28825_s1 + $0x5e0] ss:$8 sps:$4 sm:$0xff]  }
 0x714   :  { %13993 = vmatprep.subr.bf16.mxu0 %v22814_v48  ;;  %16012 = vmatprep.subr.bf16.mxu1 %v22814_v48  ;;  %v22892_v48 = vld [vmem:[%s28825_s1 + $0x5f4] ss:$8 sps:$4 sm:$0xff]  }
 0x717   :  { %13994 = vmatpush1.bf16.msra.mxu0 %v22812_v49  ;;  %16013 = vmatpush1.bf16.msra.mxu1 %v22812_v49  ;;  %v27006_v49 = vrot.slane %v12474_v47, %v23464_v16  ;;  %v22958_v47 = vld [vmem:[%s28825_s1 + $0x750] ss:$8 sps:$4 sm:$0xff]  }
 0x718   :  { %13995 = vmatprep.subr.bf16.mxu0 %v22817_v50  ;;  %16014 = vmatprep.subr.bf16.mxu1 %v22817_v50  ;;  %v22895_v50 = vld [vmem:[%s28825_s1 + $0x604] ss:$8 sps:$4 sm:$0xff]  }
 0x71b   :  { %13996 = vmatpush1.bf16.msra.mxu0 %v22815_v51  ;;  %16015 = vmatpush1.bf16.msra.mxu1 %v22815_v51  ;;  %v12490_v51 = vcombine.high %v27006_v49, %v27006_v49 }
 0x71c   :  { %13997 = vmatprep.subr.bf16.mxu0 %v22820_v52  ;;  %16016 = vmatprep.subr.bf16.mxu1 %v22820_v52  ;;  %v14509_v52 = vcombine.high %v27009_v25, %v27009_v25 }
 0x71f   :  { %13998 = vmatpush1.bf16.msra.mxu0 %v22818_v53  ;;  %16017 = vmatpush1.bf16.msra.mxu1 %v22818_v53  ;;  %v12519_v53 = vcombine.high %v26899_v44, %v26899_v44 }
 0x720   :  { %13999 = vmatprep.subr.bf16.mxu0 %v22823_v54  ;;  %16018 = vmatprep.subr.bf16.mxu1 %v22823_v54  ;;  %v14538_v54 = vcombine.high %v26903_v8, %v26903_v8 }
 0x723   :  { %14000 = vmatpush1.bf16.msra.mxu0 %v22821_v55  ;;  %16019 = vmatpush1.bf16.msra.mxu1 %v22821_v55  ;;  %v22893_v55 = vld [vmem:[%s28825_s1 + $0x600] ss:$8 sps:$4 sm:$0xff]  }
 0x724   :  { %14001 = vmatprep.subr.bf16.mxu0 %v22826_v56  ;;  %16020 = vmatprep.subr.bf16.mxu1 %v22826_v56  ;;  %v22898_v56 = vld [vmem:[%s28825_s1 + $0x614] ss:$8 sps:$4 sm:$0xff]  }
 0x727   :  { %14002 = vmatpush1.bf16.msra.mxu0 %v22824_v57  ;;  %16021 = vmatpush1.bf16.msra.mxu1 %v22824_v57  ;;  %v27032_v57 = vrot.slane %v12490_v51, %v23464_v16  ;;  %v22970_v51 = vld [vmem:[%s28825_s1 + $0x790] ss:$8 sps:$4 sm:$0xff]  }
 0x728   :  { %14003 = vmatprep.subr.bf16.mxu0 %v22829_v58  ;;  %16022 = vmatprep.subr.bf16.mxu1 %v22829_v58  ;;  %v27035_v58 = vrot.slane %v14509_v52, %v23464_v16  ;;  %v22975_v52 = vld [vmem:[%s28825_s1 + $0x7a4] ss:$8 sps:$4 sm:$0xff]  }
 0x72b   :  { %14004 = vmatpush1.bf16.msra.mxu0 %v22827_v59  ;;  %16023 = vmatpush1.bf16.msra.mxu1 %v22827_v59  ;;  %v22896_v59 = vld [vmem:[%s28825_s1 + $0x610] ss:$8 sps:$4 sm:$0xff]  }
 0x72c   :  { %14005 = vmatprep.subr.bf16.mxu0 %v22832_v45  ;;  %16024 = vmatprep.subr.bf16.mxu1 %v22832_v45  ;;  %v22901_v45 = vld [vmem:[%s28825_s1 + $0x624] ss:$8 sps:$4 sm:$0xff]  }
 0x72f   :  { %14006 = vmatpush1.bf16.msra.mxu0 %v22830_v46  ;;  %16025 = vmatpush1.bf16.msra.mxu1 %v22830_v46  ;;  %v22899_v46 = vld [vmem:[%s28825_s1 + $0x620] ss:$8 sps:$4 sm:$0xff]  }
 0x730   :  { %14007 = vmatprep.subr.bf16.mxu0 %v22835_v60  ;;  %16026 = vmatprep.subr.bf16.mxu1 %v22835_v60  ;;  %v22904_v60 = vld [vmem:[%s28825_s1 + $0x634] ss:$8 sps:$4 sm:$0xff]  }
 0x733   :  { %14008 = vmatpush1.bf16.msra.mxu0 %v22833_v61  ;;  %16027 = vmatpush1.bf16.msra.mxu1 %v22833_v61  ;;  %v22902_v61 = vld [vmem:[%s28825_s1 + $0x630] ss:$8 sps:$4 sm:$0xff]  }
 0x734   :  { %14009 = vmatprep.subr.bf16.mxu0 %v22838_v62  ;;  %16028 = vmatprep.subr.bf16.mxu1 %v22838_v62  ;;  %v22907_v62 = vld [vmem:[%s28825_s1 + $0x644] ss:$8 sps:$4 sm:$0xff]  }
 0x737   :  { %14010 = vmatpush1.bf16.msra.mxu0 %v22836_v5  ;;  %16029 = vmatpush1.bf16.msra.mxu1 %v22836_v5  ;;  %v22905_v5 = vld [vmem:[%s28825_s1 + $0x640] ss:$8 sps:$4 sm:$0xff]  }
 0x738   :  { %14011 = vmatprep.subr.bf16.mxu0 %v22841_v39  ;;  %16030 = vmatprep.subr.bf16.mxu1 %v22841_v39  ;;  %v22910_v39 = vld [vmem:[%s28825_s1 + $0x654] ss:$8 sps:$4 sm:$0xff]  }
 0x73b   :  { %14012 = vmatpush1.bf16.msra.mxu0 %v22839_v40  ;;  %16031 = vmatpush1.bf16.msra.mxu1 %v22839_v40  ;;  %v22908_v40 = vld [vmem:[%s28825_s1 + $0x650] ss:$8 sps:$4 sm:$0xff]  }
 0x73c   :  { %14013 = vmatprep.subr.bf16.mxu0 %v22844_v6  ;;  %16032 = vmatprep.subr.bf16.mxu1 %v22844_v6  ;;  %v22913_v6 = vld [vmem:[%s28825_s1 + $0x664] ss:$8 sps:$4 sm:$0xff]  }
 0x73f   :  { %14014 = vmatpush1.bf16.msra.mxu0 %v22842_v7  ;;  %16033 = vmatpush1.bf16.msra.mxu1 %v22842_v7  ;;  %v22911_v7 = vld [vmem:[%s28825_s1 + $0x660] ss:$8 sps:$4 sm:$0xff]  }
 0x740   :  { %14024 = vmatprep.subr.bf16.mxu0 %v22847_v43  ;;  %16043 = vmatprep.subr.bf16.mxu1 %v22847_v43  ;;  %v22916_v43 = vld [vmem:[%s28825_s1 + $0x674] ss:$8 sps:$4 sm:$0xff]  }
 0x742   :  { %14016 = vmatmul.mubr.bf16.vlgmr.msra.gmra.mrb[12].mxu0 %v26899_v44  ;;  %16035 = vmatmul.mubr.bf16.vlgmr.msra.gmra.mrb[12].mxu1 %v26903_v8  ;;  %v22914_v44 = vld [vmem:[%s28825_s1 + $0x670] ss:$8 sps:$4 sm:$0xff]   ;;  %v22919_v8 = vld [vmem:[%s28825_s1 + $0x684] ss:$8 sps:$4 sm:$0xff]  }
 0x743   :  { %14025 = vmatpush1.bf16.msra.mxu0 %v22845_v9  ;;  %16044 = vmatpush1.bf16.msra.mxu1 %v22845_v9  ;;  %v22917_v9 = vld [vmem:[%s28825_s1 + $0x680] ss:$8 sps:$4 sm:$0xff]  }
 0x744   :  { %14026 = vmatprep.subr.bf16.mxu0 %v22850_v10  ;;  %16045 = vmatprep.subr.bf16.mxu1 %v22850_v10  ;;  %v22922_v10 = vld [vmem:[%s28825_s1 + $0x694] ss:$8 sps:$4 sm:$0xff]  }
 0x745   :  { %14056 = vmatprep.mubr.bf16.mxu0 %v12521_v11  ;;  %16075 = vmatprep.mubr.bf16.mxu1 %v14540_v13  ;;  %v22920_v11 = vld [vmem:[%s28825_s1 + $0x690] ss:$8 sps:$4 sm:$0xff]   ;;  %v22925_v13 = vld [vmem:[%s28825_s1 + $0x6a4] ss:$8 sps:$4 sm:$0xff]  }
 0x747   :  { %14027 = vmatpush1.bf16.msra.mxu0 %v22848_v14  ;;  %16046 = vmatpush1.bf16.msra.mxu1 %v22848_v14  ;;  %v22923_v14 = vld [vmem:[%s28825_s1 + $0x6a0] ss:$8 sps:$4 sm:$0xff]  }
 0x748   :  { %14028 = vmatprep.subr.bf16.mxu0 %v22853_v15  ;;  %16047 = vmatprep.subr.bf16.mxu1 %v22853_v15  ;;  %v22928_v15 = vld [vmem:[%s28825_s1 + $0x6b4] ss:$8 sps:$4 sm:$0xff]  }
 0x74b   :  { %14029 = vmatpush1.bf16.msra.mxu0 %v22851_v17  ;;  %16048 = vmatpush1.bf16.msra.mxu1 %v22851_v17  ;;  %v22926_v17 = vld [vmem:[%s28825_s1 + $0x6b0] ss:$8 sps:$4 sm:$0xff]  }
 0x74c   :  { %14030 = vmatprep.subr.bf16.mxu0 %v22856_v20  ;;  %16049 = vmatprep.subr.bf16.mxu1 %v22856_v20  ;;  %v22931_v20 = vld [vmem:[%s28825_s1 + $0x6c4] ss:$8 sps:$4 sm:$0xff]  }
 0x74f   :  { %14031 = vmatpush1.bf16.msra.mxu0 %v22854_v21  ;;  %16050 = vmatpush1.bf16.msra.mxu1 %v22854_v21  ;;  %v22929_v21 = vld [vmem:[%s28825_s1 + $0x6c0] ss:$8 sps:$4 sm:$0xff]  }
 0x750   :  { %14032 = vmatprep.subr.bf16.mxu0 %v22859_v3  ;;  %16051 = vmatprep.subr.bf16.mxu1 %v22859_v3  ;;  %v22934_v3 = vld [vmem:[%s28825_s1 + $0x6d4] ss:$8 sps:$4 sm:$0xff]  }
 0x753   :  { %14033 = vmatpush1.bf16.msra.mxu0 %v22857_v22  ;;  %16052 = vmatpush1.bf16.msra.mxu1 %v22857_v22  ;;  %v22932_v22 = vld [vmem:[%s28825_s1 + $0x6d0] ss:$8 sps:$4 sm:$0xff]  }
 0x754   :  { %14034 = vmatprep.subr.bf16.mxu0 %v22862_v24  ;;  %16053 = vmatprep.subr.bf16.mxu1 %v22862_v24  ;;  %v22937_v24 = vld [vmem:[%s28825_s1 + $0x6e4] ss:$8 sps:$4 sm:$0xff]  }
 0x757   :  { %14035 = vmatpush1.bf16.msra.mxu0 %v22860_v27  ;;  %16054 = vmatpush1.bf16.msra.mxu1 %v22860_v27  ;;  %v22935_v27 = vld [vmem:[%s28825_s1 + $0x6e0] ss:$8 sps:$4 sm:$0xff]  }
 0x758   :  { %14036 = vmatprep.subr.bf16.mxu0 %v22865_v63  ;;  %16055 = vmatprep.subr.bf16.mxu1 %v22865_v63  ;;  %v22940_v63 = vld [vmem:[%s28825_s1 + $0x6f4] ss:$8 sps:$4 sm:$0xff]  }
 0x75b   :  { %14037 = vmatpush1.bf16.msra.mxu0 %v22863_v0  ;;  %16056 = vmatpush1.bf16.msra.mxu1 %v22863_v0  ;;  %v22938_v0 = vld [vmem:[%s28825_s1 + $0x6f0] ss:$8 sps:$4 sm:$0xff]  }
 0x75c   :  { %14038 = vmatprep.subr.bf16.mxu0 %v22868_v28  ;;  %16057 = vmatprep.subr.bf16.mxu1 %v22868_v28  ;;  %v22944_v28 = vld [vmem:[%s28825_s1 + $0x704] ss:$8 sps:$4 sm:$0xff]  }
 0x75f   :  { %14039 = vmatpush1.bf16.msra.mxu0 %v22866_v29  ;;  %16058 = vmatpush1.bf16.msra.mxu1 %v22866_v29  ;;  %v27131_v29 = vrot.slane %v27006_v49, %v23464_v16  ;;  %v22964_v49 = vld [vmem:[%s28825_s1 + $0x770] ss:$8 sps:$4 sm:$0xff]  }
 0x760   :  { %14040 = vmatprep.subr.bf16.mxu0 %v22871_v30  ;;  %16059 = vmatprep.subr.bf16.mxu1 %v22871_v30  ;;  %v27135_v30 = vrot.slane %v27009_v25, %v23464_v16  ;;  %v22969_v25 = vld [vmem:[%s28825_s1 + $0x784] ss:$8 sps:$4 sm:$0xff]  }
 0x763   :  { %14041 = vmatpush1.bf16.msra.mxu0 %v22869_v31  ;;  %16060 = vmatpush1.bf16.msra.mxu1 %v22869_v31  ;;  %v22942_v31 = vld [vmem:[%s28825_s1 + $0x700] ss:$8 sps:$4 sm:$0xff]  }
 0x764   :  { %14042 = vmatprep.subr.bf16.mxu0 %v22874_v32  ;;  %16061 = vmatprep.subr.bf16.mxu1 %v22874_v32  ;;  %v22948_v32 = vld [vmem:[%s28825_s1 + $0x714] ss:$8 sps:$4 sm:$0xff]  }
 0x767   :  { %14043 = vmatpush1.bf16.msra.mxu0 %v22872_v33  ;;  %16062 = vmatpush1.bf16.msra.mxu1 %v22872_v33  ;;  %v12522_v33 = vcombine.high %v27032_v57, %v27032_v57 }
 0x768   :  { %14044 = vmatprep.subr.bf16.mxu0 %v22877_v34  ;;  %16063 = vmatprep.subr.bf16.mxu1 %v22877_v34  ;;  %v14541_v34 = vcombine.high %v27035_v58, %v27035_v58 }
 0x76b   :  { %14045 = vmatpush1.bf16.msra.mxu0 %v22875_v35  ;;  %16064 = vmatpush1.bf16.msra.mxu1 %v22875_v35  ;;  %v22946_v35 = vld [vmem:[%s28825_s1 + $0x710] ss:$8 sps:$4 sm:$0xff]  }
 0x76c   :  { %14046 = vmatprep.subr.bf16.mxu0 %v22880_v36  ;;  %16065 = vmatprep.subr.bf16.mxu1 %v22880_v36  ;;  %v22951_v36 = vld [vmem:[%s28825_s1 + $0x724] ss:$8 sps:$4 sm:$0xff]  }
 0x76f   :  { %14047 = vmatpush1.bf16.msra.mxu0 %v22878_v37  ;;  %16066 = vmatpush1.bf16.msra.mxu1 %v22878_v37  ;;  %v22949_v37 = vld [vmem:[%s28825_s1 + $0x720] ss:$8 sps:$4 sm:$0xff]  }
 0x770   :  { %14048 = vmatprep.subr.bf16.mxu0 %v22883_v2  ;;  %16067 = vmatprep.subr.bf16.mxu1 %v22883_v2  ;;  %v22954_v2 = vld [vmem:[%s28825_s1 + $0x734] ss:$8 sps:$4 sm:$0xff]  }
 0x773   :  { %14049 = vmatpush1.bf16.msra.mxu0 %v22881_v26  ;;  %16068 = vmatpush1.bf16.msra.mxu1 %v22881_v26  ;;  %v22952_v26 = vld [vmem:[%s28825_s1 + $0x730] ss:$8 sps:$4 sm:$0xff]  }
 0x774   :  { %14050 = vmatprep.subr.bf16.mxu0 %v22886_v38  ;;  %16069 = vmatprep.subr.bf16.mxu1 %v22886_v38  ;;  %v22957_v38 = vld [vmem:[%s28825_s1 + $0x744] ss:$8 sps:$4 sm:$0xff]  }
 0x777   :  { %14051 = vmatpush1.bf16.msra.mxu0 %v22884_v41  ;;  %16070 = vmatpush1.bf16.msra.mxu1 %v22884_v41  ;;  %v22955_v41 = vld [vmem:[%s28825_s1 + $0x740] ss:$8 sps:$4 sm:$0xff]  }
 0x778   :  { %14052 = vmatprep.subr.bf16.mxu0 %v22889_v42  ;;  %16071 = vmatprep.subr.bf16.mxu1 %v22889_v42  ;;  %v22960_v42 = vld [vmem:[%s28825_s1 + $0x754] ss:$8 sps:$4 sm:$0xff]  }
 0x77b   :  { %14053 = vmatpush1.bf16.msra.mxu0 %v22887_v19  ;;  %16072 = vmatpush1.bf16.msra.mxu1 %v22887_v19  ;;  %v22961_v19 = vld [vmem:[%s28825_s1 + $0x760] ss:$8 sps:$4 sm:$0xff]  }
 0x77c   :  { %14054 = vmatprep.subr.bf16.mxu0 %v22892_v48  ;;  %16073 = vmatprep.subr.bf16.mxu1 %v22892_v48  ;;  %v22966_v48 = vld [vmem:[%s28825_s1 + $0x774] ss:$8 sps:$4 sm:$0xff]  }
 0x77f   :  { %14055 = vmatpush1.bf16.msra.mxu0 %v22890_v1  ;;  %16074 = vmatpush1.bf16.msra.mxu1 %v22890_v1  ;;  %v22967_v1 = vld [vmem:[%s28825_s1 + $0x780] ss:$8 sps:$4 sm:$0xff]  }
 0x780   :  { %14065 = vmatprep.subr.bf16.mxu0 %v22895_v50  ;;  %16084 = vmatprep.subr.bf16.mxu1 %v22895_v50  ;;  %v22972_v50 = vld [vmem:[%s28825_s1 + $0x794] ss:$8 sps:$4 sm:$0xff]  }
 0x782   :  { %14057 = vmatmul.mubr.bf16.vlgmr.msra.gmra.mrb[12].mxu0 %v12519_v53  ;;  %16076 = vmatmul.mubr.bf16.vlgmr.msra.gmra.mrb[12].mxu1 %v14538_v54  ;;  %v22973_v53 = vld [vmem:[%s28825_s1 + $0x7a0] ss:$8 sps:$4 sm:$0xff]   ;;  %v22978_v54 = vld [vmem:[%s28825_s1 + $0x7b4] ss:$8 sps:$4 sm:$0xff]  }
 0x783   :  { %14066 = vmatpush1.bf16.msra.mxu0 %v22893_v55  ;;  %16085 = vmatpush1.bf16.msra.mxu1 %v22893_v55  ;;  %v22976_v55 = vld [vmem:[%s28825_s1 + $0x7b0] ss:$8 sps:$4 sm:$0xff]  }
 0x784   :  { %14067 = vmatprep.subr.bf16.mxu0 %v22898_v56  ;;  %16086 = vmatprep.subr.bf16.mxu1 %v22898_v56  ;;  %v22981_v56 = vld [vmem:[%s28825_s1 + $0x7c4] ss:$8 sps:$4 sm:$0xff]  }
 0x785   :  { %14097 = vmatprep.mubr.bf16.mxu0 %v27032_v57  ;;  %16116 = vmatprep.mubr.bf16.mxu1 %v27035_v58  ;;  %v22979_v57 = vld [vmem:[%s28825_s1 + $0x7c0] ss:$8 sps:$4 sm:$0xff]   ;;  %v22984_v58 = vld [vmem:[%s28825_s1 + $0x7d4] ss:$8 sps:$4 sm:$0xff]  }
 0x787   :  { %14068 = vmatpush1.bf16.msra.mxu0 %v22896_v59  ;;  %16087 = vmatpush1.bf16.msra.mxu1 %v22896_v59  ;;  %v22982_v59 = vld [vmem:[%s28825_s1 + $0x7d0] ss:$8 sps:$4 sm:$0xff]  }
 0x788   :  { %14069 = vmatprep.subr.bf16.mxu0 %v22901_v45  ;;  %16088 = vmatprep.subr.bf16.mxu1 %v22901_v45  ;;  %v22987_v45 = vld [vmem:[%s28825_s1 + $0x7e4] ss:$8 sps:$4 sm:$0xff]  }
 0x78b   :  { %14070 = vmatpush1.bf16.msra.mxu0 %v22899_v46  ;;  %16089 = vmatpush1.bf16.msra.mxu1 %v22899_v46  ;;  %v22985_v46 = vld [vmem:[%s28825_s1 + $0x7e0] ss:$8 sps:$4 sm:$0xff]  }
 0x78c   :  { %14071 = vmatprep.subr.bf16.mxu0 %v22904_v60  ;;  %16090 = vmatprep.subr.bf16.mxu1 %v22904_v60  ;;  %v22990_v60 = vld [vmem:[%s28825_s1 + $0x7f4] ss:$8 sps:$4 sm:$0xff]  }
 0x78f   :  { %14072 = vmatpush1.bf16.msra.mxu0 %v22902_v61  ;;  %16091 = vmatpush1.bf16.msra.mxu1 %v22902_v61  ;;  %v27233_v61 = vld.sshfl [vmem:[#allocation2 + $0x2] sm:$0x11 pattern:$0x75316420] }
 0x790   :  { %14073 = vmatprep.subr.bf16.mxu0 %v22907_v62  ;;  %16092 = vmatprep.subr.bf16.mxu1 %v22907_v62  ;;  %v22988_v62 = vld [vmem:[%s28825_s1 + $0x7f0] ss:$8 sps:$4 sm:$0xff]  }
 0x793   :  { %14074 = vmatpush1.bf16.msra.mxu0 %v22905_v5  ;;  %16093 = vmatpush1.bf16.msra.mxu1 %v22905_v5  ;;  %v27238_v5 = vld.sshfl [vmem:[#allocation2] sm:$0x11 pattern:$0x75316420] }
 0x794   :  { %14075 = vmatprep.subr.bf16.mxu0 %v22910_v39  ;;  %16094 = vmatprep.subr.bf16.mxu1 %v22910_v39  ;;  %v27243_v39 = vld [vmem:[%s28827_s3 + $0x104] ss:$8 sps:$4 sm:$0xff]  }
 0x797   :  { %14076 = vmatpush1.bf16.msra.mxu0 %v22908_v40  ;;  %16095 = vmatpush1.bf16.msra.mxu1 %v22908_v40  ;;  %v27248_v40 = vld [vmem:[%s28827_s3 + $0x4] ss:$8 sps:$4 sm:$0xff]  }
 0x798   :  { %14077 = vmatprep.subr.bf16.mxu0 %v22913_v6  ;;  %16096 = vmatprep.subr.bf16.mxu1 %v22913_v6  ;;  %v16265_v6 = vcombine.high %v27233_v61, %v27233_v61 }
 0x79b   :  { %14078 = vmatpush1.bf16.msra.mxu0 %v22911_v7  ;;  %16097 = vmatpush1.bf16.msra.mxu1 %v22911_v7  ;;  %v12520_v7 = vcombine.high %v27131_v29, %v27131_v29 }
 0x79c   :  { %14079 = vmatprep.subr.bf16.mxu0 %v22916_v43  ;;  %16098 = vmatprep.subr.bf16.mxu1 %v22916_v43  ;;  %v14539_v43 = vcombine.high %v27135_v30, %v27135_v30 }
 0x79f   :  { %14080 = vmatpush1.bf16.msra.mxu0 %v22914_v44  ;;  %16099 = vmatpush1.bf16.msra.mxu1 %v22914_v44  ;;  %v16491_v44 = vcombine.high %v27238_v5, %v27238_v5 }
 0x7a0   :  { %14081 = vmatprep.subr.bf16.mxu0 %v22919_v8  ;;  %16100 = vmatprep.subr.bf16.mxu1 %v22919_v8  ;;  %v27261_v8 = vld [vmem:[%s28827_s3 + $0x100] ss:$8 sps:$4 sm:$0xff]  }
 0x7a3   :  { %14082 = vmatpush1.bf16.msra.mxu0 %v22917_v9  ;;  %16101 = vmatpush1.bf16.msra.mxu1 %v22917_v9  ;;  %v27267_v9 = vld [vmem:[%s28827_s3] ss:$8 sps:$4 sm:$0xff]  }
 0x7a4   :  { %14083 = vmatprep.subr.bf16.mxu0 %v22922_v10  ;;  %16102 = vmatprep.subr.bf16.mxu1 %v22922_v10  ;;  %v16279_v10 = vrot.slane %v16265_v6, %v23464_v16  ;;  %v27562_v6 = vld [vmem:[%s28827_s3 + $0x1d4] ss:$8 sps:$4 sm:$0xff]  }
 0x7a5   :  { %28978 = vst [vmem:[#allocation12_spill] sm:$0xff] %v27562_v6 }
 0x7a7   :  { %14084 = vmatpush1.bf16.msra.mxu0 %v22920_v11  ;;  %16103 = vmatpush1.bf16.msra.mxu1 %v22920_v11  ;;  %v27274_v11 = vld [vmem:[%s28827_s3 + $0x114] ss:$8 sps:$4 sm:$0xff]  }
 0x7a8   :  { %14085 = vmatprep.subr.bf16.mxu0 %v22925_v13  ;;  %16104 = vmatprep.subr.bf16.mxu1 %v22925_v13  ;;  %v27279_v13 = vld [vmem:[%s28827_s3 + $0x14] ss:$8 sps:$4 sm:$0xff]  }
 0x7ab   :  { %14086 = vmatpush1.bf16.msra.mxu0 %v22923_v14  ;;  %16105 = vmatpush1.bf16.msra.mxu1 %v22923_v14  ;;  %v16505_v14 = vrot.slane %v16491_v44, %v23464_v16  ;;  %v27581_v44 = vld [vmem:[%s28827_s3 + $0xd0] ss:$8 sps:$4 sm:$0xff]  }
 0x7ac   :  { %14087 = vmatprep.subr.bf16.mxu0 %v22928_v15  ;;  %16106 = vmatprep.subr.bf16.mxu1 %v22928_v15  ;;  %v27286_v15 = vld [vmem:[%s28827_s3 + $0x110] ss:$8 sps:$4 sm:$0xff]   ;;  %28981 = vst [vmem:[#allocation15_spill] sm:$0xff] %v27581_v44 }
 0x7af   :  { %14088 = vmatpush1.bf16.msra.mxu0 %v22926_v17  ;;  %16107 = vmatpush1.bf16.msra.mxu1 %v22926_v17  ;;  %v27292_v17 = vld [vmem:[%s28827_s3 + $0x10] ss:$8 sps:$4 sm:$0xff]  }
 0x7b0   :  { %14089 = vmatprep.subr.bf16.mxu0 %v22931_v20  ;;  %16108 = vmatprep.subr.bf16.mxu1 %v22931_v20  ;;  %v27297_v20 = vld [vmem:[%s28827_s3 + $0x124] ss:$8 sps:$4 sm:$0xff]  }
 0x7b3   :  { %14090 = vmatpush1.bf16.msra.mxu0 %v22929_v21  ;;  %16109 = vmatpush1.bf16.msra.mxu1 %v22929_v21  ;;  %v27304_v21 = vld [vmem:[%s28827_s3 + $0x24] ss:$8 sps:$4 sm:$0xff]  }
 0x7b4   :  { %14091 = vmatprep.subr.bf16.mxu0 %v22934_v3  ;;  %16110 = vmatprep.subr.bf16.mxu1 %v22934_v3  ;;  %v27310_v3 = vld [vmem:[%s28827_s3 + $0x120] ss:$8 sps:$4 sm:$0xff]  }
 0x7b7   :  { %14092 = vmatpush1.bf16.msra.mxu0 %v22932_v22  ;;  %16111 = vmatpush1.bf16.msra.mxu1 %v22932_v22  ;;  %v27317_v22 = vld [vmem:[%s28827_s3 + $0x20] ss:$8 sps:$4 sm:$0xff]  }
 0x7b8   :  { %14093 = vmatprep.subr.bf16.mxu0 %v22937_v24  ;;  %16112 = vmatprep.subr.bf16.mxu1 %v22937_v24  ;;  %v27322_v24 = vld [vmem:[%s28827_s3 + $0x134] ss:$8 sps:$4 sm:$0xff]  }
 0x7bb   :  { %14094 = vmatpush1.bf16.msra.mxu0 %v22935_v27  ;;  %16113 = vmatpush1.bf16.msra.mxu1 %v22935_v27  ;;  %v27328_v27 = vld [vmem:[%s28827_s3 + $0x34] ss:$8 sps:$4 sm:$0xff]  }
 0x7bc   :  { %14095 = vmatprep.subr.bf16.mxu0 %v22940_v63  ;;  %16114 = vmatprep.subr.bf16.mxu1 %v22940_v63  ;;  %v27334_v63 = vld [vmem:[%s28827_s3 + $0x130] ss:$8 sps:$4 sm:$0xff]  }
 0x7bf   :  { %14096 = vmatpush1.bf16.msra.mxu0 %v22938_v0  ;;  %16115 = vmatpush1.bf16.msra.mxu1 %v22938_v0  ;;  %v27341_v0 = vld [vmem:[%s28827_s3 + $0x30] ss:$8 sps:$4 sm:$0xff]  }
 0x7c0   :  { %14106 = vmatprep.subr.bf16.mxu0 %v22944_v28  ;;  %16125 = vmatprep.subr.bf16.mxu1 %v22944_v28  ;;  %v27346_v28 = vld [vmem:[%s28827_s3 + $0x144] ss:$8 sps:$4 sm:$0xff]  }
 0x7c2   :  { %14098 = vmatmul.mubr.bf16.vlgmr.msra.gmra.mrb[12].mxu0 %v27131_v29  ;;  %16117 = vmatmul.mubr.bf16.vlgmr.msra.gmra.mrb[12].mxu1 %v27135_v30  ;;  %v27352_v29 = vld [vmem:[%s28827_s3 + $0x44] ss:$8 sps:$4 sm:$0xff]   ;;  %v27358_v30 = vld [vmem:[%s28827_s3 + $0x140] ss:$8 sps:$4 sm:$0xff]  }
 0x7c3   :  { %14107 = vmatpush1.bf16.msra.mxu0 %v22942_v31  ;;  %16126 = vmatpush1.bf16.msra.mxu1 %v22942_v31  ;;  %v27365_v31 = vld [vmem:[%s28827_s3 + $0x40] ss:$8 sps:$4 sm:$0xff]  }
 0x7c4   :  { %14108 = vmatprep.subr.bf16.mxu0 %v22948_v32  ;;  %16127 = vmatprep.subr.bf16.mxu1 %v22948_v32  ;;  %v27370_v32 = vld [vmem:[%s28827_s3 + $0x154] ss:$8 sps:$4 sm:$0xff]  }
 0x7c5   :  { %14138 = vmatprep.mubr.bf16.mxu0 %v12522_v33  ;;  %16157 = vmatprep.mubr.bf16.mxu1 %v14541_v34  ;;  %v27376_v33 = vld [vmem:[%s28827_s3 + $0x54] ss:$8 sps:$4 sm:$0xff]   ;;  %v27382_v34 = vld [vmem:[%s28827_s3 + $0x150] ss:$8 sps:$4 sm:$0xff]  }
 0x7c7   :  { %14109 = vmatpush1.bf16.msra.mxu0 %v22946_v35  ;;  %16128 = vmatpush1.bf16.msra.mxu1 %v22946_v35  ;;  %v27389_v35 = vld [vmem:[%s28827_s3 + $0x50] ss:$8 sps:$4 sm:$0xff]  }
 0x7c8   :  { %14110 = vmatprep.subr.bf16.mxu0 %v22951_v36  ;;  %16129 = vmatprep.subr.bf16.mxu1 %v22951_v36  ;;  %v27394_v36 = vld [vmem:[%s28827_s3 + $0x164] ss:$8 sps:$4 sm:$0xff]  }
 0x7cb   :  { %14111 = vmatpush1.bf16.msra.mxu0 %v22949_v37  ;;  %16130 = vmatpush1.bf16.msra.mxu1 %v22949_v37  ;;  %v27400_v37 = vld [vmem:[%s28827_s3 + $0x64] ss:$8 sps:$4 sm:$0xff]  }
 0x7cc   :  { %14112 = vmatprep.subr.bf16.mxu0 %v22954_v2  ;;  %16131 = vmatprep.subr.bf16.mxu1 %v22954_v2  ;;  %v27406_v2 = vld [vmem:[%s28827_s3 + $0x160] ss:$8 sps:$4 sm:$0xff]  }
 0x7cf   :  { %14113 = vmatpush1.bf16.msra.mxu0 %v22952_v26  ;;  %16132 = vmatpush1.bf16.msra.mxu1 %v22952_v26  ;;  %v27413_v26 = vld [vmem:[%s28827_s3 + $0x60] ss:$8 sps:$4 sm:$0xff]  }
 0x7d0   :  { %14114 = vmatprep.subr.bf16.mxu0 %v22957_v38  ;;  %16133 = vmatprep.subr.bf16.mxu1 %v22957_v38  ;;  %v27418_v38 = vld [vmem:[%s28827_s3 + $0x174] ss:$8 sps:$4 sm:$0xff]  }
 0x7d3   :  { %14115 = vmatpush1.bf16.msra.mxu0 %v22955_v41  ;;  %16134 = vmatpush1.bf16.msra.mxu1 %v22955_v41  ;;  %v27424_v41 = vld [vmem:[%s28827_s3 + $0x74] ss:$8 sps:$4 sm:$0xff]  }
 0x7d4   :  { %14116 = vmatprep.subr.bf16.mxu0 %v22960_v42  ;;  %16135 = vmatprep.subr.bf16.mxu1 %v22960_v42  ;;  %v27430_v42 = vld [vmem:[%s28827_s3 + $0x170] ss:$8 sps:$4 sm:$0xff]  }
 0x7d7   :  { %14117 = vmatpush1.bf16.msra.mxu0 %v22958_v47  ;;  %16136 = vmatpush1.bf16.msra.mxu1 %v22958_v47  ;;  %v27437_v47 = vld [vmem:[%s28827_s3 + $0x70] ss:$8 sps:$4 sm:$0xff]  }
 0x7d8   :  { %14118 = vmatprep.subr.bf16.mxu0 %v22963_v4  ;;  %16137 = vmatprep.subr.bf16.mxu1 %v22963_v4  ;;  %v27442_v4 = vld [vmem:[%s28827_s3 + $0x184] ss:$8 sps:$4 sm:$0xff]  }
 0x7db   :  { %14119 = vmatpush1.bf16.msra.mxu0 %v22961_v19  ;;  %16138 = vmatpush1.bf16.msra.mxu1 %v22961_v19  ;;  %v27448_v19 = vld [vmem:[%s28827_s3 + $0x84] ss:$8 sps:$4 sm:$0xff]  }
 0x7dc   :  { %14120 = vmatprep.subr.bf16.mxu0 %v22966_v48  ;;  %16139 = vmatprep.subr.bf16.mxu1 %v22966_v48  ;;  %v27454_v48 = vld [vmem:[%s28827_s3 + $0x180] ss:$8 sps:$4 sm:$0xff]  }
 0x7df   :  { %14121 = vmatpush1.bf16.msra.mxu0 %v22964_v49  ;;  %16140 = vmatpush1.bf16.msra.mxu1 %v22964_v49  ;;  %v27461_v49 = vld [vmem:[%s28827_s3 + $0x80] ss:$8 sps:$4 sm:$0xff]  }
 0x7e0   :  { %14122 = vmatprep.subr.bf16.mxu0 %v22969_v25  ;;  %16141 = vmatprep.subr.bf16.mxu1 %v22969_v25  ;;  %v27466_v25 = vld [vmem:[%s28827_s3 + $0x194] ss:$8 sps:$4 sm:$0xff]  }
 0x7e3   :  { %14123 = vmatpush1.bf16.msra.mxu0 %v22967_v1  ;;  %16142 = vmatpush1.bf16.msra.mxu1 %v22967_v1  ;;  %v27472_v1 = vld [vmem:[%s28827_s3 + $0x94] ss:$8 sps:$4 sm:$0xff]  }
 0x7e4   :  { %14124 = vmatprep.subr.bf16.mxu0 %v22972_v50  ;;  %16143 = vmatprep.subr.bf16.mxu1 %v22972_v50  ;;  %v27478_v50 = vld [vmem:[%s28827_s3 + $0x190] ss:$8 sps:$4 sm:$0xff]  }
 0x7e7   :  { %14125 = vmatpush1.bf16.msra.mxu0 %v22970_v51  ;;  %16144 = vmatpush1.bf16.msra.mxu1 %v22970_v51  ;;  %v27485_v51 = vld [vmem:[%s28827_s3 + $0x90] ss:$8 sps:$4 sm:$0xff]  }
 0x7e8   :  { %14126 = vmatprep.subr.bf16.mxu0 %v22975_v52  ;;  %16145 = vmatprep.subr.bf16.mxu1 %v22975_v52  ;;  %v27490_v52 = vld [vmem:[%s28827_s3 + $0x1a4] ss:$8 sps:$4 sm:$0xff]  }
 0x7eb   :  { %14127 = vmatpush1.bf16.msra.mxu0 %v22973_v53  ;;  %16146 = vmatpush1.bf16.msra.mxu1 %v22973_v53  ;;  %v27496_v53 = vld [vmem:[%s28827_s3 + $0xa4] ss:$8 sps:$4 sm:$0xff]  }
 0x7ec   :  { %14128 = vmatprep.subr.bf16.mxu0 %v22978_v54  ;;  %16147 = vmatprep.subr.bf16.mxu1 %v22978_v54  ;;  %v27502_v54 = vld [vmem:[%s28827_s3 + $0x1a0] ss:$8 sps:$4 sm:$0xff]  }
 0x7ef   :  { %14129 = vmatpush1.bf16.msra.mxu0 %v22976_v55  ;;  %16148 = vmatpush1.bf16.msra.mxu1 %v22976_v55  ;;  %v27509_v55 = vld [vmem:[%s28827_s3 + $0xa0] ss:$8 sps:$4 sm:$0xff]  }
 0x7f0   :  { %14130 = vmatprep.subr.bf16.mxu0 %v22981_v56  ;;  %16149 = vmatprep.subr.bf16.mxu1 %v22981_v56  ;;  %v27514_v56 = vld [vmem:[%s28827_s3 + $0x1b4] ss:$8 sps:$4 sm:$0xff]  }
 0x7f3   :  { %14131 = vmatpush1.bf16.msra.mxu0 %v22979_v57  ;;  %16150 = vmatpush1.bf16.msra.mxu1 %v22979_v57  ;;  %v27520_v57 = vld [vmem:[%s28827_s3 + $0xb4] ss:$8 sps:$4 sm:$0xff]  }
 0x7f4   :  { %14132 = vmatprep.subr.bf16.mxu0 %v22984_v58  ;;  %16151 = vmatprep.subr.bf16.mxu1 %v22984_v58  ;;  %v27526_v58 = vld [vmem:[%s28827_s3 + $0x1b0] ss:$8 sps:$4 sm:$0xff]  }
 0x7f7   :  { %14133 = vmatpush1.bf16.msra.mxu0 %v22982_v59  ;;  %16152 = vmatpush1.bf16.msra.mxu1 %v22982_v59  ;;  %v27533_v59 = vld [vmem:[%s28827_s3 + $0xb0] ss:$8 sps:$4 sm:$0xff]  }
 0x7f8   :  { %14134 = vmatprep.subr.bf16.mxu0 %v22987_v45  ;;  %16153 = vmatprep.subr.bf16.mxu1 %v22987_v45  ;;  %v27538_v45 = vld [vmem:[%s28827_s3 + $0x1c4] ss:$8 sps:$4 sm:$0xff]  }
 0x7fb   :  { %14135 = vmatpush1.bf16.msra.mxu0 %v22985_v46  ;;  %16154 = vmatpush1.bf16.msra.mxu1 %v22985_v46  ;;  %v27544_v46 = vld [vmem:[%s28827_s3 + $0xc4] ss:$8 sps:$4 sm:$0xff]  }
 0x7fc   :  { %14136 = vmatprep.subr.bf16.mxu0 %v22990_v60  ;;  %16155 = vmatprep.subr.bf16.mxu1 %v22990_v60  ;;  %28975 = vst [vmem:[#allocation9_spill] sm:$0xff] %v27544_v46  ;;  %v27550_v60 = vld [vmem:[%s28827_s3 + $0x1c0] ss:$8 sps:$4 sm:$0xff]  }
 0x7fd   :  { %28976 = vst [vmem:[#allocation10_spill] sm:$0xff] %v27550_v60 }
 0x7ff   :  { %14137 = vmatpush1.bf16.msra.mxu0 %v22988_v62  ;;  %16156 = vmatpush1.bf16.msra.mxu1 %v22988_v62  ;;  %v27557_v62 = vld [vmem:[%s28827_s3 + $0xc0] ss:$8 sps:$4 sm:$0xff]  }
 0x800   :  { %16442 = vmatprep.subr.bf16.mxu0 %v27243_v39  ;;  %16668 = vmatprep.subr.bf16.mxu1 %v27248_v40  ;;  %28977 = vst [vmem:[#allocation11_spill] sm:$0xff] %v27557_v62 }
 0x802   :  { %14139 = vmatmul.mubr.bf16.vlgmr.msra.gmra.mrb[12].mxu0 %v12520_v7  ;;  %16158 = vmatmul.mubr.bf16.vlgmr.msra.gmra.mrb[12].mxu1 %v14539_v43  ;;  %v27568_v7 = vld [vmem:[%s28827_s3 + $0xd4] ss:$8 sps:$4 sm:$0xff]   ;;  %v27574_v43 = vld [vmem:[%s28827_s3 + $0x1d0] ss:$8 sps:$4 sm:$0xff]  }
 0x803   :  { %16443 = vmatpush1.bf16.msra.mxu0 %v27261_v8  ;;  %16474 = vmatprep.mubr.bf16.mxu0 %v16279_v10  ;;  %28979 = vst [vmem:[#allocation13_spill] sm:$0xff] %v27568_v7  ;;  %28980 = vst [vmem:[#allocation14_spill] sm:$0xff] %v27574_v43  ;;  %v27586_v10 = vld [vmem:[%s28827_s3 + $0x1e4] ss:$8 sps:$4 sm:$0xff]  }
 0x804   :  { %16669 = vmatpush1.bf16.msra.mxu1 %v27267_v9  ;;  %16700 = vmatprep.mubr.bf16.mxu1 %v16505_v14  ;;  %28982 = vst [vmem:[#allocation16_spill] sm:$0xff] %v27586_v10  ;;  %v27592_v14 = vld [vmem:[%s28827_s3 + $0xe4] ss:$8 sps:$4 sm:$0xff]  }
 0x805   :  { %16444 = vmatprep.subr.bf16.mxu0 %v27274_v11  ;;  %16670 = vmatprep.subr.bf16.mxu1 %v27279_v13  ;;  %28983 = vst [vmem:[#allocation17_spill] sm:$0xff] %v27592_v14 }
 0x807   :  { %16445 = vmatpush1.bf16.msra.mxu0 %v27286_v15 }
 0x808   :  { %16671 = vmatpush1.bf16.msra.mxu1 %v27292_v17  ;;  %16446 = vmatprep.subr.bf16.mxu0 %v27297_v20 }
 0x809   :  { %16672 = vmatprep.subr.bf16.mxu1 %v27304_v21 }
 0x80b   :  { %16447 = vmatpush1.bf16.msra.mxu0 %v27310_v3 }
 0x80c   :  { %16673 = vmatpush1.bf16.msra.mxu1 %v27317_v22  ;;  %16448 = vmatprep.subr.bf16.mxu0 %v27322_v24 }
 0x80d   :  { %16674 = vmatprep.subr.bf16.mxu1 %v27328_v27 }
 0x80f   :  { %16449 = vmatpush1.bf16.msra.mxu0 %v27334_v63 }
 0x810   :  { %16675 = vmatpush1.bf16.msra.mxu1 %v27341_v0  ;;  %16450 = vmatprep.subr.bf16.mxu0 %v27346_v28 }
 0x811   :  { %16676 = vmatprep.subr.bf16.mxu1 %v27352_v29 }
 0x813   :  { %16451 = vmatpush1.bf16.msra.mxu0 %v27358_v30 }
 0x814   :  { %16677 = vmatpush1.bf16.msra.mxu1 %v27365_v31  ;;  %16452 = vmatprep.subr.bf16.mxu0 %v27370_v32 }
 0x815   :  { %16678 = vmatprep.subr.bf16.mxu1 %v27376_v33 }
 0x817   :  { %16453 = vmatpush1.bf16.msra.mxu0 %v27382_v34 }
 0x818   :  { %16679 = vmatpush1.bf16.msra.mxu1 %v27389_v35  ;;  %16454 = vmatprep.subr.bf16.mxu0 %v27394_v36 }
 0x819   :  { %16680 = vmatprep.subr.bf16.mxu1 %v27400_v37 }
 0x81b   :  { %16455 = vmatpush1.bf16.msra.mxu0 %v27406_v2 }
 0x81c   :  { %16681 = vmatpush1.bf16.msra.mxu1 %v27413_v26  ;;  %16456 = vmatprep.subr.bf16.mxu0 %v27418_v38 }
 0x81d   :  { %16682 = vmatprep.subr.bf16.mxu1 %v27424_v41 }
 0x81f   :  { %16457 = vmatpush1.bf16.msra.mxu0 %v27430_v42 }
 0x820   :  { %16683 = vmatpush1.bf16.msra.mxu1 %v27437_v47  ;;  %16458 = vmatprep.subr.bf16.mxu0 %v27442_v4 }
 0x821   :  { %16684 = vmatprep.subr.bf16.mxu1 %v27448_v19 }
 0x823   :  { %16459 = vmatpush1.bf16.msra.mxu0 %v27454_v48 }
 0x824   :  { %16685 = vmatpush1.bf16.msra.mxu1 %v27461_v49  ;;  %16460 = vmatprep.subr.bf16.mxu0 %v27466_v25 }
 0x825   :  { %16686 = vmatprep.subr.bf16.mxu1 %v27472_v1 }
 0x827   :  { %16461 = vmatpush1.bf16.msra.mxu0 %v27478_v50 }
 0x828   :  { %16687 = vmatpush1.bf16.msra.mxu1 %v27485_v51  ;;  %16462 = vmatprep.subr.bf16.mxu0 %v27490_v52 }
 0x829   :  { %16688 = vmatprep.subr.bf16.mxu1 %v27496_v53 }
 0x82b   :  { %16463 = vmatpush1.bf16.msra.mxu0 %v27502_v54 }
 0x82c   :  { %16689 = vmatpush1.bf16.msra.mxu1 %v27509_v55  ;;  %16464 = vmatprep.subr.bf16.mxu0 %v27514_v56 }
 0x82d   :  { %16690 = vmatprep.subr.bf16.mxu1 %v27520_v57 }
 0x82f   :  { %16465 = vmatpush1.bf16.msra.mxu0 %v27526_v58 }
 0x830   :  { %16691 = vmatpush1.bf16.msra.mxu1 %v27533_v59  ;;  %16466 = vmatprep.subr.bf16.mxu0 %v27538_v45 }
 0x831   :  { %16692 = vmatprep.subr.bf16.mxu1 %v27544_v46  ;;  %v27671_v46 = vld [vmem:[%s28827_s3 + $0x214] ss:$8 sps:$4 sm:$0xff]  }
 0x832   :  { %28991 = vst [vmem:[#allocation25_spill] sm:$0xff] %v27671_v46 }
 0x833   :  { %16467 = vmatpush1.bf16.msra.mxu0 %v27550_v60  ;;  %v27663_v60 = vld [vmem:[%s28827_s3 + $0x300] ss:$8 sps:$4 sm:$0xff]  }
 0x834   :  { %16693 = vmatpush1.bf16.msra.mxu1 %v27557_v62  ;;  %16468 = vmatprep.subr.bf16.mxu0 %v27562_v6  ;;  %v27644_v6 = vld [vmem:[%s28827_s3 + $0x304] ss:$8 sps:$4 sm:$0xff]  }
 0x835   :  { %16694 = vmatprep.subr.bf16.mxu1 %v27568_v7  ;;  %v27626_v7 = vld.sshfl [vmem:[#allocation2 + $0x6] sm:$0x11 pattern:$0x75316420]  ;;  %28990 = vst [vmem:[#allocation24_spill] sm:$0xff] %v27644_v6 }
 0x836   :  { %v17013_v62 = vcombine.high %v27626_v7, %v27626_v7 }
 0x837   :  { %16469 = vmatpush1.bf16.msra.mxu0 %v27574_v43  ;;  %v27616_v43 = vld [vmem:[%s28827_s3 + $0xf4] ss:$8 sps:$4 sm:$0xff]  }
 0x838   :  { %16695 = vmatpush1.bf16.msra.mxu1 %v27581_v44  ;;  %16470 = vmatprep.subr.bf16.mxu0 %v27586_v10  ;;  %28987 = vst [vmem:[#allocation21_spill] sm:$0xff] %v27616_v43  ;;  %v27618_v44 = vld.sshfl [vmem:[#allocation2 + $0x4] sm:$0x11 pattern:$0x75316420] }
 0x839   :  { %16696 = vmatprep.subr.bf16.mxu1 %v27592_v14  ;;  %v27624_v10 = vld [vmem:[%s28827_s3 + $0x1f0] ss:$8 sps:$4 sm:$0xff]  }
 0x83a   :  { %28988 = vst [vmem:[#allocation22_spill] sm:$0xff] %v27624_v10  ;;  %v27633_v14 = vld [vmem:[%s28827_s3 + $0xf0] ss:$8 sps:$4 sm:$0xff]  }
 0x83b   :  { %16471 = vmatpush1.bf16.msra.mxu0 %v27598_v12  ;;  %v27638_v12 = vld [vmem:[%s28827_s3 + $0x204] ss:$8 sps:$4 sm:$0xff]  }
 0x83c   :  { %16697 = vmatpush1.bf16.msra.mxu1 %v27605_v23  ;;  %16472 = vmatprep.subr.bf16.mxu0 %v27610_v18  ;;  %28989 = vst [vmem:[#allocation23_spill] sm:$0xff] %v27638_v12  ;;  %v16751_v18 = vcombine.high %v27618_v44, %v27618_v44  ;;  %v27652_v23 = vld [vmem:[%s28827_s3 + $0x200] ss:$8 sps:$4 sm:$0xff]  }
 0x83d   :  { %16698 = vmatprep.subr.bf16.mxu1 %v27616_v43  ;;  %v16272_v43 = vrot.slane %v27233_v61, %v23464_v16 }
 0x83e   :  { %v27674_v61 = vrot.slane %v16751_v18, %v23464_v16  ;;  %v27695_v18 = vld [vmem:[%s28827_s3 + $0x310] ss:$8 sps:$4 sm:$0xff]  }
 0x83f   :  { %16473 = vmatpush1.bf16.msra.mxu0 %v27624_v10  ;;  %v16498_v10 = vrot.slane %v27238_v5, %v23464_v16  ;;  %v27683_v5 = vrot.slane %v17013_v62, %v23464_v16  ;;  %28994 = vst [vmem:[#allocation28_spill] sm:$0xff] %v27695_v18  ;;  %v27707_v62 = vld [vmem:[%s28827_s3 + $0x324] ss:$8 sps:$4 sm:$0xff]  }
 0x840   :  { %16699 = vmatpush1.bf16.msra.mxu1 %v27633_v14  ;;  %16928 = vmatprep.subr.bf16.mxu0 %v27638_v12  ;;  %v27679_v12 = vld [vmem:[%s28827_s3 + $0x314] ss:$8 sps:$4 sm:$0xff]   ;;  %28996 = vst [vmem:[#allocation30_spill] sm:$0xff] %v27707_v62 }
 0x841   :  { %17190 = vmatprep.subr.bf16.mxu1 %v27644_v6  ;;  %28992 = vst [vmem:[#allocation26_spill] sm:$0xff] %v27679_v12  ;;  %v27688_v6 = vld [vmem:[%s28827_s3 + $0x210] ss:$8 sps:$4 sm:$0xff]  }
 0x842   :  { %16475 = vmatmul.mubr.bf16.vlgmr.msra.gmra.mrb[16].mxu0 %v16272_v43  ;;  %28993 = vst [vmem:[#allocation27_spill] sm:$0xff] %v27688_v6  ;;  %v27700_v43 = vld [vmem:[%s28827_s3 + $0x224] ss:$8 sps:$4 sm:$0xff]  }
 0x843   :  { %16701 = vmatmul.mubr.bf16.vlgmr.msra.gmra.mrb[16].mxu1 %v16498_v10  ;;  %16929 = vmatpush1.bf16.msra.mxu0 %v27652_v23  ;;  %28995 = vst [vmem:[#allocation29_spill] sm:$0xff] %v27700_v43  ;;  %v27714_v10 = vld [vmem:[%s28827_s3 + $0x220] ss:$8 sps:$4 sm:$0xff]  }
 0x844   :  { %16960 = vmatprep.mubr.bf16.mxu0 %v27674_v61  ;;  %17191 = vmatpush1.bf16.msra.mxu1 %v27663_v60  ;;  %28997 = vst [vmem:[#allocation31_spill] sm:$0xff] %v27714_v10 }
 0x845   :  { %17222 = vmatprep.mubr.bf16.mxu1 %v27683_v5  ;;  %16930 = vmatprep.subr.bf16.mxu0 %v27671_v46  ;;  %v27721_v46 = vld [vmem:[%s28827_s3 + $0x320] ss:$8 sps:$4 sm:$0xff]  }
 0x846   :  { %17192 = vmatprep.subr.bf16.mxu1 %v27679_v12  ;;  %28998 = vst [vmem:[#allocation32_spill] sm:$0xff] %v27721_v46  ;;  %v27726_v12 = vld [vmem:[%s28827_s3 + $0x234] ss:$8 sps:$4 sm:$0xff]  }
 0x847   :  { %16931 = vmatpush1.bf16.msra.mxu0 %v27688_v6  ;;  %28999 = vst [vmem:[#allocation33_spill] sm:$0xff] %v27726_v12  ;;  %v27732_v6 = vld [vmem:[%s28827_s3 + $0x334] ss:$8 sps:$4 sm:$0xff]  }
 0x848   :  { %17193 = vmatpush1.bf16.msra.mxu1 %v27695_v18  ;;  %16932 = vmatprep.subr.bf16.mxu0 %v27700_v43  ;;  %29000 = vst [vmem:[#allocation34_spill] sm:$0xff] %v27732_v6  ;;  %v27738_v43 = vld [vmem:[%s28827_s3 + $0x230] ss:$8 sps:$4 sm:$0xff]   ;;  %v27750_v18 = vld [vmem:[%s28827_s3 + $0x244] ss:$8 sps:$4 sm:$0xff]  }
 0x849   :  { %17194 = vmatprep.subr.bf16.mxu1 %v27707_v62  ;;  %29001 = vst [vmem:[#allocation35_spill] sm:$0xff] %v27738_v43  ;;  %v27745_v62 = vld [vmem:[%s28827_s3 + $0x330] ss:$8 sps:$4 sm:$0xff]   ;;  %29003 = vst [vmem:[#allocation37_spill] sm:$0xff] %v27750_v18 }
 0x84a   :  { %29002 = vst [vmem:[#allocation36_spill] sm:$0xff] %v27745_v62 }
 0x84b   :  { %16933 = vmatpush1.bf16.msra.mxu0 %v27714_v10  ;;  %v27756_v10 = vld [vmem:[%s28827_s3 + $0x344] ss:$8 sps:$4 sm:$0xff]  }
 0x84c   :  { %17195 = vmatpush1.bf16.msra.mxu1 %v27721_v46  ;;  %16934 = vmatprep.subr.bf16.mxu0 %v27726_v12  ;;  %29004 = vst [vmem:[#allocation38_spill] sm:$0xff] %v27756_v10  ;;  %v27762_v12 = vld [vmem:[%s28827_s3 + $0x240] ss:$8 sps:$4 sm:$0xff]   ;;  %v27774_v46 = vld [vmem:[%s28827_s3 + $0x254] ss:$8 sps:$4 sm:$0xff]  }
 0x84d   :  { %17196 = vmatprep.subr.bf16.mxu1 %v27732_v6  ;;  %29005 = vst [vmem:[#allocation39_spill] sm:$0xff] %v27762_v12  ;;  %v27769_v6 = vld [vmem:[%s28827_s3 + $0x340] ss:$8 sps:$4 sm:$0xff]   ;;  %29007 = vst [vmem:[#allocation41_spill] sm:$0xff] %v27774_v46 }
 0x84e   :  { %29006 = vst [vmem:[#allocation40_spill] sm:$0xff] %v27769_v6 }
 0x84f   :  { %16935 = vmatpush1.bf16.msra.mxu0 %v27738_v43  ;;  %v27780_v43 = vld [vmem:[%s28827_s3 + $0x354] ss:$8 sps:$4 sm:$0xff]  }
 0x850   :  { %17197 = vmatpush1.bf16.msra.mxu1 %v27745_v62  ;;  %16936 = vmatprep.subr.bf16.mxu0 %v27750_v18  ;;  %29008 = vst [vmem:[#allocation42_spill] sm:$0xff] %v27780_v43  ;;  %v27786_v18 = vld [vmem:[%s28827_s3 + $0x250] ss:$8 sps:$4 sm:$0xff]   ;;  %v27798_v62 = vld [vmem:[%s28827_s3 + $0x264] ss:$8 sps:$4 sm:$0xff]  }
 0x851   :  { %17198 = vmatprep.subr.bf16.mxu1 %v27756_v10  ;;  %29009 = vst [vmem:[#allocation43_spill] sm:$0xff] %v27786_v18  ;;  %v27793_v10 = vld [vmem:[%s28827_s3 + $0x350] ss:$8 sps:$4 sm:$0xff]   ;;  %29011 = vst [vmem:[#allocation45_spill] sm:$0xff] %v27798_v62 }
 0x852   :  { %29010 = vst [vmem:[#allocation44_spill] sm:$0xff] %v27793_v10 }
 0x853   :  { %16937 = vmatpush1.bf16.msra.mxu0 %v27762_v12  ;;  %v27804_v12 = vld [vmem:[%s28827_s3 + $0x364] ss:$8 sps:$4 sm:$0xff]  }
 0x854   :  { %17199 = vmatpush1.bf16.msra.mxu1 %v27769_v6  ;;  %16938 = vmatprep.subr.bf16.mxu0 %v27774_v46  ;;  %29012 = vst [vmem:[#allocation46_spill] sm:$0xff] %v27804_v12  ;;  %v27810_v46 = vld [vmem:[%s28827_s3 + $0x260] ss:$8 sps:$4 sm:$0xff]   ;;  %v27822_v6 = vld [vmem:[%s28827_s3 + $0x274] ss:$8 sps:$4 sm:$0xff]  }
 0x855   :  { %17200 = vmatprep.subr.bf16.mxu1 %v27780_v43  ;;  %29013 = vst [vmem:[#allocation47_spill] sm:$0xff] %v27810_v46  ;;  %v27817_v43 = vld [vmem:[%s28827_s3 + $0x360] ss:$8 sps:$4 sm:$0xff]   ;;  %29015 = vst [vmem:[#allocation49_spill] sm:$0xff] %v27822_v6 }
 0x856   :  { %29014 = vst [vmem:[#allocation48_spill] sm:$0xff] %v27817_v43 }
 0x857   :  { %16939 = vmatpush1.bf16.msra.mxu0 %v27786_v18  ;;  %v27828_v18 = vld [vmem:[%s28827_s3 + $0x374] ss:$8 sps:$4 sm:$0xff]  }
 0x858   :  { %17201 = vmatpush1.bf16.msra.mxu1 %v27793_v10  ;;  %16940 = vmatprep.subr.bf16.mxu0 %v27798_v62  ;;  %29016 = vst [vmem:[#allocation50_spill] sm:$0xff] %v27828_v18  ;;  %v27834_v62 = vld [vmem:[%s28827_s3 + $0x270] ss:$8 sps:$4 sm:$0xff]   ;;  %v27846_v10 = vld [vmem:[%s28827_s3 + $0x284] ss:$8 sps:$4 sm:$0xff]  }
 0x859   :  { %17202 = vmatprep.subr.bf16.mxu1 %v27804_v12  ;;  %29017 = vst [vmem:[#allocation51_spill] sm:$0xff] %v27834_v62  ;;  %v27841_v12 = vld [vmem:[%s28827_s3 + $0x370] ss:$8 sps:$4 sm:$0xff]   ;;  %29019 = vst [vmem:[#allocation53_spill] sm:$0xff] %v27846_v10 }
 0x85a   :  { %29018 = vst [vmem:[#allocation52_spill] sm:$0xff] %v27841_v12 }
 0x85b   :  { %16941 = vmatpush1.bf16.msra.mxu0 %v27810_v46  ;;  %v27852_v46 = vld [vmem:[%s28827_s3 + $0x384] ss:$8 sps:$4 sm:$0xff]  }
 0x85c   :  { %17203 = vmatpush1.bf16.msra.mxu1 %v27817_v43  ;;  %16942 = vmatprep.subr.bf16.mxu0 %v27822_v6  ;;  %29020 = vst [vmem:[#allocation54_spill] sm:$0xff] %v27852_v46  ;;  %v27858_v6 = vld [vmem:[%s28827_s3 + $0x280] ss:$8 sps:$4 sm:$0xff]   ;;  %v27870_v43 = vld [vmem:[%s28827_s3 + $0x294] ss:$8 sps:$4 sm:$0xff]  }
 0x85d   :  { %17204 = vmatprep.subr.bf16.mxu1 %v27828_v18  ;;  %29021 = vst [vmem:[#allocation55_spill] sm:$0xff] %v27858_v6  ;;  %v27865_v18 = vld [vmem:[%s28827_s3 + $0x380] ss:$8 sps:$4 sm:$0xff]   ;;  %29023 = vst [vmem:[#allocation57_spill] sm:$0xff] %v27870_v43 }
 0x85e   :  { %29022 = vst [vmem:[#allocation56_spill] sm:$0xff] %v27865_v18 }
 0x85f   :  { %16943 = vmatpush1.bf16.msra.mxu0 %v27834_v62  ;;  %v27876_v62 = vld [vmem:[%s28827_s3 + $0x394] ss:$8 sps:$4 sm:$0xff]  }
 0x860   :  { %17205 = vmatpush1.bf16.msra.mxu1 %v27841_v12  ;;  %16944 = vmatprep.subr.bf16.mxu0 %v27846_v10  ;;  %29024 = vst [vmem:[#allocation58_spill] sm:$0xff] %v27876_v62  ;;  %v27882_v10 = vld [vmem:[%s28827_s3 + $0x290] ss:$8 sps:$4 sm:$0xff]   ;;  %v27894_v12 = vld [vmem:[%s28827_s3 + $0x2a4] ss:$8 sps:$4 sm:$0xff]  }
 0x861   :  { %17206 = vmatprep.subr.bf16.mxu1 %v27852_v46  ;;  %29025 = vst [vmem:[#allocation59_spill] sm:$0xff] %v27882_v10  ;;  %v27889_v46 = vld [vmem:[%s28827_s3 + $0x390] ss:$8 sps:$4 sm:$0xff]   ;;  %29027 = vst [vmem:[#allocation61_spill] sm:$0xff] %v27894_v12 }
 0x862   :  { %29026 = vst [vmem:[#allocation60_spill] sm:$0xff] %v27889_v46 }
 0x863   :  { %16945 = vmatpush1.bf16.msra.mxu0 %v27858_v6  ;;  %v27900_v6 = vld [vmem:[%s28827_s3 + $0x3a4] ss:$8 sps:$4 sm:$0xff]  }
 0x864   :  { %17207 = vmatpush1.bf16.msra.mxu1 %v27865_v18  ;;  %16946 = vmatprep.subr.bf16.mxu0 %v27870_v43  ;;  %29028 = vst [vmem:[#allocation62_spill] sm:$0xff] %v27900_v6  ;;  %v27906_v43 = vld [vmem:[%s28827_s3 + $0x2a0] ss:$8 sps:$4 sm:$0xff]   ;;  %v27918_v18 = vld [vmem:[%s28827_s3 + $0x2b4] ss:$8 sps:$4 sm:$0xff]  }
 0x865   :  { %17208 = vmatprep.subr.bf16.mxu1 %v27876_v62  ;;  %29029 = vst [vmem:[#allocation63_spill] sm:$0xff] %v27906_v43  ;;  %v27913_v62 = vld [vmem:[%s28827_s3 + $0x3a0] ss:$8 sps:$4 sm:$0xff]   ;;  %29031 = vst [vmem:[#allocation65_spill] sm:$0xff] %v27918_v18 }
 0x866   :  { %29030 = vst [vmem:[#allocation64_spill] sm:$0xff] %v27913_v62 }
 0x867   :  { %16947 = vmatpush1.bf16.msra.mxu0 %v27882_v10  ;;  %v27924_v10 = vld [vmem:[%s28827_s3 + $0x3b4] ss:$8 sps:$4 sm:$0xff]  }
 0x868   :  { %17209 = vmatpush1.bf16.msra.mxu1 %v27889_v46  ;;  %16948 = vmatprep.subr.bf16.mxu0 %v27894_v12  ;;  %29032 = vst [vmem:[#allocation66_spill] sm:$0xff] %v27924_v10  ;;  %v27930_v12 = vld [vmem:[%s28827_s3 + $0x2b0] ss:$8 sps:$4 sm:$0xff]   ;;  %v27942_v46 = vld [vmem:[%s28827_s3 + $0x2c4] ss:$8 sps:$4 sm:$0xff]  }
 0x869   :  { %17210 = vmatprep.subr.bf16.mxu1 %v27900_v6  ;;  %29033 = vst [vmem:[#allocation67_spill] sm:$0xff] %v27930_v12  ;;  %v27937_v6 = vld [vmem:[%s28827_s3 + $0x3b0] ss:$8 sps:$4 sm:$0xff]   ;;  %29035 = vst [vmem:[#allocation69_spill] sm:$0xff] %v27942_v46 }
 0x86a   :  { %29034 = vst [vmem:[#allocation68_spill] sm:$0xff] %v27937_v6 }
 0x86b   :  { %16949 = vmatpush1.bf16.msra.mxu0 %v27906_v43  ;;  %v27948_v43 = vld [vmem:[%s28827_s3 + $0x3c4] ss:$8 sps:$4 sm:$0xff]  }
 0x86c   :  { %17211 = vmatpush1.bf16.msra.mxu1 %v27913_v62  ;;  %16950 = vmatprep.subr.bf16.mxu0 %v27918_v18  ;;  %29036 = vst [vmem:[#allocation70_spill] sm:$0xff] %v27948_v43  ;;  %v27954_v18 = vld [vmem:[%s28827_s3 + $0x2c0] ss:$8 sps:$4 sm:$0xff]   ;;  %v27966_v62 = vld [vmem:[%s28827_s3 + $0x2d4] ss:$8 sps:$4 sm:$0xff]  }
 0x86d   :  { %17212 = vmatprep.subr.bf16.mxu1 %v27924_v10  ;;  %29037 = vst [vmem:[#allocation71_spill] sm:$0xff] %v27954_v18  ;;  %v27961_v10 = vld [vmem:[%s28827_s3 + $0x3c0] ss:$8 sps:$4 sm:$0xff]   ;;  %29039 = vst [vmem:[#allocation73_spill] sm:$0xff] %v27966_v62 }
 0x86e   :  { %29038 = vst [vmem:[#allocation72_spill] sm:$0xff] %v27961_v10 }
 0x86f   :  { %16951 = vmatpush1.bf16.msra.mxu0 %v27930_v12  ;;  %v27972_v12 = vld [vmem:[%s28827_s3 + $0x3d4] ss:$8 sps:$4 sm:$0xff]  }
 0x870   :  { %17213 = vmatpush1.bf16.msra.mxu1 %v27937_v6  ;;  %16952 = vmatprep.subr.bf16.mxu0 %v27942_v46  ;;  %29040 = vst [vmem:[#allocation74_spill] sm:$0xff] %v27972_v12  ;;  %v27978_v46 = vld [vmem:[%s28827_s3 + $0x2d0] ss:$8 sps:$4 sm:$0xff]   ;;  %v27990_v6 = vld [vmem:[%s28827_s3 + $0x2e4] ss:$8 sps:$4 sm:$0xff]  }
 0x871   :  { %17214 = vmatprep.subr.bf16.mxu1 %v27948_v43  ;;  %29041 = vst [vmem:[#allocation75_spill] sm:$0xff] %v27978_v46  ;;  %v27985_v43 = vld [vmem:[%s28827_s3 + $0x3d0] ss:$8 sps:$4 sm:$0xff]   ;;  %29043 = vst [vmem:[#allocation77_spill] sm:$0xff] %v27990_v6 }
 0x872   :  { %29042 = vst [vmem:[#allocation76_spill] sm:$0xff] %v27985_v43 }
 0x873   :  { %16953 = vmatpush1.bf16.msra.mxu0 %v27954_v18  ;;  %v27996_v18 = vld [vmem:[%s28827_s3 + $0x3e4] ss:$8 sps:$4 sm:$0xff]  }
 0x874   :  { %17215 = vmatpush1.bf16.msra.mxu1 %v27961_v10  ;;  %16954 = vmatprep.subr.bf16.mxu0 %v27966_v62  ;;  %29044 = vst [vmem:[#allocation78_spill] sm:$0xff] %v27996_v18  ;;  %v28002_v62 = vld [vmem:[%s28827_s3 + $0x2e0] ss:$8 sps:$4 sm:$0xff]   ;;  %v28014_v10 = vld [vmem:[%s28827_s3 + $0x2f4] ss:$8 sps:$4 sm:$0xff]  }
 0x875   :  { %17216 = vmatprep.subr.bf16.mxu1 %v27972_v12  ;;  %29045 = vst [vmem:[#allocation79_spill] sm:$0xff] %v28002_v62  ;;  %v28009_v12 = vld [vmem:[%s28827_s3 + $0x3e0] ss:$8 sps:$4 sm:$0xff]   ;;  %29047 = vst [vmem:[#allocation81_spill] sm:$0xff] %v28014_v10 }
 0x876   :  { %29046 = vst [vmem:[#allocation80_spill] sm:$0xff] %v28009_v12 }
 0x877   :  { %16955 = vmatpush1.bf16.msra.mxu0 %v27978_v46  ;;  %v28020_v46 = vld [vmem:[%s28827_s3 + $0x3f4] ss:$8 sps:$4 sm:$0xff]  }
 0x878   :  { %17217 = vmatpush1.bf16.msra.mxu1 %v27985_v43  ;;  %16956 = vmatprep.subr.bf16.mxu0 %v27990_v6  ;;  %29048 = vst [vmem:[#allocation82_spill] sm:$0xff] %v28020_v46  ;;  %v28026_v6 = vld [vmem:[%s28827_s3 + $0x2f0] ss:$8 sps:$4 sm:$0xff]  }
 0x879   :  { %17218 = vmatprep.subr.bf16.mxu1 %v27996_v18  ;;  %29049 = vst [vmem:[#allocation83_spill] sm:$0xff] %v28026_v6  ;;  %v28033_v18 = vld [vmem:[%s28827_s3 + $0x3f0] ss:$8 sps:$4 sm:$0xff]  }
 0x87a   :  { %29050 = vst [vmem:[#allocation84_spill] sm:$0xff] %v28033_v18 }
 0x87b   :  { %16957 = vmatpush1.bf16.msra.mxu0 %v28002_v62  ;;  %v28040_v62 = vrot.slane %v27618_v44, %v23464_v16  ;;  %v29083_v44 = vld [vmem:[#allocation39_spill] sm:$0xff] }
 0x87c   :  { %17219 = vmatpush1.bf16.msra.mxu1 %v28009_v12  ;;  %16958 = vmatprep.subr.bf16.mxu0 %v28014_v10  ;;  %v28045_v10 = vrot.slane %v27626_v7, %v23464_v16 }
 0x87d   :  { %17220 = vmatprep.subr.bf16.mxu1 %v28020_v46 }
 0x87f   :  { %16959 = vmatpush1.bf16.msra.mxu0 %v28026_v6 }
 0x880   :  { %17221 = vmatpush1.bf16.msra.mxu1 %v28033_v18  ;;  %17275 = vmatprep.subr.bf16.mxu0 %v27243_v39  ;;  %v29051_v39 = vld [vmem:[#allocation9_spill] sm:$0xff] }
 0x881   :  { %17316 = vmatprep.subr.bf16.mxu1 %v27248_v40 }
 0x882   :  { %16961 = vmatmul.mubr.bf16.vlgmr.msra.gmra.mrb[20].mxu0 %v28040_v62 }
 0x883   :  { %17223 = vmatmul.mubr.bf16.vlgmr.msra.gmra.mrb[20].mxu1 %v28045_v10  ;;  %17276 = vmatpush1.bf16.msra.mxu0 %v27261_v8  ;;  %v29052_v8 = vld [vmem:[#allocation10_spill] sm:$0xff] }
 0x884   :  { %17307 = vmatprep.mubr.bf16.mxu0 %v27683_v5  ;;  %17317 = vmatpush1.bf16.msra.mxu1 %v27267_v9  ;;  %v29053_v9 = vld [vmem:[#allocation11_spill] sm:$0xff] }
 0x885   :  { %17348 = vmatprep.mubr.bf16.mxu1 %v27674_v61  ;;  %17277 = vmatprep.subr.bf16.mxu0 %v27274_v11  ;;  %v29054_v11 = vld [vmem:[#allocation12_spill] sm:$0xff] }
 0x886   :  { %17318 = vmatprep.subr.bf16.mxu1 %v27279_v13  ;;  %v29055_v13 = vld [vmem:[#allocation13_spill] sm:$0xff]  ;;  %v29084_v61 = vld [vmem:[#allocation8_spill] sm:$0xff] }
 0x887   :  { %17278 = vmatpush1.bf16.msra.mxu0 %v27286_v15  ;;  %v29056_v15 = vld [vmem:[#allocation14_spill] sm:$0xff] }
 0x888   :  { %17319 = vmatpush1.bf16.msra.mxu1 %v27292_v17  ;;  %17279 = vmatprep.subr.bf16.mxu0 %v27297_v20  ;;  %v29057_v17 = vld [vmem:[#allocation15_spill] sm:$0xff]  ;;  %v29058_v20 = vld [vmem:[#allocation16_spill] sm:$0xff] }
 0x889   :  { %17320 = vmatprep.subr.bf16.mxu1 %v27304_v21  ;;  %v29059_v21 = vld [vmem:[#allocation17_spill] sm:$0xff] }
 0x88b   :  { %17280 = vmatpush1.bf16.msra.mxu0 %v27310_v3  ;;  %v29060_v3 = vld [vmem:[#allocation18_spill] sm:$0xff] }
 0x88c   :  { %17321 = vmatpush1.bf16.msra.mxu1 %v27317_v22  ;;  %17281 = vmatprep.subr.bf16.mxu0 %v27322_v24  ;;  %v28109_v22 = vld.sshfl [vmem:[#allocation2 + $0x8] sm:$0x11 pattern:$0x75316420]  ;;  %v29061_v24 = vld [vmem:[#allocation19_spill] sm:$0xff] }
 0x88d   :  { %17322 = vmatprep.subr.bf16.mxu1 %v27328_v27  ;;  %v29062_v27 = vld [vmem:[#allocation20_spill] sm:$0xff] }
 0x88f   :  { %17282 = vmatpush1.bf16.msra.mxu0 %v27334_v63  ;;  %v28113_v63 = vld.sshfl [vmem:[#allocation2 + $0xa] sm:$0x11 pattern:$0x75316420] }
 0x890   :  { %17323 = vmatpush1.bf16.msra.mxu1 %v27341_v0  ;;  %17283 = vmatprep.subr.bf16.mxu0 %v27346_v28  ;;  %v29063_v0 = vld [vmem:[#allocation21_spill] sm:$0xff]  ;;  %v17366_v28 = vcombine.high %v28109_v22, %v28109_v22 }
 0x891   :  { %17324 = vmatprep.subr.bf16.mxu1 %v27352_v29  ;;  %v29064_v29 = vld [vmem:[#allocation22_spill] sm:$0xff] }
 0x893   :  { %17284 = vmatpush1.bf16.msra.mxu0 %v27358_v30  ;;  %v17435_v30 = vcombine.high %v28113_v63, %v28113_v63 }
 0x894   :  { %17325 = vmatpush1.bf16.msra.mxu1 %v27365_v31  ;;  %17285 = vmatprep.subr.bf16.mxu0 %v27370_v32  ;;  %v29065_v31 = vld [vmem:[#allocation23_spill] sm:$0xff]  ;;  %v29066_v32 = vld [vmem:[#allocation24_spill] sm:$0xff] }
 0x895   :  { %17326 = vmatprep.subr.bf16.mxu1 %v27376_v33  ;;  %v28126_v33 = vrot.slane %v17366_v28, %v23464_v16 }
 0x897   :  { %17286 = vmatpush1.bf16.msra.mxu0 %v27382_v34  ;;  %v28131_v34 = vrot.slane %v17435_v30, %v23464_v16 }
 0x898   :  { %17327 = vmatpush1.bf16.msra.mxu1 %v27389_v35  ;;  %17287 = vmatprep.subr.bf16.mxu0 %v27394_v36  ;;  %v29068_v35 = vld [vmem:[#allocation25_spill] sm:$0xff]  ;;  %v29069_v36 = vld [vmem:[#allocation26_spill] sm:$0xff] }
 0x899   :  { %17328 = vmatprep.subr.bf16.mxu1 %v27400_v37  ;;  %29067 = vst [vmem:[#allocation9_spill] sm:$0xff] %v28131_v34  ;;  %v29070_v37 = vld [vmem:[#allocation27_spill] sm:$0xff] }
 0x89b   :  { %17288 = vmatpush1.bf16.msra.mxu0 %v27406_v2  ;;  %v29071_v2 = vld [vmem:[#allocation28_spill] sm:$0xff] }
 0x89c   :  { %17329 = vmatpush1.bf16.msra.mxu1 %v27413_v26  ;;  %17289 = vmatprep.subr.bf16.mxu0 %v27418_v38  ;;  %v29072_v26 = vld [vmem:[#allocation29_spill] sm:$0xff]  ;;  %v29074_v38 = vld [vmem:[#allocation31_spill] sm:$0xff] }
 0x89d   :  { %17330 = vmatprep.subr.bf16.mxu1 %v27424_v41  ;;  %v29075_v41 = vld [vmem:[#allocation32_spill] sm:$0xff] }
 0x89f   :  { %17290 = vmatpush1.bf16.msra.mxu0 %v27430_v42  ;;  %v29076_v42 = vld [vmem:[#allocation33_spill] sm:$0xff] }
 0x8a0   :  { %17331 = vmatpush1.bf16.msra.mxu1 %v27437_v47  ;;  %17291 = vmatprep.subr.bf16.mxu0 %v27442_v4  ;;  %v29077_v4 = vld [vmem:[#allocation34_spill] sm:$0xff] }
 0x8a1   :  { %17332 = vmatprep.subr.bf16.mxu1 %v27448_v19 }
 0x8a3   :  { %17292 = vmatpush1.bf16.msra.mxu0 %v27454_v48  ;;  %v29078_v48 = vld [vmem:[#allocation35_spill] sm:$0xff] }
 0x8a4   :  { %17333 = vmatpush1.bf16.msra.mxu1 %v27461_v49  ;;  %17293 = vmatprep.subr.bf16.mxu0 %v27466_v25  ;;  %v12411_v25 = vld [vmem:[%s28826_s2] sm:$0x3] }
 0x8a5   :  { %17334 = vmatprep.subr.bf16.mxu1 %v27472_v1  ;;  %v12420_v5 = vrot.slane %v12411_v25, %v29084_v61 }
 0x8a7   :  { %17294 = vmatpush1.bf16.msra.mxu0 %v27478_v50  ;;  %v14430_v50 = vld [vmem:[%s28826_s2] sm:$0x3] }
 0x8a8   :  { %17335 = vmatpush1.bf16.msra.mxu1 %v27485_v51  ;;  %17295 = vmatprep.subr.bf16.mxu0 %v27490_v52  ;;  %v29079_v52 = vld [vmem:[#allocation36_spill] sm:$0xff] }
 0x8a9   :  { %17336 = vmatprep.subr.bf16.mxu1 %v27496_v53 }
 0x8ab   :  { %17296 = vmatpush1.bf16.msra.mxu0 %v27502_v54  ;;  %v29080_v54 = vld [vmem:[#allocation37_spill] sm:$0xff] }
 0x8ac   :  { %17337 = vmatpush1.bf16.msra.mxu1 %v27509_v55  ;;  %17297 = vmatprep.subr.bf16.mxu0 %v27514_v56  ;;  %v29081_v56 = vld [vmem:[#allocation38_spill] sm:$0xff] }
 0x8ad   :  { %17338 = vmatprep.subr.bf16.mxu1 %v27520_v57 }
 0x8af   :  { %17298 = vmatpush1.bf16.msra.mxu0 %v27526_v58  ;;  %v29082_v58 = vld [vmem:[#allocation7_spill] sm:$0xff] }
 0x8b0   :  { %17339 = vmatpush1.bf16.msra.mxu1 %v27533_v59  ;;  %17299 = vmatprep.subr.bf16.mxu0 %v27538_v45  ;;  %v12416_v45 = vrot.slane %v12411_v25, %v29082_v58  ;;  %v14435_v7 = vrot.slane %v14430_v50, %v29082_v58 }
 0x8b1   :  { %17340 = vmatprep.subr.bf16.mxu1 %v29051_v39 }
 0x8b3   :  { %17300 = vmatpush1.bf16.msra.mxu0 %v29052_v8  ;;  %v29086_v8 = vld [vmem:[#allocation41_spill] sm:$0xff] }
 0x8b4   :  { %17341 = vmatpush1.bf16.msra.mxu1 %v29053_v9  ;;  %17301 = vmatprep.subr.bf16.mxu0 %v29054_v11 }
 0x8b5   :  { %17342 = vmatprep.subr.bf16.mxu1 %v29055_v13 }
 0x8b7   :  { %17302 = vmatpush1.bf16.msra.mxu0 %v29056_v15 }
 0x8b8   :  { %17343 = vmatpush1.bf16.msra.mxu1 %v29057_v17  ;;  %17303 = vmatprep.subr.bf16.mxu0 %v29058_v20  ;;  %v29087_v20 = vld [vmem:[#allocation42_spill] sm:$0xff] }
 0x8b9   :  { %17344 = vmatprep.subr.bf16.mxu1 %v29059_v21 }
 0x8bb   :  { %17304 = vmatpush1.bf16.msra.mxu0 %v29060_v3 }
 0x8bc   :  { %17345 = vmatpush1.bf16.msra.mxu1 %v29061_v24  ;;  %17305 = vmatprep.subr.bf16.mxu0 %v29062_v27 }
 0x8bd   :  { %17346 = vmatprep.subr.bf16.mxu1 %v29063_v0 }
 0x8bf   :  { %17306 = vmatpush1.bf16.msra.mxu0 %v29064_v29 }
 0x8c0   :  { %17347 = vmatpush1.bf16.msra.mxu1 %v27633_v14  ;;  %17383 = vmatprep.subr.bf16.mxu0 %v29065_v31 }
 0x8c1   :  { %17452 = vmatprep.subr.bf16.mxu1 %v29066_v32 }
 0x8c2   :  { %17308 = vmatmul.mubr.bf16.vlgmr.msra.gmra.mrb[24].mxu0 %v28045_v10  ;;  %v29085_v10 = vld [vmem:[#allocation40_spill] sm:$0xff] }
 0x8c3   :  { %17349 = vmatmul.mubr.bf16.vlgmr.msra.gmra.mrb[24].mxu1 %v28040_v62  ;;  %17384 = vmatpush1.bf16.msra.mxu0 %v27652_v23  ;;  %v29073_v23 = vld [vmem:[#allocation30_spill] sm:$0xff]  ;;  %v14439_v62 = vrot.slane %v14430_v50, %v29084_v61 }
 0x8c4   :  { %17415 = vmatprep.mubr.bf16.mxu0 %v28126_v33  ;;  %17453 = vmatpush1.bf16.msra.mxu1 %v27663_v60 }
 0x8c5   :  { %17484 = vmatprep.mubr.bf16.mxu1 %v28131_v34  ;;  %17385 = vmatprep.subr.bf16.mxu0 %v29068_v35 }
 0x8c6   :  { %17454 = vmatprep.subr.bf16.mxu1 %v29069_v36 }
 0x8c7   :  { %17386 = vmatpush1.bf16.msra.mxu0 %v29070_v37 }
 0x8c8   :  { %17455 = vmatpush1.bf16.msra.mxu1 %v29071_v2  ;;  %17387 = vmatprep.subr.bf16.mxu0 %v29072_v26  ;;  %v29088_v26 = vld [vmem:[#allocation43_spill] sm:$0xff] }
 0x8c9   :  { %17456 = vmatprep.subr.bf16.mxu1 %v29073_v23 }
 0x8cb   :  { %17388 = vmatpush1.bf16.msra.mxu0 %v29074_v38 }
 0x8cc   :  { %17457 = vmatpush1.bf16.msra.mxu1 %v29075_v41  ;;  %17389 = vmatprep.subr.bf16.mxu0 %v29076_v42 }
 0x8cd   :  { %17458 = vmatprep.subr.bf16.mxu1 %v29077_v4 }
 0x8cf   :  { %17390 = vmatpush1.bf16.msra.mxu0 %v29078_v48  ;;  %v29089_v48 = vld [vmem:[#allocation44_spill] sm:$0xff] }
 0x8d0   :  { %17459 = vmatpush1.bf16.msra.mxu1 %v29079_v52  ;;  %17391 = vmatprep.subr.bf16.mxu0 %v29080_v54  ;;  %v29090_v54 = vld [vmem:[#allocation45_spill] sm:$0xff] }
 0x8d1   :  { %17460 = vmatprep.subr.bf16.mxu1 %v29081_v56 }
 0x8d3   :  { %17392 = vmatpush1.bf16.msra.mxu0 %v29083_v44 }
 0x8d4   :  { %17461 = vmatpush1.bf16.msra.mxu1 %v29085_v10  ;;  %17393 = vmatprep.subr.bf16.mxu0 %v29086_v8 }
 0x8d5   :  { %v14140_v11 = vpop.f32.mrb[12].mxu0  ;;  %v16159_v15 = vpop.f32.mrb[12].mxu1  ;;  %17462 = vmatprep.subr.bf16.mxu1 %v29087_v20 }
 0x8d6   :  { %v21208_v3 = vadd.f32 %v14140_v11, %v12416_v45  ;;  %v21210_v27 = vadd.f32 %v16159_v15, %v14435_v7  ;;  %v14142_v28 = vpop.f32.mrb[13].mxu0  ;;  %v16161_v29 = vpop.f32.mrb[13].mxu1  ;;  %v29091_v45 = vld [vmem:[#allocation46_spill] sm:$0xff]  ;;  %v29094_v15 = vld [vmem:[#allocation49_spill] sm:$0xff] }
 0x8d7   :  { %v21209_v30 = vadd.f32 %v14142_v28, %v12420_v5  ;;  %v21211_v31 = vadd.f32 %v16161_v29, %v14439_v62  ;;  %v14144_v35 = vpop.f32.mrb[14].mxu0  ;;  %v16163_v37 = vpop.f32.mrb[14].mxu1  ;;  %17394 = vmatpush1.bf16.msra.mxu0 %v29088_v26  ;;  %v29092_v5 = vld [vmem:[#allocation47_spill] sm:$0xff]  ;;  %v29093_v62 = vld [vmem:[#allocation48_spill] sm:$0xff]  ;;  %v29095_v28 = vld [vmem:[#allocation50_spill] sm:$0xff] }
 0x8d8   :  { %v14147_v38 = vmax.f32 %v21208_v3, 0.0  ;;  %v16166_v42 = vmax.f32 %v21210_v27, 0.0  ;;  %17463 = vmatpush1.bf16.msra.mxu1 %v29089_v48  ;;  %v14145_v25 = vpop.f32.mrb[15].mxu0  ;;  %v16164_v50 = vpop.f32.mrb[15].mxu1  ;;  %17395 = vmatprep.subr.bf16.mxu0 %v29090_v54  ;;  %v29096_v29 = vld [vmem:[#allocation51_spill] sm:$0xff]  ;;  %v29099_v35 = vld [vmem:[#allocation54_spill] sm:$0xff] }
 0x8d9   :  { %v14148_v44 = vmax.f32 %v21209_v30, 0.0  ;;  %v16167_v8 = vmax.f32 %v21211_v31, 0.0  ;;  %17464 = vmatprep.subr.bf16.mxu1 %v29091_v45  ;;  %v29097_v30 = vld [vmem:[#allocation52_spill] sm:$0xff]  ;;  %v29098_v31 = vld [vmem:[#allocation53_spill] sm:$0xff]  ;;  %v29100_v37 = vld [vmem:[#allocation55_spill] sm:$0xff] }
 0x8da   :  { %v29101_v26 = vld [vmem:[#allocation56_spill] sm:$0xff]  ;;  %v29104_v25 = vld [vmem:[#allocation59_spill] sm:$0xff]  ;;  %v29106_v54 = vld [vmem:[#allocation61_spill] sm:$0xff] }
 0x8db   :  { %v20519_v7 = vpack.c.bf16 %v14148_v44, %v14147_v38  ;;  %v20779_v11 = vpack.c.bf16 %v16167_v8, %v16166_v42  ;;  %17396 = vmatpush1.bf16.msra.mxu0 %v29092_v5  ;;  %v29102_v38 = vld [vmem:[#allocation57_spill] sm:$0xff]  ;;  %v29103_v42 = vld [vmem:[#allocation58_spill] sm:$0xff]  ;;  %v29105_v50 = vld [vmem:[#allocation60_spill] sm:$0xff] }
 0x8dc   :  { %17465 = vmatpush1.bf16.msra.mxu1 %v29093_v62  ;;  %17397 = vmatprep.subr.bf16.mxu0 %v29094_v15  ;;  %v29107_v44 = vld [vmem:[#allocation62_spill] sm:$0xff]  ;;  %v29108_v8 = vld [vmem:[#allocation63_spill] sm:$0xff] }
 0x8dd   :  { %v14160_v3 = vrot.slane %v20519_v7, %v23464_v16  ;;  %v16179_v27 = vrot.slane %v20779_v11, %v23464_v16  ;;  %17466 = vmatprep.subr.bf16.mxu1 %v29095_v28  ;;  %v29109_v7 = vld [vmem:[#allocation64_spill] sm:$0xff]  ;;  %v29110_v11 = vld [vmem:[#allocation65_spill] sm:$0xff]  ;;  %v29111_v5 = vld [vmem:[#allocation66_spill] sm:$0xff] }
 0x8de   :  { %v29112_v15 = vld [vmem:[#allocation67_spill] sm:$0xff] }
 0x8df   :  { %20520 = vst.sshfl [vmem:[#allocation2 + $0xc] sm:$0x5 pattern:$0x73625140] %v14160_v3  ;;  %17398 = vmatpush1.bf16.msra.mxu0 %v29096_v29  ;;  %v29113_v3 = vld [vmem:[#allocation68_spill] sm:$0xff]  ;;  %v29115_v29 = vld [vmem:[#allocation70_spill] sm:$0xff] }
 0x8e0   :  { %20780 = vst.sshfl [vmem:[#allocation2 + $0xe] sm:$0x5 pattern:$0x73625140] %v16179_v27  ;;  %17467 = vmatpush1.bf16.msra.mxu1 %v29097_v30  ;;  %17399 = vmatprep.subr.bf16.mxu0 %v29098_v31  ;;  %v29114_v27 = vld [vmem:[#allocation69_spill] sm:$0xff]  ;;  %v29123_v31 = vld [vmem:[#allocation79_spill] sm:$0xff] }
 0x8e1   :  { %17468 = vmatprep.subr.bf16.mxu1 %v29099_v35 }
 0x8e3   :  { %17400 = vmatpush1.bf16.msra.mxu0 %v29100_v37  ;;  %v29120_v37 = vld [vmem:[#allocation75_spill] sm:$0xff] }
 0x8e4   :  { %17469 = vmatpush1.bf16.msra.mxu1 %v29101_v26  ;;  %17401 = vmatprep.subr.bf16.mxu0 %v29102_v38  ;;  %v29118_v38 = vld [vmem:[#allocation73_spill] sm:$0xff] }
 0x8e5   :  { %17470 = vmatprep.subr.bf16.mxu1 %v29103_v42 }
 0x8e7   :  { %17402 = vmatpush1.bf16.msra.mxu0 %v29104_v25  ;;  %v29116_v25 = vld [vmem:[#allocation71_spill] sm:$0xff] }
 0x8e8   :  { %17471 = vmatpush1.bf16.msra.mxu1 %v29105_v50  ;;  %17403 = vmatprep.subr.bf16.mxu0 %v29106_v54  ;;  %v29117_v54 = vld [vmem:[#allocation72_spill] sm:$0xff] }
 0x8e9   :  { %17472 = vmatprep.subr.bf16.mxu1 %v29107_v44 }
 0x8eb   :  { %17404 = vmatpush1.bf16.msra.mxu0 %v29108_v8  ;;  %v29119_v8 = vld [vmem:[#allocation74_spill] sm:$0xff] }
 0x8ec   :  { %17473 = vmatpush1.bf16.msra.mxu1 %v29109_v7  ;;  %17405 = vmatprep.subr.bf16.mxu0 %v29110_v11  ;;  %v29121_v11 = vld [vmem:[#allocation77_spill] sm:$0xff] }
 0x8ed   :  { %17474 = vmatprep.subr.bf16.mxu1 %v29111_v5 }
 0x8ef   :  { %17406 = vmatpush1.bf16.msra.mxu0 %v29112_v15  ;;  %v29122_v15 = vld [vmem:[#allocation78_spill] sm:$0xff] }
 0x8f0   :  { %17475 = vmatpush1.bf16.msra.mxu1 %v29113_v3  ;;  %17407 = vmatprep.subr.bf16.mxu0 %v29114_v27  ;;  %v29124_v27 = vld [vmem:[#allocation81_spill] sm:$0xff] }
 0x8f1   :  { %17476 = vmatprep.subr.bf16.mxu1 %v29115_v29  ;;  %v23205_v29 = vld [vmem:[%s28829_s5 + $0xb0] sm:$0xff]  }
 0x8f3   :  { %17408 = vmatpush1.bf16.msra.mxu0 %v29116_v25 }
 0x8f4   :  { %17477 = vmatpush1.bf16.msra.mxu1 %v29117_v54  ;;  %17409 = vmatprep.subr.bf16.mxu0 %v29118_v38  ;;  %v28969_v38 = vmov 0   ;;  %v29126_v54 = vmov 0  }
 0x8f5   :  { %17478 = vmatprep.subr.bf16.mxu1 %v29119_v8 }
 0x8f7   :  { %17410 = vmatpush1.bf16.msra.mxu0 %v29120_v37  ;;  %v28210_v37 = vrot.slane %v28109_v22, %v23464_v16  ;;  %v23184_v22 = vld [vmem:[%s28829_s5 + $0x8] sm:$0xff]  }
 0x8f8   :  { %17479 = vmatpush1.bf16.msra.mxu1 %v27985_v43  ;;  %17411 = vmatprep.subr.bf16.mxu0 %v29121_v11  ;;  %v23183_v11 = vld [vmem:[%s28829_s5] sm:$0xff]   ;;  %v23190_v43 = vld [vmem:[%s28829_s5 + $0x38] sm:$0xff]  }
 0x8f9   :  { %17480 = vmatprep.subr.bf16.mxu1 %v29122_v15 }
 0x8fb   :  { %17412 = vmatpush1.bf16.msra.mxu0 %v29123_v31 }
 0x8fc   :  { %17481 = vmatpush1.bf16.msra.mxu1 %v28009_v12  ;;  %17413 = vmatprep.subr.bf16.mxu0 %v29124_v27  ;;  %v28218_v27 = vrot.slane %v28113_v63, %v23464_v16  ;;  %v23186_v63 = vld [vmem:[%s28829_s5 + $0x18] sm:$0xff]  }
 0x8fd   :  { %17482 = vmatprep.subr.bf16.mxu1 %v28020_v46 }
 0x8fe   :  { %29125 = vst [vmem:[#allocation10_spill] sm:$0xff] %v28218_v27 }
 0x8ff   :  { %17414 = vmatpush1.bf16.msra.mxu0 %v28026_v6  ;;  %v23185_v6 = vld [vmem:[%s28829_s5 + $0x10] sm:$0xff]  }
 0x900   :  { %17483 = vmatpush1.bf16.msra.mxu1 %v28033_v18  ;;  %17602 = vmatprep.subr.bf16.mxu0 %v28969_v38 }
 0x901   :  { %17717 = vmatprep.subr.bf16.mxu1 %v28969_v38 }
 0x902   :  { %17416 = vmatmul.mubr.bf16.vlgmr.msra.gmra.mrb[28].mxu0 %v28210_v37 }
 0x903   :  { %17485 = vmatmul.mubr.bf16.vlgmr.msra.gmra.mrb[28].mxu1 %v28218_v27 }
 0x904   :  { %17718 = vmatpush1.bf16.msra.mxu1 %v23183_v11  ;;  %v23187_v11 = vld [vmem:[%s28829_s5 + $0x20] sm:$0xff]  }
 0x905   :  { %17719 = vmatprep.subr.bf16.mxu1 %v28969_v38 }
 0x908   :  { %17720 = vmatpush1.bf16.msra.mxu1 %v23184_v22  ;;  %v23188_v22 = vld [vmem:[%s28829_s5 + $0x28] sm:$0xff]  }
 0x909   :  { %17721 = vmatprep.subr.bf16.mxu1 %v28969_v38 }
 0x90c   :  { %17722 = vmatpush1.bf16.msra.mxu1 %v23185_v6 }
 0x90d   :  { %17723 = vmatprep.subr.bf16.mxu1 %v28969_v38 }
 0x910   :  { %17724 = vmatpush1.bf16.msra.mxu1 %v23186_v63 }
 0x911   :  { %17725 = vmatprep.subr.bf16.mxu1 %v28969_v38 }
 0x914   :  { %17726 = vmatpush1.bf16.msra.mxu1 %v23187_v11  ;;  %v23189_v11 = vld [vmem:[%s28829_s5 + $0x30] sm:$0xff]  }
 0x915   :  { %v16476_v31 = vpop.f32.mrb[16].mxu0  ;;  %17727 = vmatprep.subr.bf16.mxu1 %v28969_v38 }
 0x916   :  { %v16702_v6 = vpop.f32.mrb[16].mxu1  ;;  %v16478_v25 = vpop.f32.mrb[17].mxu0 }
 0x917   :  { %v16703_v27 = vadd.f32 %v16702_v6, %v16476_v31  ;;  %v16704_v34 = vpop.f32.mrb[17].mxu1  ;;  %v16480_v18 = vpop.f32.mrb[18].mxu0  ;;  %v23196_v31 = vld [vmem:[%s28829_s5 + $0x68] sm:$0xff]   ;;  %v23201_v6 = vld [vmem:[%s28829_s5 + $0x90] sm:$0xff]  }
 0x918   :  { %v16705_v63 = vadd.f32 %v16704_v34, %v16478_v25  ;;  %v16706_v46 = vpop.f32.mrb[18].mxu1  ;;  %v16481_v12 = vpop.f32.mrb[19].mxu0  ;;  %17728 = vmatpush1.bf16.msra.mxu1 %v23188_v22  ;;  %v23193_v18 = vld [vmem:[%s28829_s5 + $0x50] sm:$0xff]   ;;  %v23195_v34 = vld [vmem:[%s28829_s5 + $0x60] sm:$0xff]   ;;  %v23200_v22 = vld [vmem:[%s28829_s5 + $0x88] sm:$0xff]  }
 0x919   :  { %v16707_v15 = vpop.f32.mrb[19].mxu1  ;;  %17729 = vmatprep.subr.bf16.mxu1 %v28969_v38  ;;  %v23191_v12 = vld [vmem:[%s28829_s5 + $0x40] sm:$0xff]   ;;  %v23192_v46 = vld [vmem:[%s28829_s5 + $0x48] sm:$0xff]   ;;  %17603 = vmatpush1.bf16.msra.mxu0 %v23195_v34  ;;  %v23197_v25 = vld [vmem:[%s28829_s5 + $0x70] sm:$0xff]  }
 0x91a   :  { %17604 = vmatprep.subr.bf16.mxu0 %v28969_v38  ;;  %v23199_v15 = vld [vmem:[%s28829_s5 + $0x80] sm:$0xff]  }
 0x91c   :  { %17730 = vmatpush1.bf16.msra.mxu1 %v23189_v11  ;;  %v23202_v11 = vld [vmem:[%s28829_s5 + $0x98] sm:$0xff]  }
 0x91d   :  { %17731 = vmatprep.subr.bf16.mxu1 %v28969_v38  ;;  %17605 = vmatpush1.bf16.msra.mxu0 %v23196_v31 }
 0x91e   :  { %17606 = vmatprep.subr.bf16.mxu0 %v28969_v38 }
 0x920   :  { %17732 = vmatpush1.bf16.msra.mxu1 %v23190_v43  ;;  %v23194_v43 = vld [vmem:[%s28829_s5 + $0x58] sm:$0xff]  }
 0x921   :  { %17733 = vmatprep.subr.bf16.mxu1 %v28969_v38  ;;  %17607 = vmatpush1.bf16.msra.mxu0 %v23197_v25 }
 0x922   :  { %17608 = vmatprep.subr.bf16.mxu0 %v28969_v38 }
 0x924   :  { %17734 = vmatpush1.bf16.msra.mxu1 %v23191_v12  ;;  %v23203_v12 = vld [vmem:[%s28829_s5 + $0xa0] sm:$0xff]  }
 0x925   :  { %17735 = vmatprep.subr.bf16.mxu1 %v28969_v38 }
 0x928   :  { %17736 = vmatpush1.bf16.msra.mxu1 %v23192_v46  ;;  %v17233_v46 = vld [vmem:[%s28828_s4] sm:$0x3] }
 0x929   :  { %17737 = vmatprep.subr.bf16.mxu1 %v28969_v38  ;;  %v28308_v31 = vrot.slane %v17233_v46, %v29082_v58 }
 0x92c   :  { %17738 = vmatpush1.bf16.msra.mxu1 %v23193_v18 }
 0x92d   :  { %17739 = vmatprep.subr.bf16.mxu1 %v28969_v38 }
 0x930   :  { %17740 = vmatpush1.bf16.msra.mxu1 %v23194_v43 }
 0x931   :  { %17798 = vmatprep.subr.bf16.mxu1 %v27248_v40  ;;  %v23198_v40 = vld [vmem:[%s28829_s5 + $0x78] sm:$0xff]  }
 0x932   :  { %17609 = vmatpush1.bf16.msra.mxu0 %v23198_v40  ;;  %v23204_v40 = vld [vmem:[%s28829_s5 + $0xa8] sm:$0xff]  }
 0x933   :  { %17610 = vmatprep.subr.bf16.mxu0 %v28969_v38 }
 0x936   :  { %17611 = vmatpush1.bf16.msra.mxu0 %v23199_v15 }
 0x937   :  { %17612 = vmatprep.subr.bf16.mxu0 %v28969_v38 }
 0x93a   :  { %17613 = vmatpush1.bf16.msra.mxu0 %v23200_v22 }
 0x93b   :  { %17614 = vmatprep.subr.bf16.mxu0 %v28969_v38 }
 0x93e   :  { %17615 = vmatpush1.bf16.msra.mxu0 %v23201_v6  ;;  %v28314_v6 = vrot.slane %v17233_v46, %v29084_v61 }
 0x93f   :  { %17616 = vmatprep.subr.bf16.mxu0 %v28969_v38 }
 0x942   :  { %17617 = vmatpush1.bf16.msra.mxu0 %v23202_v11 }
 0x943   :  { %17618 = vmatprep.subr.bf16.mxu0 %v28969_v38 }
 0x946   :  { %17619 = vmatpush1.bf16.msra.mxu0 %v23203_v12 }
 0x947   :  { %17620 = vmatprep.subr.bf16.mxu0 %v28969_v38 }
 0x94a   :  { %17621 = vmatpush1.bf16.msra.mxu0 %v23204_v40  ;;  %v23280_v40 = vld [vmem:[%s28827_s3 + $0x10] ss:$8 sps:$4 sm:$0xff]  }
 0x94b   :  { %17622 = vmatprep.subr.bf16.mxu0 %v29126_v54 }
 0x94e   :  { %17623 = vmatpush1.bf16.msra.mxu0 %v23205_v29  ;;  %v23279_v29 = vld [vmem:[%s28827_s3 + $0x14] ss:$8 sps:$4 sm:$0xff]  }
 0x94f   :  { %17624 = vmatprep.subr.bf16.mxu0 %v29126_v54 }
 0x955   :  { %v16962_v18 = vpop.f32.mrb[20].mxu0 }
 0x956   :  { %v16969_v43 = vadd.f32 %v16962_v18, %v16703_v27  ;;  %v17224_v34 = vpop.f32.mrb[20].mxu1  ;;  %v16964_v25 = vpop.f32.mrb[21].mxu0 }
 0x957   :  { %v16970_v15 = vadd.f32 %v16964_v25, %v16705_v63  ;;  %v17226_v22 = vpop.f32.mrb[21].mxu1  ;;  %v16966_v11 = vpop.f32.mrb[22].mxu0 }
 0x958   :  { %v17231_v12 = vadd.f32 %v17224_v34, %v16969_v43  ;;  %v17228_v8 = vpop.f32.mrb[22].mxu1  ;;  %v16967_v38 = vpop.f32.mrb[23].mxu0  ;;  %v23277_v34 = vld [vmem:[%s28827_s3 + $0x104] ss:$8 sps:$4 sm:$0xff]   ;;  %v23284_v11 = vld [vmem:[%s28827_s3 + $0x30] ss:$8 sps:$4 sm:$0xff]  }
 0x959   :  { %v17232_v27 = vadd.f32 %v17226_v22, %v16970_v15  ;;  %v17229_v18 = vpop.f32.mrb[23].mxu1  ;;  %v23206_v38 = vld [vmem:[%s28829_s5 + $0xb8] sm:$0xff]   ;;  %v23281_v15 = vld [vmem:[%s28827_s3 + $0x24] ss:$8 sps:$4 sm:$0xff]   ;;  %v23282_v22 = vld [vmem:[%s28827_s3 + $0x20] ss:$8 sps:$4 sm:$0xff]  }
 0x95a   :  { %v17245_v58 = vadd.f32 %v28308_v31, %v17231_v12  ;;  %17625 = vmatpush1.bf16.msra.mxu0 %v23206_v38  ;;  %v23285_v12 = vld [vmem:[%s28827_s3 + $0x44] ss:$8 sps:$4 sm:$0xff]   ;;  %v23287_v18 = vld [vmem:[%s28827_s3 + $0x54] ss:$8 sps:$4 sm:$0xff]  }
 0x95b   :  { %v17246_v63 = vadd.f32 %v28314_v6, %v17232_v27  ;;  %17757 = vmatprep.subr.bf16.mxu0 %v23277_v34  ;;  %v23286_v27 = vld [vmem:[%s28827_s3 + $0x40] ss:$8 sps:$4 sm:$0xff]   ;;  %v23291_v38 = vld [vmem:[%s28827_s3 + $0x74] ss:$8 sps:$4 sm:$0xff]   ;;  %v23295_v34 = vld [vmem:[%s28827_s3 + $0x124] ss:$8 sps:$4 sm:$0xff]  }
 0x95c   :  { %v17247_v25 = vmax.f32 %v17245_v58, 0.0  ;;  %v23278_v58 = vld [vmem:[%s28827_s3] ss:$8 sps:$4 sm:$0xff]  }
 0x95d   :  { %v17248_v46 = vmax.f32 %v17246_v63, 0.0  ;;  %v23288_v63 = vld [vmem:[%s28827_s3 + $0x50] ss:$8 sps:$4 sm:$0xff]  }
 0x95e   :  { %v17249_v43 = vpack.c.bf16 %v17247_v25, %v17247_v25  ;;  %v23289_v25 = vld [vmem:[%s28827_s3 + $0x64] ss:$8 sps:$4 sm:$0xff]  }
 0x95f   :  { %v17250_v8 = vpack.c.bf16 %v17248_v46, %v17248_v46  ;;  %v23290_v46 = vld [vmem:[%s28827_s3 + $0x60] ss:$8 sps:$4 sm:$0xff]  }
 0x961   :  { %21060 = vmatprep.mubr.msk.bf16.mxu1 %vm17598_vm0, %v17250_v8 }
 0x962   :  { %17750 = vmatmul.mubr.bf16.vlgmr.msra.gmra.mrb[32].mxu1 %v17249_v43 }
 0x963   :  { %17799 = vmatpush1.bf16.msra.mxu1 %v23278_v58  ;;  %17830 = vmatprep.mubr.bf16.mxu1 %v28126_v33  ;;  %v23283_v33 = vld [vmem:[%s28827_s3 + $0x34] ss:$8 sps:$4 sm:$0xff]   ;;  %v23296_v58 = vld [vmem:[%s28827_s3 + $0x120] ss:$8 sps:$4 sm:$0xff]  }
 0x964   :  { %17800 = vmatprep.subr.bf16.mxu1 %v23279_v29  ;;  %v23297_v29 = vld [vmem:[%s28827_s3 + $0x134] ss:$8 sps:$4 sm:$0xff]  }
 0x967   :  { %17801 = vmatpush1.bf16.msra.mxu1 %v23280_v40  ;;  %v23298_v40 = vld [vmem:[%s28827_s3 + $0x130] ss:$8 sps:$4 sm:$0xff]  }
 0x968   :  { %17802 = vmatprep.subr.bf16.mxu1 %v23281_v15  ;;  %v23299_v15 = vld [vmem:[%s28827_s3 + $0x144] ss:$8 sps:$4 sm:$0xff]  }
 0x96b   :  { %17803 = vmatpush1.bf16.msra.mxu1 %v23282_v22  ;;  %v23300_v22 = vld [vmem:[%s28827_s3 + $0x140] ss:$8 sps:$4 sm:$0xff]  }
 0x96c   :  { %17804 = vmatprep.subr.bf16.mxu1 %v23283_v33  ;;  %v23301_v33 = vld [vmem:[%s28827_s3 + $0x154] ss:$8 sps:$4 sm:$0xff]  }
 0x96f   :  { %17805 = vmatpush1.bf16.msra.mxu1 %v23284_v11  ;;  %v23302_v11 = vld [vmem:[%s28827_s3 + $0x150] ss:$8 sps:$4 sm:$0xff]  }
 0x970   :  { %17806 = vmatprep.subr.bf16.mxu1 %v23285_v12  ;;  %v23303_v12 = vld [vmem:[%s28827_s3 + $0x164] ss:$8 sps:$4 sm:$0xff]  }
 0x973   :  { %17807 = vmatpush1.bf16.msra.mxu1 %v23286_v27  ;;  %v23304_v27 = vld [vmem:[%s28827_s3 + $0x160] ss:$8 sps:$4 sm:$0xff]  }
 0x974   :  { %17808 = vmatprep.subr.bf16.mxu1 %v23287_v18  ;;  %v23305_v18 = vld [vmem:[%s28827_s3 + $0x174] ss:$8 sps:$4 sm:$0xff]  }
 0x977   :  { %17809 = vmatpush1.bf16.msra.mxu1 %v23288_v63  ;;  %v23306_v63 = vld [vmem:[%s28827_s3 + $0x170] ss:$8 sps:$4 sm:$0xff]  }
 0x978   :  { %17810 = vmatprep.subr.bf16.mxu1 %v23289_v25  ;;  %v23307_v25 = vld [vmem:[%s28827_s3 + $0x184] ss:$8 sps:$4 sm:$0xff]  }
 0x97b   :  { %17811 = vmatpush1.bf16.msra.mxu1 %v23290_v46  ;;  %v23308_v46 = vld [vmem:[%s28827_s3 + $0x180] ss:$8 sps:$4 sm:$0xff]  }
 0x97c   :  { %17812 = vmatprep.subr.bf16.mxu1 %v23291_v38  ;;  %v23309_v38 = vld [vmem:[%s28827_s3 + $0x194] ss:$8 sps:$4 sm:$0xff]  }
 0x97f   :  { %17813 = vmatpush1.bf16.msra.mxu1 %v27437_v47 }
 0x980   :  { %17814 = vmatprep.subr.bf16.mxu1 %v27448_v19 }
 0x983   :  { %17815 = vmatpush1.bf16.msra.mxu1 %v27461_v49 }
 0x984   :  { %17816 = vmatprep.subr.bf16.mxu1 %v27472_v1 }
 0x987   :  { %17817 = vmatpush1.bf16.msra.mxu1 %v27485_v51 }
 0x988   :  { %17818 = vmatprep.subr.bf16.mxu1 %v27496_v53 }
 0x98b   :  { %17819 = vmatpush1.bf16.msra.mxu1 %v27509_v55 }
 0x98c   :  { %17820 = vmatprep.subr.bf16.mxu1 %v27520_v57 }
 0x98f   :  { %17821 = vmatpush1.bf16.msra.mxu1 %v27533_v59  ;;  %v21062_v59 = vld.sshfl [vmem:[#allocation2 + $0xe] sm:$0x11 pattern:$0x75316420] }
 0x990   :  { %17822 = vmatprep.subr.bf16.mxu1 %v29051_v39  ;;  %v17917_v39 = vcombine.high %v21062_v59, %v21062_v59 }
 0x993   :  { %17823 = vmatpush1.bf16.msra.mxu1 %v29053_v9  ;;  %v17931_v9 = vrot.slane %v17917_v39, %v23464_v16  ;;  %v23320_v39 = vld [vmem:[%s28827_s3 + $0x1e0] ss:$8 sps:$4 sm:$0xff]  }
 0x994   :  { %17824 = vmatprep.subr.bf16.mxu1 %v29055_v13  ;;  %v29129_v13 = vld [vmem:[#allocation74_spill] sm:$0xff] }
 0x995   :  { %v17309_v47 = vpop.f32.mrb[24].mxu0 }
 0x996   :  { %v17350_v19 = vpop.f32.mrb[24].mxu1  ;;  %v17311_v49 = vpop.f32.mrb[25].mxu0 }
 0x997   :  { %v17351_v1 = vadd.f32 %v17350_v19, %v17309_v47  ;;  %v17352_v8 = vpop.f32.mrb[25].mxu1  ;;  %17825 = vmatpush1.bf16.msra.mxu1 %v29057_v17  ;;  %v17313_v51 = vpop.f32.mrb[26].mxu0  ;;  %v23310_v47 = vld [vmem:[%s28827_s3 + $0x190] ss:$8 sps:$4 sm:$0xff]   ;;  %v23311_v19 = vld [vmem:[%s28827_s3 + $0x1a4] ss:$8 sps:$4 sm:$0xff]  }
 0x998   :  { %v17353_v53 = vadd.f32 %v17352_v8, %v17311_v49  ;;  %v17354_v55 = vpop.f32.mrb[26].mxu1  ;;  %v17314_v43 = vpop.f32.mrb[27].mxu0  ;;  %17826 = vmatprep.subr.bf16.mxu1 %v29059_v21  ;;  %v23312_v49 = vld [vmem:[%s28827_s3 + $0x1a0] ss:$8 sps:$4 sm:$0xff]   ;;  %v23314_v8 = vld [vmem:[%s28827_s3 + $0x1b0] ss:$8 sps:$4 sm:$0xff]  }
 0x999   :  { %v17355_v57 = vpop.f32.mrb[27].mxu1  ;;  %v23315_v51 = vld [vmem:[%s28827_s3 + $0x1c4] ss:$8 sps:$4 sm:$0xff]   ;;  %v23317_v55 = vld [vmem:[%s28827_s3 + $0x1d4] ss:$8 sps:$4 sm:$0xff]  }
 0x99a   :  { %v23318_v43 = vld [vmem:[%s28827_s3 + $0x1d0] ss:$8 sps:$4 sm:$0xff]   ;;  %v23319_v57 = vld [vmem:[%s28827_s3 + $0x1e4] ss:$8 sps:$4 sm:$0xff]  }
 0x99b   :  { %17827 = vmatpush1.bf16.msra.mxu1 %v29061_v24 }
 0x99c   :  { %17828 = vmatprep.subr.bf16.mxu1 %v29063_v0 }
 0x99f   :  { %17829 = vmatpush1.bf16.msra.mxu1 %v27633_v14  ;;  %v29128_v14 = vld [vmem:[#allocation72_spill] sm:$0xff] }
 0x9a0   :  { %17934 = vmatprep.subr.bf16.mxu1 %v29066_v32 }
 0x9a2   :  { %17831 = vmatmul.mubr.bf16.vlgmr.msra.gmra.mrb[36].mxu1 %v28210_v37 }
 0x9a3   :  { %17935 = vmatpush1.bf16.msra.mxu1 %v27663_v60  ;;  %17966 = vmatprep.mubr.bf16.mxu1 %v17931_v9  ;;  %v29127_v60 = vld [vmem:[#allocation70_spill] sm:$0xff] }
 0x9a4   :  { %17936 = vmatprep.subr.bf16.mxu1 %v29069_v36  ;;  %v23321_v9 = vld [vmem:[%s28827_s3 + $0x1f4] ss:$8 sps:$4 sm:$0xff]  }
 0x9a7   :  { %17937 = vmatpush1.bf16.msra.mxu1 %v29071_v2  ;;  %v29130_v2 = vld [vmem:[#allocation76_spill] sm:$0xff] }
 0x9a8   :  { %17938 = vmatprep.subr.bf16.mxu1 %v29073_v23 }
 0x9ab   :  { %17939 = vmatpush1.bf16.msra.mxu1 %v29075_v41 }
 0x9ac   :  { %17940 = vmatprep.subr.bf16.mxu1 %v29077_v4 }
 0x9af   :  { %17941 = vmatpush1.bf16.msra.mxu1 %v29079_v52 }
 0x9b0   :  { %17942 = vmatprep.subr.bf16.mxu1 %v29081_v56  ;;  %v29131_v56 = vld [vmem:[#allocation78_spill] sm:$0xff] }
 0x9b3   :  { %17943 = vmatpush1.bf16.msra.mxu1 %v29085_v10 }
 0x9b4   :  { %17944 = vmatprep.subr.bf16.mxu1 %v29087_v20 }
 0x9b7   :  { %17945 = vmatpush1.bf16.msra.mxu1 %v29089_v48 }
 0x9b8   :  { %17946 = vmatprep.subr.bf16.mxu1 %v29091_v45 }
 0x9bb   :  { %17947 = vmatpush1.bf16.msra.mxu1 %v29093_v62  ;;  %v29132_v62 = vld [vmem:[#allocation80_spill] sm:$0xff] }
 0x9bc   :  { %17948 = vmatprep.subr.bf16.mxu1 %v29095_v28 }
 0x9bf   :  { %17949 = vmatpush1.bf16.msra.mxu1 %v29097_v30  ;;  %v29133_v30 = vld [vmem:[#allocation82_spill] sm:$0xff] }
 0x9c0   :  { %17950 = vmatprep.subr.bf16.mxu1 %v29099_v35 }
 0x9c3   :  { %17951 = vmatpush1.bf16.msra.mxu1 %v29101_v26  ;;  %v29134_v26 = vld [vmem:[#allocation84_spill] sm:$0xff] }
 0x9c4   :  { %17952 = vmatprep.subr.bf16.mxu1 %v29103_v42 }
 0x9c7   :  { %17953 = vmatpush1.bf16.msra.mxu1 %v29105_v50  ;;  %v17924_v50 = vrot.slane %v21062_v59, %v23464_v16  ;;  %v28514_v59 = vld.sshfl [vmem:[#allocation2 + $0xc] sm:$0x11 pattern:$0x75316420] }
 0x9c8   :  { %17954 = vmatprep.subr.bf16.mxu1 %v29107_v44  ;;  %v23292_v44 = vld [vmem:[%s28827_s3 + $0x100] ss:$8 sps:$4 sm:$0xff]  }
 0x9cb   :  { %17955 = vmatpush1.bf16.msra.mxu1 %v29109_v7  ;;  %v29135_v7 = vld [vmem:[#allocation9_spill] sm:$0xff] }
 0x9cc   :  { %17956 = vmatprep.subr.bf16.mxu1 %v29111_v5  ;;  %v23293_v5 = vld [vmem:[%s28827_s3 + $0x114] ss:$8 sps:$4 sm:$0xff]  }
 0x9cf   :  { %17957 = vmatpush1.bf16.msra.mxu1 %v29113_v3  ;;  %v23294_v3 = vld [vmem:[%s28827_s3 + $0x110] ss:$8 sps:$4 sm:$0xff]  }
 0x9d0   :  { %17958 = vmatprep.subr.bf16.mxu1 %v29127_v60  ;;  %v17848_v60 = vcombine.high %v28514_v59, %v28514_v59 }
 0x9d3   :  { %17959 = vmatpush1.bf16.msra.mxu1 %v29128_v14  ;;  %v23322_v14 = vld [vmem:[%s28827_s3 + $0x1f0] ss:$8 sps:$4 sm:$0xff]  }
 0x9d4   :  { %17960 = vmatprep.subr.bf16.mxu1 %v29129_v13  ;;  %v23323_v13 = vld [vmem:[%s28827_s3 + $0x204] ss:$8 sps:$4 sm:$0xff]  }
 0x9d5   :  { %v17417_v17 = vpop.f32.mrb[28].mxu0 }
 0x9d6   :  { %v17424_v21 = vadd.f32 %v17417_v17, %v17351_v1  ;;  %v17486_v24 = vpop.f32.mrb[28].mxu1  ;;  %v17419_v0 = vpop.f32.mrb[29].mxu0  ;;  %v23313_v1 = vld [vmem:[%s28827_s3 + $0x1b4] ss:$8 sps:$4 sm:$0xff]   ;;  %v17862_v17 = vrot.slane %v17848_v60, %v23464_v16 }
 0x9d7   :  { %v17425_v32 = vadd.f32 %v17419_v0, %v17353_v53  ;;  %v17488_v36 = vpop.f32.mrb[29].mxu1  ;;  %17961 = vmatpush1.bf16.msra.mxu1 %v29130_v2  ;;  %v17421_v23 = vpop.f32.mrb[30].mxu0  ;;  %v23316_v53 = vld [vmem:[%s28827_s3 + $0x1c0] ss:$8 sps:$4 sm:$0xff]   ;;  %v23325_v0 = vld [vmem:[%s28827_s3 + $0x214] ss:$8 sps:$4 sm:$0xff]  }
 0x9d8   :  { %v17493_v41 = vadd.f32 %v17486_v24, %v17424_v21  ;;  %v17490_v4 = vpop.f32.mrb[30].mxu1  ;;  %v17422_v52 = vpop.f32.mrb[31].mxu0  ;;  %17962 = vmatprep.subr.bf16.mxu1 %v29131_v56  ;;  %v29136_v21 = vld [vmem:[#allocation10_spill] sm:$0xff]  ;;  %v23324_v24 = vld [vmem:[%s28827_s3 + $0x200] ss:$8 sps:$4 sm:$0xff]  }
 0x9d9   :  { %v17494_v10 = vadd.f32 %v17488_v36, %v17425_v32  ;;  %v17491_v20 = vpop.f32.mrb[31].mxu1  ;;  %v23326_v32 = vld [vmem:[%s28827_s3 + $0x210] ss:$8 sps:$4 sm:$0xff]   ;;  %v23327_v36 = vld [vmem:[%s28827_s3 + $0x224] ss:$8 sps:$4 sm:$0xff]  }
 0x9da   :  { %v17495_v48 = vadd.f32 %v17493_v41, %v28308_v31  ;;  %v23328_v2 = vld [vmem:[%s28827_s3 + $0x220] ss:$8 sps:$4 sm:$0xff]   ;;  %v23329_v23 = vld [vmem:[%s28827_s3 + $0x234] ss:$8 sps:$4 sm:$0xff]   ;;  %v23330_v41 = vld [vmem:[%s28827_s3 + $0x230] ss:$8 sps:$4 sm:$0xff]  }
 0x9db   :  { %v17496_v45 = vadd.f32 %v17494_v10, %v28314_v6  ;;  %17963 = vmatpush1.bf16.msra.mxu1 %v29132_v62  ;;  %v23331_v4 = vld [vmem:[%s28827_s3 + $0x244] ss:$8 sps:$4 sm:$0xff]   ;;  %v23332_v52 = vld [vmem:[%s28827_s3 + $0x240] ss:$8 sps:$4 sm:$0xff]   ;;  %v23333_v56 = vld [vmem:[%s28827_s3 + $0x254] ss:$8 sps:$4 sm:$0xff]  }
 0x9dc   :  { %v17497_v28 = vmax.f32 %v17495_v48, 0.0  ;;  %17964 = vmatprep.subr.bf16.mxu1 %v29133_v30  ;;  %v23334_v48 = vld [vmem:[%s28827_s3 + $0x250] ss:$8 sps:$4 sm:$0xff]   ;;  %v23336_v30 = vld [vmem:[%s28827_s3 + $0x260] ss:$8 sps:$4 sm:$0xff]  }
 0x9dd   :  { %v17498_v35 = vmax.f32 %v17496_v45, 0.0 }
 0x9de   :  { %v17499_v42 = vpack.c.bf16 %v17497_v28, %v17497_v28  ;;  %v23335_v28 = vld [vmem:[%s28827_s3 + $0x264] ss:$8 sps:$4 sm:$0xff]  }
 0x9df   :  { %v17500_v37 = vpack.c.bf16 %v17498_v35, %v17498_v35  ;;  %17965 = vmatpush1.bf16.msra.mxu1 %v29134_v26  ;;  %v23337_v35 = vld [vmem:[%s28827_s3 + $0x274] ss:$8 sps:$4 sm:$0xff]   ;;  %v29137_v26 = vld [vmem:[#allocation53_spill] sm:$0xff] }
 0x9e1   :  { %21047 = vmatprep.mubr.msk.bf16.mxu0 %vm17598_vm0, %v17500_v37  ;;  %v23338_v37 = vld [vmem:[%s28827_s3 + $0x270] ss:$8 sps:$4 sm:$0xff]  }
 0x9e2   :  { %17967 = vmatmul.mubr.bf16.vlgmr.msra.gmra.mrb[40].mxu1 %v17924_v50  ;;  %17635 = vmatmul.mubr.bf16.vlgmr.msra.gmra.mrb[32].mxu0 %v17499_v42  ;;  %v29138_v42 = vld [vmem:[#allocation55_spill] sm:$0xff]  ;;  %v29139_v50 = vld [vmem:[#allocation57_spill] sm:$0xff] }
 0x9e3   :  { %17758 = vmatpush1.bf16.msra.mxu0 %v23292_v44  ;;  %17789 = vmatprep.mubr.bf16.mxu0 %v29135_v7  ;;  %v29140_v44 = vld [vmem:[#allocation59_spill] sm:$0xff]  ;;  %v29141_v7 = vld [vmem:[#allocation61_spill] sm:$0xff] }
 0x9e4   :  { %17759 = vmatprep.subr.bf16.mxu0 %v23293_v5  ;;  %18287 = vmatprep.mubr.bf16.mxu1 %v29126_v54  ;;  %v29142_v5 = vld [vmem:[#allocation63_spill] sm:$0xff] }
 0x9e7   :  { %17760 = vmatpush1.bf16.msra.mxu0 %v23294_v3  ;;  %v29143_v3 = vld [vmem:[#allocation65_spill] sm:$0xff] }
 0x9e8   :  { %17761 = vmatprep.subr.bf16.mxu0 %v23295_v34  ;;  %v29144_v34 = vld [vmem:[#allocation67_spill] sm:$0xff] }
 0x9eb   :  { %17762 = vmatpush1.bf16.msra.mxu0 %v23296_v58  ;;  %v29145_v58 = vld [vmem:[#allocation69_spill] sm:$0xff] }
 0x9ec   :  { %17763 = vmatprep.subr.bf16.mxu0 %v23297_v29  ;;  %v29146_v29 = vld [vmem:[#allocation71_spill] sm:$0xff] }
 0x9ef   :  { %17764 = vmatpush1.bf16.msra.mxu0 %v23298_v40  ;;  %v29147_v40 = vld [vmem:[#allocation73_spill] sm:$0xff] }
 0x9f0   :  { %17765 = vmatprep.subr.bf16.mxu0 %v23299_v15  ;;  %v29148_v15 = vld [vmem:[#allocation75_spill] sm:$0xff] }
 0x9f3   :  { %17766 = vmatpush1.bf16.msra.mxu0 %v23300_v22  ;;  %v29149_v22 = vld [vmem:[#allocation77_spill] sm:$0xff] }
 0x9f4   :  { %17767 = vmatprep.subr.bf16.mxu0 %v23301_v33  ;;  %v29150_v33 = vld [vmem:[#allocation79_spill] sm:$0xff] }
 0x9f7   :  { %17768 = vmatpush1.bf16.msra.mxu0 %v23302_v11  ;;  %v29151_v11 = vld [vmem:[#allocation81_spill] sm:$0xff] }
 0x9f8   :  { %17769 = vmatprep.subr.bf16.mxu0 %v23303_v12  ;;  %v29152_v12 = vld [vmem:[#allocation83_spill] sm:$0xff] }
 0x9fb   :  { %17770 = vmatpush1.bf16.msra.mxu0 %v23304_v27  ;;  %v17855_v27 = vrot.slane %v28514_v59, %v23464_v16  ;;  %v23209_v16 = vld [vmem:[%s28829_s5 + $0xd0] sm:$0xff]  }
 0x9fc   :  { %17771 = vmatprep.subr.bf16.mxu0 %v23305_v18 }
 0x9ff   :  { %17772 = vmatpush1.bf16.msra.mxu0 %v23306_v63 }
 0xa00   :  { %17773 = vmatprep.subr.bf16.mxu0 %v23307_v25 }
 0xa03   :  { %17774 = vmatpush1.bf16.msra.mxu0 %v23308_v46 }
 0xa04   :  { %17775 = vmatprep.subr.bf16.mxu0 %v23309_v38  ;;  %v23207_v38 = vld [vmem:[%s28829_s5 + $0xc0] sm:$0xff]  }
 0xa07   :  { %17776 = vmatpush1.bf16.msra.mxu0 %v23310_v47  ;;  %v23208_v47 = vld [vmem:[%s28829_s5 + $0xc8] sm:$0xff]  }
 0xa08   :  { %17777 = vmatprep.subr.bf16.mxu0 %v23311_v19  ;;  %v23210_v19 = vld [vmem:[%s28829_s5 + $0xd8] sm:$0xff]  }
 0xa0b   :  { %17778 = vmatpush1.bf16.msra.mxu0 %v23312_v49  ;;  %v23211_v49 = vld [vmem:[%s28829_s5 + $0xe0] sm:$0xff]  }
 0xa0c   :  { %17779 = vmatprep.subr.bf16.mxu0 %v23313_v1  ;;  %v23212_v1 = vld [vmem:[%s28829_s5 + $0xe8] sm:$0xff]  }
 0xa0f   :  { %17780 = vmatpush1.bf16.msra.mxu0 %v23314_v8  ;;  %v23213_v8 = vld [vmem:[%s28829_s5 + $0xf0] sm:$0xff]  }
 0xa10   :  { %17781 = vmatprep.subr.bf16.mxu0 %v23315_v51  ;;  %v23214_v51 = vld [vmem:[%s28829_s5 + $0xf8] sm:$0xff]  }
 0xa13   :  { %17782 = vmatpush1.bf16.msra.mxu0 %v23316_v53  ;;  %v23215_v53 = vld [vmem:[%s28829_s5 + $0x100] sm:$0xff]  }
 0xa14   :  { %17783 = vmatprep.subr.bf16.mxu0 %v23317_v55 }
 0xa17   :  { %17784 = vmatpush1.bf16.msra.mxu0 %v23318_v43 }
 0xa18   :  { %17785 = vmatprep.subr.bf16.mxu0 %v23319_v57 }
 0xa1b   :  { %17786 = vmatpush1.bf16.msra.mxu0 %v23320_v39 }
 0xa1c   :  { %17787 = vmatprep.subr.bf16.mxu0 %v23321_v9  ;;  %v23216_v9 = vld [vmem:[%s28829_s5 + $0x108] sm:$0xff]  }
 0xa1f   :  { %17788 = vmatpush1.bf16.msra.mxu0 %v23322_v14 }
 0xa20   :  { %17865 = vmatprep.subr.bf16.mxu0 %v23323_v13 }
 0xa22   :  { %17790 = vmatmul.mubr.bf16.vlgmr.msra.gmra.mrb[36].mxu0 %v29136_v21  ;;  %v23217_v21 = vld [vmem:[%s28829_s5 + $0x110] sm:$0xff]  }
 0xa23   :  { %17866 = vmatpush1.bf16.msra.mxu0 %v23324_v24  ;;  %17897 = vmatprep.mubr.bf16.mxu0 %v17862_v17  ;;  %v23218_v24 = vld [vmem:[%s28829_s5 + $0x118] sm:$0xff]  }
 0xa24   :  { %17867 = vmatprep.subr.bf16.mxu0 %v23325_v0  ;;  %v23219_v0 = vld [vmem:[%s28831_s7] ss:$16 sps:$4 sm:$0xff]  }
 0xa27   :  { %17868 = vmatpush1.bf16.msra.mxu0 %v23326_v32  ;;  %v23221_v32 = vld [vmem:[%s28831_s7 + $0x4] ss:$16 sps:$4 sm:$0xff]  }
 0xa28   :  { %17869 = vmatprep.subr.bf16.mxu0 %v23327_v36  ;;  %v23224_v36 = vld [vmem:[%s28831_s7 + $0x24] ss:$16 sps:$4 sm:$0xff]   ;;  %18255 = vmatprep.subr.bf16.mxu1 %v23221_v32 }
 0xa29   :  { %18256 = vmatpush1.bf16.msra.mxu1 %v23219_v0  ;;  %v23261_v0 = vld [vmem:[%s28833_s9 + $0x90] sm:$0xff]  }
 0xa2a   :  { %18257 = vmatprep.subr.bf16.mxu1 %v23224_v36  ;;  %v23262_v32 = vld [vmem:[%s28833_s9 + $0x30] sm:$0xff]   ;;  %v23263_v36 = vld [vmem:[%s28833_s9 + $0xd8] sm:$0xff]  }
 0xa2b   :  { %17870 = vmatpush1.bf16.msra.mxu0 %v23328_v2  ;;  %v23222_v2 = vld [vmem:[%s28831_s7 + $0x20] ss:$16 sps:$4 sm:$0xff]  }
 0xa2c   :  { %17871 = vmatprep.subr.bf16.mxu0 %v23329_v23 }
 0xa2d   :  { %18258 = vmatpush1.bf16.msra.mxu1 %v23222_v2  ;;  %v23264_v2 = vld [vmem:[%s28833_s9 + $0x78] sm:$0xff]  }
 0xa2f   :  { %17872 = vmatpush1.bf16.msra.mxu0 %v23330_v41 }
 0xa30   :  { %17873 = vmatprep.subr.bf16.mxu0 %v23331_v4 }
 0xa33   :  { %17874 = vmatpush1.bf16.msra.mxu0 %v23332_v52 }
 0xa34   :  { %17875 = vmatprep.subr.bf16.mxu0 %v23333_v56 }
 0xa35   :  { %v28562_v10 = vpop.f32.mrb[32].mxu1 }
 0xa36   :  { %v17753_v20 = vpop.f32.mrb[33].mxu1 }
 0xa37   :  { %17876 = vmatpush1.bf16.msra.mxu0 %v23334_v48  ;;  %v17754_v45 = vpop.f32.mrb[34].mxu1 }
 0xa38   :  { %v17755_v62 = vpop.f32.mrb[35].mxu1  ;;  %17877 = vmatprep.subr.bf16.mxu0 %v23335_v28 }
 0xa3b   :  { %17878 = vmatpush1.bf16.msra.mxu0 %v23336_v30 }
 0xa3c   :  { %17879 = vmatprep.subr.bf16.mxu0 %v23337_v35 }
 0xa3f   :  { %17880 = vmatpush1.bf16.msra.mxu0 %v23338_v37 }
 0xa40   :  { %17881 = vmatprep.subr.bf16.mxu0 %v29137_v26 }
 0xa43   :  { %17882 = vmatpush1.bf16.msra.mxu0 %v29138_v42 }
 0xa44   :  { %17883 = vmatprep.subr.bf16.mxu0 %v29139_v50 }
 0xa47   :  { %17884 = vmatpush1.bf16.msra.mxu0 %v29140_v44 }
 0xa48   :  { %17885 = vmatprep.subr.bf16.mxu0 %v29141_v7 }
 0xa4b   :  { %17886 = vmatpush1.bf16.msra.mxu0 %v29142_v5 }
 0xa4c   :  { %17887 = vmatprep.subr.bf16.mxu0 %v29143_v3  ;;  %v23227_v3 = vld [vmem:[%s28831_s7 + $0x44] ss:$16 sps:$4 sm:$0xff]  }
 0xa4d   :  { %18259 = vmatprep.subr.bf16.mxu1 %v23227_v3 }
 0xa4f   :  { %17888 = vmatpush1.bf16.msra.mxu0 %v29144_v34  ;;  %v23225_v34 = vld [vmem:[%s28831_s7 + $0x40] ss:$16 sps:$4 sm:$0xff]  }
 0xa50   :  { %17889 = vmatprep.subr.bf16.mxu0 %v29145_v58  ;;  %18260 = vmatpush1.bf16.msra.mxu1 %v23225_v34  ;;  %v23233_v58 = vld [vmem:[%s28831_s7 + $0xc] ss:$16 sps:$4 sm:$0xff]  }
 0xa53   :  { %17890 = vmatpush1.bf16.msra.mxu0 %v29146_v29  ;;  %v23251_v29 = vld [vmem:[%s28833_s9 + $0xc0] sm:$0xff]  }
 0xa54   :  { %17891 = vmatprep.subr.bf16.mxu0 %v29147_v40  ;;  %v23253_v40 = vld [vmem:[%s28833_s9 + $0x80] sm:$0xff]  }
 0xa57   :  { %17892 = vmatpush1.bf16.msra.mxu0 %v29148_v15  ;;  %v23255_v15 = vld [vmem:[%s28833_s9 + $0xc8] sm:$0xff]  }
 0xa58   :  { %17893 = vmatprep.subr.bf16.mxu0 %v29149_v22  ;;  %v23257_v22 = vld [vmem:[%s28833_s9 + $0x88] sm:$0xff]  }
 0xa5b   :  { %17894 = vmatpush1.bf16.msra.mxu0 %v29150_v33 }
 0xa5c   :  { %17895 = vmatprep.subr.bf16.mxu0 %v29151_v11  ;;  %v21100_v11 = vld [vmem:[%s28830_s6] ss:$0 sm:$0xff] }
 0xa5f   :  { %17896 = vmatpush1.bf16.msra.mxu0 %v29152_v12 }
 0xa60   :  { %18083 = vmatprep.subr.bf16.mxu0 %v29126_v54 }
 0xa62   :  { %17898 = vmatmul.mubr.bf16.vlgmr.msra.gmra.mrb[40].mxu0 %v17855_v27 }
 0xa63   :  { %18084 = vmatpush1.bf16.msra.mxu0 %v23207_v38  ;;  %v23231_v38 = vld [vmem:[%s28831_s7 + $0x8] ss:$16 sps:$4 sm:$0xff]  }
 0xa64   :  { %18085 = vmatprep.subr.bf16.mxu0 %v29126_v54 }
 0xa67   :  { %18086 = vmatpush1.bf16.msra.mxu0 %v23208_v47 }
 0xa68   :  { %18087 = vmatprep.subr.bf16.mxu0 %v29126_v54 }
 0xa6b   :  { %18088 = vmatpush1.bf16.msra.mxu0 %v23209_v16  ;;  %v23236_v16 = vld [vmem:[%s28831_s7 + $0x2c] ss:$16 sps:$4 sm:$0xff]  }
 0xa6c   :  { %18089 = vmatprep.subr.bf16.mxu0 %v29126_v54 }
 0xa6f   :  { %18090 = vmatpush1.bf16.msra.mxu0 %v23210_v19  ;;  %v23234_v19 = vld [vmem:[%s28831_s7 + $0x28] ss:$16 sps:$4 sm:$0xff]  }
 0xa70   :  { %18091 = vmatprep.subr.bf16.mxu0 %v29126_v54 }
 0xa73   :  { %18092 = vmatpush1.bf16.msra.mxu0 %v23211_v49  ;;  %v23239_v49 = vld [vmem:[%s28831_s7 + $0x4c] ss:$16 sps:$4 sm:$0xff]  }
 0xa74   :  { %18093 = vmatprep.subr.bf16.mxu0 %v29126_v54 }
 0xa75   :  { %v17832_v18 = vpop.f32.mrb[36].mxu1 }
 0xa76   :  { %v17834_v63 = vpop.f32.mrb[37].mxu1 }
 0xa77   :  { %v17836_v25 = vpop.f32.mrb[38].mxu1  ;;  %18094 = vmatpush1.bf16.msra.mxu0 %v23212_v1  ;;  %v23237_v1 = vld [vmem:[%s28831_s7 + $0x48] ss:$16 sps:$4 sm:$0xff]  }
 0xa78   :  { %v17837_v46 = vpop.f32.mrb[39].mxu1  ;;  %18095 = vmatprep.subr.bf16.mxu0 %v29126_v54 }
 0xa7b   :  { %18096 = vmatpush1.bf16.msra.mxu0 %v23213_v8  ;;  %v23242_v8 = vld [vmem:[%s28831_s7 + $0x6c] ss:$16 sps:$4 sm:$0xff]  }
 0xa7c   :  { %18097 = vmatprep.subr.bf16.mxu0 %v29126_v54 }
 0xa7f   :  { %18098 = vmatpush1.bf16.msra.mxu0 %v23214_v51  ;;  %v23243_v51 = vld [vmem:[%s28833_s9 + $0x40] sm:$0xff]  }
 0xa80   :  { %18099 = vmatprep.subr.bf16.mxu0 %v29126_v54 }
 0xa83   :  { %18100 = vmatpush1.bf16.msra.mxu0 %v23215_v53  ;;  %v23244_v53 = vld [vmem:[%s28833_s9] sm:$0xff]  }
 0xa84   :  { %18101 = vmatprep.subr.bf16.mxu0 %v29126_v54 }
 0xa87   :  { %18102 = vmatpush1.bf16.msra.mxu0 %v23216_v9  ;;  %v23250_v9 = vld [vmem:[%s28833_s9 + $0x18] sm:$0xff]  }
 0xa88   :  { %18103 = vmatprep.subr.bf16.mxu0 %v29126_v54 }
 0xa8b   :  { %18104 = vmatpush1.bf16.msra.mxu0 %v23217_v21  ;;  %v23259_v21 = vld [vmem:[%s28833_s9 + $0xd0] sm:$0xff]  }
 0xa8c   :  { %18105 = vmatprep.subr.bf16.mxu0 %v29126_v54 }
 0xa8f   :  { %18106 = vmatpush1.bf16.msra.mxu0 %v23218_v24  ;;  %v23260_v24 = vld [vmem:[%s28833_s9 + $0x70] sm:$0xff]  }
 0xa90   :  { %21174 = vmatprep.subr.bf16.mxu0 %v23251_v29 }
 0xab5   :  { %v17968_v55 = vpop.f32.mrb[40].mxu1  ;;  %v17636_v43 = vpop.f32.mrb[32].mxu0 }
 0xab6   :  { %v28635_v57 = vadd.f32 %v28562_v10, %v17636_v43  ;;  %v17970_v59 = vpop.f32.mrb[41].mxu1  ;;  %v17638_v39 = vpop.f32.mrb[33].mxu0  ;;  %v23246_v43 = vld [vmem:[%s28833_s9 + $0x8] sm:$0xff]  }
 0xab7   :  { %v17972_v60 = vpop.f32.mrb[42].mxu1  ;;  %v17639_v14 = vpop.f32.mrb[34].mxu0  ;;  %v23249_v39 = vld [vmem:[%s28833_s9 + $0x58] sm:$0xff]  }
 0xab8   :  { %v17973_v13 = vpop.f32.mrb[43].mxu1  ;;  %v17640_v17 = vpop.f32.mrb[35].mxu0  ;;  %v23252_v60 = vld [vmem:[%s28833_s9 + $0x60] sm:$0xff]  }
 0xab9   :  { %v23254_v14 = vld [vmem:[%s28833_s9 + $0x20] sm:$0xff]   ;;  %v23256_v13 = vld [vmem:[%s28833_s9 + $0x68] sm:$0xff]  }
 0xaba   :  { %v23258_v17 = vld [vmem:[%s28833_s9 + $0x28] sm:$0xff]  }
 0xaf5   :  { %v17791_v23 = vpop.f32.mrb[36].mxu0 }
 0xaf6   :  { %v17833_v41 = vadd.f32 %v17832_v18, %v17791_v23  ;;  %v17793_v4 = vpop.f32.mrb[37].mxu0  ;;  %v23265_v23 = vld [vmem:[%s28833_s9 + $0x98] sm:$0xff]  }
 0xaf7   :  { %v17835_v52 = vadd.f32 %v17834_v63, %v17793_v4  ;;  %v17795_v56 = vpop.f32.mrb[38].mxu0  ;;  %v23267_v4 = vld [vmem:[%s28833_s9 + $0xe0] sm:$0xff]  }
 0xaf8   :  { %v17796_v10 = vpop.f32.mrb[39].mxu0  ;;  %v23269_v56 = vld [vmem:[%s28833_s9 + $0xe8] sm:$0xff]  }
 0xaf9   :  { %v23270_v10 = vld [vmem:[%s28833_s9 + $0xa8] sm:$0xff]  }
 0xb35   :  { %v17899_v20 = vpop.f32.mrb[40].mxu0 }
 0xb36   :  { %v17906_v48 = vadd.f32 %v17899_v20, %v17833_v41  ;;  %v17901_v45 = vpop.f32.mrb[41].mxu0  ;;  %v23266_v41 = vld [vmem:[%s28833_s9 + $0x38] sm:$0xff]   ;;  %v23271_v20 = vld [vmem:[%s28833_s9 + $0xf0] sm:$0xff]  }
 0xb37   :  { %v17907_v62 = vadd.f32 %v17901_v45, %v17835_v52  ;;  %v17903_v28 = vpop.f32.mrb[42].mxu0  ;;  %v23268_v52 = vld [vmem:[%s28833_s9 + $0xa0] sm:$0xff]   ;;  %v23273_v45 = vld [vmem:[%s28833_s9 + $0xf8] sm:$0xff]  }
 0xb38   :  { %v17975_v30 = vadd.f32 %v17968_v55, %v17906_v48  ;;  %v17904_v35 = vpop.f32.mrb[43].mxu0  ;;  %v23245_v55 = vld [vmem:[%s28833_s9 + $0x48] sm:$0xff]   ;;  %v23272_v48 = vld [vmem:[%s28833_s9 + $0xb0] sm:$0xff]   ;;  %v18150_v28 = vld [vmem:[%s28832_s8] sm:$0xf] }
 0xb39   :  { %v17976_v37 = vadd.f32 %v17970_v59, %v17907_v62  ;;  %v23248_v59 = vld [vmem:[%s28833_s9 + $0x10] sm:$0xff]   ;;  %v23274_v62 = vld [vmem:[%s28833_s9 + $0xb8] sm:$0xff]  }
 0xb3a   :  { %v17977_v26 = vadd.f32 %v17975_v30, %v28308_v31  ;;  %v23230_v31 = vld [vmem:[%s28831_s7 + $0x64] ss:$16 sps:$4 sm:$0xff]   ;;  %v29153_v30 = vld [vmem:[#allocation7_spill] sm:$0xff] }
 0xb3b   :  { %v17978_v42 = vadd.f32 %v17976_v37, %v28314_v6  ;;  %v23228_v6 = vld [vmem:[%s28831_s7 + $0x60] ss:$16 sps:$4 sm:$0xff]   ;;  %18261 = vmatprep.subr.bf16.mxu1 %v23230_v31  ;;  %v18155_v35 = vrot.slane %v18150_v28, %v29153_v30  ;;  %v18159_v37 = vrot.slane %v18150_v28, %v29084_v61 }
 0xb3c   :  { %v17979_v50 = vmax.f32 %v17977_v26, 0.0  ;;  %18262 = vmatpush1.bf16.msra.mxu1 %v23228_v6 }
 0xb3d   :  { %v17980_v44 = vmax.f32 %v17978_v42, 0.0  ;;  %18296 = vmatprep.subr.bf16.mxu1 %v23233_v58  ;;  %v29154_v58 = vld [vmem:[#allocation6_spill] sm:$0xff] }
 0xb3e   :  { %v17981_v5 = vpack.c.bf16 %v17979_v50, %v17979_v50  ;;  %v18162_v29 = vsub.s32 2, %v29154_v58 }
 0xb3f   :  { %v17982_v7 = vpack.c.bf16 %v17980_v44, %v17980_v44 }
 0xb41   :  { %21099 = vmatprep.mubr.msk.bf16.mxu0 %vm17598_vm0, %v17982_v7 }
 0xb42   :  { %18116 = vmatmul.mubr.bf16.vlgmr.msra.gmra.mrb[44].mxu0 %v17981_v5 }
 0xb43   :  { %21175 = vmatpush3.bf16.msra.mxu0 %v23253_v40  ;;  %v18166_v40 = vsub.s32 3, %v29154_v58 }
 0xb44   :  { %21176 = vmatprep.subr.bf16.mxu0 %v23255_v15  ;;  %v18163_v15 = vrot.slane %v18150_v28, %v18162_v29 }
 0xb47   :  { %21177 = vmatpush3.bf16.msra.mxu0 %v23257_v22  ;;  %v18167_v22 = vrot.slane %v18150_v28, %v18166_v40 }
 0xb48   :  { %21178 = vmatprep.subr.bf16.mxu0 %v23259_v21 }
 0xb4b   :  { %21179 = vmatpush3.bf16.msra.mxu0 %v23261_v0 }
 0xb4c   :  { %21180 = vmatprep.subr.bf16.mxu0 %v23263_v36 }
 0xb4f   :  { %21181 = vmatpush3.bf16.msra.mxu0 %v23265_v23 }
 0xb50   :  { %21182 = vmatprep.subr.bf16.mxu0 %v23267_v4 }
 0xb53   :  { %21183 = vmatpush3.bf16.msra.mxu0 %v23268_v52 }
 0xb54   :  { %21184 = vmatprep.subr.bf16.mxu0 %v23269_v56 }
 0xb57   :  { %21185 = vmatpush3.bf16.msra.mxu0 %v23270_v10 }
 0xb58   :  { %21186 = vmatprep.subr.bf16.mxu0 %v23271_v20 }
 0xb5b   :  { %21187 = vmatpush3.bf16.msra.mxu0 %v23272_v48 }
 0xb5c   :  { %21188 = vmatprep.subr.bf16.mxu0 %v23273_v45 }
 0xb5f   :  { %21189 = vmatpush3.bf16.msra.mxu0 %v23274_v62 }
 0xc15   :  { %v18117_v33 = vpop.f32.mrb[44].mxu0 }
 0xc16   :  { %v18123_v12 = vadd.f32 %v18117_v33, %v28635_v57  ;;  %v18119_v27 = vpop.f32.mrb[45].mxu0  ;;  %v23247_v57 = vld [vmem:[%s28833_s9 + $0x50] sm:$0xff]  }
 0xc17   :  { %v18120_v18 = vpop.f32.mrb[46].mxu0 }
 0xc18   :  { %v18131_v63 = vadd.f32 %v21100_v11, %v18123_v12  ;;  %v18121_v25 = vpop.f32.mrb[47].mxu0 }
 0xc1a   :  { %v18132_v46 = vmax.f32 %v18131_v63, 0.0 }
 0xc1c   :  { %v18133_v47 = vpack.c.bf16 %v18132_v46, %v18132_v46 }
 0xc1e   :  { %21117 = vmatmul.mubr.msk.bf16.vlgmr.msra.gmra.mrb[44].mxu1 %vm17598_vm0, %v18133_v47 }
 0xc1f   :  { %18297 = vmatpush1.bf16.msra.mxu1 %v23231_v38  ;;  %18328 = vmatprep.mubr.bf16.mxu1 %v29126_v54  ;;  %v23240_v54 = vld [vmem:[%s28831_s7 + $0x68] ss:$16 sps:$4 sm:$0xff]  }
 0xc20   :  { %18298 = vmatprep.subr.bf16.mxu1 %v23236_v16 }
 0xc23   :  { %18299 = vmatpush1.bf16.msra.mxu1 %v23234_v19 }
 0xc24   :  { %18300 = vmatprep.subr.bf16.mxu1 %v23239_v49 }
 0xc27   :  { %18301 = vmatpush1.bf16.msra.mxu1 %v23237_v1 }
 0xc28   :  { %18302 = vmatprep.subr.bf16.mxu1 %v23242_v8  ;;  %v21119_v8 = vld [vmem:[%s28834_s10] ss:$0 sm:$0xff] }
 0xc2b   :  { %18303 = vmatpush1.bf16.msra.mxu1 %v23240_v54 }
 0xc2c   :  { %21152 = vmatprep.subr.bf16.mxu1 %v23243_v51 }
 0xc2e   :  { %21118 = vmatmul.mubr.msk.bf16.vlgmr.msra.gmra.mrb[48].mxu1 %vm17598_vm0, %v18133_v47 }
 0xc2f   :  { %21153 = vmatpush3.bf16.msra.mxu1 %v23244_v53 }
 0xc30   :  { %21154 = vmatprep.subr.bf16.mxu1 %v23245_v55 }
 0xc33   :  { %21155 = vmatpush3.bf16.msra.mxu1 %v23246_v43 }
 0xc34   :  { %21156 = vmatprep.subr.bf16.mxu1 %v23247_v57 }
 0xc37   :  { %21157 = vmatpush3.bf16.msra.mxu1 %v23248_v59 }
 0xc38   :  { %21158 = vmatprep.subr.bf16.mxu1 %v23249_v39 }
 0xc3b   :  { %21159 = vmatpush3.bf16.msra.mxu1 %v23250_v9 }
 0xc3c   :  { %21160 = vmatprep.subr.bf16.mxu1 %v23252_v60 }
 0xc3f   :  { %21161 = vmatpush3.bf16.msra.mxu1 %v23254_v14 }
 0xc40   :  { %21162 = vmatprep.subr.bf16.mxu1 %v23256_v13 }
 0xc43   :  { %21163 = vmatpush3.bf16.msra.mxu1 %v23258_v17 }
 0xc44   :  { %21164 = vmatprep.subr.bf16.mxu1 %v23260_v24 }
 0xc47   :  { %21165 = vmatpush3.bf16.msra.mxu1 %v23262_v32 }
 0xc48   :  { %21166 = vmatprep.subr.bf16.mxu1 %v23264_v2 }
 0xc4b   :  { %21167 = vmatpush3.bf16.msra.mxu1 %v23266_v41 }
 0xcf1   :  { %v18289_v26 = vpop.f32.mrb[44].mxu1 }
 0xcf2   :  { %v18290_v42 = vadd.f32 %v18289_v26, %v18155_v35  ;;  %v18291_v50 = vpop.f32.mrb[45].mxu1 }
 0xcf3   :  { %v18292_v44 = vadd.f32 %v18291_v50, %v18159_v37  ;;  %v18293_v7 = vpop.f32.mrb[46].mxu1 }
 0xcf4   :  { %v18337_v5 = vmax.f32 %v18290_v42, 0.0  ;;  %v18294_v3 = vpop.f32.mrb[47].mxu1 }
 0xcf5   :  { %v18338_v34 = vmax.f32 %v18292_v44, 0.0 }
 0xcf6   :  { %v18341_v6 = vpack.c.bf16 %v18337_v5, %v18337_v5 }
 0xcf7   :  { %v18342_v31 = vpack.c.bf16 %v18338_v34, %v18338_v34 }
 0xcf9   :  { %18640 = vmatprep.mubr.bf16.mxu1 %v18342_v31 }
 0xcfa   :  { %18641 = vmatmul.mubr.bf16.vlgmr.msra.gmra.mrb[52].mxu1 %v18341_v6 }
 0xd01   :  { %v18330_v33 = vpop.f32.mrb[48].mxu1 }
 0xd02   :  { %v18331_v61 = vadd.f32 %v18330_v33, %v18163_v15  ;;  %v18332_v11 = vpop.f32.mrb[49].mxu1 }
 0xd03   :  { %v18333_v12 = vadd.f32 %v18332_v11, %v18167_v22  ;;  %v18334_v27 = vpop.f32.mrb[50].mxu1 }
 0xd04   :  { %v18339_v18 = vmax.f32 %v18331_v61, 0.0  ;;  %v18335_v63 = vpop.f32.mrb[51].mxu1 }
 0xd05   :  { %v18340_v25 = vmax.f32 %v18333_v12, 0.0 }
 0xd06   :  { %v18343_v38 = vpack.c.bf16 %v18339_v18, %v18339_v18 }
 0xd07   :  { %v18344_v46 = vpack.c.bf16 %v18340_v25, %v18340_v25 }
 0xd09   :  { %18680 = vmatprep.mubr.bf16.mxu0 %v18344_v46 }
 0xd0a   :  { %18681 = vmatmul.mubr.bf16.vlgmr.msra.gmra.mrb[48].mxu0 %v18343_v38 }
 0xdcd   :  { %v21168_v47 = vpop.f32.mrb[52].mxu1 }
 0xdce   :  { %v21169_v16 = vpop.f32.mrb[53].mxu1 }
 0xdcf   :  { %v21170_v19 = vadd.f32 %v21169_v16, %v21168_v47  ;;  %v21171_v49 = vpop.f32.mrb[54].mxu1 }
 0xdd0   :  { %v21172_v1 = vpop.f32.mrb[55].mxu1 }
 0xdd1   :  { %v18643_v53 = vadd.f32 %v21170_v19, %v21119_v8 }
 0xddd   :  { %v21190_v54 = vpop.f32.mrb[48].mxu0 }
 0xdde   :  { %v21191_v51 = vpop.f32.mrb[49].mxu0 }
 0xddf   :  { %v21192_v55 = vadd.f32 %v21191_v51, %v21190_v54  ;;  %v21193_v43 = vpop.f32.mrb[50].mxu0 }
 0xde0   :  { %v21194_v57 = vpop.f32.mrb[51].mxu0 }
 0xde1   :  { %v18683_v59 = vadd.f32 %v21192_v55, %v18643_v53 }
 0xde3   :  { %18688 = vst [vmem:[#allocation3] sm:$0x3] %v18683_v59 }
 0xde4   :  { %23352 = shalt.err (!%p23349_p4)
}
 0xde5   :  { %s23353_s27 = scalar_lea.hbm %s28835_s11, 32 }
 0xde6   :  { %p23354_p5 = scmp.ne.s32.totalorder %s28835_s11, %s23353_s27  ;;  %p23357_p6 = scmp.lt.u32.totalorder %s23353_s27, %s28835_s11 }
 0xde8   :  { %p23359_p7 = pnand %p23357_p6, %p23354_p5 }
 0xdea   :  { %23362 = shalt.err (!%p23359_p7)
}
 0xdeb   :  { %18698 = dma.vmem_to_hbm [thread:$0]  %s18696_s25, 32, %s28835_s11, [#allocation4]  }
 0xdec   :  { %23363 = dma.done.wait [#allocation4], 32  }
 0xded   :  { %23364 = vsyncadd [#allocation4], 4294967264 }
 0xdee   :  { %18702 = vsyncpa [#allocation4], 1 }

</bundles_post_ra>
